<compile_context>
chip_gen: v5e
topology: v5e:2x2
jax: 0.10.0
libtpu: 0.0.40
codegen_flags: <defaults>
</compile_context>

<pallas_src>
import functools

import jax
import jax.numpy as jnp
from jax.experimental import pallas as pl
from jax.experimental.pallas import tpu as pltpu

C1 = 16      # conv1 out channels
C2 = 32      # conv2 out channels
K = 5        # conv kernel size
KK1P = 32    # conv1 taps (25) zero-padded to 32 (bf16-packing friendly)


# ------------------------------ Pallas kernel --------------------------------

def _fused_convnet_kernel(p1_ref, w1_ref, b1_ref, w2_ref, b2_ref,
                          wfc_ref, bfc_ref, o_ref, y1s_ref,
                          *, H2, W2, num_classes):
    HW2 = H2 * W2

    # ---- conv1 (stacked-M matmul) + bias + relu + 2x2 maxpool ----------------
    # p1 rows are ordered (a, b, p, q, r, s):
    #   (a, b) = pool1 window offset, (p, q) = parity of the pooled pixel (needed
    #   for pool2 grouping below), (r, s) = coords inside the parity slab.
    P = p1_ref[0]                                             # (16*HW2, 32) bf16
    c1 = jnp.dot(P, w1_ref[...], preferred_element_type=jnp.float32)
    c1 = c1.reshape(4, 4 * HW2, C1)
    y1 = jnp.max(c1, axis=0)                                  # maxpool over 4 offsets
    # relu(pool(conv) + b) == pool(relu(conv + b)): both monotone, bias per-channel.
    y1 = jnp.maximum(y1 + b1_ref[...], 0.0)                   # (4*HW2, C1) f32

    # Park y1 in VMEM as 4 parity slabs with a 1-pixel zero halo (== the 4
    # decimations of the zero-padded y1 image): every conv2 tap below becomes a
    # contiguous slice of this scratch -- the conv2 im2col never exists in HBM.
    y1s_ref[...] = jnp.zeros(y1s_ref.shape, y1s_ref.dtype)
    y1s_ref[:, 1:1 + H2, 1:1 + W2, :] = (
        y1.reshape(4, H2, W2, C1).astype(y1s_ref.dtype))

    # ---- conv2 (25 taps x 4 pool offsets) + bias + relu + 2x2 maxpool --------
    acc = [jnp.zeros((HW2, C2), jnp.float32) for _ in range(4)]
    for kh in range(K):
        for kw in range(K):
            w2t = w2_ref[kh * K + kw]                         # (C1, C2) bf16
            for off in range(4):
                a2, b2 = off // 2, off % 2
                u, v = a2 + kh, b2 + kw
                slab = y1s_ref[(u % 2) * 2 + (v % 2),
                               u // 2:u // 2 + H2,
                               v // 2:v // 2 + W2, :]         # (H2, W2, C1) bf16
                acc[off] = acc[off] + jnp.dot(
                    slab.reshape(HW2, C1), w2t,
                    preferred_element_type=jnp.float32)
    y2 = jnp.maximum(jnp.maximum(acc[0], acc[1]), jnp.maximum(acc[2], acc[3]))
    y2 = jnp.maximum(y2 + b2_ref[...], 0.0)                   # (HW2, C2) f32

    # ---- fc + softmax epilogue (flattened features stay in VMEM) ------------
    y2b = y2.astype(jnp.bfloat16)                             # cast hoisted out of loop
    logits = jnp.zeros((1, num_classes), jnp.float32)
    for hw in range(HW2):                                     # un-padded K=32 dots
        logits = logits + jnp.dot(y2b[hw:hw + 1, :], wfc_ref[hw],
                                  preferred_element_type=jnp.float32)
    logits = logits + bfc_ref[...]

    mx = jnp.max(logits, axis=-1, keepdims=True)
    e = jnp.exp(logits - mx)
    probs = e * pl.reciprocal(jnp.sum(e, axis=-1, keepdims=True), approx=True)
    o_ref[...] = probs.reshape(1, 1, num_classes)


# ------------------------------ wrappers --------------------------------------

def _conv1_pool_patches(x_nchw):
    """conv1 im2col (Cin=1 only) with pool-offset and pool-2 parity folded into the
    row order: rows = (a, b, p, q, r, s), cols = 25 taps zero-padded to 32, bf16."""
    N, _, H, W = x_nchw.shape
    H2, W2 = H // 4, W // 4
    x = x_nchw[:, 0]                                          # (N, H, W)
    xp = jnp.pad(x, ((0, 0), (2, 2), (2, 2)))
    taps = jnp.stack([xp[:, kh:kh + H, kw:kw + W]
                      for kh in range(K) for kw in range(K)], axis=-1)  # (N,H,W,25)
    t = taps.reshape(N, H2, 2, 2, W2, 2, 2, 25)               # (n, r, p, a, s, q, b, k)
    t = t.transpose(0, 3, 6, 2, 5, 1, 4, 7)                   # (n, a, b, p, q, r, s, k)
    t = t.reshape(N, 16 * H2 * W2, 25)
    t = jnp.pad(t, ((0, 0), (0, 0), (0, KK1P - 25)))
    return t.astype(jnp.bfloat16)


def init_params(key, num_classes, H, W):
    H2, W2 = H // 4, W // 4
    ks = jax.random.split(key, 6)
    conv1_w = jax.random.normal(ks[0], (C1, 1, K, K), jnp.float32) * 0.1
    conv1_b = jax.random.normal(ks[1], (C1,), jnp.float32) * 0.1
    conv2_w = jax.random.normal(ks[2], (C2, C1, K, K), jnp.float32) * 0.05
    conv2_b = jax.random.normal(ks[3], (C2,), jnp.float32) * 0.1
    fc_w = jax.random.normal(ks[4], (num_classes, C2 * H2 * W2), jnp.float32) * 0.05
    fc_b = jax.random.normal(ks[5], (num_classes,), jnp.float32) * 0.1

    # conv1: (Cout,1,kh,kw) -> (kh*5+kw, Cout), taps padded 25->32, bf16.
    w1 = conv1_w.transpose(2, 3, 1, 0).reshape(25, C1)
    w1 = jnp.pad(w1, ((0, KK1P - 25), (0, 0))).astype(jnp.bfloat16)
    b1 = conv1_b.reshape(1, C1)

    # conv2: per-tap (Cin, Cout) matrices, un-padded, bf16.
    w2 = conv2_w.transpose(2, 3, 1, 0).reshape(25, C1, C2).astype(jnp.bfloat16)
    b2 = conv2_b.reshape(1, C2)

    # fc: torch flattens (c, h, w); regroup as per-pixel (32 x classes) slabs in the
    # kernel's y2 row order (h2*W2 + w2).  No 128-lane / 128-class zero inflation.
    wfc = fc_w.reshape(num_classes, C2, H2, W2).transpose(2, 3, 1, 0)
    wfc = wfc.reshape(H2 * W2, C2, num_classes).astype(jnp.bfloat16)
    bfc = fc_b.reshape(1, num_classes)
    return dict(w1=w1, b1=b1, w2=w2, b2=b2, wfc=wfc, bfc=bfc)


def conv_neural_net_forward(params, x_nchw, num_classes):
    # conv12 / conv22 / batch1 / batch2 exist in the module but are unused in
    # forward(); Dropout2d is eval-mode identity.
    N, _, H, W = x_nchw.shape
    H2, W2 = H // 4, W // 4
    HW2 = H2 * W2
    p1 = _conv1_pool_patches(x_nchw)                          # (N, 16*HW2, 32) bf16

    kernel = functools.partial(_fused_convnet_kernel, H2=H2, W2=W2,
                               num_classes=num_classes)
    out = pl.pallas_call(
        kernel,
        out_shape=jax.ShapeDtypeStruct((N, 1, num_classes), jnp.float32),
        grid_spec=pltpu.PrefetchScalarGridSpec(
            num_scalar_prefetch=0,
            grid=(N,),                                        # one image per step
            in_specs=[
                pl.BlockSpec((1, 16 * HW2, KK1P), lambda n: (n, 0, 0)),   # p1
                pl.BlockSpec((KK1P, C1), lambda n: (0, 0)),               # w1
                pl.BlockSpec((1, C1), lambda n: (0, 0)),                  # b1
                pl.BlockSpec((25, C1, C2), lambda n: (0, 0, 0)),          # w2
                pl.BlockSpec((1, C2), lambda n: (0, 0)),                  # b2
                pl.BlockSpec((HW2, C2, num_classes), lambda n: (0, 0, 0)),# wfc
                pl.BlockSpec((1, num_classes), lambda n: (0, 0)),         # bfc
            ],
            out_specs=pl.BlockSpec((1, 1, num_classes), lambda n: (n, 0, 0)),
            scratch_shapes=[
                # y1 parity slabs (+1 zero halo), bf16, VMEM-resident across the step
                pltpu.VMEM((4, H2 + 2, W2 + 2, C1), jnp.bfloat16),
            ],
        ),
        compiler_params=pltpu.CompilerParams(
            dimension_semantics=("parallel",),                # shard batch over TCs
            vmem_limit_bytes=32 * 1024 * 1024,                # explicit, v7x-safe
        ),
    )(p1, params["w1"], params["b1"], params["w2"], params["b2"],
      params["wfc"], params["bfc"])
    return out.reshape(N, num_classes)


if __name__ == "__main__":
    key = jax.random.PRNGKey(0)
    kx, kp = jax.random.split(key)
    N, H, W = 2, 16, 16
    num_classes = 10

    x = jax.random.normal(kx, (N, 1, H, W), jnp.float32)
    params = init_params(kp, num_classes, H, W)

    fwd = jax.jit(functools.partial(conv_neural_net_forward,
                                    num_classes=num_classes))
    out = jax.block_until_ready(fwd(params, x))

    assert out.shape == (N, num_classes)
    assert bool(jnp.all(jnp.isfinite(out)))
    # bf16 matmuls + approx reciprocal in the softmax -> loose normalization check
    assert bool(jnp.allclose(jnp.sum(out, axis=-1), 1.0, atol=1e-2))
    print("KERNEL_OK")
</pallas_src>

<mosaic_0001>
module attributes {stable_mosaic.version = 11 : i64} {
  func.func @_fused_convnet_kernel(%arg0: i32, %arg1: memref<1x256x32xbf16, #tpu.memory_space<vmem>>, %arg2: memref<32x16xbf16, #tpu.memory_space<vmem>>, %arg3: memref<1x16xf32, #tpu.memory_space<vmem>>, %arg4: memref<25x16x32xbf16, #tpu.memory_space<vmem>>, %arg5: memref<1x32xf32, #tpu.memory_space<vmem>>, %arg6: memref<16x32x10xbf16, #tpu.memory_space<vmem>>, %arg7: memref<1x10xf32, #tpu.memory_space<vmem>>, %arg8: memref<1x1x10xf32, #tpu.memory_space<vmem>>, %arg9: memref<4x6x6x16xbf16, #tpu.memory_space<vmem>>) attributes {dimension_semantics = [#tpu.dimension_semantics<parallel>], iteration_bounds = array<i64: 2>, scalar_prefetch = 0 : i64, scratch_operands = 1 : i64, tpu.core_type = #tpu.core_type<tc>, window_params = [{transform_indices = @transform_0, window_bounds = array<i64: 1, 256, 32>}, {pipeline_mode = #tpu.pipeline_mode<synchronous>, transform_indices = @transform_1, window_bounds = array<i64: 32, 16>}, {pipeline_mode = #tpu.pipeline_mode<synchronous>, transform_indices = @transform_2, window_bounds = array<i64: 1, 16>}, {pipeline_mode = #tpu.pipeline_mode<synchronous>, transform_indices = @transform_3, window_bounds = array<i64: 25, 16, 32>}, {pipeline_mode = #tpu.pipeline_mode<synchronous>, transform_indices = @transform_4, window_bounds = array<i64: 1, 32>}, {pipeline_mode = #tpu.pipeline_mode<synchronous>, transform_indices = @transform_5, window_bounds = array<i64: 16, 32, 10>}, {pipeline_mode = #tpu.pipeline_mode<synchronous>, transform_indices = @transform_6, window_bounds = array<i64: 1, 10>}, {transform_indices = @transform_7, window_bounds = array<i64: 1, 1, 10>}]} {
    %c0 = arith.constant 0 : index
    %c0_0 = arith.constant 0 : index
    %c0_1 = arith.constant 0 : index
    %0 = vector.load %arg1[%c0, %c0_0, %c0_1] : memref<1x256x32xbf16, #tpu.memory_space<vmem>>, vector<1x256x32xbf16>
    %1 = vector.shape_cast %0 : vector<1x256x32xbf16> to vector<256x32xbf16>
    %c0_2 = arith.constant 0 : index
    %c0_3 = arith.constant 0 : index
    %2 = vector.load %arg2[%c0_2, %c0_3] : memref<32x16xbf16, #tpu.memory_space<vmem>>, vector<32x16xbf16>
    %cst = arith.constant dense<0.000000e+00> : vector<256x16xf32>
    %3 = tpu.matmul %1, %2, %cst {dimension_numbers = #tpu.dot_dimension_numbers<[1], [0], [0], [1], [0, 0, 1, 1], [], []>} : vector<256x32xbf16>, vector<32x16xbf16>, vector<256x16xf32> -> vector<256x16xf32>
    %4 = vector.shape_cast %3 : vector<256x16xf32> to vector<4x64x16xf32>
    %cst_4 = arith.constant dense<0xFF800000> : vector<64x16xf32>
    %5 = vector.multi_reduction <maximumf>, %4, %cst_4 [0] : vector<4x64x16xf32> to vector<64x16xf32>
    %c0_5 = arith.constant 0 : index
    %c0_6 = arith.constant 0 : index
    %6 = vector.load %arg3[%c0_5, %c0_6] : memref<1x16xf32, #tpu.memory_space<vmem>>, vector<1x16xf32>
    %7 = vector.broadcast %6 : vector<1x16xf32> to vector<64x16xf32>
    %8 = arith.addf %5, %7 : vector<64x16xf32>
    %cst_7 = arith.constant 0.000000e+00 : f32
    %9 = vector.broadcast %cst_7 : f32 to vector<64x16xf32>
    %10 = arith.maximumf %8, %9 : vector<64x16xf32>
    %cst_8 = arith.constant 0.000000e+00 : bf16
    %11 = vector.broadcast %cst_8 : bf16 to vector<4x6x6x16xbf16>
    %c0_9 = arith.constant 0 : index
    %c0_10 = arith.constant 0 : index
    %c0_11 = arith.constant 0 : index
    %c0_12 = arith.constant 0 : index
    %12 = vector.load %arg9[%c0_9, %c0_10, %c0_11, %c0_12] : memref<4x6x6x16xbf16, #tpu.memory_space<vmem>>, vector<4x6x6x16xbf16>
    tpu.vector_store %arg9[%c0_9, %c0_10, %c0_11, %c0_12], %11 {strides = array<i32>} : memref<4x6x6x16xbf16, #tpu.memory_space<vmem>>, vector<4x6x6x16xbf16>,
    %13 = vector.shape_cast %10 : vector<64x16xf32> to vector<4x4x4x16xf32>
    %14 = arith.truncf %13 : vector<4x4x4x16xf32> to vector<4x4x4x16xbf16>
    %c0_13 = arith.constant 0 : index
    %c1 = arith.constant 1 : index
    %c1_14 = arith.constant 1 : index
    %c0_15 = arith.constant 0 : index
    %15 = vector.load %arg9[%c0_13, %c1, %c1_14, %c0_15] : memref<4x6x6x16xbf16, #tpu.memory_space<vmem>>, vector<4x4x4x16xbf16>
    tpu.vector_store %arg9[%c0_13, %c1, %c1_14, %c0_15], %14 {strides = array<i32>} : memref<4x6x6x16xbf16, #tpu.memory_space<vmem>>, vector<4x4x4x16xbf16>,
    %cst_16 = arith.constant 0.000000e+00 : f32
    %16 = vector.broadcast %cst_16 : f32 to vector<16x32xf32>
    %cst_17 = arith.constant 0.000000e+00 : f32
    %17 = vector.broadcast %cst_17 : f32 to vector<16x32xf32>
    %cst_18 = arith.constant 0.000000e+00 : f32
    %18 = vector.broadcast %cst_18 : f32 to vector<16x32xf32>
    %cst_19 = arith.constant 0.000000e+00 : f32
    %19 = vector.broadcast %cst_19 : f32 to vector<16x32xf32>
    %c0_20 = arith.constant 0 : index
    %c0_21 = arith.constant 0 : index
    %c0_22 = arith.constant 0 : index
    %20 = vector.load %arg4[%c0_20, %c0_21, %c0_22] : memref<25x16x32xbf16, #tpu.memory_space<vmem>>, vector<1x16x32xbf16>
    %21 = vector.shape_cast %20 : vector<1x16x32xbf16> to vector<16x32xbf16>
    %c0_23 = arith.constant 0 : index
    %c0_24 = arith.constant 0 : index
    %c0_25 = arith.constant 0 : index
    %c0_26 = arith.constant 0 : index
    %22 = vector.load %arg9[%c0_23, %c0_24, %c0_25, %c0_26] : memref<4x6x6x16xbf16, #tpu.memory_space<vmem>>, vector<1x4x4x16xbf16>
    %23 = vector.shape_cast %22 : vector<1x4x4x16xbf16> to vector<4x4x16xbf16>
    %24 = vector.shape_cast %23 : vector<4x4x16xbf16> to vector<16x16xbf16>
    %cst_27 = arith.constant dense<0.000000e+00> : vector<16x32xf32>
    %25 = tpu.matmul %24, %21, %cst_27 {dimension_numbers = #tpu.dot_dimension_numbers<[1], [0], [0], [1], [0, 0, 1, 1], [], []>} : vector<16x16xbf16>, vector<16x32xbf16>, vector<16x32xf32> -> vector<16x32xf32>
    %26 = arith.addf %16, %25 : vector<16x32xf32>
    %c1_28 = arith.constant 1 : index
    %c0_29 = arith.constant 0 : index
    %c0_30 = arith.constant 0 : index
    %c0_31 = arith.constant 0 : index
    %27 = vector.load %arg9[%c1_28, %c0_29, %c0_30, %c0_31] : memref<4x6x6x16xbf16, #tpu.memory_space<vmem>>, vector<1x4x4x16xbf16>
    %28 = vector.shape_cast %27 : vector<1x4x4x16xbf16> to vector<4x4x16xbf16>
    %29 = vector.shape_cast %28 : vector<4x4x16xbf16> to vector<16x16xbf16>
    %cst_32 = arith.constant dense<0.000000e+00> : vector<16x32xf32>
    %30 = tpu.matmul %29, %21, %cst_32 {dimension_numbers = #tpu.dot_dimension_numbers<[1], [0], [0], [1], [0, 0, 1, 1], [], []>} : vector<16x16xbf16>, vector<16x32xbf16>, vector<16x32xf32> -> vector<16x32xf32>
    %31 = arith.addf %17, %30 : vector<16x32xf32>
    %c2 = arith.constant 2 : index
    %c0_33 = arith.constant 0 : index
    %c0_34 = arith.constant 0 : index
    %c0_35 = arith.constant 0 : index
    %32 = vector.load %arg9[%c2, %c0_33, %c0_34, %c0_35] : memref<4x6x6x16xbf16, #tpu.memory_space<vmem>>, vector<1x4x4x16xbf16>
    %33 = vector.shape_cast %32 : vector<1x4x4x16xbf16> to vector<4x4x16xbf16>
    %34 = vector.shape_cast %33 : vector<4x4x16xbf16> to vector<16x16xbf16>
    %cst_36 = arith.constant dense<0.000000e+00> : vector<16x32xf32>
    %35 = tpu.matmul %34, %21, %cst_36 {dimension_numbers = #tpu.dot_dimension_numbers<[1], [0], [0], [1], [0, 0, 1, 1], [], []>} : vector<16x16xbf16>, vector<16x32xbf16>, vector<16x32xf32> -> vector<16x32xf32>
    %36 = arith.addf %18, %35 : vector<16x32xf32>
    %c3 = arith.constant 3 : index
    %c0_37 = arith.constant 0 : index
    %c0_38 = arith.constant 0 : index
    %c0_39 = arith.constant 0 : index
    %37 = vector.load %arg9[%c3, %c0_37, %c0_38, %c0_39] : memref<4x6x6x16xbf16, #tpu.memory_space<vmem>>, vector<1x4x4x16xbf16>
    %38 = vector.shape_cast %37 : vector<1x4x4x16xbf16> to vector<4x4x16xbf16>
    %39 = vector.shape_cast %38 : vector<4x4x16xbf16> to vector<16x16xbf16>
    %cst_40 = arith.constant dense<0.000000e+00> : vector<16x32xf32>
    %40 = tpu.matmul %39, %21, %cst_40 {dimension_numbers = #tpu.dot_dimension_numbers<[1], [0], [0], [1], [0, 0, 1, 1], [], []>} : vector<16x16xbf16>, vector<16x32xbf16>, vector<16x32xf32> -> vector<16x32xf32>
    %41 = arith.addf %19, %40 : vector<16x32xf32>
    %c1_41 = arith.constant 1 : index
    %c0_42 = arith.constant 0 : index
    %c0_43 = arith.constant 0 : index
    %42 = vector.load %arg4[%c1_41, %c0_42, %c0_43] : memref<25x16x32xbf16, #tpu.memory_space<vmem>>, vector<1x16x32xbf16>
    %43 = vector.shape_cast %42 : vector<1x16x32xbf16> to vector<16x32xbf16>
    %c1_44 = arith.constant 1 : index
    %c0_45 = arith.constant 0 : index
    %c0_46 = arith.constant 0 : index
    %c0_47 = arith.constant 0 : index
    %44 = vector.load %arg9[%c1_44, %c0_45, %c0_46, %c0_47] : memref<4x6x6x16xbf16, #tpu.memory_space<vmem>>, vector<1x4x4x16xbf16>
    %45 = vector.shape_cast %44 : vector<1x4x4x16xbf16> to vector<4x4x16xbf16>
    %46 = vector.shape_cast %45 : vector<4x4x16xbf16> to vector<16x16xbf16>
    %cst_48 = arith.constant dense<0.000000e+00> : vector<16x32xf32>
    %47 = tpu.matmul %46, %43, %cst_48 {dimension_numbers = #tpu.dot_dimension_numbers<[1], [0], [0], [1], [0, 0, 1, 1], [], []>} : vector<16x16xbf16>, vector<16x32xbf16>, vector<16x32xf32> -> vector<16x32xf32>
    %48 = arith.addf %26, %47 : vector<16x32xf32>
    %c0_49 = arith.constant 0 : index
    %c0_50 = arith.constant 0 : index
    %c1_51 = arith.constant 1 : index
    %c0_52 = arith.constant 0 : index
    %49 = vector.load %arg9[%c0_49, %c0_50, %c1_51, %c0_52] : memref<4x6x6x16xbf16, #tpu.memory_space<vmem>>, vector<1x4x4x16xbf16>
    %50 = vector.shape_cast %49 : vector<1x4x4x16xbf16> to vector<4x4x16xbf16>
    %51 = vector.shape_cast %50 : vector<4x4x16xbf16> to vector<16x16xbf16>
    %cst_53 = arith.constant dense<0.000000e+00> : vector<16x32xf32>
    %52 = tpu.matmul %51, %43, %cst_53 {dimension_numbers = #tpu.dot_dimension_numbers<[1], [0], [0], [1], [0, 0, 1, 1], [], []>} : vector<16x16xbf16>, vector<16x32xbf16>, vector<16x32xf32> -> vector<16x32xf32>
    %53 = arith.addf %31, %52 : vector<16x32xf32>
    %c3_54 = arith.constant 3 : index
    %c0_55 = arith.constant 0 : index
    %c0_56 = arith.constant 0 : index
    %c0_57 = arith.constant 0 : index
    %54 = vector.load %arg9[%c3_54, %c0_55, %c0_56, %c0_57] : memref<4x6x6x16xbf16, #tpu.memory_space<vmem>>, vector<1x4x4x16xbf16>
    %55 = vector.shape_cast %54 : vector<1x4x4x16xbf16> to vector<4x4x16xbf16>
    %56 = vector.shape_cast %55 : vector<4x4x16xbf16> to vector<16x16xbf16>
    %cst_58 = arith.constant dense<0.000000e+00> : vector<16x32xf32>
    %57 = tpu.matmul %56, %43, %cst_58 {dimension_numbers = #tpu.dot_dimension_numbers<[1], [0], [0], [1], [0, 0, 1, 1], [], []>} : vector<16x16xbf16>, vector<16x32xbf16>, vector<16x32xf32> -> vector<16x32xf32>
    %58 = arith.addf %36, %57 : vector<16x32xf32>
    %c2_59 = arith.constant 2 : index
    %c0_60 = arith.constant 0 : index
    %c1_61 = arith.constant 1 : index
    %c0_62 = arith.constant 0 : index
    %59 = vector.load %arg9[%c2_59, %c0_60, %c1_61, %c0_62] : memref<4x6x6x16xbf16, #tpu.memory_space<vmem>>, vector<1x4x4x16xbf16>
    %60 = vector.shape_cast %59 : vector<1x4x4x16xbf16> to vector<4x4x16xbf16>
    %61 = vector.shape_cast %60 : vector<4x4x16xbf16> to vector<16x16xbf16>
    %cst_63 = arith.constant dense<0.000000e+00> : vector<16x32xf32>
    %62 = tpu.matmul %61, %43, %cst_63 {dimension_numbers = #tpu.dot_dimension_numbers<[1], [0], [0], [1], [0, 0, 1, 1], [], []>} : vector<16x16xbf16>, vector<16x32xbf16>, vector<16x32xf32> -> vector<16x32xf32>
    %63 = arith.addf %41, %62 : vector<16x32xf32>
    %c2_64 = arith.constant 2 : index
    %c0_65 = arith.constant 0 : index
    %c0_66 = arith.constant 0 : index
    %64 = vector.load %arg4[%c2_64, %c0_65, %c0_66] : memref<25x16x32xbf16, #tpu.memory_space<vmem>>, vector<1x16x32xbf16>
    %65 = vector.shape_cast %64 : vector<1x16x32xbf16> to vector<16x32xbf16>
    %c0_67 = arith.constant 0 : index
    %c0_68 = arith.constant 0 : index
    %c1_69 = arith.constant 1 : index
    %c0_70 = arith.constant 0 : index
    %66 = vector.load %arg9[%c0_67, %c0_68, %c1_69, %c0_70] : memref<4x6x6x16xbf16, #tpu.memory_space<vmem>>, vector<1x4x4x16xbf16>
    %67 = vector.shape_cast %66 : vector<1x4x4x16xbf16> to vector<4x4x16xbf16>
    %68 = vector.shape_cast %67 : vector<4x4x16xbf16> to vector<16x16xbf16>
    %cst_71 = arith.constant dense<0.000000e+00> : vector<16x32xf32>
    %69 = tpu.matmul %68, %65, %cst_71 {dimension_numbers = #tpu.dot_dimension_numbers<[1], [0], [0], [1], [0, 0, 1, 1], [], []>} : vector<16x16xbf16>, vector<16x32xbf16>, vector<16x32xf32> -> vector<16x32xf32>
    %70 = arith.addf %48, %69 : vector<16x32xf32>
    %c1_72 = arith.constant 1 : index
    %c0_73 = arith.constant 0 : index
    %c1_74 = arith.constant 1 : index
    %c0_75 = arith.constant 0 : index
    %71 = vector.load %arg9[%c1_72, %c0_73, %c1_74, %c0_75] : memref<4x6x6x16xbf16, #tpu.memory_space<vmem>>, vector<1x4x4x16xbf16>
    %72 = vector.shape_cast %71 : vector<1x4x4x16xbf16> to vector<4x4x16xbf16>
    %73 = vector.shape_cast %72 : vector<4x4x16xbf16> to vector<16x16xbf16>
    %cst_76 = arith.constant dense<0.000000e+00> : vector<16x32xf32>
    %74 = tpu.matmul %73, %65, %cst_76 {dimension_numbers = #tpu.dot_dimension_numbers<[1], [0], [0], [1], [0, 0, 1, 1], [], []>} : vector<16x16xbf16>, vector<16x32xbf16>, vector<16x32xf32> -> vector<16x32xf32>
    %75 = arith.addf %53, %74 : vector<16x32xf32>
    %c2_77 = arith.constant 2 : index
    %c0_78 = arith.constant 0 : index
    %c1_79 = arith.constant 1 : index
    %c0_80 = arith.constant 0 : index
    %76 = vector.load %arg9[%c2_77, %c0_78, %c1_79, %c0_80] : memref<4x6x6x16xbf16, #tpu.memory_space<vmem>>, vector<1x4x4x16xbf16>
    %77 = vector.shape_cast %76 : vector<1x4x4x16xbf16> to vector<4x4x16xbf16>
    %78 = vector.shape_cast %77 : vector<4x4x16xbf16> to vector<16x16xbf16>
    %cst_81 = arith.constant dense<0.000000e+00> : vector<16x32xf32>
    %79 = tpu.matmul %78, %65, %cst_81 {dimension_numbers = #tpu.dot_dimension_numbers<[1], [0], [0], [1], [0, 0, 1, 1], [], []>} : vector<16x16xbf16>, vector<16x32xbf16>, vector<16x32xf32> -> vector<16x32xf32>
    %80 = arith.addf %58, %79 : vector<16x32xf32>
    %c3_82 = arith.constant 3 : index
    %c0_83 = arith.constant 0 : index
    %c1_84 = arith.constant 1 : index
    %c0_85 = arith.constant 0 : index
    %81 = vector.load %arg9[%c3_82, %c0_83, %c1_84, %c0_85] : memref<4x6x6x16xbf16, #tpu.memory_space<vmem>>, vector<1x4x4x16xbf16>
    %82 = vector.shape_cast %81 : vector<1x4x4x16xbf16> to vector<4x4x16xbf16>
    %83 = vector.shape_cast %82 : vector<4x4x16xbf16> to vector<16x16xbf16>
    %cst_86 = arith.constant dense<0.000000e+00> : vector<16x32xf32>
    %84 = tpu.matmul %83, %65, %cst_86 {dimension_numbers = #tpu.dot_dimension_numbers<[1], [0], [0], [1], [0, 0, 1, 1], [], []>} : vector<16x16xbf16>, vector<16x32xbf16>, vector<16x32xf32> -> vector<16x32xf32>
    %85 = arith.addf %63, %84 : vector<16x32xf32>
    %c3_87 = arith.constant 3 : index
    %c0_88 = arith.constant 0 : index
    %c0_89 = arith.constant 0 : index
    %86 = vector.load %arg4[%c3_87, %c0_88, %c0_89] : memref<25x16x32xbf16, #tpu.memory_space<vmem>>, vector<1x16x32xbf16>
    %87 = vector.shape_cast %86 : vector<1x16x32xbf16> to vector<16x32xbf16>
    %c1_90 = arith.constant 1 : index
    %c0_91 = arith.constant 0 : index
    %c1_92 = arith.constant 1 : index
    %c0_93 = arith.constant 0 : index
    %88 = vector.load %arg9[%c1_90, %c0_91, %c1_92, %c0_93] : memref<4x6x6x16xbf16, #tpu.memory_space<vmem>>, vector<1x4x4x16xbf16>
    %89 = vector.shape_cast %88 : vector<1x4x4x16xbf16> to vector<4x4x16xbf16>
    %90 = vector.shape_cast %89 : vector<4x4x16xbf16> to vector<16x16xbf16>
    %cst_94 = arith.constant dense<0.000000e+00> : vector<16x32xf32>
    %91 = tpu.matmul %90, %87, %cst_94 {dimension_numbers = #tpu.dot_dimension_numbers<[1], [0], [0], [1], [0, 0, 1, 1], [], []>} : vector<16x16xbf16>, vector<16x32xbf16>, vector<16x32xf32> -> vector<16x32xf32>
    %92 = arith.addf %70, %91 : vector<16x32xf32>
    %c0_95 = arith.constant 0 : index
    %c0_96 = arith.constant 0 : index
    %c2_97 = arith.constant 2 : index
    %c0_98 = arith.constant 0 : index
    %93 = vector.load %arg9[%c0_95, %c0_96, %c2_97, %c0_98] : memref<4x6x6x16xbf16, #tpu.memory_space<vmem>>, vector<1x4x4x16xbf16>
    %94 = vector.shape_cast %93 : vector<1x4x4x16xbf16> to vector<4x4x16xbf16>
    %95 = vector.shape_cast %94 : vector<4x4x16xbf16> to vector<16x16xbf16>
    %cst_99 = arith.constant dense<0.000000e+00> : vector<16x32xf32>
    %96 = tpu.matmul %95, %87, %cst_99 {dimension_numbers = #tpu.dot_dimension_numbers<[1], [0], [0], [1], [0, 0, 1, 1], [], []>} : vector<16x16xbf16>, vector<16x32xbf16>, vector<16x32xf32> -> vector<16x32xf32>
    %97 = arith.addf %75, %96 : vector<16x32xf32>
    %c3_100 = arith.constant 3 : index
    %c0_101 = arith.constant 0 : index
    %c1_102 = arith.constant 1 : index
    %c0_103 = arith.constant 0 : index
    %98 = vector.load %arg9[%c3_100, %c0_101, %c1_102, %c0_103] : memref<4x6x6x16xbf16, #tpu.memory_space<vmem>>, vector<1x4x4x16xbf16>
    %99 = vector.shape_cast %98 : vector<1x4x4x16xbf16> to vector<4x4x16xbf16>
    %100 = vector.shape_cast %99 : vector<4x4x16xbf16> to vector<16x16xbf16>
    %cst_104 = arith.constant dense<0.000000e+00> : vector<16x32xf32>
    %101 = tpu.matmul %100, %87, %cst_104 {dimension_numbers = #tpu.dot_dimension_numbers<[1], [0], [0], [1], [0, 0, 1, 1], [], []>} : vector<16x16xbf16>, vector<16x32xbf16>, vector<16x32xf32> -> vector<16x32xf32>
    %102 = arith.addf %80, %101 : vector<16x32xf32>
    %c2_105 = arith.constant 2 : index
    %c0_106 = arith.constant 0 : index
    %c2_107 = arith.constant 2 : index
    %c0_108 = arith.constant 0 : index
    %103 = vector.load %arg9[%c2_105, %c0_106, %c2_107, %c0_108] : memref<4x6x6x16xbf16, #tpu.memory_space<vmem>>, vector<1x4x4x16xbf16>
    %104 = vector.shape_cast %103 : vector<1x4x4x16xbf16> to vector<4x4x16xbf16>
    %105 = vector.shape_cast %104 : vector<4x4x16xbf16> to vector<16x16xbf16>
    %cst_109 = arith.constant dense<0.000000e+00> : vector<16x32xf32>
    %106 = tpu.matmul %105, %87, %cst_109 {dimension_numbers = #tpu.dot_dimension_numbers<[1], [0], [0], [1], [0, 0, 1, 1], [], []>} : vector<16x16xbf16>, vector<16x32xbf16>, vector<16x32xf32> -> vector<16x32xf32>
    %107 = arith.addf %85, %106 : vector<16x32xf32>
    %c4 = arith.constant 4 : index
    %c0_110 = arith.constant 0 : index
    %c0_111 = arith.constant 0 : index
    %108 = vector.load %arg4[%c4, %c0_110, %c0_111] : memref<25x16x32xbf16, #tpu.memory_space<vmem>>, vector<1x16x32xbf16>
    %109 = vector.shape_cast %108 : vector<1x16x32xbf16> to vector<16x32xbf16>
    %c0_112 = arith.constant 0 : index
    %c0_113 = arith.constant 0 : index
    %c2_114 = arith.constant 2 : index
    %c0_115 = arith.constant 0 : index
    %110 = vector.load %arg9[%c0_112, %c0_113, %c2_114, %c0_115] : memref<4x6x6x16xbf16, #tpu.memory_space<vmem>>, vector<1x4x4x16xbf16>
    %111 = vector.shape_cast %110 : vector<1x4x4x16xbf16> to vector<4x4x16xbf16>
    %112 = vector.shape_cast %111 : vector<4x4x16xbf16> to vector<16x16xbf16>
    %cst_116 = arith.constant dense<0.000000e+00> : vector<16x32xf32>
    %113 = tpu.matmul %112, %109, %cst_116 {dimension_numbers = #tpu.dot_dimension_numbers<[1], [0], [0], [1], [0, 0, 1, 1], [], []>} : vector<16x16xbf16>, vector<16x32xbf16>, vector<16x32xf32> -> vector<16x32xf32>
    %114 = arith.addf %92, %113 : vector<16x32xf32>
    %c1_117 = arith.constant 1 : index
    %c0_118 = arith.constant 0 : index
    %c2_119 = arith.constant 2 : index
    %c0_120 = arith.constant 0 : index
    %115 = vector.load %arg9[%c1_117, %c0_118, %c2_119, %c0_120] : memref<4x6x6x16xbf16, #tpu.memory_space<vmem>>, vector<1x4x4x16xbf16>
    %116 = vector.shape_cast %115 : vector<1x4x4x16xbf16> to vector<4x4x16xbf16>
    %117 = vector.shape_cast %116 : vector<4x4x16xbf16> to vector<16x16xbf16>
    %cst_121 = arith.constant dense<0.000000e+00> : vector<16x32xf32>
    %118 = tpu.matmul %117, %109, %cst_121 {dimension_numbers = #tpu.dot_dimension_numbers<[1], [0], [0], [1], [0, 0, 1, 1], [], []>} : vector<16x16xbf16>, vector<16x32xbf16>, vector<16x32xf32> -> vector<16x32xf32>
    %119 = arith.addf %97, %118 : vector<16x32xf32>
    %c2_122 = arith.constant 2 : index
    %c0_123 = arith.constant 0 : index
    %c2_124 = arith.constant 2 : index
    %c0_125 = arith.constant 0 : index
    %120 = vector.load %arg9[%c2_122, %c0_123, %c2_124, %c0_125] : memref<4x6x6x16xbf16, #tpu.memory_space<vmem>>, vector<1x4x4x16xbf16>
    %121 = vector.shape_cast %120 : vector<1x4x4x16xbf16> to vector<4x4x16xbf16>
    %122 = vector.shape_cast %121 : vector<4x4x16xbf16> to vector<16x16xbf16>
    %cst_126 = arith.constant dense<0.000000e+00> : vector<16x32xf32>
    %123 = tpu.matmul %122, %109, %cst_126 {dimension_numbers = #tpu.dot_dimension_numbers<[1], [0], [0], [1], [0, 0, 1, 1], [], []>} : vector<16x16xbf16>, vector<16x32xbf16>, vector<16x32xf32> -> vector<16x32xf32>
    %124 = arith.addf %102, %123 : vector<16x32xf32>
    %c3_127 = arith.constant 3 : index
    %c0_128 = arith.constant 0 : index
    %c2_129 = arith.constant 2 : index
    %c0_130 = arith.constant 0 : index
    %125 = vector.load %arg9[%c3_127, %c0_128, %c2_129, %c0_130] : memref<4x6x6x16xbf16, #tpu.memory_space<vmem>>, vector<1x4x4x16xbf16>
    %126 = vector.shape_cast %125 : vector<1x4x4x16xbf16> to vector<4x4x16xbf16>
    %127 = vector.shape_cast %126 : vector<4x4x16xbf16> to vector<16x16xbf16>
    %cst_131 = arith.constant dense<0.000000e+00> : vector<16x32xf32>
    %128 = tpu.matmul %127, %109, %cst_131 {dimension_numbers = #tpu.dot_dimension_numbers<[1], [0], [0], [1], [0, 0, 1, 1], [], []>} : vector<16x16xbf16>, vector<16x32xbf16>, vector<16x32xf32> -> vector<16x32xf32>
    %129 = arith.addf %107, %128 : vector<16x32xf32>
    %c5 = arith.constant 5 : index
    %c0_132 = arith.constant 0 : index
    %c0_133 = arith.constant 0 : index
    %130 = vector.load %arg4[%c5, %c0_132, %c0_133] : memref<25x16x32xbf16, #tpu.memory_space<vmem>>, vector<1x16x32xbf16>
    %131 = vector.shape_cast %130 : vector<1x16x32xbf16> to vector<16x32xbf16>
    %c2_134 = arith.constant 2 : index
    %c0_135 = arith.constant 0 : index
    %c0_136 = arith.constant 0 : index
    %c0_137 = arith.constant 0 : index
    %132 = vector.load %arg9[%c2_134, %c0_135, %c0_136, %c0_137] : memref<4x6x6x16xbf16, #tpu.memory_space<vmem>>, vector<1x4x4x16xbf16>
    %133 = vector.shape_cast %132 : vector<1x4x4x16xbf16> to vector<4x4x16xbf16>
    %134 = vector.shape_cast %133 : vector<4x4x16xbf16> to vector<16x16xbf16>
    %cst_138 = arith.constant dense<0.000000e+00> : vector<16x32xf32>
    %135 = tpu.matmul %134, %131, %cst_138 {dimension_numbers = #tpu.dot_dimension_numbers<[1], [0], [0], [1], [0, 0, 1, 1], [], []>} : vector<16x16xbf16>, vector<16x32xbf16>, vector<16x32xf32> -> vector<16x32xf32>
    %136 = arith.addf %114, %135 : vector<16x32xf32>
    %c3_139 = arith.constant 3 : index
    %c0_140 = arith.constant 0 : index
    %c0_141 = arith.constant 0 : index
    %c0_142 = arith.constant 0 : index
    %137 = vector.load %arg9[%c3_139, %c0_140, %c0_141, %c0_142] : memref<4x6x6x16xbf16, #tpu.memory_space<vmem>>, vector<1x4x4x16xbf16>
    %138 = vector.shape_cast %137 : vector<1x4x4x16xbf16> to vector<4x4x16xbf16>
    %139 = vector.shape_cast %138 : vector<4x4x16xbf16> to vector<16x16xbf16>
    %cst_143 = arith.constant dense<0.000000e+00> : vector<16x32xf32>
    %140 = tpu.matmul %139, %131, %cst_143 {dimension_numbers = #tpu.dot_dimension_numbers<[1], [0], [0], [1], [0, 0, 1, 1], [], []>} : vector<16x16xbf16>, vector<16x32xbf16>, vector<16x32xf32> -> vector<16x32xf32>
    %141 = arith.addf %119, %140 : vector<16x32xf32>
    %c0_144 = arith.constant 0 : index
    %c1_145 = arith.constant 1 : index
    %c0_146 = arith.constant 0 : index
    %c0_147 = arith.constant 0 : index
    %142 = vector.load %arg9[%c0_144, %c1_145, %c0_146, %c0_147] : memref<4x6x6x16xbf16, #tpu.memory_space<vmem>>, vector<1x4x4x16xbf16>
    %143 = vector.shape_cast %142 : vector<1x4x4x16xbf16> to vector<4x4x16xbf16>
    %144 = vector.shape_cast %143 : vector<4x4x16xbf16> to vector<16x16xbf16>
    %cst_148 = arith.constant dense<0.000000e+00> : vector<16x32xf32>
    %145 = tpu.matmul %144, %131, %cst_148 {dimension_numbers = #tpu.dot_dimension_numbers<[1], [0], [0], [1], [0, 0, 1, 1], [], []>} : vector<16x16xbf16>, vector<16x32xbf16>, vector<16x32xf32> -> vector<16x32xf32>
    %146 = arith.addf %124, %145 : vector<16x32xf32>
    %c1_149 = arith.constant 1 : index
    %c1_150 = arith.constant 1 : index
    %c0_151 = arith.constant 0 : index
    %c0_152 = arith.constant 0 : index
    %147 = vector.load %arg9[%c1_149, %c1_150, %c0_151, %c0_152] : memref<4x6x6x16xbf16, #tpu.memory_space<vmem>>, vector<1x4x4x16xbf16>
    %148 = vector.shape_cast %147 : vector<1x4x4x16xbf16> to vector<4x4x16xbf16>
    %149 = vector.shape_cast %148 : vector<4x4x16xbf16> to vector<16x16xbf16>
    %cst_153 = arith.constant dense<0.000000e+00> : vector<16x32xf32>
    %150 = tpu.matmul %149, %131, %cst_153 {dimension_numbers = #tpu.dot_dimension_numbers<[1], [0], [0], [1], [0, 0, 1, 1], [], []>} : vector<16x16xbf16>, vector<16x32xbf16>, vector<16x32xf32> -> vector<16x32xf32>
    %151 = arith.addf %129, %150 : vector<16x32xf32>
    %c6 = arith.constant 6 : index
    %c0_154 = arith.constant 0 : index
    %c0_155 = arith.constant 0 : index
    %152 = vector.load %arg4[%c6, %c0_154, %c0_155] : memref<25x16x32xbf16, #tpu.memory_space<vmem>>, vector<1x16x32xbf16>
    %153 = vector.shape_cast %152 : vector<1x16x32xbf16> to vector<16x32xbf16>
    %c3_156 = arith.constant 3 : index
    %c0_157 = arith.constant 0 : index
    %c0_158 = arith.constant 0 : index
    %c0_159 = arith.constant 0 : index
    %154 = vector.load %arg9[%c3_156, %c0_157, %c0_158, %c0_159] : memref<4x6x6x16xbf16, #tpu.memory_space<vmem>>, vector<1x4x4x16xbf16>
    %155 = vector.shape_cast %154 : vector<1x4x4x16xbf16> to vector<4x4x16xbf16>
    %156 = vector.shape_cast %155 : vector<4x4x16xbf16> to vector<16x16xbf16>
    %cst_160 = arith.constant dense<0.000000e+00> : vector<16x32xf32>
    %157 = tpu.matmul %156, %153, %cst_160 {dimension_numbers = #tpu.dot_dimension_numbers<[1], [0], [0], [1], [0, 0, 1, 1], [], []>} : vector<16x16xbf16>, vector<16x32xbf16>, vector<16x32xf32> -> vector<16x32xf32>
    %158 = arith.addf %136, %157 : vector<16x32xf32>
    %c2_161 = arith.constant 2 : index
    %c0_162 = arith.constant 0 : index
    %c1_163 = arith.constant 1 : index
    %c0_164 = arith.constant 0 : index
    %159 = vector.load %arg9[%c2_161, %c0_162, %c1_163, %c0_164] : memref<4x6x6x16xbf16, #tpu.memory_space<vmem>>, vector<1x4x4x16xbf16>
    %160 = vector.shape_cast %159 : vector<1x4x4x16xbf16> to vector<4x4x16xbf16>
    %161 = vector.shape_cast %160 : vector<4x4x16xbf16> to vector<16x16xbf16>
    %cst_165 = arith.constant dense<0.000000e+00> : vector<16x32xf32>
    %162 = tpu.matmul %161, %153, %cst_165 {dimension_numbers = #tpu.dot_dimension_numbers<[1], [0], [0], [1], [0, 0, 1, 1], [], []>} : vector<16x16xbf16>, vector<16x32xbf16>, vector<16x32xf32> -> vector<16x32xf32>
    %163 = arith.addf %141, %162 : vector<16x32xf32>
    %c1_166 = arith.constant 1 : index
    %c1_167 = arith.constant 1 : index
    %c0_168 = arith.constant 0 : index
    %c0_169 = arith.constant 0 : index
    %164 = vector.load %arg9[%c1_166, %c1_167, %c0_168, %c0_169] : memref<4x6x6x16xbf16, #tpu.memory_space<vmem>>, vector<1x4x4x16xbf16>
    %165 = vector.shape_cast %164 : vector<1x4x4x16xbf16> to vector<4x4x16xbf16>
    %166 = vector.shape_cast %165 : vector<4x4x16xbf16> to vector<16x16xbf16>
    %cst_170 = arith.constant dense<0.000000e+00> : vector<16x32xf32>
    %167 = tpu.matmul %166, %153, %cst_170 {dimension_numbers = #tpu.dot_dimension_numbers<[1], [0], [0], [1], [0, 0, 1, 1], [], []>} : vector<16x16xbf16>, vector<16x32xbf16>, vector<16x32xf32> -> vector<16x32xf32>
    %168 = arith.addf %146, %167 : vector<16x32xf32>
    %c0_171 = arith.constant 0 : index
    %c1_172 = arith.constant 1 : index
    %c1_173 = arith.constant 1 : index
    %c0_174 = arith.constant 0 : index
    %169 = vector.load %arg9[%c0_171, %c1_172, %c1_173, %c0_174] : memref<4x6x6x16xbf16, #tpu.memory_space<vmem>>, vector<1x4x4x16xbf16>
    %170 = vector.shape_cast %169 : vector<1x4x4x16xbf16> to vector<4x4x16xbf16>
    %171 = vector.shape_cast %170 : vector<4x4x16xbf16> to vector<16x16xbf16>
    %cst_175 = arith.constant dense<0.000000e+00> : vector<16x32xf32>
    %172 = tpu.matmul %171, %153, %cst_175 {dimension_numbers = #tpu.dot_dimension_numbers<[1], [0], [0], [1], [0, 0, 1, 1], [], []>} : vector<16x16xbf16>, vector<16x32xbf16>, vector<16x32xf32> -> vector<16x32xf32>
    %173 = arith.addf %151, %172 : vector<16x32xf32>
    %c7 = arith.constant 7 : index
    %c0_176 = arith.constant 0 : index
    %c0_177 = arith.constant 0 : index
    %174 = vector.load %arg4[%c7, %c0_176, %c0_177] : memref<25x16x32xbf16, #tpu.memory_space<vmem>>, vector<1x16x32xbf16>
    %175 = vector.shape_cast %174 : vector<1x16x32xbf16> to vector<16x32xbf16>
    %c2_178 = arith.constant 2 : index
    %c0_179 = arith.constant 0 : index
    %c1_180 = arith.constant 1 : index
    %c0_181 = arith.constant 0 : index
    %176 = vector.load %arg9[%c2_178, %c0_179, %c1_180, %c0_181] : memref<4x6x6x16xbf16, #tpu.memory_space<vmem>>, vector<1x4x4x16xbf16>
    %177 = vector.shape_cast %176 : vector<1x4x4x16xbf16> to vector<4x4x16xbf16>
    %178 = vector.shape_cast %177 : vector<4x4x16xbf16> to vector<16x16xbf16>
    %cst_182 = arith.constant dense<0.000000e+00> : vector<16x32xf32>
    %179 = tpu.matmul %178, %175, %cst_182 {dimension_numbers = #tpu.dot_dimension_numbers<[1], [0], [0], [1], [0, 0, 1, 1], [], []>} : vector<16x16xbf16>, vector<16x32xbf16>, vector<16x32xf32> -> vector<16x32xf32>
    %180 = arith.addf %158, %179 : vector<16x32xf32>
    %c3_183 = arith.constant 3 : index
    %c0_184 = arith.constant 0 : index
    %c1_185 = arith.constant 1 : index
    %c0_186 = arith.constant 0 : index
    %181 = vector.load %arg9[%c3_183, %c0_184, %c1_185, %c0_186] : memref<4x6x6x16xbf16, #tpu.memory_space<vmem>>, vector<1x4x4x16xbf16>
    %182 = vector.shape_cast %181 : vector<1x4x4x16xbf16> to vector<4x4x16xbf16>
    %183 = vector.shape_cast %182 : vector<4x4x16xbf16> to vector<16x16xbf16>
    %cst_187 = arith.constant dense<0.000000e+00> : vector<16x32xf32>
    %184 = tpu.matmul %183, %175, %cst_187 {dimension_numbers = #tpu.dot_dimension_numbers<[1], [0], [0], [1], [0, 0, 1, 1], [], []>} : vector<16x16xbf16>, vector<16x32xbf16>, vector<16x32xf32> -> vector<16x32xf32>
    %185 = arith.addf %163, %184 : vector<16x32xf32>
    %c0_188 = arith.constant 0 : index
    %c1_189 = arith.constant 1 : index
    %c1_190 = arith.constant 1 : index
    %c0_191 = arith.constant 0 : index
    %186 = vector.load %arg9[%c0_188, %c1_189, %c1_190, %c0_191] : memref<4x6x6x16xbf16, #tpu.memory_space<vmem>>, vector<1x4x4x16xbf16>
    %187 = vector.shape_cast %186 : vector<1x4x4x16xbf16> to vector<4x4x16xbf16>
    %188 = vector.shape_cast %187 : vector<4x4x16xbf16> to vector<16x16xbf16>
    %cst_192 = arith.constant dense<0.000000e+00> : vector<16x32xf32>
    %189 = tpu.matmul %188, %175, %cst_192 {dimension_numbers = #tpu.dot_dimension_numbers<[1], [0], [0], [1], [0, 0, 1, 1], [], []>} : vector<16x16xbf16>, vector<16x32xbf16>, vector<16x32xf32> -> vector<16x32xf32>
    %190 = arith.addf %168, %189 : vector<16x32xf32>
    %c1_193 = arith.constant 1 : index
    %c1_194 = arith.constant 1 : index
    %c1_195 = arith.constant 1 : index
    %c0_196 = arith.constant 0 : index
    %191 = vector.load %arg9[%c1_193, %c1_194, %c1_195, %c0_196] : memref<4x6x6x16xbf16, #tpu.memory_space<vmem>>, vector<1x4x4x16xbf16>
    %192 = vector.shape_cast %191 : vector<1x4x4x16xbf16> to vector<4x4x16xbf16>
    %193 = vector.shape_cast %192 : vector<4x4x16xbf16> to vector<16x16xbf16>
    %cst_197 = arith.constant dense<0.000000e+00> : vector<16x32xf32>
    %194 = tpu.matmul %193, %175, %cst_197 {dimension_numbers = #tpu.dot_dimension_numbers<[1], [0], [0], [1], [0, 0, 1, 1], [], []>} : vector<16x16xbf16>, vector<16x32xbf16>, vector<16x32xf32> -> vector<16x32xf32>
    %195 = arith.addf %173, %194 : vector<16x32xf32>
    %c8 = arith.constant 8 : index
    %c0_198 = arith.constant 0 : index
    %c0_199 = arith.constant 0 : index
    %196 = vector.load %arg4[%c8, %c0_198, %c0_199] : memref<25x16x32xbf16, #tpu.memory_space<vmem>>, vector<1x16x32xbf16>
    %197 = vector.shape_cast %196 : vector<1x16x32xbf16> to vector<16x32xbf16>
    %c3_200 = arith.constant 3 : index
    %c0_201 = arith.constant 0 : index
    %c1_202 = arith.constant 1 : index
    %c0_203 = arith.constant 0 : index
    %198 = vector.load %arg9[%c3_200, %c0_201, %c1_202, %c0_203] : memref<4x6x6x16xbf16, #tpu.memory_space<vmem>>, vector<1x4x4x16xbf16>
    %199 = vector.shape_cast %198 : vector<1x4x4x16xbf16> to vector<4x4x16xbf16>
    %200 = vector.shape_cast %199 : vector<4x4x16xbf16> to vector<16x16xbf16>
    %cst_204 = arith.constant dense<0.000000e+00> : vector<16x32xf32>
    %201 = tpu.matmul %200, %197, %cst_204 {dimension_numbers = #tpu.dot_dimension_numbers<[1], [0], [0], [1], [0, 0, 1, 1], [], []>} : vector<16x16xbf16>, vector<16x32xbf16>, vector<16x32xf32> -> vector<16x32xf32>
    %202 = arith.addf %180, %201 : vector<16x32xf32>
    %c2_205 = arith.constant 2 : index
    %c0_206 = arith.constant 0 : index
    %c2_207 = arith.constant 2 : index
    %c0_208 = arith.constant 0 : index
    %203 = vector.load %arg9[%c2_205, %c0_206, %c2_207, %c0_208] : memref<4x6x6x16xbf16, #tpu.memory_space<vmem>>, vector<1x4x4x16xbf16>
    %204 = vector.shape_cast %203 : vector<1x4x4x16xbf16> to vector<4x4x16xbf16>
    %205 = vector.shape_cast %204 : vector<4x4x16xbf16> to vector<16x16xbf16>
    %cst_209 = arith.constant dense<0.000000e+00> : vector<16x32xf32>
    %206 = tpu.matmul %205, %197, %cst_209 {dimension_numbers = #tpu.dot_dimension_numbers<[1], [0], [0], [1], [0, 0, 1, 1], [], []>} : vector<16x16xbf16>, vector<16x32xbf16>, vector<16x32xf32> -> vector<16x32xf32>
    %207 = arith.addf %185, %206 : vector<16x32xf32>
    %c1_210 = arith.constant 1 : index
    %c1_211 = arith.constant 1 : index
    %c1_212 = arith.constant 1 : index
    %c0_213 = arith.constant 0 : index
    %208 = vector.load %arg9[%c1_210, %c1_211, %c1_212, %c0_213] : memref<4x6x6x16xbf16, #tpu.memory_space<vmem>>, vector<1x4x4x16xbf16>
    %209 = vector.shape_cast %208 : vector<1x4x4x16xbf16> to vector<4x4x16xbf16>
    %210 = vector.shape_cast %209 : vector<4x4x16xbf16> to vector<16x16xbf16>
    %cst_214 = arith.constant dense<0.000000e+00> : vector<16x32xf32>
    %211 = tpu.matmul %210, %197, %cst_214 {dimension_numbers = #tpu.dot_dimension_numbers<[1], [0], [0], [1], [0, 0, 1, 1], [], []>} : vector<16x16xbf16>, vector<16x32xbf16>, vector<16x32xf32> -> vector<16x32xf32>
    %212 = arith.addf %190, %211 : vector<16x32xf32>
    %c0_215 = arith.constant 0 : index
    %c1_216 = arith.constant 1 : index
    %c2_217 = arith.constant 2 : index
    %c0_218 = arith.constant 0 : index
    %213 = vector.load %arg9[%c0_215, %c1_216, %c2_217, %c0_218] : memref<4x6x6x16xbf16, #tpu.memory_space<vmem>>, vector<1x4x4x16xbf16>
    %214 = vector.shape_cast %213 : vector<1x4x4x16xbf16> to vector<4x4x16xbf16>
    %215 = vector.shape_cast %214 : vector<4x4x16xbf16> to vector<16x16xbf16>
    %cst_219 = arith.constant dense<0.000000e+00> : vector<16x32xf32>
    %216 = tpu.matmul %215, %197, %cst_219 {dimension_numbers = #tpu.dot_dimension_numbers<[1], [0], [0], [1], [0, 0, 1, 1], [], []>} : vector<16x16xbf16>, vector<16x32xbf16>, vector<16x32xf32> -> vector<16x32xf32>
    %217 = arith.addf %195, %216 : vector<16x32xf32>
    %c9 = arith.constant 9 : index
    %c0_220 = arith.constant 0 : index
    %c0_221 = arith.constant 0 : index
    %218 = vector.load %arg4[%c9, %c0_220, %c0_221] : memref<25x16x32xbf16, #tpu.memory_space<vmem>>, vector<1x16x32xbf16>
    %219 = vector.shape_cast %218 : vector<1x16x32xbf16> to vector<16x32xbf16>
    %c2_222 = arith.constant 2 : index
    %c0_223 = arith.constant 0 : index
    %c2_224 = arith.constant 2 : index
    %c0_225 = arith.constant 0 : index
    %220 = vector.load %arg9[%c2_222, %c0_223, %c2_224, %c0_225] : memref<4x6x6x16xbf16, #tpu.memory_space<vmem>>, vector<1x4x4x16xbf16>
    %221 = vector.shape_cast %220 : vector<1x4x4x16xbf16> to vector<4x4x16xbf16>
    %222 = vector.shape_cast %221 : vector<4x4x16xbf16> to vector<16x16xbf16>
    %cst_226 = arith.constant dense<0.000000e+00> : vector<16x32xf32>
    %223 = tpu.matmul %222, %219, %cst_226 {dimension_numbers = #tpu.dot_dimension_numbers<[1], [0], [0], [1], [0, 0, 1, 1], [], []>} : vector<16x16xbf16>, vector<16x32xbf16>, vector<16x32xf32> -> vector<16x32xf32>
    %224 = arith.addf %202, %223 : vector<16x32xf32>
    %c3_227 = arith.constant 3 : index
    %c0_228 = arith.constant 0 : index
    %c2_229 = arith.constant 2 : index
    %c0_230 = arith.constant 0 : index
    %225 = vector.load %arg9[%c3_227, %c0_228, %c2_229, %c0_230] : memref<4x6x6x16xbf16, #tpu.memory_space<vmem>>, vector<1x4x4x16xbf16>
    %226 = vector.shape_cast %225 : vector<1x4x4x16xbf16> to vector<4x4x16xbf16>
    %227 = vector.shape_cast %226 : vector<4x4x16xbf16> to vector<16x16xbf16>
    %cst_231 = arith.constant dense<0.000000e+00> : vector<16x32xf32>
    %228 = tpu.matmul %227, %219, %cst_231 {dimension_numbers = #tpu.dot_dimension_numbers<[1], [0], [0], [1], [0, 0, 1, 1], [], []>} : vector<16x16xbf16>, vector<16x32xbf16>, vector<16x32xf32> -> vector<16x32xf32>
    %229 = arith.addf %207, %228 : vector<16x32xf32>
    %c0_232 = arith.constant 0 : index
    %c1_233 = arith.constant 1 : index
    %c2_234 = arith.constant 2 : index
    %c0_235 = arith.constant 0 : index
    %230 = vector.load %arg9[%c0_232, %c1_233, %c2_234, %c0_235] : memref<4x6x6x16xbf16, #tpu.memory_space<vmem>>, vector<1x4x4x16xbf16>
    %231 = vector.shape_cast %230 : vector<1x4x4x16xbf16> to vector<4x4x16xbf16>
    %232 = vector.shape_cast %231 : vector<4x4x16xbf16> to vector<16x16xbf16>
    %cst_236 = arith.constant dense<0.000000e+00> : vector<16x32xf32>
    %233 = tpu.matmul %232, %219, %cst_236 {dimension_numbers = #tpu.dot_dimension_numbers<[1], [0], [0], [1], [0, 0, 1, 1], [], []>} : vector<16x16xbf16>, vector<16x32xbf16>, vector<16x32xf32> -> vector<16x32xf32>
    %234 = arith.addf %212, %233 : vector<16x32xf32>
    %c1_237 = arith.constant 1 : index
    %c1_238 = arith.constant 1 : index
    %c2_239 = arith.constant 2 : index
    %c0_240 = arith.constant 0 : index
    %235 = vector.load %arg9[%c1_237, %c1_238, %c2_239, %c0_240] : memref<4x6x6x16xbf16, #tpu.memory_space<vmem>>, vector<1x4x4x16xbf16>
    %236 = vector.shape_cast %235 : vector<1x4x4x16xbf16> to vector<4x4x16xbf16>
    %237 = vector.shape_cast %236 : vector<4x4x16xbf16> to vector<16x16xbf16>
    %cst_241 = arith.constant dense<0.000000e+00> : vector<16x32xf32>
    %238 = tpu.matmul %237, %219, %cst_241 {dimension_numbers = #tpu.dot_dimension_numbers<[1], [0], [0], [1], [0, 0, 1, 1], [], []>} : vector<16x16xbf16>, vector<16x32xbf16>, vector<16x32xf32> -> vector<16x32xf32>
    %239 = arith.addf %217, %238 : vector<16x32xf32>
    %c10 = arith.constant 10 : index
    %c0_242 = arith.constant 0 : index
    %c0_243 = arith.constant 0 : index
    %240 = vector.load %arg4[%c10, %c0_242, %c0_243] : memref<25x16x32xbf16, #tpu.memory_space<vmem>>, vector<1x16x32xbf16>
    %241 = vector.shape_cast %240 : vector<1x16x32xbf16> to vector<16x32xbf16>
    %c0_244 = arith.constant 0 : index
    %c1_245 = arith.constant 1 : index
    %c0_246 = arith.constant 0 : index
    %c0_247 = arith.constant 0 : index
    %242 = vector.load %arg9[%c0_244, %c1_245, %c0_246, %c0_247] : memref<4x6x6x16xbf16, #tpu.memory_space<vmem>>, vector<1x4x4x16xbf16>
    %243 = vector.shape_cast %242 : vector<1x4x4x16xbf16> to vector<4x4x16xbf16>
    %244 = vector.shape_cast %243 : vector<4x4x16xbf16> to vector<16x16xbf16>
    %cst_248 = arith.constant dense<0.000000e+00> : vector<16x32xf32>
    %245 = tpu.matmul %244, %241, %cst_248 {dimension_numbers = #tpu.dot_dimension_numbers<[1], [0], [0], [1], [0, 0, 1, 1], [], []>} : vector<16x16xbf16>, vector<16x32xbf16>, vector<16x32xf32> -> vector<16x32xf32>
    %246 = arith.addf %224, %245 : vector<16x32xf32>
    %c1_249 = arith.constant 1 : index
    %c1_250 = arith.constant 1 : index
    %c0_251 = arith.constant 0 : index
    %c0_252 = arith.constant 0 : index
    %247 = vector.load %arg9[%c1_249, %c1_250, %c0_251, %c0_252] : memref<4x6x6x16xbf16, #tpu.memory_space<vmem>>, vector<1x4x4x16xbf16>
    %248 = vector.shape_cast %247 : vector<1x4x4x16xbf16> to vector<4x4x16xbf16>
    %249 = vector.shape_cast %248 : vector<4x4x16xbf16> to vector<16x16xbf16>
    %cst_253 = arith.constant dense<0.000000e+00> : vector<16x32xf32>
    %250 = tpu.matmul %249, %241, %cst_253 {dimension_numbers = #tpu.dot_dimension_numbers<[1], [0], [0], [1], [0, 0, 1, 1], [], []>} : vector<16x16xbf16>, vector<16x32xbf16>, vector<16x32xf32> -> vector<16x32xf32>
    %251 = arith.addf %229, %250 : vector<16x32xf32>
    %c2_254 = arith.constant 2 : index
    %c1_255 = arith.constant 1 : index
    %c0_256 = arith.constant 0 : index
    %c0_257 = arith.constant 0 : index
    %252 = vector.load %arg9[%c2_254, %c1_255, %c0_256, %c0_257] : memref<4x6x6x16xbf16, #tpu.memory_space<vmem>>, vector<1x4x4x16xbf16>
    %253 = vector.shape_cast %252 : vector<1x4x4x16xbf16> to vector<4x4x16xbf16>
    %254 = vector.shape_cast %253 : vector<4x4x16xbf16> to vector<16x16xbf16>
    %cst_258 = arith.constant dense<0.000000e+00> : vector<16x32xf32>
    %255 = tpu.matmul %254, %241, %cst_258 {dimension_numbers = #tpu.dot_dimension_numbers<[1], [0], [0], [1], [0, 0, 1, 1], [], []>} : vector<16x16xbf16>, vector<16x32xbf16>, vector<16x32xf32> -> vector<16x32xf32>
    %256 = arith.addf %234, %255 : vector<16x32xf32>
    %c3_259 = arith.constant 3 : index
    %c1_260 = arith.constant 1 : index
    %c0_261 = arith.constant 0 : index
    %c0_262 = arith.constant 0 : index
    %257 = vector.load %arg9[%c3_259, %c1_260, %c0_261, %c0_262] : memref<4x6x6x16xbf16, #tpu.memory_space<vmem>>, vector<1x4x4x16xbf16>
    %258 = vector.shape_cast %257 : vector<1x4x4x16xbf16> to vector<4x4x16xbf16>
    %259 = vector.shape_cast %258 : vector<4x4x16xbf16> to vector<16x16xbf16>
    %cst_263 = arith.constant dense<0.000000e+00> : vector<16x32xf32>
    %260 = tpu.matmul %259, %241, %cst_263 {dimension_numbers = #tpu.dot_dimension_numbers<[1], [0], [0], [1], [0, 0, 1, 1], [], []>} : vector<16x16xbf16>, vector<16x32xbf16>, vector<16x32xf32> -> vector<16x32xf32>
    %261 = arith.addf %239, %260 : vector<16x32xf32>
    %c11 = arith.constant 11 : index
    %c0_264 = arith.constant 0 : index
    %c0_265 = arith.constant 0 : index
    %262 = vector.load %arg4[%c11, %c0_264, %c0_265] : memref<25x16x32xbf16, #tpu.memory_space<vmem>>, vector<1x16x32xbf16>
    %263 = vector.shape_cast %262 : vector<1x16x32xbf16> to vector<16x32xbf16>
    %c1_266 = arith.constant 1 : index
    %c1_267 = arith.constant 1 : index
    %c0_268 = arith.constant 0 : index
    %c0_269 = arith.constant 0 : index
    %264 = vector.load %arg9[%c1_266, %c1_267, %c0_268, %c0_269] : memref<4x6x6x16xbf16, #tpu.memory_space<vmem>>, vector<1x4x4x16xbf16>
    %265 = vector.shape_cast %264 : vector<1x4x4x16xbf16> to vector<4x4x16xbf16>
    %266 = vector.shape_cast %265 : vector<4x4x16xbf16> to vector<16x16xbf16>
    %cst_270 = arith.constant dense<0.000000e+00> : vector<16x32xf32>
    %267 = tpu.matmul %266, %263, %cst_270 {dimension_numbers = #tpu.dot_dimension_numbers<[1], [0], [0], [1], [0, 0, 1, 1], [], []>} : vector<16x16xbf16>, vector<16x32xbf16>, vector<16x32xf32> -> vector<16x32xf32>
    %268 = arith.addf %246, %267 : vector<16x32xf32>
    %c0_271 = arith.constant 0 : index
    %c1_272 = arith.constant 1 : index
    %c1_273 = arith.constant 1 : index
    %c0_274 = arith.constant 0 : index
    %269 = vector.load %arg9[%c0_271, %c1_272, %c1_273, %c0_274] : memref<4x6x6x16xbf16, #tpu.memory_space<vmem>>, vector<1x4x4x16xbf16>
    %270 = vector.shape_cast %269 : vector<1x4x4x16xbf16> to vector<4x4x16xbf16>
    %271 = vector.shape_cast %270 : vector<4x4x16xbf16> to vector<16x16xbf16>
    %cst_275 = arith.constant dense<0.000000e+00> : vector<16x32xf32>
    %272 = tpu.matmul %271, %263, %cst_275 {dimension_numbers = #tpu.dot_dimension_numbers<[1], [0], [0], [1], [0, 0, 1, 1], [], []>} : vector<16x16xbf16>, vector<16x32xbf16>, vector<16x32xf32> -> vector<16x32xf32>
    %273 = arith.addf %251, %272 : vector<16x32xf32>
    %c3_276 = arith.constant 3 : index
    %c1_277 = arith.constant 1 : index
    %c0_278 = arith.constant 0 : index
    %c0_279 = arith.constant 0 : index
    %274 = vector.load %arg9[%c3_276, %c1_277, %c0_278, %c0_279] : memref<4x6x6x16xbf16, #tpu.memory_space<vmem>>, vector<1x4x4x16xbf16>
    %275 = vector.shape_cast %274 : vector<1x4x4x16xbf16> to vector<4x4x16xbf16>
    %276 = vector.shape_cast %275 : vector<4x4x16xbf16> to vector<16x16xbf16>
    %cst_280 = arith.constant dense<0.000000e+00> : vector<16x32xf32>
    %277 = tpu.matmul %276, %263, %cst_280 {dimension_numbers = #tpu.dot_dimension_numbers<[1], [0], [0], [1], [0, 0, 1, 1], [], []>} : vector<16x16xbf16>, vector<16x32xbf16>, vector<16x32xf32> -> vector<16x32xf32>
    %278 = arith.addf %256, %277 : vector<16x32xf32>
    %c2_281 = arith.constant 2 : index
    %c1_282 = arith.constant 1 : index
    %c1_283 = arith.constant 1 : index
    %c0_284 = arith.constant 0 : index
    %279 = vector.load %arg9[%c2_281, %c1_282, %c1_283, %c0_284] : memref<4x6x6x16xbf16, #tpu.memory_space<vmem>>, vector<1x4x4x16xbf16>
    %280 = vector.shape_cast %279 : vector<1x4x4x16xbf16> to vector<4x4x16xbf16>
    %281 = vector.shape_cast %280 : vector<4x4x16xbf16> to vector<16x16xbf16>
    %cst_285 = arith.constant dense<0.000000e+00> : vector<16x32xf32>
    %282 = tpu.matmul %281, %263, %cst_285 {dimension_numbers = #tpu.dot_dimension_numbers<[1], [0], [0], [1], [0, 0, 1, 1], [], []>} : vector<16x16xbf16>, vector<16x32xbf16>, vector<16x32xf32> -> vector<16x32xf32>
    %283 = arith.addf %261, %282 : vector<16x32xf32>
    %c12 = arith.constant 12 : index
    %c0_286 = arith.constant 0 : index
    %c0_287 = arith.constant 0 : index
    %284 = vector.load %arg4[%c12, %c0_286, %c0_287] : memref<25x16x32xbf16, #tpu.memory_space<vmem>>, vector<1x16x32xbf16>
    %285 = vector.shape_cast %284 : vector<1x16x32xbf16> to vector<16x32xbf16>
    %c0_288 = arith.constant 0 : index
    %c1_289 = arith.constant 1 : index
    %c1_290 = arith.constant 1 : index
    %c0_291 = arith.constant 0 : index
    %286 = vector.load %arg9[%c0_288, %c1_289, %c1_290, %c0_291] : memref<4x6x6x16xbf16, #tpu.memory_space<vmem>>, vector<1x4x4x16xbf16>
    %287 = vector.shape_cast %286 : vector<1x4x4x16xbf16> to vector<4x4x16xbf16>
    %288 = vector.shape_cast %287 : vector<4x4x16xbf16> to vector<16x16xbf16>
    %cst_292 = arith.constant dense<0.000000e+00> : vector<16x32xf32>
    %289 = tpu.matmul %288, %285, %cst_292 {dimension_numbers = #tpu.dot_dimension_numbers<[1], [0], [0], [1], [0, 0, 1, 1], [], []>} : vector<16x16xbf16>, vector<16x32xbf16>, vector<16x32xf32> -> vector<16x32xf32>
    %290 = arith.addf %268, %289 : vector<16x32xf32>
    %c1_293 = arith.constant 1 : index
    %c1_294 = arith.constant 1 : index
    %c1_295 = arith.constant 1 : index
    %c0_296 = arith.constant 0 : index
    %291 = vector.load %arg9[%c1_293, %c1_294, %c1_295, %c0_296] : memref<4x6x6x16xbf16, #tpu.memory_space<vmem>>, vector<1x4x4x16xbf16>
    %292 = vector.shape_cast %291 : vector<1x4x4x16xbf16> to vector<4x4x16xbf16>
    %293 = vector.shape_cast %292 : vector<4x4x16xbf16> to vector<16x16xbf16>
    %cst_297 = arith.constant dense<0.000000e+00> : vector<16x32xf32>
    %294 = tpu.matmul %293, %285, %cst_297 {dimension_numbers = #tpu.dot_dimension_numbers<[1], [0], [0], [1], [0, 0, 1, 1], [], []>} : vector<16x16xbf16>, vector<16x32xbf16>, vector<16x32xf32> -> vector<16x32xf32>
    %295 = arith.addf %273, %294 : vector<16x32xf32>
    %c2_298 = arith.constant 2 : index
    %c1_299 = arith.constant 1 : index
    %c1_300 = arith.constant 1 : index
    %c0_301 = arith.constant 0 : index
    %296 = vector.load %arg9[%c2_298, %c1_299, %c1_300, %c0_301] : memref<4x6x6x16xbf16, #tpu.memory_space<vmem>>, vector<1x4x4x16xbf16>
    %297 = vector.shape_cast %296 : vector<1x4x4x16xbf16> to vector<4x4x16xbf16>
    %298 = vector.shape_cast %297 : vector<4x4x16xbf16> to vector<16x16xbf16>
    %cst_302 = arith.constant dense<0.000000e+00> : vector<16x32xf32>
    %299 = tpu.matmul %298, %285, %cst_302 {dimension_numbers = #tpu.dot_dimension_numbers<[1], [0], [0], [1], [0, 0, 1, 1], [], []>} : vector<16x16xbf16>, vector<16x32xbf16>, vector<16x32xf32> -> vector<16x32xf32>
    %300 = arith.addf %278, %299 : vector<16x32xf32>
    %c3_303 = arith.constant 3 : index
    %c1_304 = arith.constant 1 : index
    %c1_305 = arith.constant 1 : index
    %c0_306 = arith.constant 0 : index
    %301 = vector.load %arg9[%c3_303, %c1_304, %c1_305, %c0_306] : memref<4x6x6x16xbf16, #tpu.memory_space<vmem>>, vector<1x4x4x16xbf16>
    %302 = vector.shape_cast %301 : vector<1x4x4x16xbf16> to vector<4x4x16xbf16>
    %303 = vector.shape_cast %302 : vector<4x4x16xbf16> to vector<16x16xbf16>
    %cst_307 = arith.constant dense<0.000000e+00> : vector<16x32xf32>
    %304 = tpu.matmul %303, %285, %cst_307 {dimension_numbers = #tpu.dot_dimension_numbers<[1], [0], [0], [1], [0, 0, 1, 1], [], []>} : vector<16x16xbf16>, vector<16x32xbf16>, vector<16x32xf32> -> vector<16x32xf32>
    %305 = arith.addf %283, %304 : vector<16x32xf32>
    %c13 = arith.constant 13 : index
    %c0_308 = arith.constant 0 : index
    %c0_309 = arith.constant 0 : index
    %306 = vector.load %arg4[%c13, %c0_308, %c0_309] : memref<25x16x32xbf16, #tpu.memory_space<vmem>>, vector<1x16x32xbf16>
    %307 = vector.shape_cast %306 : vector<1x16x32xbf16> to vector<16x32xbf16>
    %c1_310 = arith.constant 1 : index
    %c1_311 = arith.constant 1 : index
    %c1_312 = arith.constant 1 : index
    %c0_313 = arith.constant 0 : index
    %308 = vector.load %arg9[%c1_310, %c1_311, %c1_312, %c0_313] : memref<4x6x6x16xbf16, #tpu.memory_space<vmem>>, vector<1x4x4x16xbf16>
    %309 = vector.shape_cast %308 : vector<1x4x4x16xbf16> to vector<4x4x16xbf16>
    %310 = vector.shape_cast %309 : vector<4x4x16xbf16> to vector<16x16xbf16>
    %cst_314 = arith.constant dense<0.000000e+00> : vector<16x32xf32>
    %311 = tpu.matmul %310, %307, %cst_314 {dimension_numbers = #tpu.dot_dimension_numbers<[1], [0], [0], [1], [0, 0, 1, 1], [], []>} : vector<16x16xbf16>, vector<16x32xbf16>, vector<16x32xf32> -> vector<16x32xf32>
    %312 = arith.addf %290, %311 : vector<16x32xf32>
    %c0_315 = arith.constant 0 : index
    %c1_316 = arith.constant 1 : index
    %c2_317 = arith.constant 2 : index
    %c0_318 = arith.constant 0 : index
    %313 = vector.load %arg9[%c0_315, %c1_316, %c2_317, %c0_318] : memref<4x6x6x16xbf16, #tpu.memory_space<vmem>>, vector<1x4x4x16xbf16>
    %314 = vector.shape_cast %313 : vector<1x4x4x16xbf16> to vector<4x4x16xbf16>
    %315 = vector.shape_cast %314 : vector<4x4x16xbf16> to vector<16x16xbf16>
    %cst_319 = arith.constant dense<0.000000e+00> : vector<16x32xf32>
    %316 = tpu.matmul %315, %307, %cst_319 {dimension_numbers = #tpu.dot_dimension_numbers<[1], [0], [0], [1], [0, 0, 1, 1], [], []>} : vector<16x16xbf16>, vector<16x32xbf16>, vector<16x32xf32> -> vector<16x32xf32>
    %317 = arith.addf %295, %316 : vector<16x32xf32>
    %c3_320 = arith.constant 3 : index
    %c1_321 = arith.constant 1 : index
    %c1_322 = arith.constant 1 : index
    %c0_323 = arith.constant 0 : index
    %318 = vector.load %arg9[%c3_320, %c1_321, %c1_322, %c0_323] : memref<4x6x6x16xbf16, #tpu.memory_space<vmem>>, vector<1x4x4x16xbf16>
    %319 = vector.shape_cast %318 : vector<1x4x4x16xbf16> to vector<4x4x16xbf16>
    %320 = vector.shape_cast %319 : vector<4x4x16xbf16> to vector<16x16xbf16>
    %cst_324 = arith.constant dense<0.000000e+00> : vector<16x32xf32>
    %321 = tpu.matmul %320, %307, %cst_324 {dimension_numbers = #tpu.dot_dimension_numbers<[1], [0], [0], [1], [0, 0, 1, 1], [], []>} : vector<16x16xbf16>, vector<16x32xbf16>, vector<16x32xf32> -> vector<16x32xf32>
    %322 = arith.addf %300, %321 : vector<16x32xf32>
    %c2_325 = arith.constant 2 : index
    %c1_326 = arith.constant 1 : index
    %c2_327 = arith.constant 2 : index
    %c0_328 = arith.constant 0 : index
    %323 = vector.load %arg9[%c2_325, %c1_326, %c2_327, %c0_328] : memref<4x6x6x16xbf16, #tpu.memory_space<vmem>>, vector<1x4x4x16xbf16>
    %324 = vector.shape_cast %323 : vector<1x4x4x16xbf16> to vector<4x4x16xbf16>
    %325 = vector.shape_cast %324 : vector<4x4x16xbf16> to vector<16x16xbf16>
    %cst_329 = arith.constant dense<0.000000e+00> : vector<16x32xf32>
    %326 = tpu.matmul %325, %307, %cst_329 {dimension_numbers = #tpu.dot_dimension_numbers<[1], [0], [0], [1], [0, 0, 1, 1], [], []>} : vector<16x16xbf16>, vector<16x32xbf16>, vector<16x32xf32> -> vector<16x32xf32>
    %327 = arith.addf %305, %326 : vector<16x32xf32>
    %c14 = arith.constant 14 : index
    %c0_330 = arith.constant 0 : index
    %c0_331 = arith.constant 0 : index
    %328 = vector.load %arg4[%c14, %c0_330, %c0_331] : memref<25x16x32xbf16, #tpu.memory_space<vmem>>, vector<1x16x32xbf16>
    %329 = vector.shape_cast %328 : vector<1x16x32xbf16> to vector<16x32xbf16>
    %c0_332 = arith.constant 0 : index
    %c1_333 = arith.constant 1 : index
    %c2_334 = arith.constant 2 : index
    %c0_335 = arith.constant 0 : index
    %330 = vector.load %arg9[%c0_332, %c1_333, %c2_334, %c0_335] : memref<4x6x6x16xbf16, #tpu.memory_space<vmem>>, vector<1x4x4x16xbf16>
    %331 = vector.shape_cast %330 : vector<1x4x4x16xbf16> to vector<4x4x16xbf16>
    %332 = vector.shape_cast %331 : vector<4x4x16xbf16> to vector<16x16xbf16>
    %cst_336 = arith.constant dense<0.000000e+00> : vector<16x32xf32>
    %333 = tpu.matmul %332, %329, %cst_336 {dimension_numbers = #tpu.dot_dimension_numbers<[1], [0], [0], [1], [0, 0, 1, 1], [], []>} : vector<16x16xbf16>, vector<16x32xbf16>, vector<16x32xf32> -> vector<16x32xf32>
    %334 = arith.addf %312, %333 : vector<16x32xf32>
    %c1_337 = arith.constant 1 : index
    %c1_338 = arith.constant 1 : index
    %c2_339 = arith.constant 2 : index
    %c0_340 = arith.constant 0 : index
    %335 = vector.load %arg9[%c1_337, %c1_338, %c2_339, %c0_340] : memref<4x6x6x16xbf16, #tpu.memory_space<vmem>>, vector<1x4x4x16xbf16>
    %336 = vector.shape_cast %335 : vector<1x4x4x16xbf16> to vector<4x4x16xbf16>
    %337 = vector.shape_cast %336 : vector<4x4x16xbf16> to vector<16x16xbf16>
    %cst_341 = arith.constant dense<0.000000e+00> : vector<16x32xf32>
    %338 = tpu.matmul %337, %329, %cst_341 {dimension_numbers = #tpu.dot_dimension_numbers<[1], [0], [0], [1], [0, 0, 1, 1], [], []>} : vector<16x16xbf16>, vector<16x32xbf16>, vector<16x32xf32> -> vector<16x32xf32>
    %339 = arith.addf %317, %338 : vector<16x32xf32>
    %c2_342 = arith.constant 2 : index
    %c1_343 = arith.constant 1 : index
    %c2_344 = arith.constant 2 : index
    %c0_345 = arith.constant 0 : index
    %340 = vector.load %arg9[%c2_342, %c1_343, %c2_344, %c0_345] : memref<4x6x6x16xbf16, #tpu.memory_space<vmem>>, vector<1x4x4x16xbf16>
    %341 = vector.shape_cast %340 : vector<1x4x4x16xbf16> to vector<4x4x16xbf16>
    %342 = vector.shape_cast %341 : vector<4x4x16xbf16> to vector<16x16xbf16>
    %cst_346 = arith.constant dense<0.000000e+00> : vector<16x32xf32>
    %343 = tpu.matmul %342, %329, %cst_346 {dimension_numbers = #tpu.dot_dimension_numbers<[1], [0], [0], [1], [0, 0, 1, 1], [], []>} : vector<16x16xbf16>, vector<16x32xbf16>, vector<16x32xf32> -> vector<16x32xf32>
    %344 = arith.addf %322, %343 : vector<16x32xf32>
    %c3_347 = arith.constant 3 : index
    %c1_348 = arith.constant 1 : index
    %c2_349 = arith.constant 2 : index
    %c0_350 = arith.constant 0 : index
    %345 = vector.load %arg9[%c3_347, %c1_348, %c2_349, %c0_350] : memref<4x6x6x16xbf16, #tpu.memory_space<vmem>>, vector<1x4x4x16xbf16>
    %346 = vector.shape_cast %345 : vector<1x4x4x16xbf16> to vector<4x4x16xbf16>
    %347 = vector.shape_cast %346 : vector<4x4x16xbf16> to vector<16x16xbf16>
    %cst_351 = arith.constant dense<0.000000e+00> : vector<16x32xf32>
    %348 = tpu.matmul %347, %329, %cst_351 {dimension_numbers = #tpu.dot_dimension_numbers<[1], [0], [0], [1], [0, 0, 1, 1], [], []>} : vector<16x16xbf16>, vector<16x32xbf16>, vector<16x32xf32> -> vector<16x32xf32>
    %349 = arith.addf %327, %348 : vector<16x32xf32>
    %c15 = arith.constant 15 : index
    %c0_352 = arith.constant 0 : index
    %c0_353 = arith.constant 0 : index
    %350 = vector.load %arg4[%c15, %c0_352, %c0_353] : memref<25x16x32xbf16, #tpu.memory_space<vmem>>, vector<1x16x32xbf16>
    %351 = vector.shape_cast %350 : vector<1x16x32xbf16> to vector<16x32xbf16>
    %c2_354 = arith.constant 2 : index
    %c1_355 = arith.constant 1 : index
    %c0_356 = arith.constant 0 : index
    %c0_357 = arith.constant 0 : index
    %352 = vector.load %arg9[%c2_354, %c1_355, %c0_356, %c0_357] : memref<4x6x6x16xbf16, #tpu.memory_space<vmem>>, vector<1x4x4x16xbf16>
    %353 = vector.shape_cast %352 : vector<1x4x4x16xbf16> to vector<4x4x16xbf16>
    %354 = vector.shape_cast %353 : vector<4x4x16xbf16> to vector<16x16xbf16>
    %cst_358 = arith.constant dense<0.000000e+00> : vector<16x32xf32>
    %355 = tpu.matmul %354, %351, %cst_358 {dimension_numbers = #tpu.dot_dimension_numbers<[1], [0], [0], [1], [0, 0, 1, 1], [], []>} : vector<16x16xbf16>, vector<16x32xbf16>, vector<16x32xf32> -> vector<16x32xf32>
    %356 = arith.addf %334, %355 : vector<16x32xf32>
    %c3_359 = arith.constant 3 : index
    %c1_360 = arith.constant 1 : index
    %c0_361 = arith.constant 0 : index
    %c0_362 = arith.constant 0 : index
    %357 = vector.load %arg9[%c3_359, %c1_360, %c0_361, %c0_362] : memref<4x6x6x16xbf16, #tpu.memory_space<vmem>>, vector<1x4x4x16xbf16>
    %358 = vector.shape_cast %357 : vector<1x4x4x16xbf16> to vector<4x4x16xbf16>
    %359 = vector.shape_cast %358 : vector<4x4x16xbf16> to vector<16x16xbf16>
    %cst_363 = arith.constant dense<0.000000e+00> : vector<16x32xf32>
    %360 = tpu.matmul %359, %351, %cst_363 {dimension_numbers = #tpu.dot_dimension_numbers<[1], [0], [0], [1], [0, 0, 1, 1], [], []>} : vector<16x16xbf16>, vector<16x32xbf16>, vector<16x32xf32> -> vector<16x32xf32>
    %361 = arith.addf %339, %360 : vector<16x32xf32>
    %c0_364 = arith.constant 0 : index
    %c2_365 = arith.constant 2 : index
    %c0_366 = arith.constant 0 : index
    %c0_367 = arith.constant 0 : index
    %362 = vector.load %arg9[%c0_364, %c2_365, %c0_366, %c0_367] : memref<4x6x6x16xbf16, #tpu.memory_space<vmem>>, vector<1x4x4x16xbf16>
    %363 = vector.shape_cast %362 : vector<1x4x4x16xbf16> to vector<4x4x16xbf16>
    %364 = vector.shape_cast %363 : vector<4x4x16xbf16> to vector<16x16xbf16>
    %cst_368 = arith.constant dense<0.000000e+00> : vector<16x32xf32>
    %365 = tpu.matmul %364, %351, %cst_368 {dimension_numbers = #tpu.dot_dimension_numbers<[1], [0], [0], [1], [0, 0, 1, 1], [], []>} : vector<16x16xbf16>, vector<16x32xbf16>, vector<16x32xf32> -> vector<16x32xf32>
    %366 = arith.addf %344, %365 : vector<16x32xf32>
    %c1_369 = arith.constant 1 : index
    %c2_370 = arith.constant 2 : index
    %c0_371 = arith.constant 0 : index
    %c0_372 = arith.constant 0 : index
    %367 = vector.load %arg9[%c1_369, %c2_370, %c0_371, %c0_372] : memref<4x6x6x16xbf16, #tpu.memory_space<vmem>>, vector<1x4x4x16xbf16>
    %368 = vector.shape_cast %367 : vector<1x4x4x16xbf16> to vector<4x4x16xbf16>
    %369 = vector.shape_cast %368 : vector<4x4x16xbf16> to vector<16x16xbf16>
    %cst_373 = arith.constant dense<0.000000e+00> : vector<16x32xf32>
    %370 = tpu.matmul %369, %351, %cst_373 {dimension_numbers = #tpu.dot_dimension_numbers<[1], [0], [0], [1], [0, 0, 1, 1], [], []>} : vector<16x16xbf16>, vector<16x32xbf16>, vector<16x32xf32> -> vector<16x32xf32>
    %371 = arith.addf %349, %370 : vector<16x32xf32>
    %c16 = arith.constant 16 : index
    %c0_374 = arith.constant 0 : index
    %c0_375 = arith.constant 0 : index
    %372 = vector.load %arg4[%c16, %c0_374, %c0_375] : memref<25x16x32xbf16, #tpu.memory_space<vmem>>, vector<1x16x32xbf16>
    %373 = vector.shape_cast %372 : vector<1x16x32xbf16> to vector<16x32xbf16>
    %c3_376 = arith.constant 3 : index
    %c1_377 = arith.constant 1 : index
    %c0_378 = arith.constant 0 : index
    %c0_379 = arith.constant 0 : index
    %374 = vector.load %arg9[%c3_376, %c1_377, %c0_378, %c0_379] : memref<4x6x6x16xbf16, #tpu.memory_space<vmem>>, vector<1x4x4x16xbf16>
    %375 = vector.shape_cast %374 : vector<1x4x4x16xbf16> to vector<4x4x16xbf16>
    %376 = vector.shape_cast %375 : vector<4x4x16xbf16> to vector<16x16xbf16>
    %cst_380 = arith.constant dense<0.000000e+00> : vector<16x32xf32>
    %377 = tpu.matmul %376, %373, %cst_380 {dimension_numbers = #tpu.dot_dimension_numbers<[1], [0], [0], [1], [0, 0, 1, 1], [], []>} : vector<16x16xbf16>, vector<16x32xbf16>, vector<16x32xf32> -> vector<16x32xf32>
    %378 = arith.addf %356, %377 : vector<16x32xf32>
    %c2_381 = arith.constant 2 : index
    %c1_382 = arith.constant 1 : index
    %c1_383 = arith.constant 1 : index
    %c0_384 = arith.constant 0 : index
    %379 = vector.load %arg9[%c2_381, %c1_382, %c1_383, %c0_384] : memref<4x6x6x16xbf16, #tpu.memory_space<vmem>>, vector<1x4x4x16xbf16>
    %380 = vector.shape_cast %379 : vector<1x4x4x16xbf16> to vector<4x4x16xbf16>
    %381 = vector.shape_cast %380 : vector<4x4x16xbf16> to vector<16x16xbf16>
    %cst_385 = arith.constant dense<0.000000e+00> : vector<16x32xf32>
    %382 = tpu.matmul %381, %373, %cst_385 {dimension_numbers = #tpu.dot_dimension_numbers<[1], [0], [0], [1], [0, 0, 1, 1], [], []>} : vector<16x16xbf16>, vector<16x32xbf16>, vector<16x32xf32> -> vector<16x32xf32>
    %383 = arith.addf %361, %382 : vector<16x32xf32>
    %c1_386 = arith.constant 1 : index
    %c2_387 = arith.constant 2 : index
    %c0_388 = arith.constant 0 : index
    %c0_389 = arith.constant 0 : index
    %384 = vector.load %arg9[%c1_386, %c2_387, %c0_388, %c0_389] : memref<4x6x6x16xbf16, #tpu.memory_space<vmem>>, vector<1x4x4x16xbf16>
    %385 = vector.shape_cast %384 : vector<1x4x4x16xbf16> to vector<4x4x16xbf16>
    %386 = vector.shape_cast %385 : vector<4x4x16xbf16> to vector<16x16xbf16>
    %cst_390 = arith.constant dense<0.000000e+00> : vector<16x32xf32>
    %387 = tpu.matmul %386, %373, %cst_390 {dimension_numbers = #tpu.dot_dimension_numbers<[1], [0], [0], [1], [0, 0, 1, 1], [], []>} : vector<16x16xbf16>, vector<16x32xbf16>, vector<16x32xf32> -> vector<16x32xf32>
    %388 = arith.addf %366, %387 : vector<16x32xf32>
    %c0_391 = arith.constant 0 : index
    %c2_392 = arith.constant 2 : index
    %c1_393 = arith.constant 1 : index
    %c0_394 = arith.constant 0 : index
    %389 = vector.load %arg9[%c0_391, %c2_392, %c1_393, %c0_394] : memref<4x6x6x16xbf16, #tpu.memory_space<vmem>>, vector<1x4x4x16xbf16>
    %390 = vector.shape_cast %389 : vector<1x4x4x16xbf16> to vector<4x4x16xbf16>
    %391 = vector.shape_cast %390 : vector<4x4x16xbf16> to vector<16x16xbf16>
    %cst_395 = arith.constant dense<0.000000e+00> : vector<16x32xf32>
    %392 = tpu.matmul %391, %373, %cst_395 {dimension_numbers = #tpu.dot_dimension_numbers<[1], [0], [0], [1], [0, 0, 1, 1], [], []>} : vector<16x16xbf16>, vector<16x32xbf16>, vector<16x32xf32> -> vector<16x32xf32>
    %393 = arith.addf %371, %392 : vector<16x32xf32>
    %c17 = arith.constant 17 : index
    %c0_396 = arith.constant 0 : index
    %c0_397 = arith.constant 0 : index
    %394 = vector.load %arg4[%c17, %c0_396, %c0_397] : memref<25x16x32xbf16, #tpu.memory_space<vmem>>, vector<1x16x32xbf16>
    %395 = vector.shape_cast %394 : vector<1x16x32xbf16> to vector<16x32xbf16>
    %c2_398 = arith.constant 2 : index
    %c1_399 = arith.constant 1 : index
    %c1_400 = arith.constant 1 : index
    %c0_401 = arith.constant 0 : index
    %396 = vector.load %arg9[%c2_398, %c1_399, %c1_400, %c0_401] : memref<4x6x6x16xbf16, #tpu.memory_space<vmem>>, vector<1x4x4x16xbf16>
    %397 = vector.shape_cast %396 : vector<1x4x4x16xbf16> to vector<4x4x16xbf16>
    %398 = vector.shape_cast %397 : vector<4x4x16xbf16> to vector<16x16xbf16>
    %cst_402 = arith.constant dense<0.000000e+00> : vector<16x32xf32>
    %399 = tpu.matmul %398, %395, %cst_402 {dimension_numbers = #tpu.dot_dimension_numbers<[1], [0], [0], [1], [0, 0, 1, 1], [], []>} : vector<16x16xbf16>, vector<16x32xbf16>, vector<16x32xf32> -> vector<16x32xf32>
    %400 = arith.addf %378, %399 : vector<16x32xf32>
    %c3_403 = arith.constant 3 : index
    %c1_404 = arith.constant 1 : index
    %c1_405 = arith.constant 1 : index
    %c0_406 = arith.constant 0 : index
    %401 = vector.load %arg9[%c3_403, %c1_404, %c1_405, %c0_406] : memref<4x6x6x16xbf16, #tpu.memory_space<vmem>>, vector<1x4x4x16xbf16>
    %402 = vector.shape_cast %401 : vector<1x4x4x16xbf16> to vector<4x4x16xbf16>
    %403 = vector.shape_cast %402 : vector<4x4x16xbf16> to vector<16x16xbf16>
    %cst_407 = arith.constant dense<0.000000e+00> : vector<16x32xf32>
    %404 = tpu.matmul %403, %395, %cst_407 {dimension_numbers = #tpu.dot_dimension_numbers<[1], [0], [0], [1], [0, 0, 1, 1], [], []>} : vector<16x16xbf16>, vector<16x32xbf16>, vector<16x32xf32> -> vector<16x32xf32>
    %405 = arith.addf %383, %404 : vector<16x32xf32>
    %c0_408 = arith.constant 0 : index
    %c2_409 = arith.constant 2 : index
    %c1_410 = arith.constant 1 : index
    %c0_411 = arith.constant 0 : index
    %406 = vector.load %arg9[%c0_408, %c2_409, %c1_410, %c0_411] : memref<4x6x6x16xbf16, #tpu.memory_space<vmem>>, vector<1x4x4x16xbf16>
    %407 = vector.shape_cast %406 : vector<1x4x4x16xbf16> to vector<4x4x16xbf16>
    %408 = vector.shape_cast %407 : vector<4x4x16xbf16> to vector<16x16xbf16>
    %cst_412 = arith.constant dense<0.000000e+00> : vector<16x32xf32>
    %409 = tpu.matmul %408, %395, %cst_412 {dimension_numbers = #tpu.dot_dimension_numbers<[1], [0], [0], [1], [0, 0, 1, 1], [], []>} : vector<16x16xbf16>, vector<16x32xbf16>, vector<16x32xf32> -> vector<16x32xf32>
    %410 = arith.addf %388, %409 : vector<16x32xf32>
    %c1_413 = arith.constant 1 : index
    %c2_414 = arith.constant 2 : index
    %c1_415 = arith.constant 1 : index
    %c0_416 = arith.constant 0 : index
    %411 = vector.load %arg9[%c1_413, %c2_414, %c1_415, %c0_416] : memref<4x6x6x16xbf16, #tpu.memory_space<vmem>>, vector<1x4x4x16xbf16>
    %412 = vector.shape_cast %411 : vector<1x4x4x16xbf16> to vector<4x4x16xbf16>
    %413 = vector.shape_cast %412 : vector<4x4x16xbf16> to vector<16x16xbf16>
    %cst_417 = arith.constant dense<0.000000e+00> : vector<16x32xf32>
    %414 = tpu.matmul %413, %395, %cst_417 {dimension_numbers = #tpu.dot_dimension_numbers<[1], [0], [0], [1], [0, 0, 1, 1], [], []>} : vector<16x16xbf16>, vector<16x32xbf16>, vector<16x32xf32> -> vector<16x32xf32>
    %415 = arith.addf %393, %414 : vector<16x32xf32>
    %c18 = arith.constant 18 : index
    %c0_418 = arith.constant 0 : index
    %c0_419 = arith.constant 0 : index
    %416 = vector.load %arg4[%c18, %c0_418, %c0_419] : memref<25x16x32xbf16, #tpu.memory_space<vmem>>, vector<1x16x32xbf16>
    %417 = vector.shape_cast %416 : vector<1x16x32xbf16> to vector<16x32xbf16>
    %c3_420 = arith.constant 3 : index
    %c1_421 = arith.constant 1 : index
    %c1_422 = arith.constant 1 : index
    %c0_423 = arith.constant 0 : index
    %418 = vector.load %arg9[%c3_420, %c1_421, %c1_422, %c0_423] : memref<4x6x6x16xbf16, #tpu.memory_space<vmem>>, vector<1x4x4x16xbf16>
    %419 = vector.shape_cast %418 : vector<1x4x4x16xbf16> to vector<4x4x16xbf16>
    %420 = vector.shape_cast %419 : vector<4x4x16xbf16> to vector<16x16xbf16>
    %cst_424 = arith.constant dense<0.000000e+00> : vector<16x32xf32>
    %421 = tpu.matmul %420, %417, %cst_424 {dimension_numbers = #tpu.dot_dimension_numbers<[1], [0], [0], [1], [0, 0, 1, 1], [], []>} : vector<16x16xbf16>, vector<16x32xbf16>, vector<16x32xf32> -> vector<16x32xf32>
    %422 = arith.addf %400, %421 : vector<16x32xf32>
    %c2_425 = arith.constant 2 : index
    %c1_426 = arith.constant 1 : index
    %c2_427 = arith.constant 2 : index
    %c0_428 = arith.constant 0 : index
    %423 = vector.load %arg9[%c2_425, %c1_426, %c2_427, %c0_428] : memref<4x6x6x16xbf16, #tpu.memory_space<vmem>>, vector<1x4x4x16xbf16>
    %424 = vector.shape_cast %423 : vector<1x4x4x16xbf16> to vector<4x4x16xbf16>
    %425 = vector.shape_cast %424 : vector<4x4x16xbf16> to vector<16x16xbf16>
    %cst_429 = arith.constant dense<0.000000e+00> : vector<16x32xf32>
    %426 = tpu.matmul %425, %417, %cst_429 {dimension_numbers = #tpu.dot_dimension_numbers<[1], [0], [0], [1], [0, 0, 1, 1], [], []>} : vector<16x16xbf16>, vector<16x32xbf16>, vector<16x32xf32> -> vector<16x32xf32>
    %427 = arith.addf %405, %426 : vector<16x32xf32>
    %c1_430 = arith.constant 1 : index
    %c2_431 = arith.constant 2 : index
    %c1_432 = arith.constant 1 : index
    %c0_433 = arith.constant 0 : index
    %428 = vector.load %arg9[%c1_430, %c2_431, %c1_432, %c0_433] : memref<4x6x6x16xbf16, #tpu.memory_space<vmem>>, vector<1x4x4x16xbf16>
    %429 = vector.shape_cast %428 : vector<1x4x4x16xbf16> to vector<4x4x16xbf16>
    %430 = vector.shape_cast %429 : vector<4x4x16xbf16> to vector<16x16xbf16>
    %cst_434 = arith.constant dense<0.000000e+00> : vector<16x32xf32>
    %431 = tpu.matmul %430, %417, %cst_434 {dimension_numbers = #tpu.dot_dimension_numbers<[1], [0], [0], [1], [0, 0, 1, 1], [], []>} : vector<16x16xbf16>, vector<16x32xbf16>, vector<16x32xf32> -> vector<16x32xf32>
    %432 = arith.addf %410, %431 : vector<16x32xf32>
    %c0_435 = arith.constant 0 : index
    %c2_436 = arith.constant 2 : index
    %c2_437 = arith.constant 2 : index
    %c0_438 = arith.constant 0 : index
    %433 = vector.load %arg9[%c0_435, %c2_436, %c2_437, %c0_438] : memref<4x6x6x16xbf16, #tpu.memory_space<vmem>>, vector<1x4x4x16xbf16>
    %434 = vector.shape_cast %433 : vector<1x4x4x16xbf16> to vector<4x4x16xbf16>
    %435 = vector.shape_cast %434 : vector<4x4x16xbf16> to vector<16x16xbf16>
    %cst_439 = arith.constant dense<0.000000e+00> : vector<16x32xf32>
    %436 = tpu.matmul %435, %417, %cst_439 {dimension_numbers = #tpu.dot_dimension_numbers<[1], [0], [0], [1], [0, 0, 1, 1], [], []>} : vector<16x16xbf16>, vector<16x32xbf16>, vector<16x32xf32> -> vector<16x32xf32>
    %437 = arith.addf %415, %436 : vector<16x32xf32>
    %c19 = arith.constant 19 : index
    %c0_440 = arith.constant 0 : index
    %c0_441 = arith.constant 0 : index
    %438 = vector.load %arg4[%c19, %c0_440, %c0_441] : memref<25x16x32xbf16, #tpu.memory_space<vmem>>, vector<1x16x32xbf16>
    %439 = vector.shape_cast %438 : vector<1x16x32xbf16> to vector<16x32xbf16>
    %c2_442 = arith.constant 2 : index
    %c1_443 = arith.constant 1 : index
    %c2_444 = arith.constant 2 : index
    %c0_445 = arith.constant 0 : index
    %440 = vector.load %arg9[%c2_442, %c1_443, %c2_444, %c0_445] : memref<4x6x6x16xbf16, #tpu.memory_space<vmem>>, vector<1x4x4x16xbf16>
    %441 = vector.shape_cast %440 : vector<1x4x4x16xbf16> to vector<4x4x16xbf16>
    %442 = vector.shape_cast %441 : vector<4x4x16xbf16> to vector<16x16xbf16>
    %cst_446 = arith.constant dense<0.000000e+00> : vector<16x32xf32>
    %443 = tpu.matmul %442, %439, %cst_446 {dimension_numbers = #tpu.dot_dimension_numbers<[1], [0], [0], [1], [0, 0, 1, 1], [], []>} : vector<16x16xbf16>, vector<16x32xbf16>, vector<16x32xf32> -> vector<16x32xf32>
    %444 = arith.addf %422, %443 : vector<16x32xf32>
    %c3_447 = arith.constant 3 : index
    %c1_448 = arith.constant 1 : index
    %c2_449 = arith.constant 2 : index
    %c0_450 = arith.constant 0 : index
    %445 = vector.load %arg9[%c3_447, %c1_448, %c2_449, %c0_450] : memref<4x6x6x16xbf16, #tpu.memory_space<vmem>>, vector<1x4x4x16xbf16>
    %446 = vector.shape_cast %445 : vector<1x4x4x16xbf16> to vector<4x4x16xbf16>
    %447 = vector.shape_cast %446 : vector<4x4x16xbf16> to vector<16x16xbf16>
    %cst_451 = arith.constant dense<0.000000e+00> : vector<16x32xf32>
    %448 = tpu.matmul %447, %439, %cst_451 {dimension_numbers = #tpu.dot_dimension_numbers<[1], [0], [0], [1], [0, 0, 1, 1], [], []>} : vector<16x16xbf16>, vector<16x32xbf16>, vector<16x32xf32> -> vector<16x32xf32>
    %449 = arith.addf %427, %448 : vector<16x32xf32>
    %c0_452 = arith.constant 0 : index
    %c2_453 = arith.constant 2 : index
    %c2_454 = arith.constant 2 : index
    %c0_455 = arith.constant 0 : index
    %450 = vector.load %arg9[%c0_452, %c2_453, %c2_454, %c0_455] : memref<4x6x6x16xbf16, #tpu.memory_space<vmem>>, vector<1x4x4x16xbf16>
    %451 = vector.shape_cast %450 : vector<1x4x4x16xbf16> to vector<4x4x16xbf16>
    %452 = vector.shape_cast %451 : vector<4x4x16xbf16> to vector<16x16xbf16>
    %cst_456 = arith.constant dense<0.000000e+00> : vector<16x32xf32>
    %453 = tpu.matmul %452, %439, %cst_456 {dimension_numbers = #tpu.dot_dimension_numbers<[1], [0], [0], [1], [0, 0, 1, 1], [], []>} : vector<16x16xbf16>, vector<16x32xbf16>, vector<16x32xf32> -> vector<16x32xf32>
    %454 = arith.addf %432, %453 : vector<16x32xf32>
    %c1_457 = arith.constant 1 : index
    %c2_458 = arith.constant 2 : index
    %c2_459 = arith.constant 2 : index
    %c0_460 = arith.constant 0 : index
    %455 = vector.load %arg9[%c1_457, %c2_458, %c2_459, %c0_460] : memref<4x6x6x16xbf16, #tpu.memory_space<vmem>>, vector<1x4x4x16xbf16>
    %456 = vector.shape_cast %455 : vector<1x4x4x16xbf16> to vector<4x4x16xbf16>
    %457 = vector.shape_cast %456 : vector<4x4x16xbf16> to vector<16x16xbf16>
    %cst_461 = arith.constant dense<0.000000e+00> : vector<16x32xf32>
    %458 = tpu.matmul %457, %439, %cst_461 {dimension_numbers = #tpu.dot_dimension_numbers<[1], [0], [0], [1], [0, 0, 1, 1], [], []>} : vector<16x16xbf16>, vector<16x32xbf16>, vector<16x32xf32> -> vector<16x32xf32>
    %459 = arith.addf %437, %458 : vector<16x32xf32>
    %c20 = arith.constant 20 : index
    %c0_462 = arith.constant 0 : index
    %c0_463 = arith.constant 0 : index
    %460 = vector.load %arg4[%c20, %c0_462, %c0_463] : memref<25x16x32xbf16, #tpu.memory_space<vmem>>, vector<1x16x32xbf16>
    %461 = vector.shape_cast %460 : vector<1x16x32xbf16> to vector<16x32xbf16>
    %c0_464 = arith.constant 0 : index
    %c2_465 = arith.constant 2 : index
    %c0_466 = arith.constant 0 : index
    %c0_467 = arith.constant 0 : index
    %462 = vector.load %arg9[%c0_464, %c2_465, %c0_466, %c0_467] : memref<4x6x6x16xbf16, #tpu.memory_space<vmem>>, vector<1x4x4x16xbf16>
    %463 = vector.shape_cast %462 : vector<1x4x4x16xbf16> to vector<4x4x16xbf16>
    %464 = vector.shape_cast %463 : vector<4x4x16xbf16> to vector<16x16xbf16>
    %cst_468 = arith.constant dense<0.000000e+00> : vector<16x32xf32>
    %465 = tpu.matmul %464, %461, %cst_468 {dimension_numbers = #tpu.dot_dimension_numbers<[1], [0], [0], [1], [0, 0, 1, 1], [], []>} : vector<16x16xbf16>, vector<16x32xbf16>, vector<16x32xf32> -> vector<16x32xf32>
    %466 = arith.addf %444, %465 : vector<16x32xf32>
    %c1_469 = arith.constant 1 : index
    %c2_470 = arith.constant 2 : index
    %c0_471 = arith.constant 0 : index
    %c0_472 = arith.constant 0 : index
    %467 = vector.load %arg9[%c1_469, %c2_470, %c0_471, %c0_472] : memref<4x6x6x16xbf16, #tpu.memory_space<vmem>>, vector<1x4x4x16xbf16>
    %468 = vector.shape_cast %467 : vector<1x4x4x16xbf16> to vector<4x4x16xbf16>
    %469 = vector.shape_cast %468 : vector<4x4x16xbf16> to vector<16x16xbf16>
    %cst_473 = arith.constant dense<0.000000e+00> : vector<16x32xf32>
    %470 = tpu.matmul %469, %461, %cst_473 {dimension_numbers = #tpu.dot_dimension_numbers<[1], [0], [0], [1], [0, 0, 1, 1], [], []>} : vector<16x16xbf16>, vector<16x32xbf16>, vector<16x32xf32> -> vector<16x32xf32>
    %471 = arith.addf %449, %470 : vector<16x32xf32>
    %c2_474 = arith.constant 2 : index
    %c2_475 = arith.constant 2 : index
    %c0_476 = arith.constant 0 : index
    %c0_477 = arith.constant 0 : index
    %472 = vector.load %arg9[%c2_474, %c2_475, %c0_476, %c0_477] : memref<4x6x6x16xbf16, #tpu.memory_space<vmem>>, vector<1x4x4x16xbf16>
    %473 = vector.shape_cast %472 : vector<1x4x4x16xbf16> to vector<4x4x16xbf16>
    %474 = vector.shape_cast %473 : vector<4x4x16xbf16> to vector<16x16xbf16>
    %cst_478 = arith.constant dense<0.000000e+00> : vector<16x32xf32>
    %475 = tpu.matmul %474, %461, %cst_478 {dimension_numbers = #tpu.dot_dimension_numbers<[1], [0], [0], [1], [0, 0, 1, 1], [], []>} : vector<16x16xbf16>, vector<16x32xbf16>, vector<16x32xf32> -> vector<16x32xf32>
    %476 = arith.addf %454, %475 : vector<16x32xf32>
    %c3_479 = arith.constant 3 : index
    %c2_480 = arith.constant 2 : index
    %c0_481 = arith.constant 0 : index
    %c0_482 = arith.constant 0 : index
    %477 = vector.load %arg9[%c3_479, %c2_480, %c0_481, %c0_482] : memref<4x6x6x16xbf16, #tpu.memory_space<vmem>>, vector<1x4x4x16xbf16>
    %478 = vector.shape_cast %477 : vector<1x4x4x16xbf16> to vector<4x4x16xbf16>
    %479 = vector.shape_cast %478 : vector<4x4x16xbf16> to vector<16x16xbf16>
    %cst_483 = arith.constant dense<0.000000e+00> : vector<16x32xf32>
    %480 = tpu.matmul %479, %461, %cst_483 {dimension_numbers = #tpu.dot_dimension_numbers<[1], [0], [0], [1], [0, 0, 1, 1], [], []>} : vector<16x16xbf16>, vector<16x32xbf16>, vector<16x32xf32> -> vector<16x32xf32>
    %481 = arith.addf %459, %480 : vector<16x32xf32>
    %c21 = arith.constant 21 : index
    %c0_484 = arith.constant 0 : index
    %c0_485 = arith.constant 0 : index
    %482 = vector.load %arg4[%c21, %c0_484, %c0_485] : memref<25x16x32xbf16, #tpu.memory_space<vmem>>, vector<1x16x32xbf16>
    %483 = vector.shape_cast %482 : vector<1x16x32xbf16> to vector<16x32xbf16>
    %c1_486 = arith.constant 1 : index
    %c2_487 = arith.constant 2 : index
    %c0_488 = arith.constant 0 : index
    %c0_489 = arith.constant 0 : index
    %484 = vector.load %arg9[%c1_486, %c2_487, %c0_488, %c0_489] : memref<4x6x6x16xbf16, #tpu.memory_space<vmem>>, vector<1x4x4x16xbf16>
    %485 = vector.shape_cast %484 : vector<1x4x4x16xbf16> to vector<4x4x16xbf16>
    %486 = vector.shape_cast %485 : vector<4x4x16xbf16> to vector<16x16xbf16>
    %cst_490 = arith.constant dense<0.000000e+00> : vector<16x32xf32>
    %487 = tpu.matmul %486, %483, %cst_490 {dimension_numbers = #tpu.dot_dimension_numbers<[1], [0], [0], [1], [0, 0, 1, 1], [], []>} : vector<16x16xbf16>, vector<16x32xbf16>, vector<16x32xf32> -> vector<16x32xf32>
    %488 = arith.addf %466, %487 : vector<16x32xf32>
    %c0_491 = arith.constant 0 : index
    %c2_492 = arith.constant 2 : index
    %c1_493 = arith.constant 1 : index
    %c0_494 = arith.constant 0 : index
    %489 = vector.load %arg9[%c0_491, %c2_492, %c1_493, %c0_494] : memref<4x6x6x16xbf16, #tpu.memory_space<vmem>>, vector<1x4x4x16xbf16>
    %490 = vector.shape_cast %489 : vector<1x4x4x16xbf16> to vector<4x4x16xbf16>
    %491 = vector.shape_cast %490 : vector<4x4x16xbf16> to vector<16x16xbf16>
    %cst_495 = arith.constant dense<0.000000e+00> : vector<16x32xf32>
    %492 = tpu.matmul %491, %483, %cst_495 {dimension_numbers = #tpu.dot_dimension_numbers<[1], [0], [0], [1], [0, 0, 1, 1], [], []>} : vector<16x16xbf16>, vector<16x32xbf16>, vector<16x32xf32> -> vector<16x32xf32>
    %493 = arith.addf %471, %492 : vector<16x32xf32>
    %c3_496 = arith.constant 3 : index
    %c2_497 = arith.constant 2 : index
    %c0_498 = arith.constant 0 : index
    %c0_499 = arith.constant 0 : index
    %494 = vector.load %arg9[%c3_496, %c2_497, %c0_498, %c0_499] : memref<4x6x6x16xbf16, #tpu.memory_space<vmem>>, vector<1x4x4x16xbf16>
    %495 = vector.shape_cast %494 : vector<1x4x4x16xbf16> to vector<4x4x16xbf16>
    %496 = vector.shape_cast %495 : vector<4x4x16xbf16> to vector<16x16xbf16>
    %cst_500 = arith.constant dense<0.000000e+00> : vector<16x32xf32>
    %497 = tpu.matmul %496, %483, %cst_500 {dimension_numbers = #tpu.dot_dimension_numbers<[1], [0], [0], [1], [0, 0, 1, 1], [], []>} : vector<16x16xbf16>, vector<16x32xbf16>, vector<16x32xf32> -> vector<16x32xf32>
    %498 = arith.addf %476, %497 : vector<16x32xf32>
    %c2_501 = arith.constant 2 : index
    %c2_502 = arith.constant 2 : index
    %c1_503 = arith.constant 1 : index
    %c0_504 = arith.constant 0 : index
    %499 = vector.load %arg9[%c2_501, %c2_502, %c1_503, %c0_504] : memref<4x6x6x16xbf16, #tpu.memory_space<vmem>>, vector<1x4x4x16xbf16>
    %500 = vector.shape_cast %499 : vector<1x4x4x16xbf16> to vector<4x4x16xbf16>
    %501 = vector.shape_cast %500 : vector<4x4x16xbf16> to vector<16x16xbf16>
    %cst_505 = arith.constant dense<0.000000e+00> : vector<16x32xf32>
    %502 = tpu.matmul %501, %483, %cst_505 {dimension_numbers = #tpu.dot_dimension_numbers<[1], [0], [0], [1], [0, 0, 1, 1], [], []>} : vector<16x16xbf16>, vector<16x32xbf16>, vector<16x32xf32> -> vector<16x32xf32>
    %503 = arith.addf %481, %502 : vector<16x32xf32>
    %c22 = arith.constant 22 : index
    %c0_506 = arith.constant 0 : index
    %c0_507 = arith.constant 0 : index
    %504 = vector.load %arg4[%c22, %c0_506, %c0_507] : memref<25x16x32xbf16, #tpu.memory_space<vmem>>, vector<1x16x32xbf16>
    %505 = vector.shape_cast %504 : vector<1x16x32xbf16> to vector<16x32xbf16>
    %c0_508 = arith.constant 0 : index
    %c2_509 = arith.constant 2 : index
    %c1_510 = arith.constant 1 : index
    %c0_511 = arith.constant 0 : index
    %506 = vector.load %arg9[%c0_508, %c2_509, %c1_510, %c0_511] : memref<4x6x6x16xbf16, #tpu.memory_space<vmem>>, vector<1x4x4x16xbf16>
    %507 = vector.shape_cast %506 : vector<1x4x4x16xbf16> to vector<4x4x16xbf16>
    %508 = vector.shape_cast %507 : vector<4x4x16xbf16> to vector<16x16xbf16>
    %cst_512 = arith.constant dense<0.000000e+00> : vector<16x32xf32>
    %509 = tpu.matmul %508, %505, %cst_512 {dimension_numbers = #tpu.dot_dimension_numbers<[1], [0], [0], [1], [0, 0, 1, 1], [], []>} : vector<16x16xbf16>, vector<16x32xbf16>, vector<16x32xf32> -> vector<16x32xf32>
    %510 = arith.addf %488, %509 : vector<16x32xf32>
    %c1_513 = arith.constant 1 : index
    %c2_514 = arith.constant 2 : index
    %c1_515 = arith.constant 1 : index
    %c0_516 = arith.constant 0 : index
    %511 = vector.load %arg9[%c1_513, %c2_514, %c1_515, %c0_516] : memref<4x6x6x16xbf16, #tpu.memory_space<vmem>>, vector<1x4x4x16xbf16>
    %512 = vector.shape_cast %511 : vector<1x4x4x16xbf16> to vector<4x4x16xbf16>
    %513 = vector.shape_cast %512 : vector<4x4x16xbf16> to vector<16x16xbf16>
    %cst_517 = arith.constant dense<0.000000e+00> : vector<16x32xf32>
    %514 = tpu.matmul %513, %505, %cst_517 {dimension_numbers = #tpu.dot_dimension_numbers<[1], [0], [0], [1], [0, 0, 1, 1], [], []>} : vector<16x16xbf16>, vector<16x32xbf16>, vector<16x32xf32> -> vector<16x32xf32>
    %515 = arith.addf %493, %514 : vector<16x32xf32>
    %c2_518 = arith.constant 2 : index
    %c2_519 = arith.constant 2 : index
    %c1_520 = arith.constant 1 : index
    %c0_521 = arith.constant 0 : index
    %516 = vector.load %arg9[%c2_518, %c2_519, %c1_520, %c0_521] : memref<4x6x6x16xbf16, #tpu.memory_space<vmem>>, vector<1x4x4x16xbf16>
    %517 = vector.shape_cast %516 : vector<1x4x4x16xbf16> to vector<4x4x16xbf16>
    %518 = vector.shape_cast %517 : vector<4x4x16xbf16> to vector<16x16xbf16>
    %cst_522 = arith.constant dense<0.000000e+00> : vector<16x32xf32>
    %519 = tpu.matmul %518, %505, %cst_522 {dimension_numbers = #tpu.dot_dimension_numbers<[1], [0], [0], [1], [0, 0, 1, 1], [], []>} : vector<16x16xbf16>, vector<16x32xbf16>, vector<16x32xf32> -> vector<16x32xf32>
    %520 = arith.addf %498, %519 : vector<16x32xf32>
    %c3_523 = arith.constant 3 : index
    %c2_524 = arith.constant 2 : index
    %c1_525 = arith.constant 1 : index
    %c0_526 = arith.constant 0 : index
    %521 = vector.load %arg9[%c3_523, %c2_524, %c1_525, %c0_526] : memref<4x6x6x16xbf16, #tpu.memory_space<vmem>>, vector<1x4x4x16xbf16>
    %522 = vector.shape_cast %521 : vector<1x4x4x16xbf16> to vector<4x4x16xbf16>
    %523 = vector.shape_cast %522 : vector<4x4x16xbf16> to vector<16x16xbf16>
    %cst_527 = arith.constant dense<0.000000e+00> : vector<16x32xf32>
    %524 = tpu.matmul %523, %505, %cst_527 {dimension_numbers = #tpu.dot_dimension_numbers<[1], [0], [0], [1], [0, 0, 1, 1], [], []>} : vector<16x16xbf16>, vector<16x32xbf16>, vector<16x32xf32> -> vector<16x32xf32>
    %525 = arith.addf %503, %524 : vector<16x32xf32>
    %c23 = arith.constant 23 : index
    %c0_528 = arith.constant 0 : index
    %c0_529 = arith.constant 0 : index
    %526 = vector.load %arg4[%c23, %c0_528, %c0_529] : memref<25x16x32xbf16, #tpu.memory_space<vmem>>, vector<1x16x32xbf16>
    %527 = vector.shape_cast %526 : vector<1x16x32xbf16> to vector<16x32xbf16>
    %c1_530 = arith.constant 1 : index
    %c2_531 = arith.constant 2 : index
    %c1_532 = arith.constant 1 : index
    %c0_533 = arith.constant 0 : index
    %528 = vector.load %arg9[%c1_530, %c2_531, %c1_532, %c0_533] : memref<4x6x6x16xbf16, #tpu.memory_space<vmem>>, vector<1x4x4x16xbf16>
    %529 = vector.shape_cast %528 : vector<1x4x4x16xbf16> to vector<4x4x16xbf16>
    %530 = vector.shape_cast %529 : vector<4x4x16xbf16> to vector<16x16xbf16>
    %cst_534 = arith.constant dense<0.000000e+00> : vector<16x32xf32>
    %531 = tpu.matmul %530, %527, %cst_534 {dimension_numbers = #tpu.dot_dimension_numbers<[1], [0], [0], [1], [0, 0, 1, 1], [], []>} : vector<16x16xbf16>, vector<16x32xbf16>, vector<16x32xf32> -> vector<16x32xf32>
    %532 = arith.addf %510, %531 : vector<16x32xf32>
    %c0_535 = arith.constant 0 : index
    %c2_536 = arith.constant 2 : index
    %c2_537 = arith.constant 2 : index
    %c0_538 = arith.constant 0 : index
    %533 = vector.load %arg9[%c0_535, %c2_536, %c2_537, %c0_538] : memref<4x6x6x16xbf16, #tpu.memory_space<vmem>>, vector<1x4x4x16xbf16>
    %534 = vector.shape_cast %533 : vector<1x4x4x16xbf16> to vector<4x4x16xbf16>
    %535 = vector.shape_cast %534 : vector<4x4x16xbf16> to vector<16x16xbf16>
    %cst_539 = arith.constant dense<0.000000e+00> : vector<16x32xf32>
    %536 = tpu.matmul %535, %527, %cst_539 {dimension_numbers = #tpu.dot_dimension_numbers<[1], [0], [0], [1], [0, 0, 1, 1], [], []>} : vector<16x16xbf16>, vector<16x32xbf16>, vector<16x32xf32> -> vector<16x32xf32>
    %537 = arith.addf %515, %536 : vector<16x32xf32>
    %c3_540 = arith.constant 3 : index
    %c2_541 = arith.constant 2 : index
    %c1_542 = arith.constant 1 : index
    %c0_543 = arith.constant 0 : index
    %538 = vector.load %arg9[%c3_540, %c2_541, %c1_542, %c0_543] : memref<4x6x6x16xbf16, #tpu.memory_space<vmem>>, vector<1x4x4x16xbf16>
    %539 = vector.shape_cast %538 : vector<1x4x4x16xbf16> to vector<4x4x16xbf16>
    %540 = vector.shape_cast %539 : vector<4x4x16xbf16> to vector<16x16xbf16>
    %cst_544 = arith.constant dense<0.000000e+00> : vector<16x32xf32>
    %541 = tpu.matmul %540, %527, %cst_544 {dimension_numbers = #tpu.dot_dimension_numbers<[1], [0], [0], [1], [0, 0, 1, 1], [], []>} : vector<16x16xbf16>, vector<16x32xbf16>, vector<16x32xf32> -> vector<16x32xf32>
    %542 = arith.addf %520, %541 : vector<16x32xf32>
    %c2_545 = arith.constant 2 : index
    %c2_546 = arith.constant 2 : index
    %c2_547 = arith.constant 2 : index
    %c0_548 = arith.constant 0 : index
    %543 = vector.load %arg9[%c2_545, %c2_546, %c2_547, %c0_548] : memref<4x6x6x16xbf16, #tpu.memory_space<vmem>>, vector<1x4x4x16xbf16>
    %544 = vector.shape_cast %543 : vector<1x4x4x16xbf16> to vector<4x4x16xbf16>
    %545 = vector.shape_cast %544 : vector<4x4x16xbf16> to vector<16x16xbf16>
    %cst_549 = arith.constant dense<0.000000e+00> : vector<16x32xf32>
    %546 = tpu.matmul %545, %527, %cst_549 {dimension_numbers = #tpu.dot_dimension_numbers<[1], [0], [0], [1], [0, 0, 1, 1], [], []>} : vector<16x16xbf16>, vector<16x32xbf16>, vector<16x32xf32> -> vector<16x32xf32>
    %547 = arith.addf %525, %546 : vector<16x32xf32>
    %c24 = arith.constant 24 : index
    %c0_550 = arith.constant 0 : index
    %c0_551 = arith.constant 0 : index
    %548 = vector.load %arg4[%c24, %c0_550, %c0_551] : memref<25x16x32xbf16, #tpu.memory_space<vmem>>, vector<1x16x32xbf16>
    %549 = vector.shape_cast %548 : vector<1x16x32xbf16> to vector<16x32xbf16>
    %c0_552 = arith.constant 0 : index
    %c2_553 = arith.constant 2 : index
    %c2_554 = arith.constant 2 : index
    %c0_555 = arith.constant 0 : index
    %550 = vector.load %arg9[%c0_552, %c2_553, %c2_554, %c0_555] : memref<4x6x6x16xbf16, #tpu.memory_space<vmem>>, vector<1x4x4x16xbf16>
    %551 = vector.shape_cast %550 : vector<1x4x4x16xbf16> to vector<4x4x16xbf16>
    %552 = vector.shape_cast %551 : vector<4x4x16xbf16> to vector<16x16xbf16>
    %cst_556 = arith.constant dense<0.000000e+00> : vector<16x32xf32>
    %553 = tpu.matmul %552, %549, %cst_556 {dimension_numbers = #tpu.dot_dimension_numbers<[1], [0], [0], [1], [0, 0, 1, 1], [], []>} : vector<16x16xbf16>, vector<16x32xbf16>, vector<16x32xf32> -> vector<16x32xf32>
    %554 = arith.addf %532, %553 : vector<16x32xf32>
    %c1_557 = arith.constant 1 : index
    %c2_558 = arith.constant 2 : index
    %c2_559 = arith.constant 2 : index
    %c0_560 = arith.constant 0 : index
    %555 = vector.load %arg9[%c1_557, %c2_558, %c2_559, %c0_560] : memref<4x6x6x16xbf16, #tpu.memory_space<vmem>>, vector<1x4x4x16xbf16>
    %556 = vector.shape_cast %555 : vector<1x4x4x16xbf16> to vector<4x4x16xbf16>
    %557 = vector.shape_cast %556 : vector<4x4x16xbf16> to vector<16x16xbf16>
    %cst_561 = arith.constant dense<0.000000e+00> : vector<16x32xf32>
    %558 = tpu.matmul %557, %549, %cst_561 {dimension_numbers = #tpu.dot_dimension_numbers<[1], [0], [0], [1], [0, 0, 1, 1], [], []>} : vector<16x16xbf16>, vector<16x32xbf16>, vector<16x32xf32> -> vector<16x32xf32>
    %559 = arith.addf %537, %558 : vector<16x32xf32>
    %c2_562 = arith.constant 2 : index
    %c2_563 = arith.constant 2 : index
    %c2_564 = arith.constant 2 : index
    %c0_565 = arith.constant 0 : index
    %560 = vector.load %arg9[%c2_562, %c2_563, %c2_564, %c0_565] : memref<4x6x6x16xbf16, #tpu.memory_space<vmem>>, vector<1x4x4x16xbf16>
    %561 = vector.shape_cast %560 : vector<1x4x4x16xbf16> to vector<4x4x16xbf16>
    %562 = vector.shape_cast %561 : vector<4x4x16xbf16> to vector<16x16xbf16>
    %cst_566 = arith.constant dense<0.000000e+00> : vector<16x32xf32>
    %563 = tpu.matmul %562, %549, %cst_566 {dimension_numbers = #tpu.dot_dimension_numbers<[1], [0], [0], [1], [0, 0, 1, 1], [], []>} : vector<16x16xbf16>, vector<16x32xbf16>, vector<16x32xf32> -> vector<16x32xf32>
    %564 = arith.addf %542, %563 : vector<16x32xf32>
    %c3_567 = arith.constant 3 : index
    %c2_568 = arith.constant 2 : index
    %c2_569 = arith.constant 2 : index
    %c0_570 = arith.constant 0 : index
    %565 = vector.load %arg9[%c3_567, %c2_568, %c2_569, %c0_570] : memref<4x6x6x16xbf16, #tpu.memory_space<vmem>>, vector<1x4x4x16xbf16>
    %566 = vector.shape_cast %565 : vector<1x4x4x16xbf16> to vector<4x4x16xbf16>
    %567 = vector.shape_cast %566 : vector<4x4x16xbf16> to vector<16x16xbf16>
    %cst_571 = arith.constant dense<0.000000e+00> : vector<16x32xf32>
    %568 = tpu.matmul %567, %549, %cst_571 {dimension_numbers = #tpu.dot_dimension_numbers<[1], [0], [0], [1], [0, 0, 1, 1], [], []>} : vector<16x16xbf16>, vector<16x32xbf16>, vector<16x32xf32> -> vector<16x32xf32>
    %569 = arith.addf %547, %568 : vector<16x32xf32>
    %570 = arith.maximumf %554, %559 : vector<16x32xf32>
    %571 = arith.maximumf %564, %569 : vector<16x32xf32>
    %572 = arith.maximumf %570, %571 : vector<16x32xf32>
    %c0_572 = arith.constant 0 : index
    %c0_573 = arith.constant 0 : index
    %573 = vector.load %arg5[%c0_572, %c0_573] : memref<1x32xf32, #tpu.memory_space<vmem>>, vector<1x32xf32>
    %574 = vector.broadcast %573 : vector<1x32xf32> to vector<16x32xf32>
    %575 = arith.addf %572, %574 : vector<16x32xf32>
    %cst_574 = arith.constant 0.000000e+00 : f32
    %576 = vector.broadcast %cst_574 : f32 to vector<16x32xf32>
    %577 = arith.maximumf %575, %576 : vector<16x32xf32>
    %578 = arith.truncf %577 : vector<16x32xf32> to vector<16x32xbf16>
    %cst_575 = arith.constant 0.000000e+00 : f32
    %579 = vector.broadcast %cst_575 : f32 to vector<1x10xf32>
    %580 = vector.extract_strided_slice %578 {offsets = [0, 0], sizes = [1, 32], strides = [1, 1]} : vector<16x32xbf16> to vector<1x32xbf16>
    %c0_576 = arith.constant 0 : index
    %c0_577 = arith.constant 0 : index
    %c0_578 = arith.constant 0 : index
    %581 = vector.load %arg6[%c0_576, %c0_577, %c0_578] : memref<16x32x10xbf16, #tpu.memory_space<vmem>>, vector<1x32x10xbf16>
    %582 = vector.shape_cast %581 : vector<1x32x10xbf16> to vector<32x10xbf16>
    %cst_579 = arith.constant dense<0.000000e+00> : vector<1x10xf32>
    %583 = tpu.matmul %580, %582, %cst_579 {dimension_numbers = #tpu.dot_dimension_numbers<[1], [0], [0], [1], [0, 0, 1, 1], [], []>} : vector<1x32xbf16>, vector<32x10xbf16>, vector<1x10xf32> -> vector<1x10xf32>
    %584 = arith.addf %579, %583 : vector<1x10xf32>
    %585 = vector.extract_strided_slice %578 {offsets = [1, 0], sizes = [1, 32], strides = [1, 1]} : vector<16x32xbf16> to vector<1x32xbf16>
    %c1_580 = arith.constant 1 : index
    %c0_581 = arith.constant 0 : index
    %c0_582 = arith.constant 0 : index
    %586 = vector.load %arg6[%c1_580, %c0_581, %c0_582] : memref<16x32x10xbf16, #tpu.memory_space<vmem>>, vector<1x32x10xbf16>
    %587 = vector.shape_cast %586 : vector<1x32x10xbf16> to vector<32x10xbf16>
    %cst_583 = arith.constant dense<0.000000e+00> : vector<1x10xf32>
    %588 = tpu.matmul %585, %587, %cst_583 {dimension_numbers = #tpu.dot_dimension_numbers<[1], [0], [0], [1], [0, 0, 1, 1], [], []>} : vector<1x32xbf16>, vector<32x10xbf16>, vector<1x10xf32> -> vector<1x10xf32>
    %589 = arith.addf %584, %588 : vector<1x10xf32>
    %590 = vector.extract_strided_slice %578 {offsets = [2, 0], sizes = [1, 32], strides = [1, 1]} : vector<16x32xbf16> to vector<1x32xbf16>
    %c2_584 = arith.constant 2 : index
    %c0_585 = arith.constant 0 : index
    %c0_586 = arith.constant 0 : index
    %591 = vector.load %arg6[%c2_584, %c0_585, %c0_586] : memref<16x32x10xbf16, #tpu.memory_space<vmem>>, vector<1x32x10xbf16>
    %592 = vector.shape_cast %591 : vector<1x32x10xbf16> to vector<32x10xbf16>
    %cst_587 = arith.constant dense<0.000000e+00> : vector<1x10xf32>
    %593 = tpu.matmul %590, %592, %cst_587 {dimension_numbers = #tpu.dot_dimension_numbers<[1], [0], [0], [1], [0, 0, 1, 1], [], []>} : vector<1x32xbf16>, vector<32x10xbf16>, vector<1x10xf32> -> vector<1x10xf32>
    %594 = arith.addf %589, %593 : vector<1x10xf32>
    %595 = vector.extract_strided_slice %578 {offsets = [3, 0], sizes = [1, 32], strides = [1, 1]} : vector<16x32xbf16> to vector<1x32xbf16>
    %c3_588 = arith.constant 3 : index
    %c0_589 = arith.constant 0 : index
    %c0_590 = arith.constant 0 : index
    %596 = vector.load %arg6[%c3_588, %c0_589, %c0_590] : memref<16x32x10xbf16, #tpu.memory_space<vmem>>, vector<1x32x10xbf16>
    %597 = vector.shape_cast %596 : vector<1x32x10xbf16> to vector<32x10xbf16>
    %cst_591 = arith.constant dense<0.000000e+00> : vector<1x10xf32>
    %598 = tpu.matmul %595, %597, %cst_591 {dimension_numbers = #tpu.dot_dimension_numbers<[1], [0], [0], [1], [0, 0, 1, 1], [], []>} : vector<1x32xbf16>, vector<32x10xbf16>, vector<1x10xf32> -> vector<1x10xf32>
    %599 = arith.addf %594, %598 : vector<1x10xf32>
    %600 = vector.extract_strided_slice %578 {offsets = [4, 0], sizes = [1, 32], strides = [1, 1]} : vector<16x32xbf16> to vector<1x32xbf16>
    %c4_592 = arith.constant 4 : index
    %c0_593 = arith.constant 0 : index
    %c0_594 = arith.constant 0 : index
    %601 = vector.load %arg6[%c4_592, %c0_593, %c0_594] : memref<16x32x10xbf16, #tpu.memory_space<vmem>>, vector<1x32x10xbf16>
    %602 = vector.shape_cast %601 : vector<1x32x10xbf16> to vector<32x10xbf16>
    %cst_595 = arith.constant dense<0.000000e+00> : vector<1x10xf32>
    %603 = tpu.matmul %600, %602, %cst_595 {dimension_numbers = #tpu.dot_dimension_numbers<[1], [0], [0], [1], [0, 0, 1, 1], [], []>} : vector<1x32xbf16>, vector<32x10xbf16>, vector<1x10xf32> -> vector<1x10xf32>
    %604 = arith.addf %599, %603 : vector<1x10xf32>
    %605 = vector.extract_strided_slice %578 {offsets = [5, 0], sizes = [1, 32], strides = [1, 1]} : vector<16x32xbf16> to vector<1x32xbf16>
    %c5_596 = arith.constant 5 : index
    %c0_597 = arith.constant 0 : index
    %c0_598 = arith.constant 0 : index
    %606 = vector.load %arg6[%c5_596, %c0_597, %c0_598] : memref<16x32x10xbf16, #tpu.memory_space<vmem>>, vector<1x32x10xbf16>
    %607 = vector.shape_cast %606 : vector<1x32x10xbf16> to vector<32x10xbf16>
    %cst_599 = arith.constant dense<0.000000e+00> : vector<1x10xf32>
    %608 = tpu.matmul %605, %607, %cst_599 {dimension_numbers = #tpu.dot_dimension_numbers<[1], [0], [0], [1], [0, 0, 1, 1], [], []>} : vector<1x32xbf16>, vector<32x10xbf16>, vector<1x10xf32> -> vector<1x10xf32>
    %609 = arith.addf %604, %608 : vector<1x10xf32>
    %610 = vector.extract_strided_slice %578 {offsets = [6, 0], sizes = [1, 32], strides = [1, 1]} : vector<16x32xbf16> to vector<1x32xbf16>
    %c6_600 = arith.constant 6 : index
    %c0_601 = arith.constant 0 : index
    %c0_602 = arith.constant 0 : index
    %611 = vector.load %arg6[%c6_600, %c0_601, %c0_602] : memref<16x32x10xbf16, #tpu.memory_space<vmem>>, vector<1x32x10xbf16>
    %612 = vector.shape_cast %611 : vector<1x32x10xbf16> to vector<32x10xbf16>
    %cst_603 = arith.constant dense<0.000000e+00> : vector<1x10xf32>
    %613 = tpu.matmul %610, %612, %cst_603 {dimension_numbers = #tpu.dot_dimension_numbers<[1], [0], [0], [1], [0, 0, 1, 1], [], []>} : vector<1x32xbf16>, vector<32x10xbf16>, vector<1x10xf32> -> vector<1x10xf32>
    %614 = arith.addf %609, %613 : vector<1x10xf32>
    %615 = vector.extract_strided_slice %578 {offsets = [7, 0], sizes = [1, 32], strides = [1, 1]} : vector<16x32xbf16> to vector<1x32xbf16>
    %c7_604 = arith.constant 7 : index
    %c0_605 = arith.constant 0 : index
    %c0_606 = arith.constant 0 : index
    %616 = vector.load %arg6[%c7_604, %c0_605, %c0_606] : memref<16x32x10xbf16, #tpu.memory_space<vmem>>, vector<1x32x10xbf16>
    %617 = vector.shape_cast %616 : vector<1x32x10xbf16> to vector<32x10xbf16>
    %cst_607 = arith.constant dense<0.000000e+00> : vector<1x10xf32>
    %618 = tpu.matmul %615, %617, %cst_607 {dimension_numbers = #tpu.dot_dimension_numbers<[1], [0], [0], [1], [0, 0, 1, 1], [], []>} : vector<1x32xbf16>, vector<32x10xbf16>, vector<1x10xf32> -> vector<1x10xf32>
    %619 = arith.addf %614, %618 : vector<1x10xf32>
    %620 = vector.extract_strided_slice %578 {offsets = [8, 0], sizes = [1, 32], strides = [1, 1]} : vector<16x32xbf16> to vector<1x32xbf16>
    %c8_608 = arith.constant 8 : index
    %c0_609 = arith.constant 0 : index
    %c0_610 = arith.constant 0 : index
    %621 = vector.load %arg6[%c8_608, %c0_609, %c0_610] : memref<16x32x10xbf16, #tpu.memory_space<vmem>>, vector<1x32x10xbf16>
    %622 = vector.shape_cast %621 : vector<1x32x10xbf16> to vector<32x10xbf16>
    %cst_611 = arith.constant dense<0.000000e+00> : vector<1x10xf32>
    %623 = tpu.matmul %620, %622, %cst_611 {dimension_numbers = #tpu.dot_dimension_numbers<[1], [0], [0], [1], [0, 0, 1, 1], [], []>} : vector<1x32xbf16>, vector<32x10xbf16>, vector<1x10xf32> -> vector<1x10xf32>
    %624 = arith.addf %619, %623 : vector<1x10xf32>
    %625 = vector.extract_strided_slice %578 {offsets = [9, 0], sizes = [1, 32], strides = [1, 1]} : vector<16x32xbf16> to vector<1x32xbf16>
    %c9_612 = arith.constant 9 : index
    %c0_613 = arith.constant 0 : index
    %c0_614 = arith.constant 0 : index
    %626 = vector.load %arg6[%c9_612, %c0_613, %c0_614] : memref<16x32x10xbf16, #tpu.memory_space<vmem>>, vector<1x32x10xbf16>
    %627 = vector.shape_cast %626 : vector<1x32x10xbf16> to vector<32x10xbf16>
    %cst_615 = arith.constant dense<0.000000e+00> : vector<1x10xf32>
    %628 = tpu.matmul %625, %627, %cst_615 {dimension_numbers = #tpu.dot_dimension_numbers<[1], [0], [0], [1], [0, 0, 1, 1], [], []>} : vector<1x32xbf16>, vector<32x10xbf16>, vector<1x10xf32> -> vector<1x10xf32>
    %629 = arith.addf %624, %628 : vector<1x10xf32>
    %630 = vector.extract_strided_slice %578 {offsets = [10, 0], sizes = [1, 32], strides = [1, 1]} : vector<16x32xbf16> to vector<1x32xbf16>
    %c10_616 = arith.constant 10 : index
    %c0_617 = arith.constant 0 : index
    %c0_618 = arith.constant 0 : index
    %631 = vector.load %arg6[%c10_616, %c0_617, %c0_618] : memref<16x32x10xbf16, #tpu.memory_space<vmem>>, vector<1x32x10xbf16>
    %632 = vector.shape_cast %631 : vector<1x32x10xbf16> to vector<32x10xbf16>
    %cst_619 = arith.constant dense<0.000000e+00> : vector<1x10xf32>
    %633 = tpu.matmul %630, %632, %cst_619 {dimension_numbers = #tpu.dot_dimension_numbers<[1], [0], [0], [1], [0, 0, 1, 1], [], []>} : vector<1x32xbf16>, vector<32x10xbf16>, vector<1x10xf32> -> vector<1x10xf32>
    %634 = arith.addf %629, %633 : vector<1x10xf32>
    %635 = vector.extract_strided_slice %578 {offsets = [11, 0], sizes = [1, 32], strides = [1, 1]} : vector<16x32xbf16> to vector<1x32xbf16>
    %c11_620 = arith.constant 11 : index
    %c0_621 = arith.constant 0 : index
    %c0_622 = arith.constant 0 : index
    %636 = vector.load %arg6[%c11_620, %c0_621, %c0_622] : memref<16x32x10xbf16, #tpu.memory_space<vmem>>, vector<1x32x10xbf16>
    %637 = vector.shape_cast %636 : vector<1x32x10xbf16> to vector<32x10xbf16>
    %cst_623 = arith.constant dense<0.000000e+00> : vector<1x10xf32>
    %638 = tpu.matmul %635, %637, %cst_623 {dimension_numbers = #tpu.dot_dimension_numbers<[1], [0], [0], [1], [0, 0, 1, 1], [], []>} : vector<1x32xbf16>, vector<32x10xbf16>, vector<1x10xf32> -> vector<1x10xf32>
    %639 = arith.addf %634, %638 : vector<1x10xf32>
    %640 = vector.extract_strided_slice %578 {offsets = [12, 0], sizes = [1, 32], strides = [1, 1]} : vector<16x32xbf16> to vector<1x32xbf16>
    %c12_624 = arith.constant 12 : index
    %c0_625 = arith.constant 0 : index
    %c0_626 = arith.constant 0 : index
    %641 = vector.load %arg6[%c12_624, %c0_625, %c0_626] : memref<16x32x10xbf16, #tpu.memory_space<vmem>>, vector<1x32x10xbf16>
    %642 = vector.shape_cast %641 : vector<1x32x10xbf16> to vector<32x10xbf16>
    %cst_627 = arith.constant dense<0.000000e+00> : vector<1x10xf32>
    %643 = tpu.matmul %640, %642, %cst_627 {dimension_numbers = #tpu.dot_dimension_numbers<[1], [0], [0], [1], [0, 0, 1, 1], [], []>} : vector<1x32xbf16>, vector<32x10xbf16>, vector<1x10xf32> -> vector<1x10xf32>
    %644 = arith.addf %639, %643 : vector<1x10xf32>
    %645 = vector.extract_strided_slice %578 {offsets = [13, 0], sizes = [1, 32], strides = [1, 1]} : vector<16x32xbf16> to vector<1x32xbf16>
    %c13_628 = arith.constant 13 : index
    %c0_629 = arith.constant 0 : index
    %c0_630 = arith.constant 0 : index
    %646 = vector.load %arg6[%c13_628, %c0_629, %c0_630] : memref<16x32x10xbf16, #tpu.memory_space<vmem>>, vector<1x32x10xbf16>
    %647 = vector.shape_cast %646 : vector<1x32x10xbf16> to vector<32x10xbf16>
    %cst_631 = arith.constant dense<0.000000e+00> : vector<1x10xf32>
    %648 = tpu.matmul %645, %647, %cst_631 {dimension_numbers = #tpu.dot_dimension_numbers<[1], [0], [0], [1], [0, 0, 1, 1], [], []>} : vector<1x32xbf16>, vector<32x10xbf16>, vector<1x10xf32> -> vector<1x10xf32>
    %649 = arith.addf %644, %648 : vector<1x10xf32>
    %650 = vector.extract_strided_slice %578 {offsets = [14, 0], sizes = [1, 32], strides = [1, 1]} : vector<16x32xbf16> to vector<1x32xbf16>
    %c14_632 = arith.constant 14 : index
    %c0_633 = arith.constant 0 : index
    %c0_634 = arith.constant 0 : index
    %651 = vector.load %arg6[%c14_632, %c0_633, %c0_634] : memref<16x32x10xbf16, #tpu.memory_space<vmem>>, vector<1x32x10xbf16>
    %652 = vector.shape_cast %651 : vector<1x32x10xbf16> to vector<32x10xbf16>
    %cst_635 = arith.constant dense<0.000000e+00> : vector<1x10xf32>
    %653 = tpu.matmul %650, %652, %cst_635 {dimension_numbers = #tpu.dot_dimension_numbers<[1], [0], [0], [1], [0, 0, 1, 1], [], []>} : vector<1x32xbf16>, vector<32x10xbf16>, vector<1x10xf32> -> vector<1x10xf32>
    %654 = arith.addf %649, %653 : vector<1x10xf32>
    %655 = vector.extract_strided_slice %578 {offsets = [15, 0], sizes = [1, 32], strides = [1, 1]} : vector<16x32xbf16> to vector<1x32xbf16>
    %c15_636 = arith.constant 15 : index
    %c0_637 = arith.constant 0 : index
    %c0_638 = arith.constant 0 : index
    %656 = vector.load %arg6[%c15_636, %c0_637, %c0_638] : memref<16x32x10xbf16, #tpu.memory_space<vmem>>, vector<1x32x10xbf16>
    %657 = vector.shape_cast %656 : vector<1x32x10xbf16> to vector<32x10xbf16>
    %cst_639 = arith.constant dense<0.000000e+00> : vector<1x10xf32>
    %658 = tpu.matmul %655, %657, %cst_639 {dimension_numbers = #tpu.dot_dimension_numbers<[1], [0], [0], [1], [0, 0, 1, 1], [], []>} : vector<1x32xbf16>, vector<32x10xbf16>, vector<1x10xf32> -> vector<1x10xf32>
    %659 = arith.addf %654, %658 : vector<1x10xf32>
    %c0_640 = arith.constant 0 : index
    %c0_641 = arith.constant 0 : index
    %660 = vector.load %arg7[%c0_640, %c0_641] : memref<1x10xf32, #tpu.memory_space<vmem>>, vector<1x10xf32>
    %661 = arith.addf %659, %660 : vector<1x10xf32>
    %cst_642 = arith.constant dense<0xFF800000> : vector<1xf32>
    %662 = vector.multi_reduction <maximumf>, %661, %cst_642 [1] : vector<1x10xf32> to vector<1xf32>
    %663 = vector.shape_cast %662 : vector<1xf32> to vector<1x1xf32>
    %664 = vector.broadcast %663 : vector<1x1xf32> to vector<1x10xf32>
    %665 = arith.subf %661, %664 : vector<1x10xf32>
    %666 = math.exp %665 : vector<1x10xf32>
    %cst_643 = arith.constant dense<0.000000e+00> : vector<1xf32>
    %667 = vector.multi_reduction <add>, %666, %cst_643 [1] : vector<1x10xf32> to vector<1xf32>
    %668 = vector.shape_cast %667 : vector<1xf32> to vector<1x1xf32>
    %669 = tpu.reciprocal %668 {approx = true} : vector<1x1xf32> -> vector<1x1xf32>
    %670 = vector.broadcast %669 : vector<1x1xf32> to vector<1x10xf32>
    %671 = arith.mulf %666, %670 : vector<1x10xf32>
    %672 = vector.shape_cast %671 : vector<1x10xf32> to vector<1x1x10xf32>
    %c0_644 = arith.constant 0 : index
    %c0_645 = arith.constant 0 : index
    %c0_646 = arith.constant 0 : index
    %673 = vector.load %arg8[%c0_644, %c0_645, %c0_646] : memref<1x1x10xf32, #tpu.memory_space<vmem>>, vector<1x1x10xf32>
    tpu.vector_store %arg8[%c0_644, %c0_645, %c0_646], %672 {strides = array<i32>} : memref<1x1x10xf32, #tpu.memory_space<vmem>>, vector<1x1x10xf32>,
    return
  }
  func.func @transform_0(%arg0: i32) -> (i32, i32, i32) {
    %c0_i32 = arith.constant 0 : i32
    %c0_i32_0 = arith.constant 0 : i32
    %c0_i32_1 = arith.constant 0 : i32
    return %arg0, %c0_i32, %c0_i32_0 : i32, i32, i32
  }
  func.func @transform_1(%arg0: i32) -> (i32, i32) {
    %c0_i32 = arith.constant 0 : i32
    %c0_i32_0 = arith.constant 0 : i32
    %c0_i32_1 = arith.constant 0 : i32
    return %c0_i32, %c0_i32_0 : i32, i32
  }
  func.func @transform_2(%arg0: i32) -> (i32, i32) {
    %c0_i32 = arith.constant 0 : i32
    %c0_i32_0 = arith.constant 0 : i32
    %c0_i32_1 = arith.constant 0 : i32
    return %c0_i32, %c0_i32_0 : i32, i32
  }
  func.func @transform_3(%arg0: i32) -> (i32, i32, i32) {
    %c0_i32 = arith.constant 0 : i32
    %c0_i32_0 = arith.constant 0 : i32
    %c0_i32_1 = arith.constant 0 : i32
    %c0_i32_2 = arith.constant 0 : i32
    return %c0_i32, %c0_i32_0, %c0_i32_1 : i32, i32, i32
  }
  func.func @transform_4(%arg0: i32) -> (i32, i32) {
    %c0_i32 = arith.constant 0 : i32
    %c0_i32_0 = arith.constant 0 : i32
    %c0_i32_1 = arith.constant 0 : i32
    return %c0_i32, %c0_i32_0 : i32, i32
  }
  func.func @transform_5(%arg0: i32) -> (i32, i32, i32) {
    %c0_i32 = arith.constant 0 : i32
    %c0_i32_0 = arith.constant 0 : i32
    %c0_i32_1 = arith.constant 0 : i32
    %c0_i32_2 = arith.constant 0 : i32
    return %c0_i32, %c0_i32_0, %c0_i32_1 : i32, i32, i32
  }
  func.func @transform_6(%arg0: i32) -> (i32, i32) {
    %c0_i32 = arith.constant 0 : i32
    %c0_i32_0 = arith.constant 0 : i32
    %c0_i32_1 = arith.constant 0 : i32
    return %c0_i32, %c0_i32_0 : i32, i32
  }
  func.func @transform_7(%arg0: i32) -> (i32, i32, i32) {
    %c0_i32 = arith.constant 0 : i32
    %c0_i32_0 = arith.constant 0 : i32
    %c0_i32_1 = arith.constant 0 : i32
    return %arg0, %c0_i32, %c0_i32_0 : i32, i32, i32
  }
}

</mosaic_0001>

<bundles_post_ra>
// kernel: conv_neural_net_forward.1
= control target key start
LH: loop header
LB: loop body
LE: loop exit
PB: predicated region body
PF: predicated region fallthrough
CT: control target
= control target key end

     0   :  { %12 = vsyncpa [#allocation4], 0  ;;  %s9294_s0 = inlined_call_operand.vmem [shape: bf16[2,256,32], index: 0, kind: input, shape index: {}]   ;;  %s9295_s1 = inlined_call_operand.vmem [shape: bf16[32,16], index: 1, kind: input, shape index: {}]   ;;  %s9296_s2 = inlined_call_operand.vmem [shape: f32[1,16], index: 2, kind: input, shape index: {}]   ;;  %s9297_s3 = inlined_call_operand.vmem [shape: bf16[25,16,32], index: 3, kind: input, shape index: {}]   ;;  %s9298_s4 = inlined_call_operand.vmem [shape: f32[1,32], index: 4, kind: input, shape index: {}]   ;;  %s9299_s5 = inlined_call_operand.vmem [shape: bf16[16,32,10], index: 5, kind: input, shape index: {}]   ;;  %s9300_s6 = inlined_call_operand.vmem [shape: f32[1,10], index: 6, kind: input, shape index: {}]   ;;  %s9301_s7 = inlined_call_operand.hbm [shape: f32[2,1,10], index: 7, kind: output, shape index: {}]  }
   0x1   :  { %14 = vsyncpa [#allocation4 + $0x1], 0  ;;  %s7154_s24 = smov 0   ;;  %s7156_s25 = smov 0  }
   0x2   :  { %s7158_s26 = smov 0   ;;  %s7160_s27 = smov 0  }
   0x3 LB: > { %s7175_s28 = sadd.s32 4294967295, %s7111_s27   ;;  %s6283_s29 = sadd.s32 4294967294, %s7111_s27   ;;  %s7111_s27 = sphi %s7160_s27, %s9473_s27   ;;  %s7107_s26 = sphi %s7158_s26, %s9472_s26   ;;  %s7103_s25 = sphi %s7156_s25, %s9471_s25   ;;  %s7099_s24 = sphi %s7154_s24, %s9470_s24  }
   0x4   : > { %s7179_s30 = sadd.s32 1, %s7111_s27   ;;  %s179_s8 = sadd.s32 1, %s7107_s26 }
   0x5   : > { %s176_s9 = ssub.s32 %s7111_s27, %s7179_s30  ;;  %p189_p0 = scmp.ne.s32.totalorder %s7107_s26, %s7103_s25 }
   0x6   : > { %p177_p1 = scmp.eq.s32.totalorder %s176_s9, 0  ;;  %p190_p2 = scmp.eq.s32.totalorder %s7175_s28, 1 }
   0x7   : > { %p195_p3 = scmp.ne.s32.totalorder %s7103_s25, %s7099_s24  ;;  %p196_p4 = scmp.eq.s32.totalorder %s6283_s29, 1 }
   0x8   : > { %s7190_s10 = scalar_select %p177_p1, %s7107_s26, %s179_s8  }
   0x9   : > { %p7192_p5 = por %p190_p2, %p189_p0  ;;  %p7196_p6 = por %p196_p4, %p195_p3 }
   0xa   : > { %p6286_p7 = scmp.ge.s32.totalorder %s7111_s27, 1  ;;  %p240_p8 = scmp.lt.s32.totalorder %s7111_s27, 3 }
   0xc   : > { %p241_p9 = pnand %p6286_p7, %p240_p8 }
   0xe   : > { %244 = sbr.rel (%p241_p9) target bundleno = 2078 (0x81e), region = 48 }
  0x13   : > { %v6945_v0 = vld [vmem:[%s9295_s1 + $0x8] sm:$0xff]  ;;  %p271_p10 = scmp.lt.s32.totalorder %s7175_s28, 1  ;;  %v6944_v1 = vld [vmem:[%s9295_s1] sm:$0xff]  ;;  %vm405_vm0 = vcmask 261120   ;;  %vm543_vm1 = vcmask 130048   ;;  %vm620_vm2 = vcmask 124928   ;;  %s6224_s19 = scalar_lea.hbm %s9301_s7, %s7175_s28 }
  0x14   : > { %460 = vmatpush.bf16.msra.mxu0 %v6945_v0  ;;  %v7113_v55 = vmov 0   ;;  %vm815_vm3 = vsmask.f32 2306  ;;  %vm969_vm5 = vcmask 1041408   ;;  %vm973_vm6 = vcmask 1043458   ;;  %s269_s16 = sand.u32 1, %s7103_s25  }
  0x15   : > { %s272_s17 = scalar_select %p271_p10, %s7175_s28, 1  ;;  %621 = vst.msk [vmem:[#allocation2] sm:$0x7] %vm620_vm2, %v7113_v55  ;;  %vm7333_vm4 = vmand %vm620_vm2, %vm815_vm3  ;;  %vm995_vm7 = vsmask.f32 1280  ;;  %vm1674_vm14 = vcmask 1040384  }
  0x16   : > { %622 = vst.msk [vmem:[#allocation2 + $0x4] sm:$0x7] %vm620_vm2, %v7113_v55  ;;  %vm996_vm8 = vsmask.f32 3336  ;;  %vm998_vm9 = vsmask.f32 5392 }
  0x17   : > { %s6927_s18 = sshll.u32 %s272_s17, 7  ;;  %623 = vst.msk [vmem:[#allocation2 + $0x8] sm:$0x7] %vm620_vm2, %v7113_v55  ;;  %vm997_vm10 = vmor %vm995_vm7, %vm996_vm8  ;;  %vm1000_vm12 = vsmask.f32 7448  ;;  %vm1675_vm15 = vcmask 1042434  }
  0x18   : > { %s7213_s21 = scalar_lea.vmem %s9294_s0, %s6927_s18  ;;  %461 = vmatpush.bf16.msra.mxu0 %v6944_v1  ;;  %627 = vst.msk [vmem:[#allocation2 + $0x18] sm:$0x7] %vm620_vm2, %v7113_v55  ;;  %v7326_v1 = vld [vmem:[%s9296_s2] ss:$0 sm:$0xff]  ;;  %vm999_vm11 = vmor %vm997_vm10, %vm998_vm9  ;;  %vm1677_vm3 = vcmask 1044484   ;;  %s270_s20 = scalar_lea.vmem [#allocation3], %s269_s16 }
  0x19   : > { %v6928_v2 = vld [vmem:[%s7213_s21] sm:$0xff]  ;;  %v6929_v3 = vld [vmem:[%s7213_s21 + $0x8] sm:$0xff]  ;;  %v6930_v4 = vld [vmem:[%s7213_s21 + $0x10] sm:$0xff]  ;;  %633 = vst.msk [vmem:[#allocation2 + $0x30] sm:$0x7] %vm620_vm2, %v7113_v55  ;;  %s6228_s22 = sshll.u32 %s6224_s19, 4  ;;  %s6229_s22 = int_to_ptr.hbm [resolvable:$true] %s6228_s22 }
  0x1a   : > { %v6931_v5 = vld [vmem:[%s7213_s21 + $0x18] sm:$0xff]  ;;  %v6932_v6 = vld [vmem:[%s7213_s21 + $0x20] sm:$0xff]  ;;  %v6933_v7 = vld [vmem:[%s7213_s21 + $0x28] sm:$0xff]  ;;  %639 = vst.msk [vmem:[#allocation2 + $0x48] sm:$0x7] %vm620_vm2, %v7113_v55  ;;  %s6216_s23 = scalar_lea.sflag [#allocation4], %s269_s16 }
  0x1b   : > { %6361 = vmatmul.msk.bf16.vlgmr.msra.gmra.mxu0 %vm405_vm0, %v6928_v2  ;;  %v6934_v8 = vld [vmem:[%s7213_s21 + $0x30] sm:$0xff]  ;;  %v6935_v9 = vld [vmem:[%s7213_s21 + $0x38] sm:$0xff]  ;;  %v6936_v10 = vld [vmem:[%s7213_s21 + $0x40] sm:$0xff]  ;;  %624 = vst.msk [vmem:[#allocation2 + $0xc] sm:$0x7] %vm620_vm2, %v7113_v55  ;;  %s7063_s29 = sshra.s32 %s6229_s22, 4  ;;  %s7064_s29 = int_to_ptr.hbm [resolvable:$true] %s7063_s29 }
  0x1c   : > { %v6937_v13 = vld [vmem:[%s7213_s21 + $0x48] sm:$0xff]  ;;  %v6938_v16 = vld [vmem:[%s7213_s21 + $0x50] sm:$0xff]  ;;  %v6939_v19 = vld [vmem:[%s7213_s21 + $0x58] sm:$0xff]  ;;  %625 = vst.msk [vmem:[#allocation2 + $0x10] sm:$0x7] %vm620_vm2, %v7113_v55  ;;  %s7065_s8 = scalar_lea.hbm %s7064_s29, 1  ;;  %p7070_p0 = scmp.lt.s32.totalorder %s7064_s29, %s9301_s7 }
  0x1d   : > { %v6940_v22 = vld [vmem:[%s7213_s21 + $0x60] sm:$0xff]  ;;  %v6941_v28 = vld [vmem:[%s7213_s21 + $0x68] sm:$0xff]  ;;  %v6942_v34 = vld [vmem:[%s7213_s21 + $0x70] sm:$0xff]  ;;  %626 = vst.msk [vmem:[#allocation2 + $0x14] sm:$0x7] %vm620_vm2, %v7113_v55  ;;  %p7066_p11 = scmp.ne.s32.totalorder %s7064_s29, %s7065_s8  ;;  %s7069_s28 = scalar_lea.hbm %s9301_s7, 2 }
  0x1e   : > { %v6943_v40 = vld [vmem:[%s7213_s21 + $0x78] sm:$0xff]  ;;  %628 = vst.msk [vmem:[#allocation2 + $0x1c] sm:$0x7] %vm620_vm2, %v7113_v55  ;;  %vm7404_vm13 = vmor %vm999_vm11, %vm1000_vm12  ;;  %s6226_s21 = sshll.u32 %s270_s20, 4  ;;  %p7071_p1 = scmp.lt.s32.totalorder %s7069_s28, %s7065_s8  ;;  %s6227_s21 = int_to_ptr.vmem [resolvable:$true] %s6226_s21 }
  0x1f   : > { %629 = vst.msk [vmem:[#allocation2 + $0x20] sm:$0x7] %vm620_vm2, %v7113_v55  ;;  %v7313_v61 = vld [vmem:[#allocation2 + $0x18] sm:$0x3]  ;;  %p7067_p12 = pnand %p7066_p11, %p7192_p5 }
  0x20   : > { %630 = vst.msk [vmem:[#allocation2 + $0x24] sm:$0x7] %vm620_vm2, %v7113_v55  ;;  %p7072_p2 = por %p7071_p1, %p7070_p0 }
  0x21   : > { %631 = vst.msk [vmem:[#allocation2 + $0x28] sm:$0x7] %vm620_vm2, %v7113_v55  ;;  %p7068_p13 = pneg %p7067_p12 }
  0x22   : > { %632 = vst.msk [vmem:[#allocation2 + $0x2c] sm:$0x7] %vm620_vm2, %v7113_v55 }
  0x23   : > { %634 = vst.msk [vmem:[#allocation2 + $0x34] sm:$0x7] %vm620_vm2, %v7113_v55  ;;  %p7073_p3 = pnand %p7072_p2, %p7068_p13 }
  0x24   : > { %635 = vst.msk [vmem:[#allocation2 + $0x38] sm:$0x7] %vm620_vm2, %v7113_v55 }
  0x25   : > { %636 = vst.msk [vmem:[#allocation2 + $0x3c] sm:$0x7] %vm620_vm2, %v7113_v55 }
  0x26   : > { %637 = vst.msk [vmem:[#allocation2 + $0x40] sm:$0x7] %vm620_vm2, %v7113_v55 }
  0x27   : > { %638 = vst.msk [vmem:[#allocation2 + $0x44] sm:$0x7] %vm620_vm2, %v7113_v55 }
  0x28   : > { %890 = vst [vmem:[#allocation1] ss:$4 sm:$0xff] %v7313_v61 }
  0x29   : > { %640 = vst.msk [vmem:[#allocation2 + $0x4c] sm:$0x7] %vm620_vm2, %v7113_v55 }
  0x2a   : > { %641 = vst.msk [vmem:[#allocation2 + $0x50] sm:$0x7] %vm620_vm2, %v7113_v55 }
  0x2b   : > { %6362 = vmatmul.msk.bf16.gmra.mxu0 %vm405_vm0, %v6929_v3  ;;  %642 = vst.msk [vmem:[#allocation2 + $0x54] sm:$0x7] %vm620_vm2, %v7113_v55 }
  0x2c   : > { %643 = vst.msk [vmem:[#allocation2 + $0x58] sm:$0x7] %vm620_vm2, %v7113_v55 }
  0x2d   : > { %644 = vst.msk [vmem:[#allocation2 + $0x5c] sm:$0x7] %vm620_vm2, %v7113_v55  ;;  %vm1676_vm2 = vmor %vm1674_vm14, %vm1675_vm15 }
  0x2e   : > { %vm1678_vm7 = vmor %vm1676_vm2, %vm1677_vm3 }
  0x3b   : > { %6363 = vmatmul.msk.bf16.gmra.mxu0 %vm405_vm0, %v6930_v4 }
  0x4b   : > { %6364 = vmatmul.msk.bf16.gmra.mxu0 %vm405_vm0, %v6931_v5 }
  0x5b   : > { %6365 = vmatmul.msk.bf16.gmra.mxu0 %vm405_vm0, %v6932_v6 }
  0x6b   : > { %6366 = vmatmul.msk.bf16.gmra.mxu0 %vm405_vm0, %v6933_v7 }
  0x7b   : > { %6367 = vmatmul.msk.bf16.gmra.mxu0 %vm405_vm0, %v6934_v8 }
  0x8b   : > { %6368 = vmatmul.msk.bf16.gmra.mxu0 %vm405_vm0, %v6935_v9 }
  0x98   : > { %v463_v11 = vpop.f32.mrf.mxu0 }
  0x99   : > { %v7249_v24 = vsel %vm543_vm1, %v463_v11, -inf }
  0x9b   : > { %6369 = vmatmul.msk.bf16.gmra.mxu0 %vm405_vm0, %v6936_v10 }
  0xa0   : > { %v7233_v12 = vpop.f32.mrf.mxu0 }
  0xa8   : > { %v468_v14 = vpop.f32.mrf.mxu0 }
  0xa9   : > { %v558_v30 = vsel %vm543_vm1, %v468_v14, -inf }
  0xab   : > { %6370 = vmatmul.msk.bf16.gmra.mxu0 %vm405_vm0, %v6937_v13 }
  0xb0   : > { %v7237_v15 = vpop.f32.mrf.mxu0 }
  0xb8   : > { %v473_v17 = vpop.f32.mrf.mxu0 }
  0xb9   : > { %v572_v36 = vsel %vm543_vm1, %v473_v17, -inf }
  0xbb   : > { %6371 = vmatmul.msk.bf16.gmra.mxu0 %vm405_vm0, %v6938_v16  ;;  %v817_v16 = vld [vmem:[#allocation2 + $0x4] sm:$0x7] }
  0xc0   : > { %v7241_v18 = vpop.f32.mrf.mxu0 }
  0xc8   : > { %v478_v20 = vpop.f32.mrf.mxu0 }
  0xc9   : > { %v586_v42 = vsel %vm543_vm1, %v478_v20, -inf }
  0xcb   : > { %6372 = vmatmul.msk.bf16.gmra.mxu0 %vm405_vm0, %v6939_v19 }
  0xd0   : > { %v7245_v21 = vpop.f32.mrf.mxu0 }
  0xd8   : > { %v483_v23 = vpop.f32.mrf.mxu0 }
  0xd9   : > { %v7252_v25 = vsel %vm543_vm1, %v483_v23, -inf }
  0xda   : > { %v546_v26 = vmax.f32 %v7249_v24, %v7252_v25 }
  0xdb   : > { %6373 = vmatmul.msk.bf16.gmra.mxu0 %vm405_vm0, %v6940_v22  ;;  %v820_v22 = vld [vmem:[#allocation2 + $0x8] sm:$0x7] }
  0xe0   : > { %v7257_v27 = vpop.f32.mrf.mxu0 }
  0xe8   : > { %v488_v29 = vpop.f32.mrf.mxu0 }
  0xe9   : > { %v559_v31 = vsel %vm543_vm1, %v488_v29, -inf  ;;  %v551_v29 = vsel %vm543_vm1, %v7233_v12, -inf }
  0xea   : > { %v560_v32 = vmax.f32 %v558_v30, %v559_v31 }
  0xeb   : > { %6374 = vmatmul.msk.bf16.gmra.mxu0 %vm405_vm0, %v6941_v28 }
  0xf0   : > { %v7263_v33 = vpop.f32.mrf.mxu0 }
  0xf8   : > { %v493_v35 = vpop.f32.mrf.mxu0 }
  0xf9   : > { %v573_v37 = vsel %vm543_vm1, %v493_v35, -inf }
  0xfa   : > { %v574_v38 = vmax.f32 %v572_v36, %v573_v37 }
  0xfb   : > { %6375 = vmatmul.msk.bf16.gmra.mxu0 %vm405_vm0, %v6942_v34 }
 0x100   : > { %v7269_v39 = vpop.f32.mrf.mxu0 }
 0x108   : > { %v498_v41 = vpop.f32.mrf.mxu0 }
 0x109   : > { %v587_v43 = vsel %vm543_vm1, %v498_v41, -inf }
 0x10a   : > { %v588_v44 = vmax.f32 %v586_v42, %v587_v43 }
 0x10b   : > { %6376 = vmatmul.msk.bf16.gmra.mxu0 %vm405_vm0, %v6943_v40 }
 0x110   : > { %v7275_v45 = vpop.f32.mrf.mxu0 }
 0x118   : > { %v503_v46 = vpop.f32.mrf.mxu0 }
 0x119   : > { %v547_v62 = vsel %vm543_vm1, %v503_v46, -inf }
 0x11a   : > { %v548_v63 = vmax.f32 %v546_v26, %v547_v62  ;;  %v552_v26 = vsel %vm543_vm1, %v7257_v27, -inf }
 0x11b   : > { %v553_v31 = vmax.f32 %v551_v29, %v552_v26 }
 0x120   : > { %v7277_v47 = vpop.f32.mrf.mxu0 }
 0x121   : > { %v554_v30 = vsel %vm543_vm1, %v7277_v47, -inf }
 0x122   : > { %v555_v34 = vmax.f32 %v553_v31, %v554_v30 }
 0x128   : > { %v508_v48 = vpop.f32.mrf.mxu0 }
 0x129   : > { %v561_v49 = vsel %vm543_vm1, %v508_v48, -inf }
 0x12a   : > { %v7280_v50 = vmax.f32 %v560_v32, %v561_v49  ;;  %v823_v49 = vld [vmem:[#allocation2 + $0xc] sm:$0x7] }
 0x130   : > { %v7282_v51 = vpop.f32.mrf.mxu0 }
 0x131   : > { %v568_v26 = vsel %vm543_vm1, %v7282_v51, -inf }
 0x138   : > { %v513_v52 = vpop.f32.mrf.mxu0 }
 0x139   : > { %v575_v53 = vsel %vm543_vm1, %v513_v52, -inf }
 0x13a   : > { %v7285_v54 = vmax.f32 %v574_v38, %v575_v53 }
 0x140   : > { %v7288_v56 = vpop.f32.mrf.mxu0 }
 0x148   : > { %v518_v57 = vpop.f32.mrf.mxu0 }
 0x149   : > { %v589_v58 = vsel %vm543_vm1, %v518_v57, -inf }
 0x14a   : > { %v7301_v59 = vmax.f32 %v588_v44, %v589_v58  ;;  %v826_v58 = vld [vmem:[#allocation2 + $0x10] sm:$0x7] }
 0x150   : > { %v7309_v60 = vpop.f32.mrf.mxu0 }
 0x158   : > { %v523_v0 = vpop.f32.mrf.mxu0 }
 0x159   : > { %v549_v2 = vsel %vm543_vm1, %v523_v0, -inf }
 0x15a   : > { %v550_v3 = vmax.f32 %v548_v63, %v549_v2 }
 0x15c   : > { %v604_v4 = vadd.f32 %v7326_v1, %v550_v3 }
 0x15e   : > { %v612_v5 = vmax.f32 %v604_v4, 0.0 }
 0x160   : > { %v653_v6 = vrot.slane %v612_v5, 4  ;;  %v669_v7 = vpack.c.bf16 %v612_v5, %v612_v5  ;;  %v525_v28 = vpop.f32.mrf.mxu0 }
 0x161   : > { %v556_v32 = vsel %vm543_vm1, %v525_v28, -inf }
 0x162   : > { %v670_v8 = vpack.c.bf16 %v653_v6, %v653_v6  ;;  %v686_v9 = vshrl.u32 %v669_v7, 16  ;;  %v689_v11 = vshll.u32 %v669_v7, 16  ;;  %v557_v35 = vmax.f32 %v555_v34, %v556_v32 }
 0x164   : > { %v688_v10 = vrot.slane %v686_v9, 7  ;;  %v693_v13 = vshrl.u32 %v670_v8, 16  ;;  %v696_v20 = vshll.u32 %v670_v8, 16  ;;  %v605_v36 = vadd.f32 %v7326_v1, %v557_v35 }
 0x166   : > { %v691_v17 = vor.u32 %v689_v11, %v688_v10  ;;  %v695_v19 = vrot.slane %v693_v13, 7  ;;  %v613_v38 = vmax.f32 %v605_v36, 0.0  ;;  %v829_v13 = vld [vmem:[#allocation2 + $0x1c] sm:$0x7] }
 0x168   : > { %v698_v23 = vor.u32 %v696_v20, %v695_v19  ;;  %v818_v24 = vsel %vm7333_vm4, %v691_v17, %v817_v16  ;;  %v528_v37 = vpop.f32.mrf.mxu0  ;;  %v654_v40 = vrot.slane %v613_v38, 4  ;;  %v671_v41 = vpack.c.bf16 %v613_v38, %v613_v38  ;;  %v832_v16 = vld [vmem:[#allocation2 + $0x20] sm:$0x7] }
 0x169   : > { %819 = vst [vmem:[#allocation2 + $0x4] sm:$0x7] %v818_v24  ;;  %v563_v27 = vsel %vm543_vm1, %v528_v37, -inf }
 0x16a   : > { %v821_v25 = vsel %vm7333_vm4, %v698_v23, %v820_v22  ;;  %v564_v42 = vmax.f32 %v7280_v50, %v563_v27  ;;  %v672_v43 = vpack.c.bf16 %v654_v40, %v654_v40  ;;  %v700_v12 = vshrl.u32 %v671_v41, 16 }
 0x16b   : > { %822 = vst [vmem:[#allocation2 + $0x8] sm:$0x7] %v821_v25  ;;  %v703_v47 = vshll.u32 %v671_v41, 16  ;;  %v566_v23 = vsel %vm543_vm1, %v7263_v33, -inf  ;;  %v565_v25 = vsel %vm543_vm1, %v7237_v15, -inf }
 0x16c   : > { %v606_v44 = vadd.f32 %v7326_v1, %v564_v42  ;;  %v702_v46 = vrot.slane %v700_v12, 7  ;;  %v707_v48 = vshrl.u32 %v672_v43, 16  ;;  %v710_v57 = vshll.u32 %v672_v43, 16  ;;  %v835_v12 = vld [vmem:[#allocation2 + $0x24] sm:$0x7] }
 0x16d   : > { %v567_v28 = vmax.f32 %v565_v25, %v566_v23 }
 0x16e   : > { %v614_v52 = vmax.f32 %v606_v44, 0.0  ;;  %v705_v53 = vor.u32 %v703_v47, %v702_v46  ;;  %v709_v55 = vrot.slane %v707_v48, 7  ;;  %v838_v46 = vld [vmem:[#allocation2 + $0x28] sm:$0x7]  ;;  %v957_v48 = vld [vmem:[#allocation2] sm:$0x7] }
 0x16f   : > { %v569_v30 = vmax.f32 %v567_v28, %v568_v26  ;;  %v867_v28 = vld [vmem:[#allocation2] sm:$0x3] }
 0x170   : > { %v655_v62 = vrot.slane %v614_v52, 4  ;;  %v673_v63 = vpack.c.bf16 %v614_v52, %v614_v52  ;;  %v712_v0 = vor.u32 %v710_v57, %v709_v55  ;;  %v824_v2 = vsel %vm7333_vm4, %v705_v53, %v823_v49  ;;  %v530_v24 = vpop.f32.mrf.mxu0  ;;  %v958_v57 = vld [vmem:[#allocation2 + $0x4] sm:$0x7] }
 0x171   : > { %825 = vst [vmem:[#allocation2 + $0xc] sm:$0x7] %v824_v2  ;;  %v570_v29 = vsel %vm543_vm1, %v530_v24, -inf  ;;  %v966_v2 = vrot.slane %v958_v57, 2 }
 0x172   : > { %v674_v50 = vpack.c.bf16 %v655_v62, %v655_v62  ;;  %v714_v3 = vshrl.u32 %v673_v63, 16  ;;  %v827_v4 = vsel %vm7333_vm4, %v712_v0, %v826_v58  ;;  %v717_v8 = vshll.u32 %v673_v63, 16  ;;  %v959_v62 = vld [vmem:[#allocation2 + $0x8] sm:$0x7] }
 0x173   : > { %828 = vst [vmem:[#allocation2 + $0x10] sm:$0x7] %v827_v4  ;;  %v571_v31 = vmax.f32 %v569_v30, %v570_v29 }
 0x174   : > { %v721_v5 = vshrl.u32 %v674_v50, 16  ;;  %v716_v6 = vrot.slane %v714_v3, 7  ;;  %v724_v9 = vshll.u32 %v674_v50, 16  ;;  %v967_v50 = vrot.slane %v959_v62, 2 }
 0x175   : > { %v607_v32 = vadd.f32 %v7326_v1, %v571_v31 }
 0x176   : > { %v723_v7 = vrot.slane %v721_v5, 7  ;;  %v719_v10 = vor.u32 %v717_v8, %v716_v6 }
 0x177   : > { %v615_v34 = vmax.f32 %v607_v32, 0.0 }
 0x178   : > { %v726_v11 = vor.u32 %v724_v9, %v723_v7  ;;  %v830_v17 = vsel %vm7333_vm4, %v719_v10, %v829_v13  ;;  %v533_v36 = vpop.f32.mrf.mxu0  ;;  %v960_v63 = vld [vmem:[#allocation2 + $0xc] sm:$0x7]  ;;  %v979_v10 = vsel %vm969_vm5, %v958_v57, %v966_v2 }
 0x179   : > { %831 = vst [vmem:[#allocation2 + $0x1c] sm:$0x7] %v830_v17  ;;  %v656_v35 = vrot.slane %v615_v34, 4  ;;  %v675_v37 = vpack.c.bf16 %v615_v34, %v615_v34  ;;  %v577_v40 = vsel %vm543_vm1, %v533_v36, -inf  ;;  %v968_v6 = vrot.slane %v960_v63, 2 }
 0x17a   : > { %v833_v19 = vsel %vm7333_vm4, %v726_v11, %v832_v16  ;;  %v578_v51 = vmax.f32 %v7285_v54, %v577_v40  ;;  %v965_v54 = vrot.slane %v957_v48, 2  ;;  %v841_v16 = vld [vmem:[#allocation2 + $0x34] sm:$0x7]  ;;  %v985_v17 = vsel %vm969_vm5, %v959_v62, %v967_v50  ;;  %v868_v36 = vld [vmem:[#allocation2 + $0x4] sm:$0x3] }
 0x17b   : > { %834 = vst [vmem:[#allocation2 + $0x20] sm:$0x7] %v833_v19  ;;  %v676_v38 = vpack.c.bf16 %v656_v35, %v656_v35  ;;  %v728_v33 = vshrl.u32 %v675_v37, 16  ;;  %v731_v27 = vshll.u32 %v675_v37, 16  ;;  %v991_v19 = vsel %vm969_vm5, %v960_v63, %v968_v6 }
 0x17c   : > { %v608_v47 = vadd.f32 %v7326_v1, %v578_v51  ;;  %v972_v3 = vsel %vm969_vm5, %v957_v48, %v965_v54  ;;  %v974_v9 = vsel %vm973_vm6, %v957_v48, %v965_v54  ;;  %v1015_v24 = vshrl.u32 %v979_v10, 16 }
 0x17d   : > { %v735_v41 = vshrl.u32 %v676_v38, 16  ;;  %v730_v15 = vrot.slane %v728_v33, 7  ;;  %v738_v43 = vshll.u32 %v676_v38, 16  ;;  %v1002_v11 = vshrl.u32 %v972_v3, 16 }
 0x17e   : > { %v7379_v53 = vmax.f32 %v608_v47, 0.0  ;;  %v1005_v13 = vshll.u32 %v972_v3, 16  ;;  %v976_v23 = vrot.slane %v974_v9, 2  ;;  %v1018_v25 = vshll.u32 %v979_v10, 16 }
 0x17f   : > { %v737_v42 = vrot.slane %v735_v41, 7  ;;  %v733_v44 = vor.u32 %v731_v27, %v730_v15  ;;  %v1004_v29 = vrot.slane %v1002_v11, 6  ;;  %v1028_v31 = vshrl.u32 %v985_v17, 16  ;;  %v869_v27 = vld [vmem:[#allocation2 + $0x8] sm:$0x3] }
 0x180   : > { %v7360_v20 = vld [vmem:[#allocation2 + $0x1c] sm:$0x3]  ;;  %v677_v58 = vpack.c.bf16 %v7379_v53, %v7379_v53  ;;  %v1007_v30 = vrot.slane %v1005_v13, 7  ;;  %v1031_v32 = vshll.u32 %v985_v17, 16  ;;  %v1041_v34 = vshrl.u32 %v991_v19, 16 }
 0x181   : > { %893 = vst [vmem:[#allocation1 + $0x1] ss:$4 sm:$0xff] %v7360_v20  ;;  %v740_v49 = vor.u32 %v738_v43, %v737_v42  ;;  %v836_v52 = vsel %vm7333_vm4, %v733_v44, %v835_v12  ;;  %v1044_v35 = vshll.u32 %v991_v19, 16  ;;  %v980_v37 = vsel %vm973_vm6, %v958_v57, %v966_v2 }
 0x182   : > { %v7362_v22 = vld [vmem:[#allocation2 + $0x20] sm:$0x3]  ;;  %837 = vst [vmem:[#allocation2 + $0x24] sm:$0x7] %v836_v52  ;;  %v742_v0 = vshrl.u32 %v677_v58, 16  ;;  %v745_v5 = vshll.u32 %v677_v58, 16  ;;  %v986_v38 = vsel %vm973_vm6, %v959_v62, %v967_v50  ;;  %v1008_v51 = vor.u32 %v1007_v30, %v1004_v29 }
 0x183   : > { %896 = vst [vmem:[#allocation1 + $0x2] ss:$4 sm:$0xff] %v7362_v22  ;;  %v839_v55 = vsel %vm7333_vm4, %v740_v49, %v838_v46  ;;  %v1011_v33 = vshll.u32 %v976_v23, 16  ;;  %v1017_v40 = vrot.slane %v1015_v24, 6  ;;  %v1020_v41 = vrot.slane %v1018_v25, 7  ;;  %v535_v24 = vpop.f32.mrf.mxu0 }
 0x184   : > { %840 = vst [vmem:[#allocation2 + $0x28] sm:$0x7] %v839_v55  ;;  %v744_v4 = vrot.slane %v742_v0, 7  ;;  %v1030_v42 = vrot.slane %v1028_v31, 6  ;;  %v1033_v43 = vrot.slane %v1031_v32, 7  ;;  %v992_v12 = vsel %vm973_vm6, %v960_v63, %v968_v6 }
 0x185   : > { %v982_v44 = vrot.slane %v980_v37, 2  ;;  %v1043_v46 = vrot.slane %v1041_v34, 6  ;;  %v1046_v47 = vrot.slane %v1044_v35, 7  ;;  %v988_v48 = vrot.slane %v986_v38, 2  ;;  %v870_v49 = vld [vmem:[#allocation2 + $0xc] sm:$0x3] }
 0x186   : > { %v747_v8 = vor.u32 %v745_v5, %v744_v4  ;;  %v1021_v52 = vor.u32 %v1020_v41, %v1017_v40  ;;  %v994_v55 = vrot.slane %v992_v12, 2  ;;  %v657_v57 = vrot.slane %v7379_v53, 4  ;;  %v844_v34 = vld [vmem:[#allocation2 + $0x38] sm:$0x7] }
 0x187   : > { %v1009_v54 = vrot.slane %v1008_v51, 2  ;;  %v1013_v58 = vrot.slane %v1011_v33, 7  ;;  %v1034_v62 = vor.u32 %v1033_v43, %v1030_v42  ;;  %v1024_v63 = vshll.u32 %v982_v44, 16  ;;  %v7444_v33 = vld [vmem:[#allocation2 + $0x48] sm:$0x3] }
 0x188   : > { %v842_v26 = vsel %vm7333_vm4, %v747_v8, %v841_v16  ;;  %v1047_v0 = vor.u32 %v1046_v47, %v1043_v46  ;;  %v1037_v2 = vshll.u32 %v988_v48, 16  ;;  %v1022_v3 = vrot.slane %v1021_v52, 2  ;;  %v847_v44 = vld [vmem:[#allocation2 + $0x3c] sm:$0x7]  ;;  %v850_v47 = vld [vmem:[#allocation2 + $0x40] sm:$0x7] }
 0x189   : > { %v7386_v7 = vld [vmem:[#allocation2 + $0x24] sm:$0x3]  ;;  %843 = vst [vmem:[#allocation2 + $0x34] sm:$0x7] %v842_v26  ;;  %v1050_v4 = vshll.u32 %v994_v55, 16  ;;  %v678_v5 = vpack.c.bf16 %v657_v57, %v657_v57  ;;  %v7410_v6 = vsel %vm7404_vm13, %v1009_v54, %v1013_v58  ;;  %v1035_v53 = vrot.slane %v1034_v62, 2 }
 0x18a   : > { %899 = vst [vmem:[#allocation1 + $0x3] ss:$4 sm:$0xff] %v7386_v7  ;;  %v1026_v8 = vrot.slane %v1024_v63, 7  ;;  %v1048_v9 = vrot.slane %v1047_v0, 2  ;;  %v1039_v10 = vrot.slane %v1037_v2, 7  ;;  %v580_v13 = vsel %vm543_vm1, %v7269_v39, -inf }
 0x18b   : > { %v1052_v17 = vrot.slane %v1050_v4, 7  ;;  %v749_v19 = vshrl.u32 %v678_v5, 16  ;;  %v579_v25 = vsel %vm543_vm1, %v7241_v18, -inf  ;;  %v582_v39 = vsel %vm543_vm1, %v7288_v56, -inf  ;;  %v538_v52 = vpop.f32.mrf.mxu0  ;;  %v7457_v57 = vld [vmem:[%s9297_s3 + $0x8] sm:$0xff] }
 0x18c   : > { %v7418_v16 = vsel %vm7404_vm13, %v1022_v3, %v1026_v8  ;;  %v7423_v23 = vsel %vm7404_vm13, %v1035_v53, %v1039_v10  ;;  %v752_v30 = vshll.u32 %v678_v5, 16  ;;  %v584_v31 = vsel %vm543_vm1, %v535_v24, -inf  ;;  %916 = vmatpush.bf16.msra.mxu1 %v7457_v57  ;;  %1075 = vmatpush.bf16.msra.mxu3 %v7457_v57 }
 0x18d   : > { %v7432_v26 = vsel %vm7404_vm13, %v1048_v9, %v1052_v17  ;;  %v751_v29 = vrot.slane %v749_v19, 7  ;;  %v591_v55 = vsel %vm543_vm1, %v538_v52, -inf  ;;  %v856_v17 = vld [vmem:[#allocation2 + $0x50] sm:$0x7] }
 0x18e   : > { %v592_v54 = vmax.f32 %v7301_v59, %v591_v55  ;;  %v853_v59 = vld [vmem:[#allocation2 + $0x4c] sm:$0x7] }
 0x18f   : > { %v754_v35 = vor.u32 %v752_v30, %v751_v29 }
 0x190   : > { %v610_v58 = vadd.f32 %v7326_v1, %v592_v54 }
 0x191   : > { %v7397_v15 = vld.sshfl [vmem:[#allocation1] sm:$0xff pattern:$0x73625140]  ;;  %v845_v56 = vsel %vm7333_vm4, %v754_v35, %v844_v34 }
 0x192   : > { %924 = vst [vmem:[#allocation1] ss:$4 sm:$0xff] %v867_v28  ;;  %v581_v28 = vmax.f32 %v579_v25, %v580_v13  ;;  %6383 = vmatmul.msk.bf16.vlgmr.msra.gmra.mxu1 %vm543_vm1, %v7397_v15  ;;  %v618_v62 = vmax.f32 %v610_v58, 0.0  ;;  %v594_v13 = vsel %vm543_vm1, %v7275_v45, -inf  ;;  %v593_v25 = vsel %vm543_vm1, %v7245_v21, -inf }
 0x193   : > { %927 = vst [vmem:[#allocation1 + $0x1] ss:$4 sm:$0xff] %v868_v36  ;;  %v540_v24 = vpop.f32.mrf.mxu0 }
 0x194   : > { %930 = vst [vmem:[#allocation1 + $0x2] ss:$4 sm:$0xff] %v869_v27  ;;  %v583_v32 = vmax.f32 %v581_v28, %v582_v39  ;;  %v681_v63 = vpack.c.bf16 %v618_v62, %v618_v62  ;;  %v659_v0 = vrot.slane %v618_v62, 4  ;;  %v596_v39 = vsel %vm543_vm1, %v7309_v60, -inf }
 0x195   : > { %933 = vst [vmem:[#allocation1 + $0x3] ss:$4 sm:$0xff] %v870_v49  ;;  %v595_v28 = vmax.f32 %v593_v25, %v594_v13  ;;  %v598_v45 = vsel %vm543_vm1, %v540_v24, -inf  ;;  %v7499_v24 = vld [vmem:[#allocation2 + $0x34] sm:$0x3] }
 0x196   : > { %v585_v18 = vmax.f32 %v583_v32, %v584_v31  ;;  %846 = vst [vmem:[#allocation2 + $0x38] sm:$0x7] %v845_v56  ;;  %v770_v2 = vshrl.u32 %v681_v63, 16  ;;  %v682_v3 = vpack.c.bf16 %v659_v0, %v659_v0  ;;  %v773_v5 = vshll.u32 %v681_v63, 16 }
 0x197   : > { %v597_v30 = vmax.f32 %v595_v28, %v596_v39 }
 0x198   : > { %v609_v37 = vadd.f32 %v7326_v1, %v585_v18  ;;  %v772_v4 = vrot.slane %v770_v2, 7  ;;  %v777_v53 = vshrl.u32 %v682_v3, 16  ;;  %v780_v10 = vshll.u32 %v682_v3, 16 }
 0x199   : > { %v599_v31 = vmax.f32 %v597_v30, %v598_v45 }
 0x19a   : > { %v617_v38 = vmax.f32 %v609_v37, 0.0  ;;  %v775_v8 = vor.u32 %v773_v5, %v772_v4  ;;  %v779_v9 = vrot.slane %v777_v53, 7 }
 0x19b   : > { %v611_v21 = vadd.f32 %v7326_v1, %v599_v31  ;;  %v862_v1 = vld [vmem:[#allocation2 + $0x58] sm:$0x7] }
 0x19c   : > { %v7412_v11 = vld.sshfl [vmem:[#allocation1] sm:$0xff pattern:$0x73625140]  ;;  %v679_v40 = vpack.c.bf16 %v617_v38, %v617_v38  ;;  %v658_v41 = vrot.slane %v617_v38, 4  ;;  %v854_v15 = vsel %vm7333_vm4, %v775_v8, %v853_v59  ;;  %v782_v19 = vor.u32 %v780_v10, %v779_v9  ;;  %v7496_v10 = vld [vmem:[#allocation2 + $0x30] sm:$0x3] }
 0x19d   : > { %1055 = vst [vmem:[#allocation1] ss:$4 sm:$0xff] %v7410_v6  ;;  %v619_v60 = vmax.f32 %v611_v21, 0.0 }
 0x19e   : > { %1058 = vst [vmem:[#allocation1 + $0x1] ss:$4 sm:$0xff] %v7418_v16  ;;  %v756_v51 = vshrl.u32 %v679_v40, 16  ;;  %v680_v42 = vpack.c.bf16 %v658_v41, %v658_v41  ;;  %v759_v12 = vshll.u32 %v679_v40, 16  ;;  %v857_v29 = vsel %vm7333_vm4, %v782_v19, %v856_v17  ;;  %v859_v41 = vld [vmem:[#allocation2 + $0x54] sm:$0x7] }
 0x19f   : > { %1061 = vst [vmem:[#allocation1 + $0x2] ss:$4 sm:$0xff] %v7423_v23  ;;  %v683_v35 = vpack.c.bf16 %v619_v60, %v619_v60  ;;  %v660_v18 = vrot.slane %v619_v60, 4 }
 0x1a0   : > { %1064 = vst [vmem:[#allocation1 + $0x3] ss:$4 sm:$0xff] %v7432_v26  ;;  %v763_v43 = vshrl.u32 %v680_v42, 16 }
 0x1a1   : > { %855 = vst [vmem:[#allocation2 + $0x4c] sm:$0x7] %v854_v15  ;;  %v784_v56 = vshrl.u32 %v683_v35, 16  ;;  %v787_v38 = vshll.u32 %v683_v35, 16  ;;  %v7506_v35 = vld [vmem:[#allocation2 + $0x38] sm:$0x3] }
 0x1a2   : > { %v765_v46 = vrot.slane %v763_v43, 7  ;;  %858 = vst [vmem:[#allocation2 + $0x50] sm:$0x7] %v857_v29 }
 0x1a3   : > { %v786_v37 = vrot.slane %v784_v56, 7 }
 0x1a7   : > { %v1065_v36 = vld.sshfl [vmem:[#allocation1] sm:$0xff pattern:$0x73625140] }
 0x1a8   : > { %1082 = vst [vmem:[#allocation1] ss:$4 sm:$0xff] %v7313_v61  ;;  %v758_v61 = vrot.slane %v756_v51, 7  ;;  %6389 = vmatmul.msk.bf16.vlgmr.msra.gmra.mxu3 %vm543_vm1, %v1065_v36  ;;  %v7477_v32 = vld [vmem:[#allocation2 + $0x4c] sm:$0x3]  ;;  %v684_v36 = vpack.c.bf16 %v660_v18, %v660_v18 }
 0x1a9   : > { %1084 = vst [vmem:[#allocation1 + $0x1] ss:$4 sm:$0xff] %v7360_v20  ;;  %v7480_v34 = vld [vmem:[#allocation2 + $0x50] sm:$0x3] }
 0x1aa   : > { %1086 = vst [vmem:[#allocation1 + $0x2] ss:$4 sm:$0xff] %v7362_v22  ;;  %v761_v20 = vor.u32 %v759_v12, %v758_v61  ;;  %v766_v22 = vshll.u32 %v680_v42, 16  ;;  %v791_v40 = vshrl.u32 %v684_v36, 16  ;;  %v1162_v51 = vld [vmem:[#allocation2 + $0x30] sm:$0x7]  ;;  %v789_v42 = vor.u32 %v787_v38, %v786_v37 }
 0x1ab   : > { %1088 = vst [vmem:[#allocation1 + $0x3] ss:$4 sm:$0xff] %v7386_v7  ;;  %v794_v43 = vshll.u32 %v684_v36, 16 }
 0x1ac   : > { %v848_v7 = vsel %vm7333_vm4, %v761_v20, %v847_v44  ;;  %v768_v48 = vor.u32 %v766_v22, %v765_v46  ;;  %v793_v61 = vrot.slane %v791_v40, 7  ;;  %v860_v12 = vsel %vm7333_vm4, %v789_v42, %v859_v41  ;;  %v1163_v20 = vld [vmem:[#allocation2 + $0x34] sm:$0x7]  ;;  %v1164_v22 = vld [vmem:[#allocation2 + $0x38] sm:$0x7] }
 0x1ad   : > { %849 = vst [vmem:[#allocation2 + $0x3c] sm:$0x7] %v848_v7  ;;  %v1170_v44 = vrot.slane %v1162_v51, 2  ;;  %v1172_v52 = vrot.slane %v1164_v22, 2 }
 0x1ae   : > { %v851_v49 = vsel %vm7333_vm4, %v768_v48, %v850_v47  ;;  %861 = vst [vmem:[#allocation2 + $0x54] sm:$0x7] %v860_v12  ;;  %v796_v46 = vor.u32 %v794_v43, %v793_v61 }
 0x1af   : > { %852 = vst [vmem:[#allocation2 + $0x40] sm:$0x7] %v851_v49  ;;  %v1176_v48 = vsel %vm969_vm5, %v1162_v51, %v1170_v44  ;;  %v1171_v49 = vrot.slane %v1163_v20, 2  ;;  %v1177_v54 = vsel %vm973_vm6, %v1162_v51, %v1170_v44  ;;  %v1188_v2 = vsel %vm969_vm5, %v1164_v22, %v1172_v52 }
 0x1b0   : > { %v863_v47 = vsel %vm7333_vm4, %v796_v46, %v862_v1  ;;  %v1198_v58 = vshrl.u32 %v1176_v48, 16  ;;  %v1201_v62 = vshll.u32 %v1176_v48, 16  ;;  %v1179_v14 = vrot.slane %v1177_v54, 2 }
 0x1b1   : > { %864 = vst [vmem:[#allocation2 + $0x58] sm:$0x7] %v863_v47  ;;  %v1182_v0 = vsel %vm969_vm5, %v1163_v20, %v1171_v49  ;;  %v1224_v8 = vshrl.u32 %v1188_v2, 16  ;;  %v1227_v9 = vshll.u32 %v1188_v2, 16  ;;  %v1183_v13 = vsel %vm973_vm6, %v1163_v20, %v1171_v49  ;;  %v1339_v2 = vld [vmem:[#allocation2 + $0x20] sm:$0x7] }
 0x1b2   : > { %v7446_v27 = vld.sshfl [vmem:[#allocation1] sm:$0xff pattern:$0x73625140]  ;;  %v1200_v4 = vrot.slane %v1198_v58, 6  ;;  %v1203_v5 = vrot.slane %v1201_v62, 7  ;;  %v1211_v53 = vshrl.u32 %v1182_v0, 16  ;;  %v1189_v39 = vsel %vm973_vm6, %v1164_v22, %v1172_v52 }
 0x1b3   : > { %1107 = vst [vmem:[#allocation1] ss:$4 sm:$0xff] %v7444_v33  ;;  %v1214_v59 = vshll.u32 %v1182_v0, 16  ;;  %v1207_v19 = vshll.u32 %v1179_v14, 16  ;;  %v1185_v30 = vrot.slane %v1183_v13, 2  ;;  %v1226_v31 = vrot.slane %v1224_v8, 6 }
 0x1b4   : > { %1110 = vst [vmem:[#allocation1 + $0x1] ss:$4 sm:$0xff] %v7477_v32  ;;  %v1165_v7 = vld [vmem:[#allocation2 + $0x3c] sm:$0x7]  ;;  %v1204_v25 = vor.u32 %v1203_v5, %v1200_v4  ;;  %v1213_v28 = vrot.slane %v1211_v53, 6  ;;  %v1229_v21 = vrot.slane %v1227_v9, 7 }
 0x1b5   : > { %1113 = vst [vmem:[#allocation1 + $0x2] ss:$4 sm:$0xff] %v7480_v34  ;;  %v1173_v55 = vrot.slane %v1165_v7, 2  ;;  %v7490_v63 = vld [vmem:[#allocation2 + $0x54] sm:$0x3]  ;;  %v1216_v29 = vrot.slane %v1214_v59, 7 }
 0x1b6   : > { %1116 = vst [vmem:[#allocation1 + $0x3] ss:$4 sm:$0xff] %v7490_v63  ;;  %v1191_v36 = vrot.slane %v1189_v39, 2  ;;  %v7509_v37 = vld [vmem:[#allocation2 + $0x3c] sm:$0x3]  ;;  %v1205_v41 = vrot.slane %v1204_v25, 2  ;;  %v1230_v42 = vor.u32 %v1229_v21, %v1226_v31 }
 0x1b7   : > { %v1194_v3 = vsel %vm969_vm5, %v1165_v7, %v1173_v55  ;;  %v1195_v60 = vsel %vm973_vm6, %v1165_v7, %v1173_v55  ;;  %v1217_v38 = vor.u32 %v1216_v29, %v1213_v28  ;;  %v1209_v51 = vrot.slane %v1207_v19, 7  ;;  %v1337_v58 = vld [vmem:[#allocation2 + $0x18] sm:$0x7]  ;;  %v1338_v0 = vld [vmem:[#allocation2 + $0x1c] sm:$0x7] }
 0x1b8   : > { %v1237_v15 = vshrl.u32 %v1194_v3, 16  ;;  %v1240_v17 = vshll.u32 %v1194_v3, 16  ;;  %v1197_v40 = vrot.slane %v1195_v60, 2  ;;  %v1220_v61 = vshll.u32 %v1185_v30, 16  ;;  %v1340_v14 = vld [vmem:[#allocation2 + $0x24] sm:$0x7] }
 0x1b9   : > { %v1233_v12 = vshll.u32 %v1191_v36, 16  ;;  %v1218_v44 = vrot.slane %v1217_v38, 2  ;;  %v7515_v20 = vsel %vm7404_vm13, %v1205_v41, %v1209_v51  ;;  %v1231_v46 = vrot.slane %v1230_v42, 2 }
 0x1ba   : > { %v1239_v18 = vrot.slane %v1237_v15, 6  ;;  %v1242_v56 = vrot.slane %v1240_v17, 7  ;;  %v1246_v1 = vshll.u32 %v1197_v40, 16  ;;  %v1222_v22 = vrot.slane %v1220_v61, 7 }
 0x1bb   : > { %v1235_v47 = vrot.slane %v1233_v12, 7  ;;  %v1345_v62 = vrot.slane %v1337_v58, 2  ;;  %v1346_v3 = vrot.slane %v1338_v0, 2  ;;  %v1347_v53 = vrot.slane %v1339_v2, 2 }
 0x1bc   : > { %v1243_v43 = vor.u32 %v1242_v56, %v1239_v18  ;;  %v7521_v49 = vsel %vm7404_vm13, %v1218_v44, %v1222_v22  ;;  %v1248_v52 = vrot.slane %v1246_v1, 7  ;;  %v1348_v59 = vrot.slane %v1340_v14, 2 }
 0x1bd   : > { %v7502_v45 = vld.sshfl [vmem:[#allocation1] sm:$0xff pattern:$0x73625140]  ;;  %v7526_v55 = vsel %vm7404_vm13, %v1231_v46, %v1235_v47  ;;  %v1351_v5 = vsel %vm969_vm5, %v1337_v58, %v1345_v62  ;;  %v1352_v8 = vsel %vm973_vm6, %v1337_v58, %v1345_v62  ;;  %v1357_v15 = vsel %vm969_vm5, %v1338_v0, %v1346_v3  ;;  %v1481_v62 = vld [vmem:[#allocation2 + $0x48] sm:$0x7] }
 0x1be   : > { %1135 = vst [vmem:[#allocation1] ss:$4 sm:$0xff] %v7496_v10  ;;  %v1244_v7 = vrot.slane %v1243_v43, 2  ;;  %v1373_v9 = vshrl.u32 %v1351_v5, 16  ;;  %v1376_v13 = vshll.u32 %v1351_v5, 16  ;;  %v1363_v17 = vsel %vm969_vm5, %v1339_v2, %v1347_v53 }
 0x1bf   : > { %1138 = vst [vmem:[#allocation1 + $0x1] ss:$4 sm:$0xff] %v7499_v24  ;;  %v1369_v19 = vsel %vm969_vm5, %v1340_v14, %v1348_v59  ;;  %v1354_v25 = vrot.slane %v1352_v8, 2  ;;  %v1386_v39 = vshrl.u32 %v1357_v15, 16  ;;  %v1389_v28 = vshll.u32 %v1357_v15, 16 }
 0x1c0   : > { %1141 = vst [vmem:[#allocation1 + $0x2] ss:$4 sm:$0xff] %v7506_v35  ;;  %v7531_v54 = vsel %vm7404_vm13, %v1244_v7, %v1248_v52  ;;  %v1375_v29 = vrot.slane %v1373_v9, 6  ;;  %v1378_v30 = vrot.slane %v1376_v13, 7  ;;  %v1399_v31 = vshrl.u32 %v1363_v17, 16 }
 0x1c1   : > { %1144 = vst [vmem:[#allocation1 + $0x3] ss:$4 sm:$0xff] %v7509_v37  ;;  %v1402_v21 = vshll.u32 %v1363_v17, 16  ;;  %v1412_v60 = vshrl.u32 %v1369_v19, 16  ;;  %v1415_v18 = vshll.u32 %v1369_v19, 16  ;;  %v1358_v56 = vsel %vm973_vm6, %v1338_v0, %v1346_v3 }
 0x1c2   : > { %v1382_v36 = vshll.u32 %v1354_v25, 16  ;;  %v1364_v38 = vsel %vm973_vm6, %v1339_v2, %v1347_v53  ;;  %v1388_v40 = vrot.slane %v1386_v39, 6  ;;  %v1391_v41 = vrot.slane %v1389_v28, 7  ;;  %v1483_v8 = vld [vmem:[#allocation2 + $0x50] sm:$0x7] }
 0x1c3   : > { %v1379_v42 = vor.u32 %v1378_v30, %v1375_v29  ;;  %v1401_v61 = vrot.slane %v1399_v31, 6  ;;  %v1404_v43 = vrot.slane %v1402_v21, 7  ;;  %v1370_v12 = vsel %vm973_vm6, %v1340_v14, %v1348_v59  ;;  %v1482_v59 = vld [vmem:[#allocation2 + $0x4c] sm:$0x7] }
 0x1c4   : > { %v1360_v44 = vrot.slane %v1358_v56, 2  ;;  %v1414_v1 = vrot.slane %v1412_v60, 6  ;;  %v1417_v46 = vrot.slane %v1415_v18, 7  ;;  %v1366_v22 = vrot.slane %v1364_v38, 2 }
 0x1c5   : > { %v1392_v7 = vor.u32 %v1391_v41, %v1388_v40  ;;  %v1372_v47 = vrot.slane %v1370_v12, 2  ;;  %v1380_v52 = vrot.slane %v1379_v42, 2  ;;  %v1384_v58 = vrot.slane %v1382_v36, 7 }
 0x1c6   : > { %v1405_v0 = vor.u32 %v1404_v43, %v1401_v61  ;;  %v1395_v2 = vshll.u32 %v1360_v44, 16  ;;  %v1418_v14 = vor.u32 %v1417_v46, %v1414_v1  ;;  %v1408_v3 = vshll.u32 %v1366_v22, 16 }
 0x1c7   : > { %v1393_v5 = vrot.slane %v1392_v7, 2  ;;  %v1421_v53 = vshll.u32 %v1372_v47, 16  ;;  %v1490_v17 = vrot.slane %v1482_v59, 2  ;;  %v1491_v29 = vrot.slane %v1483_v8, 2 }
 0x1c8   : > { %v7517_v48 = vld.sshfl [vmem:[#allocation1] sm:$0xff pattern:$0x73625140]  ;;  %v1397_v9 = vrot.slane %v1395_v2, 7  ;;  %v1419_v13 = vrot.slane %v1418_v14, 2  ;;  %v1410_v15 = vrot.slane %v1408_v3, 7 }
 0x1c9   : > { %1251 = vst [vmem:[#allocation1] ss:$4 sm:$0xff] %v7515_v20  ;;  %v1423_v28 = vrot.slane %v1421_v53, 7  ;;  %v1501_v36 = vsel %vm969_vm5, %v1482_v59, %v1490_v17  ;;  %v1507_v38 = vsel %vm969_vm5, %v1483_v8, %v1491_v29  ;;  %v1502_v7 = vsel %vm973_vm6, %v1482_v59, %v1490_v17 }
 0x1ca   : > { %1254 = vst [vmem:[#allocation1 + $0x1] ss:$4 sm:$0xff] %v7521_v49  ;;  %v7564_v39 = vsel %vm7404_vm13, %v1393_v5, %v1397_v9  ;;  %v1530_v42 = vshrl.u32 %v1501_v36, 16  ;;  %v1533_v61 = vshll.u32 %v1501_v36, 16  ;;  %v1543_v44 = vshrl.u32 %v1507_v38, 16 }
 0x1cb   : > { %1257 = vst [vmem:[#allocation1 + $0x2] ss:$4 sm:$0xff] %v7526_v55  ;;  %v7574_v21 = vsel %vm7404_vm13, %v1419_v13, %v1423_v28  ;;  %v1546_v1 = vshll.u32 %v1507_v38, 16  ;;  %v1504_v5 = vrot.slane %v1502_v7, 2  ;;  %vm1679_vm4 = vcmask 1046534  }
 0x1cc   : > { %1260 = vst [vmem:[#allocation1 + $0x3] ss:$4 sm:$0xff] %v7531_v54  ;;  %v1545_v14 = vrot.slane %v1543_v44, 6  ;;  %v1635_v44 = vld [vmem:[#allocation2 + $0x4] sm:$0x6]  ;;  %vm7627_vm8 = vmor %vm1678_vm7, %vm1679_vm4 }
 0x1cd   : > { %v1548_v3 = vrot.slane %v1546_v1, 7 }
 0x1cf   : > { %v1549_v17 = vor.u32 %v1548_v3, %v1545_v14 }
 0x1d3   : > { %v7535_v4 = vld.sshfl [vmem:[#allocation1] sm:$0xff pattern:$0x73625140] }
 0x1d4   : > { %1278 = vst [vmem:[#allocation1] ss:$4 sm:$0xff] %v7444_v33 }
 0x1d5   : > { %1280 = vst [vmem:[#allocation1 + $0x1] ss:$4 sm:$0xff] %v7477_v32 }
 0x1d6   : > { %1282 = vst [vmem:[#allocation1 + $0x2] ss:$4 sm:$0xff] %v7480_v34 }
 0x1d7   : > { %1284 = vst [vmem:[#allocation1 + $0x3] ss:$4 sm:$0xff] %v7490_v63 }
 0x1de   : > { %v7548_v51 = vld.sshfl [vmem:[#allocation1] sm:$0xff pattern:$0x73625140] }
 0x1df   : > { %1305 = vst [vmem:[#allocation1] ss:$4 sm:$0xff] %v7410_v6  ;;  %v1489_v6 = vrot.slane %v1481_v62, 2 }
 0x1e0   : > { %1307 = vst [vmem:[#allocation1 + $0x1] ss:$4 sm:$0xff] %v7418_v16  ;;  %v7557_v16 = vsel %vm7404_vm13, %v1380_v52, %v1384_v58  ;;  %v1508_v52 = vsel %vm973_vm6, %v1483_v8, %v1491_v29  ;;  %v1532_v58 = vrot.slane %v1530_v42, 6 }
 0x1e1   : > { %1309 = vst [vmem:[#allocation1 + $0x2] ss:$4 sm:$0xff] %v7423_v23  ;;  %v1406_v23 = vrot.slane %v1405_v0, 2  ;;  %v1495_v25 = vsel %vm969_vm5, %v1481_v62, %v1489_v6  ;;  %v1496_v60 = vsel %vm973_vm6, %v1481_v62, %v1489_v6  ;;  %v1535_v62 = vrot.slane %v1533_v61, 7 }
 0x1e2   : > { %1311 = vst [vmem:[#allocation1 + $0x3] ss:$4 sm:$0xff] %v7432_v26  ;;  %v1484_v26 = vld [vmem:[#allocation2 + $0x54] sm:$0x7]  ;;  %v1517_v18 = vshrl.u32 %v1495_v25, 16  ;;  %v1520_v56 = vshll.u32 %v1495_v25, 16 }
 0x1e3   : > { %v7569_v30 = vsel %vm7404_vm13, %v1406_v23, %v1410_v15  ;;  %v1492_v31 = vrot.slane %v1484_v26, 2  ;;  %v1498_v41 = vrot.slane %v1496_v60, 2  ;;  %v1510_v59 = vrot.slane %v1508_v52, 2 }
 0x1e4   : > { %v1519_v43 = vrot.slane %v1517_v18, 6  ;;  %v1522_v12 = vrot.slane %v1520_v56, 7  ;;  %v1536_v8 = vor.u32 %v1535_v62, %v1532_v58  ;;  %v1539_v25 = vshll.u32 %v1504_v5, 16 }
 0x1e5   : > { %v1513_v40 = vsel %vm969_vm5, %v1484_v26, %v1492_v31  ;;  %v1526_v47 = vshll.u32 %v1498_v41, 16  ;;  %v1514_v6 = vsel %vm973_vm6, %v1484_v26, %v1492_v31  ;;  %v1552_v29 = vshll.u32 %v1510_v59, 16 }
 0x1e6   : > { %v1556_v46 = vshrl.u32 %v1513_v40, 16  ;;  %v1559_v22 = vshll.u32 %v1513_v40, 16  ;;  %v1523_v2 = vor.u32 %v1522_v12, %v1519_v43  ;;  %v1516_v9 = vrot.slane %v1514_v6, 2  ;;  %v1634_v12 = vld [vmem:[#allocation2] sm:$0x6] }
 0x1e7   : > { %v1528_v15 = vrot.slane %v1526_v47, 7  ;;  %v1537_v60 = vrot.slane %v1536_v8, 2  ;;  %v1550_v18 = vrot.slane %v1549_v17, 2  ;;  %v1541_v56 = vrot.slane %v1539_v25, 7 }
 0x1e8   : > { %v1558_v53 = vrot.slane %v1556_v46, 6  ;;  %v1561_v23 = vrot.slane %v1559_v22, 7  ;;  %v1524_v13 = vrot.slane %v1523_v2, 2  ;;  %v1565_v26 = vshll.u32 %v1516_v9, 16  ;;  %v1636_v46 = vld [vmem:[#allocation2 + $0x8] sm:$0x6] }
 0x1e9   : > { %v7559_v19 = vld.sshfl [vmem:[#allocation1] sm:$0xff pattern:$0x73625140]  ;;  %v1554_v38 = vrot.slane %v1552_v29, 7  ;;  %v7599_v41 = vsel %vm7404_vm13, %v1537_v60, %v1541_v56  ;;  %v1642_v1 = vrot.slane %v1634_v12, 2  ;;  %v1643_v47 = vrot.slane %v1635_v44, 2 }
 0x1ea   : > { %1426 = vst [vmem:[#allocation1] ss:$4 sm:$0xff] %v7557_v16  ;;  %v1562_v28 = vor.u32 %v1561_v23, %v1558_v53  ;;  %v7593_v31 = vsel %vm7404_vm13, %v1524_v13, %v1528_v15  ;;  %v1567_v42 = vrot.slane %v1565_v26, 7  ;;  %v1637_v22 = vld [vmem:[#allocation2 + $0xc] sm:$0x6]  ;;  %v1644_v52 = vrot.slane %v1636_v46, 2 }
 0x1eb   : > { %1429 = vst [vmem:[#allocation1 + $0x1] ss:$4 sm:$0xff] %v7564_v39  ;;  %v7604_v61 = vsel %vm7404_vm13, %v1550_v18, %v1554_v38  ;;  %v1648_v58 = vsel %vm969_vm5, %v1634_v12, %v1642_v1  ;;  %v1650_v62 = vsel %vm973_vm6, %v1634_v12, %v1642_v1  ;;  %v1645_v2 = vrot.slane %v1637_v22, 2  ;;  %v1753_v26 = vld [vmem:[#allocation2 + $0x30] sm:$0x6] }
 0x1ec   : > { %1432 = vst [vmem:[#allocation1 + $0x2] ss:$4 sm:$0xff] %v7569_v30  ;;  %v1563_v36 = vrot.slane %v1562_v28, 2  ;;  %v1655_v14 = vsel %vm969_vm5, %v1635_v44, %v1643_v47  ;;  %v1657_v3 = vsel %vm973_vm6, %v1635_v44, %v1643_v47  ;;  %v6413_v6 = vrot.slane %v1650_v62, 9  ;;  %v1754_v56 = vld [vmem:[#allocation2 + $0x34] sm:$0x6] }
 0x1ed   : > { %1435 = vst [vmem:[#allocation1 + $0x3] ss:$4 sm:$0xff] %v7574_v21  ;;  %v1662_v5 = vsel %vm969_vm5, %v1636_v46, %v1644_v52  ;;  %v1664_v53 = vsel %vm973_vm6, %v1636_v46, %v1644_v52  ;;  %v1669_v23 = vsel %vm969_vm5, %v1637_v22, %v1645_v2  ;;  %v6415_v59 = vrot.slane %v1657_v3, 9  ;;  %v1756_v38 = vld [vmem:[#allocation2 + $0x3c] sm:$0x6] }
 0x1ee   : > { %v7609_v43 = vsel %vm7404_vm13, %v1563_v36, %v1567_v42  ;;  %v6416_v9 = vrot.slane %v1662_v5, 9  ;;  %v6417_v13 = vrot.slane %v1664_v53, 9  ;;  %v6418_v15 = vrot.slane %v1669_v23, 9  ;;  %v1755_v36 = vld [vmem:[#allocation2 + $0x38] sm:$0x6] }
 0x1ef   : > { %v1761_v18 = vrot.slane %v1753_v26, 2  ;;  %v1762_v12 = vrot.slane %v1754_v56, 2  ;;  %v1763_v46 = vrot.slane %v1755_v36, 2 }
 0x1f0   : > { %v1692_v29 = vsel %vm7627_vm8, %v6416_v9, %v6417_v13 }
 0x1f1   : > { %v1767_v44 = vsel %vm969_vm5, %v1753_v26, %v1761_v18  ;;  %v1769_v1 = vsel %vm973_vm6, %v1753_v26, %v1761_v18  ;;  %v1776_v62 = vsel %vm973_vm6, %v1754_v56, %v1762_v12  ;;  %v1874_v26 = vld [vmem:[#allocation2 + $0x18] sm:$0x6] }
 0x1f2   : > { %v6422_v47 = vrot.slane %v1767_v44, 9  ;;  %v6423_v52 = vrot.slane %v1769_v1, 9  ;;  %v6425_v5 = vrot.slane %v1776_v62, 9  ;;  %v1882_v18 = vrot.slane %v1874_v26, 2 }
 0x1f4   : > { %v7584_v0 = vld.sshfl [vmem:[#allocation1] sm:$0xff pattern:$0x73625140]  ;;  %v7657_v53 = vsel %vm7627_vm8, %v6422_v47, %v6423_v52  ;;  %v1888_v1 = vsel %vm969_vm5, %v1874_v26, %v1882_v18 }
 0x1f5   : > { %1455 = vst [vmem:[#allocation1] ss:$4 sm:$0xff] %v7515_v20  ;;  %v6438_v52 = vrot.slane %v1888_v1, 9 }
 0x1f6   : > { %1457 = vst [vmem:[#allocation1 + $0x1] ss:$4 sm:$0xff] %v7521_v49 }
 0x1f7   : > { %1459 = vst [vmem:[#allocation1 + $0x2] ss:$4 sm:$0xff] %v7526_v55 }
 0x1f8   : > { %1461 = vst [vmem:[#allocation1 + $0x3] ss:$4 sm:$0xff] %v7531_v54 }
 0x1ff   : > { %v7595_v40 = vld.sshfl [vmem:[#allocation1] sm:$0xff pattern:$0x73625140] }
 0x200   : > { %1570 = vst [vmem:[#allocation1] ss:$4 sm:$0xff] %v7593_v31 }
 0x201   : > { %1573 = vst [vmem:[#allocation1 + $0x1] ss:$4 sm:$0xff] %v7599_v41 }
 0x202   : > { %1576 = vst [vmem:[#allocation1 + $0x2] ss:$4 sm:$0xff] %v7604_v61 }
 0x203   : > { %1579 = vst [vmem:[#allocation1 + $0x3] ss:$4 sm:$0xff] %v7609_v43 }
 0x20a   : > { %v7613_v7 = vld.sshfl [vmem:[#allocation1] sm:$0xff pattern:$0x73625140] }
 0x20b   : > { %1602 = vst [vmem:[#allocation1] ss:$4 sm:$0xff] %v7557_v16  ;;  %v6412_v16 = vrot.slane %v1648_v58, 9  ;;  %v1774_v58 = vsel %vm969_vm5, %v1754_v56, %v1762_v12  ;;  %v1875_v56 = vld [vmem:[#allocation2 + $0x1c] sm:$0x6] }
 0x20c   : > { %1604 = vst [vmem:[#allocation1 + $0x1] ss:$4 sm:$0xff] %v7564_v39  ;;  %v1671_v39 = vsel %vm973_vm6, %v1637_v22, %v1645_v2  ;;  %v1764_v22 = vrot.slane %v1756_v38, 2  ;;  %v1781_v2 = vsel %vm969_vm5, %v1755_v36, %v1763_v46  ;;  %v1883_v44 = vrot.slane %v1875_v56, 2 }
 0x20d   : > { %1606 = vst [vmem:[#allocation1 + $0x2] ss:$4 sm:$0xff] %v7569_v30  ;;  %v9334_v30 = vmov 0  ;;  %v1684_v8 = vsel %vm7627_vm8, %v6412_v16, %v6413_v6  ;;  %v6419_v17 = vrot.slane %v1671_v39, 9  ;;  %v6424_v6 = vrot.slane %v1774_v58, 9 }
 0x20e   : > { %1608 = vst [vmem:[#allocation1 + $0x3] ss:$4 sm:$0xff] %v7574_v21  ;;  %v9335_v30 = vsel %vm7627_vm8, 4294967295, %v9334_v30  ;;  %v6414_v21 = vrot.slane %v1655_v14, 9  ;;  %v1783_v14 = vsel %vm973_vm6, %v1755_v36, %v1763_v46  ;;  %v1788_v3 = vsel %vm969_vm5, %v1756_v38, %v1764_v22  ;;  %v1876_v36 = vld [vmem:[#allocation2 + $0x20] sm:$0x6] }
 0x20f   : > { %9336 = vst [vmem:[#allocation6_spill] sm:$0xff] %v9335_v30  ;;  %v1696_v60 = vsel %vm7627_vm8, %v6418_v15, %v6419_v17  ;;  %v1790_v16 = vsel %vm973_vm6, %v1756_v38, %v1764_v22  ;;  %v6426_v23 = vrot.slane %v1781_v2, 9  ;;  %v6427_v39 = vrot.slane %v1783_v14, 9  ;;  %v1877_v38 = vld [vmem:[#allocation2 + $0x24] sm:$0x6] }
 0x210   : > { %v1688_v28 = vsel %vm7627_vm8, %v6414_v21, %v6415_v59  ;;  %v6428_v21 = vrot.slane %v1788_v3, 9  ;;  %v6429_v59 = vrot.slane %v1790_v16, 9  ;;  %v7663_v13 = vsel %vm7627_vm8, %v6424_v6, %v6425_v5 }
 0x211   : > { %v7668_v15 = vsel %vm7627_vm8, %v6426_v23, %v6427_v39  ;;  %v1890_v46 = vsel %vm973_vm6, %v1874_v26, %v1882_v18  ;;  %v1884_v22 = vrot.slane %v1876_v36, 2  ;;  %v1885_v47 = vrot.slane %v1877_v38, 2 }
 0x212   : > { %v7673_v17 = vsel %vm7627_vm8, %v6428_v21, %v6429_v59  ;;  %v6439_v58 = vrot.slane %v1890_v46, 9  ;;  %v1895_v62 = vsel %vm969_vm5, %v1875_v56, %v1883_v44  ;;  %v1897_v2 = vsel %vm973_vm6, %v1875_v56, %v1883_v44  ;;  %v1986_v56 = vld [vmem:[#allocation2 + $0x48] sm:$0x6]  ;;  %v1988_v44 = vld [vmem:[#allocation2 + $0x50] sm:$0x6] }
 0x213   : > { %v1902_v14 = vsel %vm969_vm5, %v1876_v36, %v1884_v22  ;;  %v1904_v3 = vsel %vm973_vm6, %v1876_v36, %v1884_v22  ;;  %v1911_v16 = vsel %vm973_vm6, %v1877_v38, %v1885_v47  ;;  %v6440_v6 = vrot.slane %v1895_v62, 9  ;;  %v1989_v46 = vld [vmem:[#allocation2 + $0x54] sm:$0x6] }
 0x214   : > { %v6441_v5 = vrot.slane %v1897_v2, 9  ;;  %v6445_v39 = vrot.slane %v1911_v16, 9  ;;  %v1994_v36 = vrot.slane %v1986_v56, 2  ;;  %v1997_v62 = vrot.slane %v1989_v46, 2 }
 0x215   : > { %v7633_v25 = vld.sshfl [vmem:[#allocation1] sm:$0xff pattern:$0x73625140] }
 0x216   : > { %1698 = vst [vmem:[#allocation1] ss:$4 sm:$0xff] %v1684_v8  ;;  %v1921_v59 = vsel %vm7627_vm8, %v6440_v6, %v6441_v5  ;;  %v2021_v5 = vsel %vm969_vm5, %v1989_v46, %v1997_v62 }
 0x217   : > { %1701 = vst [vmem:[#allocation1 + $0x1] ss:$4 sm:$0xff] %v1688_v28 }
 0x218   : > { %1704 = vst [vmem:[#allocation1 + $0x2] ss:$4 sm:$0xff] %v1692_v29 }
 0x219   : > { %1707 = vst [vmem:[#allocation1 + $0x3] ss:$4 sm:$0xff] %v1696_v60 }
 0x220   : > { %v7641_v42 = vld.sshfl [vmem:[#allocation1] sm:$0xff pattern:$0x73625140] }
 0x221   : > { %1727 = vst [vmem:[#allocation1] ss:$4 sm:$0xff] %v7593_v31 }
 0x222   : > { %1729 = vst [vmem:[#allocation1 + $0x1] ss:$4 sm:$0xff] %v7599_v41 }
 0x223   : > { %1731 = vst [vmem:[#allocation1 + $0x2] ss:$4 sm:$0xff] %v7604_v61 }
 0x224   : > { %1733 = vst [vmem:[#allocation1 + $0x3] ss:$4 sm:$0xff] %v7609_v43 }
 0x22b   : > { %v7659_v9 = vld.sshfl [vmem:[#allocation1] sm:$0xff pattern:$0x73625140] }
 0x22c   : > { %1810 = vst [vmem:[#allocation1] ss:$4 sm:$0xff] %v7657_v53 }
 0x22d   : > { %1813 = vst [vmem:[#allocation1 + $0x1] ss:$4 sm:$0xff] %v7663_v13 }
 0x22e   : > { %1816 = vst [vmem:[#allocation1 + $0x2] ss:$4 sm:$0xff] %v7668_v15 }
 0x22f   : > { %1819 = vst [vmem:[#allocation1 + $0x3] ss:$4 sm:$0xff] %v7673_v17 }
 0x236   : > { %v7677_v12 = vld.sshfl [vmem:[#allocation1] sm:$0xff pattern:$0x73625140] }
 0x237   : > { %1842 = vst [vmem:[#allocation1] ss:$4 sm:$0xff] %v1684_v8  ;;  %v1909_v8 = vsel %vm969_vm5, %v1877_v38, %v1885_v47  ;;  %v1987_v38 = vld [vmem:[#allocation2 + $0x4c] sm:$0x6]  ;;  %v2000_v47 = vsel %vm969_vm5, %v1986_v56, %v1994_v36 }
 0x238   : > { %1844 = vst [vmem:[#allocation1 + $0x1] ss:$4 sm:$0xff] %v1688_v28  ;;  %v1917_v28 = vsel %vm7627_vm8, %v6438_v52, %v6439_v58  ;;  %v6444_v23 = vrot.slane %v1909_v8, 9  ;;  %v1995_v22 = vrot.slane %v1987_v38, 2  ;;  %v2002_v52 = vsel %vm973_vm6, %v1986_v56, %v1994_v36 }
 0x239   : > { %1846 = vst [vmem:[#allocation1 + $0x2] ss:$4 sm:$0xff] %v1692_v29  ;;  %v6442_v29 = vrot.slane %v1902_v14, 9  ;;  %v1996_v58 = vrot.slane %v1988_v44, 2  ;;  %v6448_v2 = vrot.slane %v2000_v47, 9  ;;  %v6449_v14 = vrot.slane %v2002_v52, 9 }
 0x23a   : > { %1848 = vst [vmem:[#allocation1 + $0x3] ss:$4 sm:$0xff] %v1696_v60  ;;  %v6443_v60 = vrot.slane %v1904_v3, 9  ;;  %v1929_v18 = vsel %vm7627_vm8, %v6444_v23, %v6445_v39  ;;  %v2007_v3 = vsel %vm969_vm5, %v1987_v38, %v1995_v22  ;;  %v2009_v8 = vsel %vm973_vm6, %v1987_v38, %v1995_v22 }
 0x23b   : > { %v2014_v16 = vsel %vm969_vm5, %v1988_v44, %v1996_v58  ;;  %v2016_v6 = vsel %vm973_vm6, %v1988_v44, %v1996_v58  ;;  %v7713_v23 = vsel %vm7627_vm8, %v6448_v2, %v6449_v14  ;;  %v2290_v58 = vld [vmem:[#allocation2 + $0x8] sm:$0x7] }
 0x23c   : > { %v1925_v26 = vsel %vm7627_vm8, %v6442_v29, %v6443_v60  ;;  %v6450_v29 = vrot.slane %v2007_v3, 9  ;;  %v6451_v60 = vrot.slane %v2009_v8, 9  ;;  %v6452_v39 = vrot.slane %v2014_v16, 9  ;;  %v6948_v2 = vld [vmem:[%s9297_s3 + $0x10] sm:$0xff]  ;;  %v2292_v3 = vld [vmem:[#allocation2 + $0x10] sm:$0x7] }
 0x23d   : > { %v2298_v8 = vrot.slane %v2290_v58, 2 }
 0x23e   : > { %v7719_v36 = vsel %vm7627_vm8, %v6450_v29, %v6451_v60 }
 0x241   : > { %v7689_v21 = vld.sshfl [vmem:[#allocation1] sm:$0xff pattern:$0x73625140] }
 0x242   : > { %1931 = vst [vmem:[#allocation1] ss:$4 sm:$0xff] %v1917_v28  ;;  %v2023_v28 = vsel %vm973_vm6, %v1989_v46, %v1997_v62  ;;  %v6946_v46 = vld [vmem:[%s9297_s3] sm:$0xff]  ;;  %v2291_v62 = vld [vmem:[#allocation2 + $0xc] sm:$0x7] }
 0x243   : > { %1934 = vst [vmem:[#allocation1 + $0x1] ss:$4 sm:$0xff] %v1921_v59  ;;  %v6453_v59 = vrot.slane %v2016_v6, 9  ;;  %950 = vmatpush.bf16.msra.mxu2 %v6946_v46  ;;  %1099 = vmatpush.bf16.msrb.mxu1 %v6946_v46 }
 0x244   : > { %1937 = vst [vmem:[#allocation1 + $0x2] ss:$4 sm:$0xff] %v1925_v26  ;;  %v6454_v26 = vrot.slane %v2021_v5, 9  ;;  %1155 = vmatpush.bf16.msrb.mxu3 %v6946_v46 }
 0x245   : > { %1940 = vst [vmem:[#allocation1 + $0x3] ss:$4 sm:$0xff] %v1929_v18  ;;  %v6455_v18 = vrot.slane %v2023_v28, 9  ;;  %v7724_v38 = vsel %vm7627_vm8, %v6452_v39, %v6453_v59 }
 0x246   : > { %9337 = vst [vmem:[#allocation7_spill] sm:$0xff] %v7724_v38  ;;  %6388 = vmatmul.msk.bf16.vlgmr.msra.gmra.mxu2 %vm543_vm1, %v7412_v11  ;;  %6390 = vmatmul.msk.bf16.vlgmr.msrb.gmra.mxu1 %vm543_vm1, %v7446_v27  ;;  %v7760_v11 = vld [vmem:[#allocation2 + $0x4] sm:$0x3] }
 0x247   : > { %v7729_v44 = vsel %vm7627_vm8, %v6454_v26, %v6455_v18  ;;  %1127 = vmatpush.bf16.msrb.mxu2 %v7457_v57  ;;  %1271 = vmatpush.bf16.msra.mxu1 %v7457_v57  ;;  %9339 = vst [vmem:[#allocation9_spill] sm:$0xff] %v7760_v11  ;;  %v7764_v57 = vld [vmem:[#allocation2 + $0x8] sm:$0x3] }
 0x248   : > { %9338 = vst [vmem:[#allocation8_spill] sm:$0xff] %v7729_v44  ;;  %6392 = vmatmul.msk.bf16.vlgmr.msrb.gmra.mxu3 %vm543_vm1, %v7517_v48  ;;  %v7783_v48 = vld [vmem:[#allocation2 + $0x24] sm:$0x3] }
 0x249   : > { %9340 = vst [vmem:[#allocation10_spill] sm:$0xff] %v7764_v57  ;;  %1328 = vmatpush.bf16.msra.mxu3 %v6948_v2 }
 0x24b   : > { %1295 = vmatpush.bf16.msra.mxu2 %v6946_v46  ;;  %1446 = vmatpush.bf16.msrb.mxu1 %v6948_v2  ;;  %v2310_v46 = vsel %vm973_vm6, %v2290_v58, %v2298_v8 }
 0x24c   : > { %v7697_v1 = vld.sshfl [vmem:[#allocation1] sm:$0xff pattern:$0x73625140] }
 0x24d   : > { %1960 = vst [vmem:[#allocation1] ss:$4 sm:$0xff] %v7657_v53  ;;  %1590 = vmatpush.bf16.msrb.mxu3 %v6948_v2 }
 0x24e   : > { %1962 = vst [vmem:[#allocation1 + $0x1] ss:$4 sm:$0xff] %v7663_v13 }
 0x24f   : > { %1964 = vst [vmem:[#allocation1 + $0x2] ss:$4 sm:$0xff] %v7668_v15 }
 0x250   : > { %1966 = vst [vmem:[#allocation1 + $0x3] ss:$4 sm:$0xff] %v7673_v17 }
 0x256   : > { %6391 = vmatmul.msk.bf16.vlgmr.msrb.gmra.mxu2 %vm543_vm1, %v7502_v45  ;;  %6393 = vmatmul.msk.bf16.vlgmr.msra.gmra.mxu1 %vm543_vm1, %v7535_v4  ;;  %v7774_v45 = vld [vmem:[#allocation2 + $0x1c] sm:$0x3]  ;;  %v7786_v4 = vld [vmem:[#allocation2 + $0x28] sm:$0x3] }
 0x257   : > { %v7715_v56 = vld.sshfl [vmem:[#allocation1] sm:$0xff pattern:$0x73625140]  ;;  %1472 = vmatpush.bf16.msrb.mxu2 %v6948_v2 }
 0x258   : > { %2043 = vst [vmem:[#allocation1] ss:$4 sm:$0xff] %v7713_v23  ;;  %6401 = vmatmul.msk.bf16.vlgmr.msra.gmra.mxu3 %vm543_vm1, %v7559_v19 }
 0x259   : > { %2046 = vst [vmem:[#allocation1 + $0x1] ss:$4 sm:$0xff] %v7719_v36 }
 0x25a   : > { %2049 = vst [vmem:[#allocation1 + $0x2] ss:$4 sm:$0xff] %v7724_v38 }
 0x25b   : > { %2052 = vst [vmem:[#allocation1 + $0x3] ss:$4 sm:$0xff] %v7729_v44 }
 0x262   : > { %v7736_v22 = vld.sshfl [vmem:[#allocation1] sm:$0xff pattern:$0x73625140] }
 0x263   : > { %2075 = vst [vmem:[#allocation1] ss:$4 sm:$0xff] %v7496_v10  ;;  %v7767_v10 = vld [vmem:[#allocation2 + $0xc] sm:$0x3] }
 0x264   : > { %2077 = vst [vmem:[#allocation1 + $0x1] ss:$4 sm:$0xff] %v7499_v24  ;;  %v7770_v24 = vld [vmem:[#allocation2 + $0x10] sm:$0x3] }
 0x265   : > { %2079 = vst [vmem:[#allocation1 + $0x2] ss:$4 sm:$0xff] %v7506_v35 }
 0x266   : > { %2081 = vst [vmem:[#allocation1 + $0x3] ss:$4 sm:$0xff] %v7509_v37  ;;  %v7778_v37 = vld [vmem:[#allocation2 + $0x20] sm:$0x3]  ;;  %6394 = vmatmul.msk.bf16.vlgmr.msra.gmra.mxu2 %vm543_vm1, %v7548_v51  ;;  %v2289_v51 = vld [vmem:[#allocation2 + $0x4] sm:$0x7]  ;;  %6402 = vmatmul.msk.bf16.vlgmr.msrb.gmra.mxu1 %vm543_vm1, %v7584_v0 }
 0x267   : > { %9341 = vst [vmem:[#allocation11_spill] sm:$0xff] %v7767_v10  ;;  %v2297_v14 = vrot.slane %v2289_v51, 2 }
 0x268   : > { %9342 = vst [vmem:[#allocation12_spill] sm:$0xff] %v7770_v24  ;;  %6404 = vmatmul.msk.bf16.vlgmr.msrb.gmra.mxu3 %vm543_vm1, %v7613_v7 }
 0x269   : > { %v2304_v26 = vsel %vm973_vm6, %v2289_v51, %v2297_v14 }
 0x26d   : > { %v7750_v47 = vld.sshfl [vmem:[#allocation1] sm:$0xff pattern:$0x73625140] }
 0x26e   : > { %2107 = vst [vmem:[#allocation1] ss:$4 sm:$0xff] %v7444_v33 }
 0x26f   : > { %2109 = vst [vmem:[#allocation1 + $0x1] ss:$4 sm:$0xff] %v7477_v32 }
 0x270   : > { %2111 = vst [vmem:[#allocation1 + $0x2] ss:$4 sm:$0xff] %v7480_v34 }
 0x271   : > { %2113 = vst [vmem:[#allocation1 + $0x3] ss:$4 sm:$0xff] %v7490_v63 }
 0x276   : > { %6403 = vmatmul.msk.bf16.vlgmr.msrb.gmra.mxu2 %vm543_vm1, %v7595_v40 }
 0x278   : > { %v7762_v27 = vld.sshfl [vmem:[#allocation1] sm:$0xff pattern:$0x73625140] }
 0x279   : > { %2138 = vst [vmem:[#allocation1] ss:$4 sm:$0xff] %v7760_v11 }
 0x27a   : > { %2141 = vst [vmem:[#allocation1 + $0x1] ss:$4 sm:$0xff] %v7764_v57 }
 0x27b   : > { %2144 = vst [vmem:[#allocation1 + $0x2] ss:$4 sm:$0xff] %v7767_v10 }
 0x27c   : > { %2147 = vst [vmem:[#allocation1 + $0x3] ss:$4 sm:$0xff] %v7770_v24 }
 0x283   : > { %v7776_v35 = vld.sshfl [vmem:[#allocation1] sm:$0xff pattern:$0x73625140] }
 0x284   : > { %2173 = vst [vmem:[#allocation1] ss:$4 sm:$0xff] %v7774_v45 }
 0x285   : > { %2176 = vst [vmem:[#allocation1 + $0x1] ss:$4 sm:$0xff] %v7778_v37 }
 0x286   : > { %2179 = vst [vmem:[#allocation1 + $0x2] ss:$4 sm:$0xff] %v7783_v48 }
 0x287   : > { %2182 = vst [vmem:[#allocation1 + $0x3] ss:$4 sm:$0xff] %v7786_v4 }
 0x28e   : > { %v7790_v52 = vld.sshfl [vmem:[#allocation1] sm:$0xff pattern:$0x73625140] }
 0x28f   : > { %2205 = vst [vmem:[#allocation1] ss:$4 sm:$0xff] %v7444_v33  ;;  %v2299_v33 = vrot.slane %v2291_v62, 2 }
 0x290   : > { %2207 = vst [vmem:[#allocation1 + $0x1] ss:$4 sm:$0xff] %v7477_v32  ;;  %v2300_v32 = vrot.slane %v2292_v3, 2 }
 0x291   : > { %2209 = vst [vmem:[#allocation1 + $0x2] ss:$4 sm:$0xff] %v7480_v34  ;;  %v2303_v34 = vsel %vm969_vm5, %v2289_v51, %v2297_v14  ;;  %v2315_v6 = vsel %vm969_vm5, %v2291_v62, %v2299_v33  ;;  %v2316_v57 = vsel %vm973_vm6, %v2291_v62, %v2299_v33  ;;  %v2312_v51 = vrot.slane %v2310_v46, 2 }
 0x292   : > { %2211 = vst [vmem:[#allocation1 + $0x3] ss:$4 sm:$0xff] %v7490_v63  ;;  %v2309_v63 = vsel %vm969_vm5, %v2290_v58, %v2298_v8  ;;  %v2325_v5 = vshrl.u32 %v2303_v34, 16  ;;  %v2328_v28 = vshll.u32 %v2303_v34, 16  ;;  %v2321_v29 = vsel %vm969_vm5, %v2292_v3, %v2300_v32 }
 0x293   : > { %v2338_v60 = vshrl.u32 %v2309_v63, 16  ;;  %v2341_v39 = vshll.u32 %v2309_v63, 16  ;;  %v2351_v59 = vshrl.u32 %v2315_v6, 16  ;;  %v2354_v19 = vshll.u32 %v2315_v6, 16 }
 0x294   : > { %v2364_v0 = vshrl.u32 %v2321_v29, 16  ;;  %v2367_v18 = vshll.u32 %v2321_v29, 16  ;;  %v2327_v2 = vrot.slane %v2325_v5, 6  ;;  %v2330_v24 = vrot.slane %v2328_v28, 7 }
 0x295   : > { %v2340_v10 = vrot.slane %v2338_v60, 6  ;;  %v2343_v40 = vrot.slane %v2341_v39, 7  ;;  %v2306_v34 = vrot.slane %v2304_v26, 2  ;;  %v2322_v44 = vsel %vm973_vm6, %v2292_v3, %v2300_v32 }
 0x296   : > { %v2353_v63 = vrot.slane %v2351_v59, 6  ;;  %v2356_v38 = vrot.slane %v2354_v19, 7  ;;  %v2366_v14 = vrot.slane %v2364_v0, 6  ;;  %v2369_v6 = vrot.slane %v2367_v18, 7 }
 0x297   : > { %v2331_v58 = vor.u32 %v2330_v24, %v2327_v2  ;;  %v2318_v8 = vrot.slane %v2316_v57, 2  ;;  %v2344_v5 = vor.u32 %v2343_v40, %v2340_v10  ;;  %v2324_v62 = vrot.slane %v2322_v44, 2  ;;  %v6949_v2 = vld [vmem:[%s9297_s3 + $0x18] sm:$0xff] }
 0x298   : > { %v2334_v33 = vshll.u32 %v2306_v34, 16  ;;  %v2357_v28 = vor.u32 %v2356_v38, %v2353_v63  ;;  %v2347_v3 = vshll.u32 %v2312_v51, 16  ;;  %v2370_v32 = vor.u32 %v2369_v6, %v2366_v14  ;;  %1625 = vmatpush.bf16.msra.mxu1 %v6949_v2  ;;  %1718 = vmatpush.bf16.msra.mxu2 %v6949_v2  ;;  %v2494_v34 = vld [vmem:[#allocation2 + $0x1c] sm:$0x7]  ;;  %v2495_v63 = vld [vmem:[#allocation2 + $0x20] sm:$0x7] }
 0x299   : > { %v7799_v16 = vld.sshfl [vmem:[#allocation1] sm:$0xff pattern:$0x73625140]  ;;  %v2332_v29 = vrot.slane %v2331_v58, 2  ;;  %v2360_v60 = vshll.u32 %v2318_v8, 16  ;;  %v2345_v39 = vrot.slane %v2344_v5, 2  ;;  %1744 = vmatpush.bf16.msra.mxu3 %v6949_v2 }
 0x29a   : > { %2237 = vst [vmem:[#allocation1] ss:$4 sm:$0xff] %v7515_v20  ;;  %v2373_v59 = vshll.u32 %v2324_v62, 16  ;;  %v2336_v19 = vrot.slane %v2334_v33, 7  ;;  %v2358_v24 = vrot.slane %v2357_v28, 2  ;;  %v2349_v57 = vrot.slane %v2347_v3, 7 }
 0x29b   : > { %2239 = vst [vmem:[#allocation1 + $0x1] ss:$4 sm:$0xff] %v7521_v49  ;;  %v2371_v26 = vrot.slane %v2370_v32, 2  ;;  %v2362_v10 = vrot.slane %v2360_v60, 7  ;;  %6411 = vmatmul.msk.bf16.vlgmr.msra.gmra.mxu1 %vm543_vm1, %v7633_v25  ;;  %6420 = vmatmul.msk.bf16.vlgmr.msra.gmra.mxu2 %vm543_vm1, %v7641_v42  ;;  %v2496_v51 = vld [vmem:[#allocation2 + $0x24] sm:$0x7] }
 0x29c   : > { %2241 = vst [vmem:[#allocation1 + $0x2] ss:$4 sm:$0xff] %v7526_v55  ;;  %v7829_v44 = vsel %vm7404_vm13, %v2332_v29, %v2336_v19  ;;  %v7835_v38 = vsel %vm7404_vm13, %v2345_v39, %v2349_v57  ;;  %v2375_v18 = vrot.slane %v2373_v59, 7  ;;  %1830 = vmatpush.bf16.msrb.mxu1 %v6949_v2  ;;  %6421 = vmatmul.msk.bf16.vlgmr.msra.gmra.mxu3 %vm543_vm1, %v7659_v9  ;;  %v2502_v14 = vrot.slane %v2494_v34, 2 }
 0x29d   : > { %2243 = vst [vmem:[#allocation1 + $0x3] ss:$4 sm:$0xff] %v7531_v54  ;;  %v7840_v7 = vsel %vm7404_vm13, %v2358_v24, %v2362_v10  ;;  %v2503_v6 = vrot.slane %v2495_v63, 2  ;;  %v2504_v58 = vrot.slane %v2496_v51, 2 }
 0x29e   : > { %v7845_v46 = vsel %vm7404_vm13, %v2371_v26, %v2375_v18  ;;  %v2509_v32 = vsel %vm973_vm6, %v2494_v34, %v2502_v14 }
 0x29f   : > { %v2520_v42 = vsel %vm969_vm5, %v2496_v51, %v2504_v58  ;;  %v2515_v39 = vsel %vm973_vm6, %v2495_v63, %v2503_v6  ;;  %v2521_v26 = vsel %vm973_vm6, %v2496_v51, %v2504_v58  ;;  %v2511_v18 = vrot.slane %v2509_v32, 2 }
 0x2a0   : > { %v2556_v28 = vshrl.u32 %v2520_v42, 16  ;;  %v2559_v3 = vshll.u32 %v2520_v42, 16 }
 0x2a1   : > { %v2539_v58 = vshll.u32 %v2511_v18, 16 }
 0x2a4   : > { %v7818_v11 = vld.sshfl [vmem:[#allocation1] sm:$0xff pattern:$0x73625140] }
 0x2a5   : > { %2263 = vst [vmem:[#allocation1] ss:$4 sm:$0xff] %v7774_v45 }
 0x2a6   : > { %2265 = vst [vmem:[#allocation1 + $0x1] ss:$4 sm:$0xff] %v7778_v37 }
 0x2a7   : > { %2267 = vst [vmem:[#allocation1 + $0x2] ss:$4 sm:$0xff] %v7783_v48 }
 0x2a8   : > { %2269 = vst [vmem:[#allocation1 + $0x3] ss:$4 sm:$0xff] %v7786_v4 }
 0x2ab   : > { %6430 = vmatmul.msk.bf16.vlgmr.msrb.gmra.mxu1 %vm543_vm1, %v7677_v12  ;;  %v2558_v12 = vrot.slane %v2556_v28, 6 }
 0x2af   : > { %v7831_v0 = vld.sshfl [vmem:[#allocation1] sm:$0xff pattern:$0x73625140] }
 0x2b0   : > { %2378 = vst [vmem:[#allocation1] ss:$4 sm:$0xff] %v7829_v44 }
 0x2b1   : > { %2381 = vst [vmem:[#allocation1 + $0x1] ss:$4 sm:$0xff] %v7835_v38 }
 0x2b2   : > { %2384 = vst [vmem:[#allocation1 + $0x2] ss:$4 sm:$0xff] %v7840_v7 }
 0x2b3   : > { %2387 = vst [vmem:[#allocation1 + $0x3] ss:$4 sm:$0xff] %v7845_v46 }
 0x2ba   : > { %v7852_v40 = vld.sshfl [vmem:[#allocation1] sm:$0xff pattern:$0x73625140] }
 0x2bb   : > { %2410 = vst [vmem:[#allocation1] ss:$4 sm:$0xff] %v7515_v20  ;;  %v2497_v20 = vld [vmem:[#allocation2 + $0x28] sm:$0x7] }
 0x2bc   : > { %2412 = vst [vmem:[#allocation1 + $0x1] ss:$4 sm:$0xff] %v7521_v49  ;;  %v2505_v25 = vrot.slane %v2497_v20, 2 }
 0x2bd   : > { %2414 = vst [vmem:[#allocation1 + $0x2] ss:$4 sm:$0xff] %v7526_v55  ;;  %v2508_v55 = vsel %vm969_vm5, %v2494_v34, %v2502_v14  ;;  %v2517_v34 = vrot.slane %v2515_v39, 2 }
 0x2be   : > { %2416 = vst [vmem:[#allocation1 + $0x3] ss:$4 sm:$0xff] %v7531_v54  ;;  %v2514_v54 = vsel %vm969_vm5, %v2495_v63, %v2503_v6  ;;  %v2530_v9 = vshrl.u32 %v2508_v55, 16  ;;  %v2533_v8 = vshll.u32 %v2508_v55, 16  ;;  %v2526_v5 = vsel %vm969_vm5, %v2497_v20, %v2505_v25 }
 0x2bf   : > { %v2543_v62 = vshrl.u32 %v2514_v54, 16  ;;  %v2546_v33 = vshll.u32 %v2514_v54, 16  ;;  %v2569_v29 = vshrl.u32 %v2526_v5, 16  ;;  %v2572_v60 = vshll.u32 %v2526_v5, 16 }
 0x2c0   : > { %v2532_v59 = vrot.slane %v2530_v9, 6  ;;  %v2535_v19 = vrot.slane %v2533_v8, 7  ;;  %v2527_v2 = vsel %vm973_vm6, %v2497_v20, %v2505_v25  ;;  %v2561_v55 = vrot.slane %v2559_v3, 7 }
 0x2c1   : > { %v2545_v24 = vrot.slane %v2543_v62, 6  ;;  %v2548_v57 = vrot.slane %v2546_v33, 7  ;;  %v2571_v14 = vrot.slane %v2569_v29, 6  ;;  %v2574_v54 = vrot.slane %v2572_v60, 7  ;;  %v6950_v62 = vld [vmem:[%s9297_s3 + $0x20] sm:$0xff] }
 0x2c2   : > { %v2536_v63 = vor.u32 %v2535_v19, %v2532_v59  ;;  %v2523_v6 = vrot.slane %v2521_v26, 2  ;;  %v2529_v51 = vrot.slane %v2527_v2, 2  ;;  %v2562_v9 = vor.u32 %v2561_v55, %v2558_v12  ;;  %1865 = vmatpush.bf16.msrb.mxu2 %v6950_v62  ;;  %1951 = vmatpush.bf16.msrb.mxu3 %v6950_v62 }
 0x2c3   : > { %v2549_v42 = vor.u32 %v2548_v57, %v2545_v24  ;;  %v2552_v20 = vshll.u32 %v2517_v34, 16  ;;  %v2575_v25 = vor.u32 %v2574_v54, %v2571_v14  ;;  %v2541_v3 = vrot.slane %v2539_v58, 7  ;;  %1977 = vmatpush.bf16.msra.mxu1 %v6950_v62  ;;  %v1077_v34 = vpop.f32.mrf.mxu3 }
 0x2c4   : > { %v2537_v8 = vrot.slane %v2536_v63, 2  ;;  %v2565_v5 = vshll.u32 %v2523_v6, 16  ;;  %v2578_v28 = vshll.u32 %v2529_v51, 16  ;;  %v2563_v32 = vrot.slane %v2562_v9, 2  ;;  %v2702_v63 = vld [vmem:[#allocation2 + $0x10] sm:$0x6] }
 0x2c5   : > { %v7864_v49 = vld.sshfl [vmem:[#allocation1] sm:$0xff pattern:$0x73625140]  ;;  %v2550_v33 = vrot.slane %v2549_v42, 2  ;;  %v2554_v29 = vrot.slane %v2552_v20, 7  ;;  %v2576_v60 = vrot.slane %v2575_v25, 2  ;;  %6437 = vmatmul.msk.bf16.vlgmr.msrb.gmra.mxu2 %vm543_vm1, %v7689_v21  ;;  %6446 = vmatmul.msk.bf16.vlgmr.msrb.gmra.mxu3 %vm543_vm1, %v7697_v1  ;;  %v918_v21 = vpop.f32.mrf.mxu1 }
 0x2c6   : > { %2442 = vst [vmem:[#allocation1] ss:$4 sm:$0xff] %v7593_v31  ;;  %2063 = vmatpush.bf16.msra.mxu2 %v6950_v62  ;;  %v7891_v39 = vsel %vm7404_vm13, %v2537_v8, %v2541_v3  ;;  %v2567_v59 = vrot.slane %v2565_v5, 7  ;;  %v2580_v57 = vrot.slane %v2578_v28, 7  ;;  %6447 = vmatmul.msk.bf16.vlgmr.msra.gmra.mxu1 %vm543_vm1, %v7715_v56  ;;  %v2710_v9 = vrot.slane %v2702_v63, 2 }
 0x2c7   : > { %2444 = vst [vmem:[#allocation1 + $0x1] ss:$4 sm:$0xff] %v7599_v41  ;;  %v7897_v24 = vsel %vm7404_vm13, %v2550_v33, %v2554_v29 }
 0x2c8   : > { %2446 = vst [vmem:[#allocation1 + $0x2] ss:$4 sm:$0xff] %v7604_v61  ;;  %v7906_v26 = vsel %vm7404_vm13, %v2563_v32, %v2567_v59  ;;  %v7913_v18 = vsel %vm7404_vm13, %v2576_v60, %v2580_v57  ;;  %v2734_v28 = vsel %vm969_vm5, %v2702_v63, %v2710_v9  ;;  %v2736_v3 = vsel %vm973_vm6, %v2702_v63, %v2710_v9 }
 0x2c9   : > { %2448 = vst [vmem:[#allocation1 + $0x3] ss:$4 sm:$0xff] %v7609_v43  ;;  %v952_v1 = vpop.f32.mrf.mxu2 }
 0x2ca   : > { %v7921_v12 = vadd.f32 %v952_v1, %v918_v21  ;;  %v6502_v21 = vrot.slane %v2734_v28, 9  ;;  %v6503_v1 = vrot.slane %v2736_v3, 9 }
 0x2cb   : > { %v7953_v20 = vpop.f32.mrf.mxu3 }
 0x2cc   : > { %9345 = vst [vmem:[#allocation15_spill] sm:$0xff] %v7953_v20  ;;  %v7986_v63 = vsel %vm7627_vm8, %v6502_v21, %v6503_v1 }
 0x2cd   : > { %v7924_v56 = vpop.f32.mrf.mxu1 }
 0x2ce   : > { %9343 = vst [vmem:[#allocation13_spill] sm:$0xff] %v7924_v56 }
 0x2d0   : > { %v7879_v10 = vld.sshfl [vmem:[#allocation1] sm:$0xff pattern:$0x73625140] }
 0x2d1   : > { %2468 = vst [vmem:[#allocation1] ss:$4 sm:$0xff] %v7829_v44  ;;  %v7947_v51 = vpop.f32.mrf.mxu2 }
 0x2d2   : > { %2470 = vst [vmem:[#allocation1 + $0x1] ss:$4 sm:$0xff] %v7835_v38 }
 0x2d3   : > { %2472 = vst [vmem:[#allocation1 + $0x2] ss:$4 sm:$0xff] %v7840_v7 }
 0x2d4   : > { %2474 = vst [vmem:[#allocation1 + $0x3] ss:$4 sm:$0xff] %v7845_v46 }
 0x2d5   : > { %6456 = vmatmul.msk.bf16.vlgmr.msra.gmra.mxu2 %vm543_vm1, %v7736_v22  ;;  %v1101_v14 = vpop.f32.mrf.mxu1  ;;  %v2701_v22 = vld [vmem:[#allocation2 + $0xc] sm:$0x6]  ;;  %9344 = vst [vmem:[#allocation14_spill] sm:$0xff] %v7947_v51 }
 0x2d6   : > { %v2709_v58 = vrot.slane %v2701_v22, 2 }
 0x2d8   : > { %v2729_v5 = vsel %vm973_vm6, %v2701_v22, %v2709_v58 }
 0x2d9   : > { %v6501_v59 = vrot.slane %v2729_v5, 9  ;;  %v1129_v57 = vpop.f32.mrf.mxu2 }
 0x2db   : > { %v7893_v19 = vld.sshfl [vmem:[#allocation1] sm:$0xff pattern:$0x73625140] }
 0x2dc   : > { %2583 = vst [vmem:[#allocation1] ss:$4 sm:$0xff] %v7891_v39 }
 0x2dd   : > { %2586 = vst [vmem:[#allocation1 + $0x1] ss:$4 sm:$0xff] %v7897_v24 }
 0x2de   : > { %2589 = vst [vmem:[#allocation1 + $0x2] ss:$4 sm:$0xff] %v7906_v26 }
 0x2df   : > { %2592 = vst [vmem:[#allocation1 + $0x3] ss:$4 sm:$0xff] %v7913_v18 }
 0x2e6   : > { %v7917_v2 = vld.sshfl [vmem:[#allocation1] sm:$0xff pattern:$0x73625140] }
 0x2e7   : > { %2615 = vst [vmem:[#allocation1] ss:$4 sm:$0xff] %v7593_v31  ;;  %v7932_v31 = vadd.f32 %v1101_v14, %v1077_v34 }
 0x2e8   : > { %2617 = vst [vmem:[#allocation1 + $0x1] ss:$4 sm:$0xff] %v7599_v41  ;;  %v6951_v41 = vld [vmem:[%s9297_s3 + $0x28] sm:$0xff] }
 0x2e9   : > { %2619 = vst [vmem:[#allocation1 + $0x2] ss:$4 sm:$0xff] %v7604_v61  ;;  %v2699_v61 = vld [vmem:[#allocation2 + $0x4] sm:$0x6]  ;;  %2098 = vmatpush.bf16.msra.mxu3 %v6951_v41  ;;  %2124 = vmatpush.bf16.msrb.mxu1 %v6951_v41 }
 0x2ea   : > { %2621 = vst [vmem:[#allocation1 + $0x3] ss:$4 sm:$0xff] %v7609_v43  ;;  %v2700_v43 = vld [vmem:[#allocation2 + $0x8] sm:$0x6]  ;;  %2158 = vmatpush.bf16.msrb.mxu2 %v6951_v41  ;;  %v2707_v54 = vrot.slane %v2699_v61, 2 }
 0x2eb   : > { %v2708_v42 = vrot.slane %v2700_v43, 2 }
 0x2ec   : > { %6463 = vmatmul.msk.bf16.vlgmr.msra.gmra.mxu3 %vm543_vm1, %v7750_v47  ;;  %6464 = vmatmul.msk.bf16.vlgmr.msrb.gmra.mxu1 %vm543_vm1, %v7762_v27  ;;  %v2713_v47 = vsel %vm969_vm5, %v2699_v61, %v2707_v54  ;;  %v2715_v27 = vsel %vm973_vm6, %v2699_v61, %v2707_v54  ;;  %v1157_v61 = vpop.f32.mrf.mxu3 }
 0x2ed   : > { %2193 = vmatpush.bf16.msrb.mxu3 %v6951_v41  ;;  %6465 = vmatmul.msk.bf16.vlgmr.msrb.gmra.mxu2 %vm543_vm1, %v7776_v35  ;;  %v2720_v25 = vsel %vm969_vm5, %v2700_v43, %v2708_v42  ;;  %v2722_v8 = vsel %vm973_vm6, %v2700_v43, %v2708_v42  ;;  %v2727_v35 = vsel %vm969_vm5, %v2701_v22, %v2709_v58  ;;  %v6496_v62 = vrot.slane %v2713_v47, 9  ;;  %v7970_v41 = vpop.f32.mrf.mxu1  ;;  %v7992_v42 = vpop.f32.mrf.mxu2 }
 0x2ee   : > { %v6497_v33 = vrot.slane %v2715_v27, 9  ;;  %v6498_v32 = vrot.slane %v2720_v25, 9  ;;  %v6499_v29 = vrot.slane %v2722_v8, 9  ;;  %v6500_v60 = vrot.slane %v2727_v35, 9  ;;  %9346 = vst [vmem:[#allocation16_spill] sm:$0xff] %v7970_v41  ;;  %v9351_v35 = vld [vmem:[#allocation8_spill] sm:$0xff] }
 0x2ef   : > { %v7977_v22 = vadd.f32 %v1157_v61, %v1129_v57  ;;  %9347 = vst [vmem:[#allocation17_spill] sm:$0xff] %v7992_v42 }
 0x2f0   : > { %v7966_v34 = vsel %vm7627_vm8, %v6496_v62, %v6497_v33  ;;  %v7974_v43 = vsel %vm7627_vm8, %v6498_v32, %v6499_v29  ;;  %v7981_v54 = vsel %vm7627_vm8, %v6500_v60, %v6501_v59  ;;  %v2873_v62 = vld [vmem:[#allocation2 + $0x20] sm:$0x6]  ;;  %v2874_v33 = vld [vmem:[#allocation2 + $0x24] sm:$0x6] }
 0x2f1   : > { %v7929_v55 = vld.sshfl [vmem:[#allocation1] sm:$0xff pattern:$0x73625140]  ;;  %v2882_v32 = vrot.slane %v2874_v33, 2 }
 0x2f2   : > { %2647 = vst [vmem:[#allocation1] ss:$4 sm:$0xff] %v7657_v53 }
 0x2f3   : > { %2649 = vst [vmem:[#allocation1 + $0x1] ss:$4 sm:$0xff] %v7663_v13  ;;  %v2900_v57 = vsel %vm969_vm5, %v2874_v33, %v2882_v32  ;;  %v2902_v21 = vsel %vm973_vm6, %v2874_v33, %v2882_v32 }
 0x2f4   : > { %2651 = vst [vmem:[#allocation1 + $0x2] ss:$4 sm:$0xff] %v7668_v15  ;;  %v8000_v47 = vpop.f32.mrf.mxu3 }
 0x2f5   : > { %2653 = vst [vmem:[#allocation1 + $0x3] ss:$4 sm:$0xff] %v7673_v17  ;;  %v1273_v58 = vpop.f32.mrf.mxu1  ;;  %v1297_v27 = vpop.f32.mrf.mxu2 }
 0x2f6   : > { %9348 = vst [vmem:[#allocation18_spill] sm:$0xff] %v8000_v47  ;;  %v8005_v25 = vadd.f32 %v1297_v27, %v1273_v58 }
 0x2fc   : > { %v7940_v6 = vld.sshfl [vmem:[#allocation1] sm:$0xff pattern:$0x73625140]  ;;  %6466 = vmatmul.msk.bf16.vlgmr.msrb.gmra.mxu3 %vm543_vm1, %v7790_v52  ;;  %v6952_v52 = vld [vmem:[%s9297_s3 + $0x30] sm:$0xff] }
 0x2fd   : > { %2673 = vst [vmem:[#allocation1] ss:$4 sm:$0xff] %v7891_v39  ;;  %v8007_v8 = vpop.f32.mrf.mxu1  ;;  %2228 = vmatpush.bf16.msra.mxu1 %v6952_v52  ;;  %2254 = vmatpush.bf16.msra.mxu2 %v6952_v52  ;;  %v8025_v28 = vpop.f32.mrf.mxu2 }
 0x2fe   : > { %2675 = vst [vmem:[#allocation1 + $0x1] ss:$4 sm:$0xff] %v7897_v24  ;;  %2280 = vmatpush.bf16.msra.mxu3 %v6952_v52 }
 0x2ff   : > { %2677 = vst [vmem:[#allocation1 + $0x2] ss:$4 sm:$0xff] %v7906_v26 }
 0x300   : > { %2679 = vst [vmem:[#allocation1 + $0x3] ss:$4 sm:$0xff] %v7913_v18  ;;  %6473 = vmatmul.msk.bf16.vlgmr.msra.gmra.mxu1 %vm543_vm1, %v7799_v16  ;;  %6474 = vmatmul.msk.bf16.vlgmr.msra.gmra.mxu2 %vm543_vm1, %v7818_v11  ;;  %v2872_v11 = vld [vmem:[#allocation2 + $0x1c] sm:$0x6] }
 0x301   : > { %9349 = vst [vmem:[#allocation19_spill] sm:$0xff] %v8007_v8  ;;  %2398 = vmatpush.bf16.msrb.mxu1 %v6952_v52 }
 0x305   : > { %v1448_v16 = vpop.f32.mrf.mxu1 }
 0x306   : > { %v8023_v5 = vadd.f32 %v1448_v16, %v7932_v31  ;;  %v6518_v16 = vrot.slane %v2900_v57, 9 }
 0x307   : > { %v7968_v14 = vld.sshfl [vmem:[#allocation1] sm:$0xff pattern:$0x73625140] }
 0x308   : > { %2756 = vst [vmem:[#allocation1] ss:$4 sm:$0xff] %v7966_v34 }
 0x309   : > { %2759 = vst [vmem:[#allocation1 + $0x1] ss:$4 sm:$0xff] %v7974_v43 }
 0x30a   : > { %2762 = vst [vmem:[#allocation1 + $0x2] ss:$4 sm:$0xff] %v7981_v54 }
 0x30b   : > { %2765 = vst [vmem:[#allocation1 + $0x3] ss:$4 sm:$0xff] %v7986_v63 }
 0x30c   : > { %6475 = vmatmul.msk.bf16.vlgmr.msra.gmra.mxu3 %vm543_vm1, %v7831_v0  ;;  %v2880_v0 = vrot.slane %v2872_v11, 2 }
 0x30e   : > { %v2886_v31 = vsel %vm969_vm5, %v2872_v11, %v2880_v0  ;;  %v2888_v29 = vsel %vm973_vm6, %v2872_v11, %v2880_v0  ;;  %v6519_v11 = vrot.slane %v2902_v21, 9 }
 0x30f   : > { %v6514_v1 = vrot.slane %v2886_v31, 9  ;;  %v6515_v61 = vrot.slane %v2888_v29, 9  ;;  %v6953_v29 = vld [vmem:[%s9297_s3 + $0x38] sm:$0xff] }
 0x310   : > { %6476 = vmatmul.msk.bf16.vlgmr.msrb.gmra.mxu1 %vm543_vm1, %v7852_v40  ;;  %2433 = vmatpush.bf16.msrb.mxu2 %v6953_v29 }
 0x311   : > { %v8050_v33 = vsel %vm7627_vm8, %v6514_v1, %v6515_v61  ;;  %2459 = vmatpush.bf16.msrb.mxu3 %v6953_v29  ;;  %2485 = vmatpush.bf16.msra.mxu1 %v6953_v29  ;;  %v9355_v1 = vld [vmem:[#allocation9_spill] sm:$0xff]  ;;  %v9357_v61 = vld [vmem:[#allocation10_spill] sm:$0xff] }
 0x312   : > { %v7994_v9 = vld.sshfl [vmem:[#allocation1] sm:$0xff pattern:$0x73625140] }
 0x313   : > { %2788 = vst [vmem:[#allocation1] ss:$4 sm:$0xff] %v7657_v53  ;;  %6483 = vmatmul.msk.bf16.vlgmr.msrb.gmra.mxu2 %vm543_vm1, %v7864_v49 }
 0x314   : > { %2790 = vst [vmem:[#allocation1 + $0x1] ss:$4 sm:$0xff] %v7663_v13  ;;  %v1330_v13 = vpop.f32.mrf.mxu3  ;;  %2603 = vmatpush.bf16.msra.mxu2 %v6953_v29  ;;  %v8111_v29 = vld [vmem:[#allocation2 + $0x40] sm:$0x3] }
 0x315   : > { %2792 = vst [vmem:[#allocation1 + $0x2] ss:$4 sm:$0xff] %v7668_v15  ;;  %v9350_v15 = vld [vmem:[#allocation7_spill] sm:$0xff] }
 0x316   : > { %2794 = vst [vmem:[#allocation1 + $0x3] ss:$4 sm:$0xff] %v7673_v17  ;;  %v1335_v17 = vadd.f32 %v1330_v13, %v7921_v12  ;;  %v1474_v13 = vpop.f32.mrf.mxu2 }
 0x317   : > { %9352 = vst [vmem:[#allocation7_spill] sm:$0xff] %v8025_v28  ;;  %v1479_v40 = vadd.f32 %v1474_v13, %v7977_v22  ;;  %v8061_v22 = vsel %vm7627_vm8, %v6518_v16, %v6519_v11 }
 0x318   : > { %9363 = vst [vmem:[#allocation21_spill] sm:$0xff] %v8111_v29 }
 0x31c   : > { %v8043_v52 = vpop.f32.mrf.mxu3  ;;  %6484 = vmatmul.msk.bf16.vlgmr.msrb.gmra.mxu3 %vm543_vm1, %v7879_v10 }
 0x31d   : > { %v8013_v53 = vld.sshfl [vmem:[#allocation1] sm:$0xff pattern:$0x73625140]  ;;  %9353 = vst [vmem:[#allocation8_spill] sm:$0xff] %v8043_v52 }
 0x31e   : > { %2820 = vst [vmem:[#allocation1] ss:$4 sm:$0xff] %v7713_v23  ;;  %v2875_v23 = vld [vmem:[#allocation2 + $0x28] sm:$0x6] }
 0x31f   : > { %2822 = vst [vmem:[#allocation1 + $0x1] ss:$4 sm:$0xff] %v7719_v36  ;;  %v2881_v36 = vrot.slane %v2873_v62, 2  ;;  %v2883_v12 = vrot.slane %v2875_v23, 2 }
 0x320   : > { %2824 = vst [vmem:[#allocation1 + $0x2] ss:$4 sm:$0xff] %v9350_v15  ;;  %6485 = vmatmul.msk.bf16.vlgmr.msra.gmra.mxu1 %vm543_vm1, %v7893_v19 }
 0x321   : > { %2826 = vst [vmem:[#allocation1 + $0x3] ss:$4 sm:$0xff] %v9351_v35  ;;  %v2893_v60 = vsel %vm969_vm5, %v2873_v62, %v2881_v36  ;;  %v2895_v59 = vsel %vm973_vm6, %v2873_v62, %v2881_v36  ;;  %v2907_v58 = vsel %vm969_vm5, %v2875_v23, %v2883_v12  ;;  %v2909_v27 = vsel %vm973_vm6, %v2875_v23, %v2883_v12  ;;  %v8046_v62 = vpop.f32.mrf.mxu1 }
 0x322   : > { %v6516_v15 = vrot.slane %v2893_v60, 9  ;;  %v6517_v35 = vrot.slane %v2895_v59, 9  ;;  %9354 = vst [vmem:[#allocation20_spill] sm:$0xff] %v8046_v62  ;;  %v6520_v0 = vrot.slane %v2907_v58, 9  ;;  %v6521_v36 = vrot.slane %v2909_v27, 9  ;;  %v9359_v58 = vld [vmem:[#allocation12_spill] sm:$0xff] }
 0x323   : > { %6486 = vmatmul.msk.bf16.vlgmr.msra.gmra.mxu2 %vm543_vm1, %v7917_v2 }
 0x324   : > { %v8056_v23 = vsel %vm7627_vm8, %v6516_v15, %v6517_v35  ;;  %v8066_v12 = vsel %vm7627_vm8, %v6520_v0, %v6521_v36  ;;  %v1592_v31 = vpop.f32.mrf.mxu3  ;;  %v8105_v36 = vld [vmem:[#allocation2 + $0x38] sm:$0x3] }
 0x325   : > { %v1597_v60 = vadd.f32 %v1592_v31, %v8005_v25  ;;  %v8083_v25 = vpop.f32.mrf.mxu2  ;;  %v8108_v31 = vld [vmem:[#allocation2 + $0x3c] sm:$0x3] }
 0x326   : > { %9356 = vst [vmem:[#allocation9_spill] sm:$0xff] %v8083_v25 }
 0x327   : > { %9362 = vst [vmem:[#allocation12_spill] sm:$0xff] %v8108_v31 }
 0x328   : > { %v8027_v3 = vld.sshfl [vmem:[#allocation1] sm:$0xff pattern:$0x73625140] }
 0x329   : > { %2846 = vst [vmem:[#allocation1] ss:$4 sm:$0xff] %v7966_v34  ;;  %v1627_v59 = vpop.f32.mrf.mxu1  ;;  %v9422_v30 = vld [vmem:[#allocation20_spill] sm:$0xff] }
 0x32a   : > { %2848 = vst [vmem:[#allocation1 + $0x1] ss:$4 sm:$0xff] %v7974_v43  ;;  %v1632_v57 = vadd.f32 %v1627_v59, %v1335_v17  ;;  %v9358_v17 = vld [vmem:[#allocation11_spill] sm:$0xff] }
 0x32b   : > { %2850 = vst [vmem:[#allocation1 + $0x2] ss:$4 sm:$0xff] %v7981_v54 }
 0x32c   : > { %2852 = vst [vmem:[#allocation1 + $0x3] ss:$4 sm:$0xff] %v7986_v63  ;;  %v8088_v27 = vpop.f32.mrf.mxu3 }
 0x32d   : > { %9360 = vst [vmem:[#allocation10_spill] sm:$0xff] %v8088_v27  ;;  %v1720_v49 = vpop.f32.mrf.mxu2  ;;  %v3179_v27 = vld [vmem:[#allocation2 + $0x40] sm:$0x7] }
 0x32e   : > { %v1725_v10 = vadd.f32 %v1720_v49, %v8023_v5  ;;  %v8101_v5 = vld [vmem:[#allocation2 + $0x34] sm:$0x3] }
 0x331   : > { %v8093_v19 = vpop.f32.mrf.mxu1 }
 0x332   : > { %9361 = vst [vmem:[#allocation11_spill] sm:$0xff] %v8093_v19 }
 0x333   : > { %v8052_v32 = vld.sshfl [vmem:[#allocation1] sm:$0xff pattern:$0x73625140] }
 0x334   : > { %2929 = vst [vmem:[#allocation1] ss:$4 sm:$0xff] %v8050_v33  ;;  %v1746_v15 = vpop.f32.mrf.mxu3 }
 0x335   : > { %2932 = vst [vmem:[#allocation1 + $0x1] ss:$4 sm:$0xff] %v8056_v23  ;;  %v1751_v35 = vadd.f32 %v1746_v15, %v1479_v40  ;;  %v8114_v2 = vpop.f32.mrf.mxu2  ;;  %v6954_v40 = vld [vmem:[%s9297_s3 + $0x40] sm:$0xff] }
 0x336   : > { %2935 = vst [vmem:[#allocation1 + $0x2] ss:$4 sm:$0xff] %v8061_v22  ;;  %2638 = vmatpush.bf16.msra.mxu3 %v6954_v40  ;;  %2664 = vmatpush.bf16.msrb.mxu1 %v6954_v40 }
 0x337   : > { %2938 = vst [vmem:[#allocation1 + $0x3] ss:$4 sm:$0xff] %v8066_v12  ;;  %2690 = vmatpush.bf16.msrb.mxu2 %v6954_v40 }
 0x338   : > { %9364 = vst [vmem:[#allocation22_spill] sm:$0xff] %v8114_v2 }
 0x339   : > { %v1832_v16 = vpop.f32.mrf.mxu1  ;;  %6493 = vmatmul.msk.bf16.vlgmr.msra.gmra.mxu3 %vm543_vm1, %v7929_v55  ;;  %6494 = vmatmul.msk.bf16.vlgmr.msrb.gmra.mxu1 %vm543_vm1, %v7940_v6  ;;  %v8137_v55 = vld [vmem:[#allocation2 + $0x54] sm:$0x3] }
 0x33a   : > { %v1837_v11 = vadd.f32 %v1832_v16, %v1597_v60  ;;  %2776 = vmatpush.bf16.msrb.mxu3 %v6954_v40  ;;  %6495 = vmatmul.msk.bf16.vlgmr.msrb.gmra.mxu2 %vm543_vm1, %v7968_v14  ;;  %v8126_v60 = vld [vmem:[#allocation2 + $0x4c] sm:$0x3]  ;;  %v8142_v14 = vld [vmem:[#allocation2 + $0x58] sm:$0x3] }
 0x33e   : > { %v8080_v21 = vld.sshfl [vmem:[#allocation1] sm:$0xff pattern:$0x73625140] }
 0x33f   : > { %2961 = vst [vmem:[#allocation1] ss:$4 sm:$0xff] %v9355_v1  ;;  %v8130_v1 = vpop.f32.mrf.mxu3 }
 0x340   : > { %2963 = vst [vmem:[#allocation1 + $0x1] ss:$4 sm:$0xff] %v9357_v61 }
 0x341   : > { %2965 = vst [vmem:[#allocation1 + $0x2] ss:$4 sm:$0xff] %v9358_v17  ;;  %v8132_v17 = vld [vmem:[#allocation2 + $0x50] sm:$0x3]  ;;  %v8140_v6 = vpop.f32.mrf.mxu1 }
 0x342   : > { %2967 = vst [vmem:[#allocation1 + $0x3] ss:$4 sm:$0xff] %v9359_v58 }
 0x343   : > { %9365 = vst [vmem:[#allocation23_spill] sm:$0xff] %v8130_v1 }
 0x344   : > { %9366 = vst [vmem:[#allocation24_spill] sm:$0xff] %v8140_v6  ;;  %v3178_v6 = vld [vmem:[#allocation2 + $0x3c] sm:$0x7] }
 0x348   : > { %v1867_v61 = vpop.f32.mrf.mxu2  ;;  %v1953_v49 = vpop.f32.mrf.mxu3 }
 0x349   : > { %v8091_v13 = vld.sshfl [vmem:[#allocation1] sm:$0xff pattern:$0x73625140]  ;;  %v8135_v58 = vadd.f32 %v1867_v61, %v1632_v57  ;;  %v8146_v15 = vadd.f32 %v1953_v49, %v1725_v10  ;;  %v1979_v16 = vpop.f32.mrf.mxu1  ;;  %6504 = vmatmul.msk.bf16.vlgmr.msrb.gmra.mxu3 %vm543_vm1, %v7994_v9  ;;  %v3176_v10 = vld [vmem:[#allocation2 + $0x34] sm:$0x7] }
 0x34a   : > { %2993 = vst [vmem:[#allocation1] ss:$4 sm:$0xff] %v7774_v45  ;;  %v8150_v57 = vadd.f32 %v1979_v16, %v1751_v35  ;;  %v3177_v49 = vld [vmem:[#allocation2 + $0x38] sm:$0x7]  ;;  %v3184_v1 = vrot.slane %v3176_v10, 2 }
 0x34b   : > { %2995 = vst [vmem:[#allocation1 + $0x1] ss:$4 sm:$0xff] %v7778_v37  ;;  %v3185_v35 = vrot.slane %v3177_v49, 2 }
 0x34c   : > { %2997 = vst [vmem:[#allocation1 + $0x2] ss:$4 sm:$0xff] %v7783_v48  ;;  %v3190_v25 = vsel %vm969_vm5, %v3176_v10, %v3184_v1 }
 0x34d   : > { %2999 = vst [vmem:[#allocation1 + $0x3] ss:$4 sm:$0xff] %v7786_v4  ;;  %v3196_v8 = vsel %vm969_vm5, %v3177_v49, %v3185_v35  ;;  %v3215_v2 = vshll.u32 %v3190_v25, 16 }
 0x34e   : > { %v3225_v41 = vshrl.u32 %v3196_v8, 16  ;;  %v3228_v20 = vshll.u32 %v3196_v8, 16 }
 0x34f   : > { %v3217_v52 = vrot.slane %v3215_v2, 7 }
 0x350   : > { %v8158_v61 = vpop.f32.mrf.mxu2  ;;  %v8164_v9 = vpop.f32.mrf.mxu3  ;;  %v3227_v51 = vrot.slane %v3225_v41, 6  ;;  %v3230_v56 = vrot.slane %v3228_v20, 7 }
 0x351   : > { %9367 = vst [vmem:[#allocation25_spill] sm:$0xff] %v8158_v61  ;;  %v8175_v47 = vpop.f32.mrf.mxu1 }
 0x352   : > { %9368 = vst [vmem:[#allocation26_spill] sm:$0xff] %v8164_v9  ;;  %v3212_v9 = vshrl.u32 %v3190_v25, 16  ;;  %v3197_v25 = vsel %vm973_vm6, %v3177_v49, %v3185_v35 }
 0x353   : > { %9369 = vst [vmem:[#allocation27_spill] sm:$0xff] %v8175_v47  ;;  %v3191_v47 = vsel %vm973_vm6, %v3176_v10, %v3184_v1  ;;  %v3199_v10 = vrot.slane %v3197_v25, 2 }
 0x354   : > { %v8103_v0 = vld.sshfl [vmem:[#allocation1] sm:$0xff pattern:$0x73625140]  ;;  %v3214_v19 = vrot.slane %v3212_v9, 6 }
 0x355   : > { %3025 = vst [vmem:[#allocation1] ss:$4 sm:$0xff] %v8101_v5 }
 0x356   : > { %3028 = vst [vmem:[#allocation1 + $0x1] ss:$4 sm:$0xff] %v8105_v36  ;;  %v3218_v41 = vor.u32 %v3217_v52, %v3214_v19 }
 0x357   : > { %3031 = vst [vmem:[#allocation1 + $0x2] ss:$4 sm:$0xff] %v8108_v31 }
 0x358   : > { %3034 = vst [vmem:[#allocation1 + $0x3] ss:$4 sm:$0xff] %v8111_v29  ;;  %v3219_v9 = vrot.slane %v3218_v41, 2  ;;  %v6956_v41 = vld [vmem:[%s9297_s3 + $0x50] sm:$0xff] }
 0x35f   : > { %v8128_v59 = vld.sshfl [vmem:[#allocation1] sm:$0xff pattern:$0x73625140] }
 0x360   : > { %3060 = vst [vmem:[#allocation1] ss:$4 sm:$0xff] %v8126_v60 }
 0x361   : > { %3063 = vst [vmem:[#allocation1 + $0x1] ss:$4 sm:$0xff] %v8132_v17 }
 0x362   : > { %3066 = vst [vmem:[#allocation1 + $0x2] ss:$4 sm:$0xff] %v8137_v55 }
 0x363   : > { %3069 = vst [vmem:[#allocation1 + $0x3] ss:$4 sm:$0xff] %v8142_v14 }
 0x36a   : > { %v8148_v40 = vld.sshfl [vmem:[#allocation1] sm:$0xff pattern:$0x73625140] }
 0x36b   : > { %3092 = vst [vmem:[#allocation1] ss:$4 sm:$0xff] %v7774_v45  ;;  %v3186_v45 = vrot.slane %v3178_v6, 2 }
 0x36c   : > { %3094 = vst [vmem:[#allocation1 + $0x1] ss:$4 sm:$0xff] %v7778_v37  ;;  %v3187_v37 = vrot.slane %v3179_v27, 2 }
 0x36d   : > { %3096 = vst [vmem:[#allocation1 + $0x2] ss:$4 sm:$0xff] %v7783_v48  ;;  %v2065_v48 = vpop.f32.mrf.mxu2  ;;  %v3202_v42 = vsel %vm969_vm5, %v3178_v6, %v3186_v45 }
 0x36e   : > { %3098 = vst [vmem:[#allocation1 + $0x3] ss:$4 sm:$0xff] %v7786_v4  ;;  %v6955_v4 = vld [vmem:[%s9297_s3 + $0x48] sm:$0xff]  ;;  %v8171_v28 = vadd.f32 %v2065_v48, %v1837_v11  ;;  %v3208_v62 = vsel %vm969_vm5, %v3179_v27, %v3187_v37  ;;  %v3238_v11 = vshrl.u32 %v3202_v42, 16  ;;  %v3241_v48 = vshll.u32 %v3202_v42, 16 }
 0x36f   : > { %2811 = vmatpush.bf16.msra.mxu1 %v6955_v4  ;;  %2837 = vmatpush.bf16.msra.mxu2 %v6955_v4  ;;  %v3254_v61 = vshll.u32 %v3208_v62, 16  ;;  %v2100_v8 = vpop.f32.mrf.mxu3 }
 0x370   : > { %2863 = vmatpush.bf16.msra.mxu3 %v6955_v4  ;;  %v2105_v42 = vadd.f32 %v2100_v8, %v8135_v58  ;;  %v3240_v31 = vrot.slane %v3238_v11, 6  ;;  %v3243_v1 = vrot.slane %v3241_v48, 7 }
 0x371   : > { %v3256_v2 = vrot.slane %v3254_v61, 7 }
 0x372   : > { %6511 = vmatmul.msk.bf16.vlgmr.msra.gmra.mxu1 %vm543_vm1, %v8013_v53  ;;  %6512 = vmatmul.msk.bf16.vlgmr.msra.gmra.mxu2 %vm543_vm1, %v8027_v3  ;;  %v3203_v53 = vsel %vm973_vm6, %v3178_v6, %v3186_v45  ;;  %v3193_v3 = vrot.slane %v3191_v47, 2  ;;  %v3231_v47 = vor.u32 %v3230_v56, %v3227_v51  ;;  %v3244_v35 = vor.u32 %v3243_v1, %v3240_v31 }
 0x373   : > { %2949 = vmatpush.bf16.msrb.mxu1 %v6955_v4  ;;  %6513 = vmatmul.msk.bf16.vlgmr.msra.gmra.mxu3 %vm543_vm1, %v8052_v32  ;;  %v3251_v4 = vshrl.u32 %v3208_v62, 16  ;;  %v3209_v32 = vsel %vm973_vm6, %v3179_v27, %v3187_v37  ;;  %v2126_v62 = vpop.f32.mrf.mxu1  ;;  %v3205_v6 = vrot.slane %v3203_v53, 2  ;;  %v3234_v45 = vshll.u32 %v3199_v10, 16 }
 0x374   : > { %v8195_v20 = vadd.f32 %v2126_v62, %v8146_v15  ;;  %v3211_v58 = vrot.slane %v3209_v32, 2  ;;  %v3221_v27 = vshll.u32 %v3193_v3, 16  ;;  %v3232_v48 = vrot.slane %v3231_v47, 2  ;;  %2984 = vmatpush.bf16.msrb.mxu2 %v6956_v41  ;;  %3010 = vmatpush.bf16.msrb.mxu3 %v6956_v41 }
 0x375   : > { %v8160_v16 = vld.sshfl [vmem:[#allocation1] sm:$0xff pattern:$0x73625140]  ;;  %v3253_v49 = vrot.slane %v3251_v4, 6  ;;  %v3247_v11 = vshll.u32 %v3205_v6, 16  ;;  %v8199_v61 = vpop.f32.mrf.mxu2  ;;  %v3245_v25 = vrot.slane %v3244_v35, 2 }
 0x376   : > { %3124 = vst [vmem:[#allocation1] ss:$4 sm:$0xff] %v7829_v44  ;;  %v3260_v4 = vshll.u32 %v3211_v58, 16  ;;  %v3223_v15 = vrot.slane %v3221_v27, 7  ;;  %v3236_v52 = vrot.slane %v3234_v45, 7 }
 0x377   : > { %3126 = vst [vmem:[#allocation1 + $0x1] ss:$4 sm:$0xff] %v7835_v38  ;;  %v3257_v37 = vor.u32 %v3256_v2, %v3253_v49  ;;  %v3249_v51 = vrot.slane %v3247_v11, 7  ;;  %v8225_v1 = vpop.f32.mrf.mxu3  ;;  %3045 = vmatpush.bf16.msra.mxu1 %v6956_v41 }
 0x378   : > { %3128 = vst [vmem:[#allocation1 + $0x2] ss:$4 sm:$0xff] %v7840_v7  ;;  %v8203_v56 = vsel %vm7404_vm13, %v3219_v9, %v3223_v15  ;;  %v8209_v31 = vsel %vm7404_vm13, %v3232_v48, %v3236_v52  ;;  %v3262_v53 = vrot.slane %v3260_v4, 7  ;;  %3080 = vmatpush.bf16.msra.mxu2 %v6956_v41 }
 0x379   : > { %3130 = vst [vmem:[#allocation1 + $0x3] ss:$4 sm:$0xff] %v7845_v46  ;;  %v3258_v19 = vrot.slane %v3257_v37, 2  ;;  %v8216_v3 = vsel %vm7404_vm13, %v3245_v25, %v3249_v51 }
 0x37a   : > { %9370 = vst [vmem:[#allocation28_spill] sm:$0xff] %v8199_v61 }
 0x37b   : > { %v8221_v32 = vsel %vm7404_vm13, %v3258_v19, %v3262_v53 }
 0x37d   : > { %v2160_v62 = vpop.f32.mrf.mxu2 }
 0x37e   : > { %v8228_v10 = vadd.f32 %v2160_v62, %v8150_v57 }
 0x37f   : > { %v2195_v2 = vpop.f32.mrf.mxu3 }
 0x380   : > { %v8188_v29 = vld.sshfl [vmem:[#allocation1] sm:$0xff pattern:$0x73625140]  ;;  %v8240_v6 = vadd.f32 %v2195_v2, %v8171_v28 }
 0x381   : > { %3150 = vst [vmem:[#allocation1] ss:$4 sm:$0xff] %v8126_v60 }
 0x382   : > { %3152 = vst [vmem:[#allocation1 + $0x1] ss:$4 sm:$0xff] %v8132_v17  ;;  %6522 = vmatmul.msk.bf16.vlgmr.msrb.gmra.mxu1 %vm543_vm1, %v8080_v21  ;;  %v8230_v21 = vpop.f32.mrf.mxu1  ;;  %6529 = vmatmul.msk.bf16.vlgmr.msrb.gmra.mxu2 %vm543_vm1, %v8091_v13 }
 0x383   : > { %3154 = vst [vmem:[#allocation1 + $0x2] ss:$4 sm:$0xff] %v8137_v55  ;;  %6530 = vmatmul.msk.bf16.vlgmr.msrb.gmra.mxu3 %vm543_vm1, %v8103_v0 }
 0x384   : > { %3156 = vst [vmem:[#allocation1 + $0x3] ss:$4 sm:$0xff] %v8142_v14 }
 0x385   : > { %9371 = vst [vmem:[#allocation29_spill] sm:$0xff] %v8230_v21  ;;  %v8252_v28 = vpop.f32.mrf.mxu2 }
 0x386   : > { %9372 = vst [vmem:[#allocation30_spill] sm:$0xff] %v8252_v28 }
 0x387   : > { %v8264_v48 = vpop.f32.mrf.mxu3 }
 0x388   : > { %9373 = vst [vmem:[#allocation31_spill] sm:$0xff] %v8264_v48 }
 0x38a   : > { %v2230_v57 = vpop.f32.mrf.mxu1 }
 0x38b   : > { %v8205_v8 = vld.sshfl [vmem:[#allocation1] sm:$0xff pattern:$0x73625140]  ;;  %v8244_v47 = vadd.f32 %v2230_v57, %v2105_v42 }
 0x38c   : > { %3265 = vst [vmem:[#allocation1] ss:$4 sm:$0xff] %v8203_v56 }
 0x38d   : > { %3268 = vst [vmem:[#allocation1 + $0x1] ss:$4 sm:$0xff] %v8209_v31  ;;  %v2256_v4 = vpop.f32.mrf.mxu2 }
 0x38e   : > { %3271 = vst [vmem:[#allocation1 + $0x2] ss:$4 sm:$0xff] %v8216_v3  ;;  %v8267_v52 = vadd.f32 %v2256_v4, %v8195_v20 }
 0x38f   : > { %3274 = vst [vmem:[#allocation1 + $0x3] ss:$4 sm:$0xff] %v8221_v32 }
 0x392   : > { %6531 = vmatmul.msk.bf16.vlgmr.msra.gmra.mxu1 %vm543_vm1, %v8128_v59  ;;  %v8269_v53 = vpop.f32.mrf.mxu1  ;;  %6532 = vmatmul.msk.bf16.vlgmr.msra.gmra.mxu2 %vm543_vm1, %v8148_v40 }
 0x396   : > { %v8232_v49 = vld.sshfl [vmem:[#allocation1] sm:$0xff pattern:$0x73625140] }
 0x397   : > { %3297 = vst [vmem:[#allocation1] ss:$4 sm:$0xff] %v7829_v44  ;;  %v3381_v44 = vld [vmem:[#allocation2 + $0x4c] sm:$0x7] }
 0x398   : > { %3299 = vst [vmem:[#allocation1 + $0x1] ss:$4 sm:$0xff] %v7835_v38  ;;  %v3382_v38 = vld [vmem:[#allocation2 + $0x50] sm:$0x7]  ;;  %v3389_v58 = vrot.slane %v3381_v44, 2 }
 0x399   : > { %3301 = vst [vmem:[#allocation1 + $0x2] ss:$4 sm:$0xff] %v7840_v7  ;;  %v3383_v7 = vld [vmem:[#allocation2 + $0x54] sm:$0x7]  ;;  %v3390_v42 = vrot.slane %v3382_v38, 2 }
 0x39a   : > { %3303 = vst [vmem:[#allocation1 + $0x3] ss:$4 sm:$0xff] %v7845_v46  ;;  %v3384_v46 = vld [vmem:[#allocation2 + $0x58] sm:$0x7]  ;;  %v3391_v35 = vrot.slane %v3383_v7, 2  ;;  %v3395_v0 = vsel %vm969_vm5, %v3381_v44, %v3389_v58  ;;  %v3396_v62 = vsel %vm973_vm6, %v3381_v44, %v3389_v58 }
 0x39b   : > { %v3392_v13 = vrot.slane %v3384_v46, 2  ;;  %v3401_v59 = vsel %vm969_vm5, %v3382_v38, %v3390_v42  ;;  %v3417_v37 = vshrl.u32 %v3395_v0, 16  ;;  %v3420_v9 = vshll.u32 %v3395_v0, 16 }
 0x39c   : > { %v3407_v45 = vsel %vm969_vm5, %v3383_v7, %v3391_v35  ;;  %v3430_v15 = vshrl.u32 %v3401_v59, 16  ;;  %v3433_v25 = vshll.u32 %v3401_v59, 16  ;;  %v3402_v57 = vsel %vm973_vm6, %v3382_v38, %v3390_v42 }
 0x39d   : > { %v3413_v11 = vsel %vm969_vm5, %v3384_v46, %v3392_v13  ;;  %v3443_v19 = vshrl.u32 %v3407_v45, 16  ;;  %v3446_v51 = vshll.u32 %v3407_v45, 16  ;;  %v3419_v0 = vrot.slane %v3417_v37, 6 }
 0x39e   : > { %v3456_v2 = vshrl.u32 %v3413_v11, 16  ;;  %v3459_v41 = vshll.u32 %v3413_v11, 16  ;;  %v3422_v28 = vrot.slane %v3420_v9, 7  ;;  %v3432_v61 = vrot.slane %v3430_v15, 6 }
 0x39f   : > { %v3435_v48 = vrot.slane %v3433_v25, 7  ;;  %v3408_v59 = vsel %vm973_vm6, %v3383_v7, %v3391_v35  ;;  %v3398_v20 = vrot.slane %v3396_v62, 2  ;;  %v3414_v44 = vsel %vm973_vm6, %v3384_v46, %v3392_v13  ;;  %v2282_v7 = vpop.f32.mrf.mxu3  ;;  %v2400_v13 = vpop.f32.mrf.mxu1 }
 0x3a0   : > { %v3445_v58 = vrot.slane %v3443_v19, 6  ;;  %v3448_v45 = vrot.slane %v3446_v51, 7  ;;  %v3404_v11 = vrot.slane %v3402_v57, 2  ;;  %v3458_v38 = vrot.slane %v3456_v2, 6 }
 0x3a1   : > { %v8254_v27 = vld.sshfl [vmem:[#allocation1] sm:$0xff pattern:$0x73625140]  ;;  %v3461_v42 = vrot.slane %v3459_v41, 7  ;;  %v3423_v37 = vor.u32 %v3422_v28, %v3419_v0  ;;  %v3410_v9 = vrot.slane %v3408_v59, 2  ;;  %v3436_v35 = vor.u32 %v3435_v48, %v3432_v61 }
 0x3a2   : > { %3329 = vst [vmem:[#allocation1] ss:$4 sm:$0xff] %v7891_v39  ;;  %v3416_v40 = vrot.slane %v3414_v44, 2  ;;  %v2287_v4 = vadd.f32 %v2282_v7, %v8228_v10  ;;  %v3426_v15 = vshll.u32 %v3398_v20, 16  ;;  %v3449_v46 = vor.u32 %v3448_v45, %v3445_v58  ;;  %v8291_v44 = vpop.f32.mrf.mxu2 }
 0x3a3   : > { %3331 = vst [vmem:[#allocation1 + $0x1] ss:$4 sm:$0xff] %v7897_v24  ;;  %v3439_v25 = vshll.u32 %v3404_v11, 16  ;;  %v3462_v19 = vor.u32 %v3461_v42, %v3458_v38  ;;  %v2405_v51 = vadd.f32 %v2400_v13, %v8240_v6  ;;  %v3424_v62 = vrot.slane %v3423_v37, 2  ;;  %v6957_v6 = vld [vmem:[%s9297_s3 + $0x58] sm:$0xff] }
 0x3a4   : > { %3333 = vst [vmem:[#allocation1 + $0x2] ss:$4 sm:$0xff] %v7906_v26  ;;  %v3452_v2 = vshll.u32 %v3410_v9, 16  ;;  %v3437_v28 = vrot.slane %v3436_v35, 2  ;;  %v3465_v41 = vshll.u32 %v3416_v40, 16  ;;  %v3428_v57 = vrot.slane %v3426_v15, 7  ;;  %3115 = vmatpush.bf16.msra.mxu3 %v6957_v6  ;;  %3141 = vmatpush.bf16.msrb.mxu1 %v6957_v6 }
 0x3a5   : > { %3335 = vst [vmem:[#allocation1 + $0x3] ss:$4 sm:$0xff] %v7913_v18  ;;  %v3450_v0 = vrot.slane %v3449_v46, 2  ;;  %v3441_v59 = vrot.slane %v3439_v25, 7  ;;  %v3463_v61 = vrot.slane %v3462_v19, 2  ;;  %3167 = vmatpush.bf16.msrb.mxu2 %v6957_v6 }
 0x3a6   : > { %v8287_v48 = vsel %vm7404_vm13, %v3424_v62, %v3428_v57  ;;  %v3454_v20 = vrot.slane %v3452_v2, 7  ;;  %9374 = vst [vmem:[#allocation32_spill] sm:$0xff] %v8291_v44  ;;  %v3467_v45 = vrot.slane %v3465_v41, 7  ;;  %v3589_v46 = vld [vmem:[#allocation2 + $0x40] sm:$0x6] }
 0x3a7   : > { %v8298_v58 = vsel %vm7404_vm13, %v3437_v28, %v3441_v59  ;;  %6539 = vmatmul.msk.bf16.vlgmr.msra.gmra.mxu3 %vm543_vm1, %v8160_v16  ;;  %6540 = vmatmul.msk.bf16.vlgmr.msrb.gmra.mxu1 %vm543_vm1, %v8188_v29  ;;  %v8318_v42 = vpop.f32.mrf.mxu3  ;;  %v8321_v7 = vpop.f32.mrf.mxu1  ;;  %v3597_v28 = vrot.slane %v3589_v46, 2 }
 0x3a8   : > { %v8303_v11 = vsel %vm7404_vm13, %v3450_v0, %v3454_v20  ;;  %v8308_v38 = vsel %vm7404_vm13, %v3463_v61, %v3467_v45  ;;  %3285 = vmatpush.bf16.msrb.mxu3 %v6957_v6  ;;  %6541 = vmatmul.msk.bf16.vlgmr.msrb.gmra.mxu2 %vm543_vm1, %v8205_v8  ;;  %9375 = vst [vmem:[#allocation33_spill] sm:$0xff] %v8318_v42 }
 0x3a9   : > { %9376 = vst [vmem:[#allocation34_spill] sm:$0xff] %v8321_v7  ;;  %v3623_v45 = vsel %vm973_vm6, %v3589_v46, %v3597_v28 }
 0x3aa   : > { %v2435_v37 = vpop.f32.mrf.mxu2 }
 0x3ab   : > { %v2440_v9 = vadd.f32 %v2435_v37, %v8244_v47 }
 0x3ac   : > { %v8273_v21 = vld.sshfl [vmem:[#allocation1] sm:$0xff pattern:$0x73625140] }
 0x3ad   : > { %3355 = vst [vmem:[#allocation1] ss:$4 sm:$0xff] %v8203_v56 }
 0x3ae   : > { %3357 = vst [vmem:[#allocation1 + $0x1] ss:$4 sm:$0xff] %v8209_v31 }
 0x3af   : > { %3359 = vst [vmem:[#allocation1 + $0x2] ss:$4 sm:$0xff] %v8216_v3  ;;  %v2461_v29 = vpop.f32.mrf.mxu3  ;;  %v2487_v8 = vpop.f32.mrf.mxu1 }
 0x3b0   : > { %3361 = vst [vmem:[#allocation1 + $0x3] ss:$4 sm:$0xff] %v8221_v32  ;;  %v2466_v16 = vadd.f32 %v2461_v29, %v8267_v52  ;;  %v8328_v40 = vadd.f32 %v2487_v8, %v2287_v4  ;;  %v6958_v52 = vld [vmem:[%s9297_s3 + $0x60] sm:$0xff] }
 0x3b1   : > { %3490 = vmatpush.bf16.msrb.mxu0 %v6958_v52  ;;  %3320 = vmatpush.bf16.msra.mxu1 %v6958_v52 }
 0x3b2   : > { %3346 = vmatpush.bf16.msra.mxu2 %v6958_v52  ;;  %3372 = vmatpush.bf16.msra.mxu3 %v6958_v52 }
 0x3b7   : > { %v8289_v10 = vld.sshfl [vmem:[#allocation1] sm:$0xff pattern:$0x73625140]  ;;  %6542 = vmatmul.msk.bf16.vlgmr.msrb.gmra.mxu3 %vm543_vm1, %v8232_v49  ;;  %v8343_v49 = vpop.f32.mrf.mxu3  ;;  %v8348_v62 = vpop.f32.mrf.mxu1  ;;  %6549 = vmatmul.msk.bf16.vlgmr.msra.gmra.mxu1 %vm543_vm1, %v8254_v27  ;;  %v3621_v27 = vsel %vm969_vm5, %v3589_v46, %v3597_v28 }
 0x3b8   : > { %3470 = vst [vmem:[#allocation1] ss:$4 sm:$0xff] %v8287_v48  ;;  %6550 = vmatmul.msk.bf16.vlgmr.msra.gmra.mxu2 %vm543_vm1, %v8273_v21  ;;  %v6568_v52 = vrot.slane %v3621_v27, 9 }
 0x3b9   : > { %3473 = vst [vmem:[#allocation1 + $0x1] ss:$4 sm:$0xff] %v8298_v58 }
 0x3ba   : > { %3476 = vst [vmem:[#allocation1 + $0x2] ss:$4 sm:$0xff] %v8303_v11 }
 0x3bb   : > { %3479 = vst [vmem:[#allocation1 + $0x3] ss:$4 sm:$0xff] %v8308_v38 }
 0x3bc   : > { %9377 = vst [vmem:[#allocation35_spill] sm:$0xff] %v8343_v49 }
 0x3bd   : > { %9378 = vst [vmem:[#allocation36_spill] sm:$0xff] %v8348_v62  ;;  %v6962_v62 = vld [vmem:[%s9297_s3 + $0x80] sm:$0xff] }
 0x3bf   : > { %v2640_v37 = vpop.f32.mrf.mxu3  ;;  %v2666_v21 = vpop.f32.mrf.mxu1 }
 0x3c0   : > { %v2645_v8 = vadd.f32 %v2640_v37, %v2440_v9 }
 0x3c2   : > { %v3480_v35 = vld.sshfl [vmem:[#allocation1] sm:$0xff pattern:$0x73625140] }
 0x3c3   : > { %3502 = vst [vmem:[#allocation1] ss:$4 sm:$0xff] %v7891_v39  ;;  %v8336_v39 = vpop.f32.mrf.mxu2  ;;  %6552 = vmatmul.msk.bf16.vlgmr.msrb.gmra.mxu0 %vm543_vm1, %v3480_v35 }
 0x3c4   : > { %3504 = vst [vmem:[#allocation1 + $0x1] ss:$4 sm:$0xff] %v7897_v24  ;;  %v3586_v24 = vld [vmem:[#allocation2 + $0x34] sm:$0x6] }
 0x3c5   : > { %3506 = vst [vmem:[#allocation1 + $0x2] ss:$4 sm:$0xff] %v7906_v26  ;;  %v3587_v26 = vld [vmem:[#allocation2 + $0x38] sm:$0x6]  ;;  %v3594_v15 = vrot.slane %v3586_v24, 2 }
 0x3c6   : > { %3508 = vst [vmem:[#allocation1 + $0x3] ss:$4 sm:$0xff] %v7913_v18  ;;  %v3588_v18 = vld [vmem:[#allocation2 + $0x3c] sm:$0x6]  ;;  %v3595_v19 = vrot.slane %v3587_v26, 2 }
 0x3c7   : > { %v3596_v2 = vrot.slane %v3588_v18, 2  ;;  %v3600_v41 = vsel %vm969_vm5, %v3586_v24, %v3594_v15  ;;  %v3602_v57 = vsel %vm973_vm6, %v3586_v24, %v3594_v15  ;;  %6551 = vmatmul.msk.bf16.vlgmr.msra.gmra.mxu3 %vm543_vm1, %v8289_v10  ;;  %v2671_v10 = vadd.f32 %v2666_v21, %v2466_v16  ;;  %v8391_v28 = vpop.f32.mrf.mxu3 }
 0x3c8   : > { %v3609_v0 = vsel %vm973_vm6, %v3587_v26, %v3595_v19  ;;  %v6562_v20 = vrot.slane %v3600_v41, 9  ;;  %v6563_v6 = vrot.slane %v3602_v57, 9  ;;  %9380 = vst [vmem:[#allocation38_spill] sm:$0xff] %v8391_v28 }
 0x3c9   : > { %v3614_v59 = vsel %vm969_vm5, %v3588_v18, %v3596_v2  ;;  %v3616_v61 = vsel %vm973_vm6, %v3588_v18, %v3596_v2  ;;  %v6565_v29 = vrot.slane %v3609_v0, 9 }
 0x3ca   : > { %v6566_v24 = vrot.slane %v3614_v59, 9  ;;  %v8370_v15 = vsel %vm7627_vm8, %v6562_v20, %v6563_v6  ;;  %v6959_v59 = vld [vmem:[%s9297_s3 + $0x68] sm:$0xff] }
 0x3cb   : > { %v2605_v4 = vpop.f32.mrf.mxu2  ;;  %3525 = vmatpush.bf16.msrb.mxu1 %v6959_v59  ;;  %3551 = vmatpush.bf16.msrb.mxu2 %v6959_v59 }
 0x3cc   : > { %v2610_v25 = vadd.f32 %v2605_v4, %v2405_v51  ;;  %v3607_v51 = vsel %vm969_vm5, %v3587_v26, %v3595_v19  ;;  %v6567_v26 = vrot.slane %v3616_v61, 9  ;;  %v6569_v4 = vrot.slane %v3623_v45, 9  ;;  %3577 = vmatpush.bf16.msrb.mxu3 %v6959_v59  ;;  %3663 = vmatpush.bf16.msra.mxu0 %v6959_v59 }
 0x3cd   : > { %v8332_v47 = vld.sshfl [vmem:[#allocation1] sm:$0xff pattern:$0x73625140]  ;;  %v6564_v35 = vrot.slane %v3607_v51, 9  ;;  %v8396_v51 = vpop.f32.mrf.mxu1 }
 0x3ce   : > { %3534 = vst [vmem:[#allocation1] ss:$4 sm:$0xff] %v7966_v34  ;;  %v8379_v9 = vsel %vm7627_vm8, %v6566_v24, %v6567_v26  ;;  %v8384_v16 = vsel %vm7627_vm8, %v6568_v52, %v6569_v4  ;;  %6559 = vmatmul.msk.bf16.vlgmr.msrb.gmra.mxu1 %vm543_vm1, %v8332_v47 }
 0x3cf   : > { %3536 = vst [vmem:[#allocation1 + $0x1] ss:$4 sm:$0xff] %v7974_v43  ;;  %v8374_v19 = vsel %vm7627_vm8, %v6564_v35, %v6565_v29  ;;  %v2778_v0 = vpop.f32.mrf.mxu3 }
 0x3d0   : > { %3538 = vst [vmem:[#allocation1 + $0x2] ss:$4 sm:$0xff] %v7981_v54  ;;  %v2783_v61 = vadd.f32 %v2778_v0, %v2610_v25 }
 0x3d1   : > { %3540 = vst [vmem:[#allocation1 + $0x3] ss:$4 sm:$0xff] %v7986_v63 }
 0x3d2   : > { %9381 = vst [vmem:[#allocation39_spill] sm:$0xff] %v8396_v51 }
 0x3d3   : > { %v8388_v46 = vpop.f32.mrf.mxu2 }
 0x3d4   : > { %9379 = vst [vmem:[#allocation37_spill] sm:$0xff] %v8388_v46 }
 0x3d8   : > { %v8345_v13 = vld.sshfl [vmem:[#allocation1] sm:$0xff pattern:$0x73625140] }
 0x3d9   : > { %3560 = vst [vmem:[#allocation1] ss:$4 sm:$0xff] %v8287_v48  ;;  %6560 = vmatmul.msk.bf16.vlgmr.msrb.gmra.mxu2 %vm543_vm1, %v8345_v13  ;;  %v8421_v13 = vpop.f32.mrf.mxu3 }
 0x3da   : > { %3562 = vst [vmem:[#allocation1 + $0x1] ss:$4 sm:$0xff] %v8298_v58 }
 0x3db   : > { %3564 = vst [vmem:[#allocation1 + $0x2] ss:$4 sm:$0xff] %v8303_v11  ;;  %v2692_v41 = vpop.f32.mrf.mxu2 }
 0x3dc   : > { %3566 = vst [vmem:[#allocation1 + $0x3] ss:$4 sm:$0xff] %v8308_v38  ;;  %v2697_v57 = vadd.f32 %v2692_v41, %v8328_v40  ;;  %v3761_v40 = vld [vmem:[#allocation2 + $0x54] sm:$0x6] }
 0x3dd   : > { %v3769_v47 = vrot.slane %v3761_v40, 2  ;;  %9383 = vst [vmem:[#allocation41_spill] sm:$0xff] %v8421_v13 }
 0x3df   : > { %v3787_v26 = vsel %vm969_vm5, %v3761_v40, %v3769_v47  ;;  %v3789_v21 = vsel %vm973_vm6, %v3761_v40, %v3769_v47 }
 0x3e0   : > { %v6584_v59 = vrot.slane %v3787_v26, 9 }
 0x3e3   : > { %v3567_v18 = vld.sshfl [vmem:[#allocation1] sm:$0xff pattern:$0x73625140] }
 0x3e4   : > { %3643 = vst [vmem:[#allocation1] ss:$4 sm:$0xff] %v8370_v15  ;;  %6561 = vmatmul.msk.bf16.vlgmr.msrb.gmra.mxu3 %vm543_vm1, %v3567_v18 }
 0x3e5   : > { %3646 = vst [vmem:[#allocation1 + $0x1] ss:$4 sm:$0xff] %v8374_v19 }
 0x3e6   : > { %3649 = vst [vmem:[#allocation1 + $0x2] ss:$4 sm:$0xff] %v8379_v9 }
 0x3e7   : > { %3652 = vst [vmem:[#allocation1 + $0x3] ss:$4 sm:$0xff] %v8384_v16 }
 0x3ee   : > { %v3653_v2 = vld.sshfl [vmem:[#allocation1] sm:$0xff pattern:$0x73625140] }
 0x3ef   : > { %3675 = vst [vmem:[#allocation1] ss:$4 sm:$0xff] %v7966_v34  ;;  %v2813_v20 = vpop.f32.mrf.mxu1  ;;  %6570 = vmatmul.msk.bf16.vlgmr.msra.gmra.mxu0 %vm543_vm1, %v3653_v2 }
 0x3f0   : > { %3677 = vst [vmem:[#allocation1 + $0x1] ss:$4 sm:$0xff] %v7974_v43  ;;  %v8405_v43 = vadd.f32 %v2813_v20, %v2645_v8 }
 0x3f1   : > { %3679 = vst [vmem:[#allocation1 + $0x2] ss:$4 sm:$0xff] %v7981_v54  ;;  %v8416_v54 = vpop.f32.mrf.mxu2 }
 0x3f2   : > { %3681 = vst [vmem:[#allocation1 + $0x3] ss:$4 sm:$0xff] %v7986_v63  ;;  %v3759_v63 = vld [vmem:[#allocation2 + $0x4c] sm:$0x6] }
 0x3f3   : > { %9382 = vst [vmem:[#allocation40_spill] sm:$0xff] %v8416_v54 }
 0x3f7   : > { %v8428_v24 = vpop.f32.mrf.mxu1 }
 0x3f8   : > { %9384 = vst [vmem:[#allocation42_spill] sm:$0xff] %v8428_v24 }
 0x3f9   : > { %v8402_v34 = vld.sshfl [vmem:[#allocation1] sm:$0xff pattern:$0x73625140]  ;;  %v2839_v27 = vpop.f32.mrf.mxu2 }
 0x3fa   : > { %3707 = vst [vmem:[#allocation1] ss:$4 sm:$0xff] %v8050_v33  ;;  %v3760_v33 = vld [vmem:[#allocation2 + $0x50] sm:$0x6]  ;;  %v2844_v35 = vadd.f32 %v2839_v27, %v2671_v10  ;;  %v6585_v10 = vrot.slane %v3789_v21, 9 }
 0x3fb   : > { %3709 = vst [vmem:[#allocation1 + $0x1] ss:$4 sm:$0xff] %v8056_v23  ;;  %v3767_v23 = vrot.slane %v3759_v63, 2  ;;  %v3768_v6 = vrot.slane %v3760_v33, 2 }
 0x3fc   : > { %3711 = vst [vmem:[#allocation1 + $0x2] ss:$4 sm:$0xff] %v8061_v22  ;;  %v3762_v22 = vld [vmem:[#allocation2 + $0x58] sm:$0x6] }
 0x3fd   : > { %3713 = vst [vmem:[#allocation1 + $0x3] ss:$4 sm:$0xff] %v8066_v12  ;;  %v3770_v12 = vrot.slane %v3762_v22, 2  ;;  %v3773_v45 = vsel %vm969_vm5, %v3759_v63, %v3767_v23  ;;  %v3775_v37 = vsel %vm973_vm6, %v3759_v63, %v3767_v23  ;;  %v3780_v29 = vsel %vm969_vm5, %v3760_v33, %v3768_v6 }
 0x3fe   : > { %v3782_v8 = vsel %vm973_vm6, %v3760_v33, %v3768_v6  ;;  %v6580_v52 = vrot.slane %v3773_v45, 9  ;;  %v6581_v4 = vrot.slane %v3775_v37, 9  ;;  %v6582_v41 = vrot.slane %v3780_v29, 9  ;;  %v2865_v6 = vpop.f32.mrf.mxu3 }
 0x3ff   : > { %v3794_v18 = vsel %vm969_vm5, %v3762_v22, %v3770_v12  ;;  %v3796_v2 = vsel %vm973_vm6, %v3762_v22, %v3770_v12  ;;  %v6583_v0 = vrot.slane %v3782_v8, 9  ;;  %v2870_v47 = vadd.f32 %v2865_v6, %v2697_v57  ;;  %v2951_v12 = vpop.f32.mrf.mxu1  ;;  %v6960_v57 = vld [vmem:[%s9297_s3 + $0x70] sm:$0xff]  ;;  %v9387_v8 = vld [vmem:[#allocation21_spill] sm:$0xff] }
 0x400   : > { %v6586_v20 = vrot.slane %v3794_v18, 9  ;;  %v6587_v63 = vrot.slane %v3796_v2, 9  ;;  %v8436_v33 = vsel %vm7627_vm8, %v6580_v52, %v6581_v4  ;;  %v8445_v22 = vsel %vm7627_vm8, %v6584_v59, %v6585_v10  ;;  %3698 = vmatpush.bf16.msra.mxu1 %v6960_v57  ;;  %3724 = vmatpush.bf16.msra.mxu2 %v6960_v57  ;;  %v8483_v59 = vld [vmem:[#allocation2 + $0x14] sm:$0x3]  ;;  %v8486_v10 = vld [vmem:[#allocation2 + $0x10] sm:$0x3] }
 0x401   : > { %v8440_v40 = vsel %vm7627_vm8, %v6582_v41, %v6583_v0  ;;  %v2956_v45 = vadd.f32 %v2951_v12, %v2783_v61  ;;  %v8454_v37 = vpop.f32.mrf.mxu2  ;;  %3750 = vmatpush.bf16.msra.mxu3 %v6960_v57  ;;  %3836 = vmatpush.bf16.msrb.mxu0 %v6960_v57  ;;  %v9386_v61 = vld [vmem:[#allocation12_spill] sm:$0xff]  ;;  %v8479_v41 = vld [vmem:[#allocation2 + $0x8] sm:$0x3]  ;;  %v8481_v0 = vld [vmem:[#allocation2 + $0xc] sm:$0x3] }
 0x402   : > { %v8450_v27 = vsel %vm7627_vm8, %v6586_v20, %v6587_v63  ;;  %9385 = vst [vmem:[#allocation43_spill] sm:$0xff] %v8454_v37  ;;  %v6961_v63 = vld [vmem:[%s9297_s3 + $0x78] sm:$0xff]  ;;  %v8500_v57 = vld [vmem:[#allocation2 + $0x24] sm:$0x3] }
 0x403   : > { %6577 = vmatmul.msk.bf16.vlgmr.msra.gmra.mxu1 %vm543_vm1, %v8402_v34 }
 0x404   : > { %v3714_v25 = vld.sshfl [vmem:[#allocation1] sm:$0xff pattern:$0x73625140]  ;;  %3871 = vmatpush.bf16.msrb.mxu1 %v6961_v63  ;;  %3897 = vmatpush.bf16.msrb.mxu2 %v6961_v63 }
 0x405   : > { %3733 = vst [vmem:[#allocation1] ss:$4 sm:$0xff] %v8370_v15  ;;  %6578 = vmatmul.msk.bf16.vlgmr.msra.gmra.mxu2 %vm543_vm1, %v3714_v25  ;;  %3932 = vmatpush.bf16.msrb.mxu3 %v6961_v63 }
 0x406   : > { %3735 = vst [vmem:[#allocation1 + $0x1] ss:$4 sm:$0xff] %v8374_v19  ;;  %v8468_v26 = vpop.f32.mrf.mxu3  ;;  %3967 = vmatpush.bf16.msra.mxu0 %v6961_v63  ;;  %v4066_v63 = vld [vmem:[#allocation2 + $0x14] sm:$0x7] }
 0x407   : > { %3737 = vst [vmem:[#allocation1 + $0x2] ss:$4 sm:$0xff] %v8379_v9  ;;  %v8471_v52 = vpop.f32.mrf.mxu1 }
 0x408   : > { %3739 = vst [vmem:[#allocation1 + $0x3] ss:$4 sm:$0xff] %v8384_v16  ;;  %4002 = vmatpush.bf16.msra.mxu1 %v6962_v62  ;;  %4028 = vmatpush.bf16.msra.mxu2 %v6962_v62 }
 0x409   : > { %9388 = vst [vmem:[#allocation12_spill] sm:$0xff] %v8468_v26  ;;  %v2986_v21 = vpop.f32.mrf.mxu2 }
 0x40a   : > { %9389 = vst [vmem:[#allocation21_spill] sm:$0xff] %v8471_v52 }
 0x40e   : > { %v3012_v34 = vpop.f32.mrf.mxu3 }
 0x40f   : > { %v3740_v23 = vld.sshfl [vmem:[#allocation1] sm:$0xff pattern:$0x73625140]  ;;  %v3017_v25 = vadd.f32 %v3012_v34, %v2844_v35  ;;  %v3047_v4 = vpop.f32.mrf.mxu1 }
 0x410   : > { %3816 = vst [vmem:[#allocation1] ss:$4 sm:$0xff] %v8436_v33  ;;  %6579 = vmatmul.msk.bf16.vlgmr.msra.gmra.mxu3 %vm543_vm1, %v3740_v23  ;;  %v3052_v18 = vadd.f32 %v3047_v4, %v2870_v47  ;;  %v8498_v47 = vld [vmem:[#allocation2 + $0x20] sm:$0x3] }
 0x411   : > { %3819 = vst [vmem:[#allocation1 + $0x1] ss:$4 sm:$0xff] %v8440_v40  ;;  %v8477_v2 = vpop.f32.mrf.mxu2  ;;  %4054 = vmatpush.bf16.msra.mxu3 %v6962_v62 }
 0x412   : > { %3822 = vst [vmem:[#allocation1 + $0x2] ss:$4 sm:$0xff] %v8445_v22 }
 0x413   : > { %3825 = vst [vmem:[#allocation1 + $0x3] ss:$4 sm:$0xff] %v8450_v27 }
 0x414   : > { %9390 = vst [vmem:[#allocation44_spill] sm:$0xff] %v8477_v2 }
 0x416   : > { %v8491_v35 = vpop.f32.mrf.mxu3 }
 0x417   : > { %9391 = vst [vmem:[#allocation45_spill] sm:$0xff] %v8491_v35  ;;  %v8496_v6 = vpop.f32.mrf.mxu1 }
 0x418   : > { %9392 = vst [vmem:[#allocation46_spill] sm:$0xff] %v8496_v6  ;;  %v4074_v6 = vrot.slane %v4066_v63, 2 }
 0x419   : > { %v3082_v20 = vpop.f32.mrf.mxu2 }
 0x41a   : > { %v3826_v29 = vld.sshfl [vmem:[#allocation1] sm:$0xff pattern:$0x73625140]  ;;  %v3087_v23 = vadd.f32 %v3082_v20, %v2956_v45  ;;  %v8507_v45 = vld [vmem:[#allocation2 + $0x28] sm:$0x3]  ;;  %v4096_v51 = vsel %vm973_vm6, %v4066_v63, %v4074_v6 }
 0x41b   : > { %3848 = vst [vmem:[#allocation1] ss:$4 sm:$0xff] %v8101_v5  ;;  %6588 = vmatmul.msk.bf16.vlgmr.msrb.gmra.mxu0 %vm543_vm1, %v3826_v29  ;;  %v2991_v5 = vadd.f32 %v2986_v21, %v8405_v43  ;;  %v8502_v29 = vld [vmem:[#allocation2 + $0x2c] sm:$0x3]  ;;  %v4098_v24 = vrot.slane %v4096_v51, 2 }
 0x41c   : > { %3850 = vst [vmem:[#allocation1 + $0x1] ss:$4 sm:$0xff] %v8105_v36  ;;  %v4064_v20 = vld [vmem:[#allocation2 + $0xc] sm:$0x7]  ;;  %4172 = vmatpush.bf16.msrb.mxu0 %v6962_v62 }
 0x41d   : > { %3852 = vst [vmem:[#allocation1 + $0x2] ss:$4 sm:$0xff] %v9386_v61  ;;  %v4147_v51 = vshll.u32 %v4098_v24, 16 }
 0x41e   : > { %3854 = vst [vmem:[#allocation1 + $0x3] ss:$4 sm:$0xff] %v9387_v8 }
 0x424   : > { %v3143_v21 = vpop.f32.mrf.mxu1 }
 0x425   : > { %v3855_v36 = vld.sshfl [vmem:[#allocation1] sm:$0xff pattern:$0x73625140]  ;;  %v8513_v34 = vadd.f32 %v3143_v21, %v3017_v25  ;;  %v4072_v21 = vrot.slane %v4064_v20, 2 }
 0x426   : > { %3880 = vst [vmem:[#allocation1] ss:$4 sm:$0xff] %v8126_v60  ;;  %6595 = vmatmul.msk.bf16.vlgmr.msrb.gmra.mxu1 %vm543_vm1, %v3855_v36  ;;  %v8516_v36 = vpop.f32.mrf.mxu2 }
 0x427   : > { %3882 = vst [vmem:[#allocation1 + $0x1] ss:$4 sm:$0xff] %v8132_v17  ;;  %v4084_v2 = vsel %vm973_vm6, %v4064_v20, %v4072_v21 }
 0x428   : > { %3884 = vst [vmem:[#allocation1 + $0x2] ss:$4 sm:$0xff] %v8137_v55 }
 0x429   : > { %3886 = vst [vmem:[#allocation1 + $0x3] ss:$4 sm:$0xff] %v8142_v14 }
 0x42a   : > { %v3117_v61 = vpop.f32.mrf.mxu3  ;;  %9393 = vst [vmem:[#allocation47_spill] sm:$0xff] %v8516_v36 }
 0x42b   : > { %v3122_v8 = vadd.f32 %v3117_v61, %v2991_v5 }
 0x42e   : > { %v3169_v61 = vpop.f32.mrf.mxu2 }
 0x430   : > { %v3887_v43 = vld.sshfl [vmem:[#allocation1] sm:$0xff pattern:$0x73625140] }
 0x431   : > { %3912 = vst [vmem:[#allocation1] ss:$4 sm:$0xff] %v8479_v41  ;;  %6596 = vmatmul.msk.bf16.vlgmr.msrb.gmra.mxu2 %vm543_vm1, %v3887_v43  ;;  %v4063_v43 = vld [vmem:[#allocation2 + $0x8] sm:$0x7] }
 0x432   : > { %3915 = vst [vmem:[#allocation1 + $0x1] ss:$4 sm:$0xff] %v8481_v0  ;;  %v4071_v5 = vrot.slane %v4063_v43, 2  ;;  %v8522_v25 = vpop.f32.mrf.mxu3 }
 0x433   : > { %3918 = vst [vmem:[#allocation1 + $0x2] ss:$4 sm:$0xff] %v8486_v10 }
 0x434   : > { %3921 = vst [vmem:[#allocation1 + $0x3] ss:$4 sm:$0xff] %v8483_v59 }
 0x435   : > { %9394 = vst [vmem:[#allocation48_spill] sm:$0xff] %v8522_v25 }
 0x43a   : > { %v3287_v46 = vpop.f32.mrf.mxu3 }
 0x43b   : > { %v3922_v12 = vld.sshfl [vmem:[#allocation1] sm:$0xff pattern:$0x73625140] }
 0x43c   : > { %3947 = vst [vmem:[#allocation1] ss:$4 sm:$0xff] %v8498_v47  ;;  %6597 = vmatmul.msk.bf16.vlgmr.msrb.gmra.mxu3 %vm543_vm1, %v3922_v12  ;;  %v4065_v12 = vld [vmem:[#allocation2 + $0x10] sm:$0x7] }
 0x43d   : > { %3950 = vst [vmem:[#allocation1 + $0x1] ss:$4 sm:$0xff] %v8500_v57 }
 0x43e   : > { %3953 = vst [vmem:[#allocation1 + $0x2] ss:$4 sm:$0xff] %v8507_v45 }
 0x43f   : > { %3956 = vst [vmem:[#allocation1 + $0x3] ss:$4 sm:$0xff] %v8502_v29 }
 0x446   : > { %v3957_v4 = vld.sshfl [vmem:[#allocation1] sm:$0xff pattern:$0x73625140] }
 0x447   : > { %3979 = vst [vmem:[#allocation1] ss:$4 sm:$0xff] %v8126_v60  ;;  %6598 = vmatmul.msk.bf16.vlgmr.msra.gmra.mxu0 %vm543_vm1, %v3957_v4  ;;  %v8524_v60 = vadd.f32 %v3169_v61, %v3052_v18  ;;  %v8526_v4 = vpop.f32.mrf.mxu1  ;;  %v4095_v18 = vsel %vm969_vm5, %v4066_v63, %v4074_v6 }
 0x448   : > { %3981 = vst [vmem:[#allocation1 + $0x1] ss:$4 sm:$0xff] %v8132_v17  ;;  %v4073_v17 = vrot.slane %v4065_v12, 2  ;;  %v4138_v7 = vshrl.u32 %v4095_v18, 16  ;;  %v4141_v42 = vshll.u32 %v4095_v18, 16 }
 0x449   : > { %3983 = vst [vmem:[#allocation1 + $0x2] ss:$4 sm:$0xff] %v8137_v55  ;;  %v4077_v55 = vsel %vm969_vm5, %v4063_v43, %v4071_v5 }
 0x44a   : > { %3985 = vst [vmem:[#allocation1 + $0x3] ss:$4 sm:$0xff] %v8142_v14  ;;  %v4083_v14 = vsel %vm969_vm5, %v4064_v20, %v4072_v21  ;;  %v4099_v61 = vshrl.u32 %v4077_v55, 16  ;;  %v4089_v52 = vsel %vm969_vm5, %v4065_v12, %v4073_v17  ;;  %v4102_v26 = vshll.u32 %v4077_v55, 16 }
 0x44b   : > { %9395 = vst [vmem:[#allocation49_spill] sm:$0xff] %v8526_v4  ;;  %v4112_v13 = vshrl.u32 %v4083_v14, 16  ;;  %v4115_v54 = vshll.u32 %v4083_v14, 16  ;;  %v8539_v4 = vadd.f32 %v3287_v46, %v3087_v23  ;;  %v4125_v35 = vshrl.u32 %v4089_v52, 16 }
 0x44c   : > { %v4128_v37 = vshll.u32 %v4089_v52, 16  ;;  %v4078_v55 = vsel %vm973_vm6, %v4063_v43, %v4071_v5  ;;  %v4101_v44 = vrot.slane %v4099_v61, 6  ;;  %v4104_v25 = vrot.slane %v4102_v26, 7 }
 0x44d   : > { %v4114_v18 = vrot.slane %v4112_v13, 6  ;;  %v4117_v46 = vrot.slane %v4115_v54, 7  ;;  %v4090_v23 = vsel %vm973_vm6, %v4065_v12, %v4073_v17  ;;  %v4140_v6 = vrot.slane %v4138_v7, 6  ;;  %v8552_v13 = vpop.f32.mrf.mxu2 }
 0x44e   : > { %v4143_v63 = vrot.slane %v4141_v42, 7  ;;  %v4080_v28 = vrot.slane %v4078_v55, 2  ;;  %v4127_v43 = vrot.slane %v4125_v35, 6  ;;  %v4130_v5 = vrot.slane %v4128_v37, 7  ;;  %9396 = vst [vmem:[#allocation50_spill] sm:$0xff] %v8552_v13 }
 0x44f   : > { %v3322_v49 = vpop.f32.mrf.mxu1  ;;  %v4105_v62 = vor.u32 %v4104_v25, %v4101_v44  ;;  %v4092_v54 = vrot.slane %v4090_v23, 2  ;;  %v4118_v7 = vor.u32 %v4117_v46, %v4114_v18  ;;  %v4149_v12 = vrot.slane %v4147_v51, 7  ;;  %v8559_v18 = vpop.f32.mrf.mxu3 }
 0x450   : > { %v8543_v14 = vadd.f32 %v3322_v49, %v3122_v8  ;;  %v4086_v49 = vrot.slane %v4084_v2, 2  ;;  %v4144_v42 = vor.u32 %v4143_v63, %v4140_v6  ;;  %v4108_v26 = vshll.u32 %v4080_v28, 16  ;;  %9397 = vst [vmem:[#allocation51_spill] sm:$0xff] %v8559_v18 }
 0x451   : > { %v3986_v36 = vld.sshfl [vmem:[#allocation1] sm:$0xff pattern:$0x73625140]  ;;  %v4131_v37 = vor.u32 %v4130_v5, %v4127_v43  ;;  %v4106_v8 = vrot.slane %v4105_v62, 2  ;;  %v4119_v20 = vrot.slane %v4118_v7, 2 }
 0x452   : > { %4011 = vst [vmem:[#allocation1] ss:$4 sm:$0xff] %v8203_v56  ;;  %6605 = vmatmul.msk.bf16.vlgmr.msra.gmra.mxu1 %vm543_vm1, %v3986_v36  ;;  %v4121_v35 = vshll.u32 %v4086_v49, 16  ;;  %v4134_v36 = vshll.u32 %v4092_v54, 16  ;;  %v4145_v2 = vrot.slane %v4144_v42, 2  ;;  %v4110_v21 = vrot.slane %v4108_v26, 7 }
 0x453   : > { %4013 = vst [vmem:[#allocation1 + $0x1] ss:$4 sm:$0xff] %v8209_v31  ;;  %v4132_v44 = vrot.slane %v4131_v37, 2  ;;  %v4268_v62 = vld [vmem:[#allocation2 + $0x20] sm:$0x7] }
 0x454   : > { %4015 = vst [vmem:[#allocation1 + $0x2] ss:$4 sm:$0xff] %v8216_v3  ;;  %v4123_v25 = vrot.slane %v4121_v35, 7  ;;  %v8557_v17 = vsel %vm7404_vm13, %v4106_v8, %v4110_v21  ;;  %v4136_v61 = vrot.slane %v4134_v36, 7  ;;  %v8567_v46 = vsel %vm7404_vm13, %v4145_v2, %v4149_v12  ;;  %v4269_v54 = vld [vmem:[#allocation2 + $0x24] sm:$0x7] }
 0x455   : > { %4017 = vst [vmem:[#allocation1 + $0x3] ss:$4 sm:$0xff] %v8221_v32  ;;  %v3348_v24 = vpop.f32.mrf.mxu2  ;;  %v4270_v42 = vld [vmem:[#allocation2 + $0x28] sm:$0x7] }
 0x456   : > { %v8563_v28 = vsel %vm7404_vm13, %v4119_v20, %v4123_v25  ;;  %v8571_v23 = vadd.f32 %v3348_v24, %v8513_v34  ;;  %v3492_v34 = vpop.f32.mrf.mxu0  ;;  %v4278_v26 = vrot.slane %v4270_v42, 2 }
 0x457   : > { %v3374_v6 = vpop.f32.mrf.mxu3  ;;  %v8584_v43 = vpop.f32.mrf.mxu1  ;;  %v8587_v49 = vadd.f32 %v3492_v34, %v8539_v4  ;;  %v4271_v4 = vld [vmem:[#allocation2 + $0x2c] sm:$0x7] }
 0x458   : > { %v8582_v63 = vadd.f32 %v3374_v6, %v8524_v60  ;;  %9398 = vst [vmem:[#allocation52_spill] sm:$0xff] %v8584_v43  ;;  %v6963_v60 = vld [vmem:[%s9297_s3 + $0x88] sm:$0xff]  ;;  %v4294_v2 = vsel %vm969_vm5, %v4270_v42, %v4278_v26 }
 0x459   : > { %4207 = vmatpush.bf16.msrb.mxu1 %v6963_v60  ;;  %4233 = vmatpush.bf16.msrb.mxu2 %v6963_v60 }
 0x45a   : > { %4259 = vmatpush.bf16.msrb.mxu3 %v6963_v60  ;;  %4377 = vmatpush.bf16.msra.mxu0 %v6963_v60 }
 0x45c   : > { %v4018_v52 = vld.sshfl [vmem:[#allocation1] sm:$0xff pattern:$0x73625140] }
 0x45d   : > { %4037 = vst [vmem:[#allocation1] ss:$4 sm:$0xff] %v8498_v47  ;;  %6606 = vmatmul.msk.bf16.vlgmr.msra.gmra.mxu2 %vm543_vm1, %v4018_v52  ;;  %v8576_v52 = vsel %vm7404_vm13, %v4132_v44, %v4136_v61  ;;  %v8604_v35 = vpop.f32.mrf.mxu2  ;;  %v4330_v61 = vshrl.u32 %v4294_v2, 16 }
 0x45e   : > { %4039 = vst [vmem:[#allocation1 + $0x1] ss:$4 sm:$0xff] %v8500_v57 }
 0x45f   : > { %4041 = vst [vmem:[#allocation1 + $0x2] ss:$4 sm:$0xff] %v8507_v45  ;;  %v3527_v7 = vpop.f32.mrf.mxu1  ;;  %v8615_v18 = vpop.f32.mrf.mxu3 }
 0x460   : > { %4043 = vst [vmem:[#allocation1 + $0x3] ss:$4 sm:$0xff] %v8502_v29 }
 0x461   : > { %9399 = vst [vmem:[#allocation53_spill] sm:$0xff] %v8604_v35 }
 0x465   : > { %v3553_v13 = vpop.f32.mrf.mxu2 }
 0x467   : > { %v4044_v55 = vld.sshfl [vmem:[#allocation1] sm:$0xff pattern:$0x73625140] }
 0x468   : > { %4152 = vst [vmem:[#allocation1] ss:$4 sm:$0xff] %v8557_v17  ;;  %6607 = vmatmul.msk.bf16.vlgmr.msra.gmra.mxu3 %vm543_vm1, %v4044_v55  ;;  %v4333_v55 = vshll.u32 %v4294_v2, 16  ;;  %v3558_v2 = vadd.f32 %v3553_v13, %v8571_v23 }
 0x469   : > { %4155 = vst [vmem:[#allocation1 + $0x1] ss:$4 sm:$0xff] %v8563_v28 }
 0x46a   : > { %4158 = vst [vmem:[#allocation1 + $0x2] ss:$4 sm:$0xff] %v8576_v52 }
 0x46b   : > { %4161 = vst [vmem:[#allocation1 + $0x3] ss:$4 sm:$0xff] %v8567_v46 }
 0x472   : > { %v4162_v5 = vld.sshfl [vmem:[#allocation1] sm:$0xff pattern:$0x73625140] }
 0x473   : > { %4184 = vst [vmem:[#allocation1] ss:$4 sm:$0xff] %v8203_v56  ;;  %6608 = vmatmul.msk.bf16.vlgmr.msrb.gmra.mxu0 %vm543_vm1, %v4162_v5  ;;  %v8598_v56 = vadd.f32 %v3527_v7, %v8543_v14  ;;  %v4295_v7 = vsel %vm973_vm6, %v4270_v42, %v4278_v26 }
 0x474   : > { %4186 = vst [vmem:[#allocation1 + $0x1] ss:$4 sm:$0xff] %v8209_v31  ;;  %v4276_v31 = vrot.slane %v4268_v62, 2 }
 0x475   : > { %4188 = vst [vmem:[#allocation1 + $0x2] ss:$4 sm:$0xff] %v8216_v3  ;;  %v4277_v3 = vrot.slane %v4269_v54, 2 }
 0x476   : > { %4190 = vst [vmem:[#allocation1 + $0x3] ss:$4 sm:$0xff] %v8221_v32  ;;  %v4279_v32 = vrot.slane %v4271_v4, 2  ;;  %v4282_v37 = vsel %vm969_vm5, %v4268_v62, %v4276_v31  ;;  %v4283_v6 = vsel %vm973_vm6, %v4268_v62, %v4276_v31  ;;  %v4335_v62 = vrot.slane %v4333_v55, 7  ;;  %v8619_v31 = vpop.f32.mrf.mxu0 }
 0x477   : > { %v4288_v14 = vsel %vm969_vm5, %v4269_v54, %v4277_v3  ;;  %v4304_v36 = vshrl.u32 %v4282_v37, 16  ;;  %v4307_v20 = vshll.u32 %v4282_v37, 16  ;;  %v4289_v60 = vsel %vm973_vm6, %v4269_v54, %v4277_v3 }
 0x478   : > { %v4300_v8 = vsel %vm969_vm5, %v4271_v4, %v4279_v32  ;;  %v4317_v12 = vshrl.u32 %v4288_v14, 16  ;;  %v4320_v21 = vshll.u32 %v4288_v14, 16  ;;  %v4301_v24 = vsel %vm973_vm6, %v4271_v4, %v4279_v32 }
 0x479   : > { %v4343_v44 = vshrl.u32 %v4300_v8, 16  ;;  %v4346_v25 = vshll.u32 %v4300_v8, 16  ;;  %v4306_v34 = vrot.slane %v4304_v36, 6  ;;  %v4309_v5 = vrot.slane %v4307_v20, 7 }
 0x47a   : > { %v4322_v37 = vrot.slane %v4320_v21, 7  ;;  %v4303_v35 = vrot.slane %v4301_v24, 2  ;;  %v4285_v4 = vrot.slane %v4283_v6, 2  ;;  %v4332_v32 = vrot.slane %v4330_v61, 6 }
 0x47b   : > { %v4345_v8 = vrot.slane %v4343_v44, 6  ;;  %v4348_v43 = vrot.slane %v4346_v25, 7  ;;  %v4291_v54 = vrot.slane %v4289_v60, 2  ;;  %v4310_v42 = vor.u32 %v4309_v5, %v4306_v34  ;;  %v3579_v25 = vpop.f32.mrf.mxu3  ;;  %v8626_v60 = vpop.f32.mrf.mxu1 }
 0x47c   : > { %v4297_v3 = vrot.slane %v4295_v7, 2  ;;  %v4352_v23 = vshll.u32 %v4303_v35, 16  ;;  %v4313_v36 = vshll.u32 %v4285_v4, 16  ;;  %v4336_v20 = vor.u32 %v4335_v62, %v4332_v32  ;;  %v6964_v4 = vld [vmem:[%s9297_s3 + $0x90] sm:$0xff] }
 0x47d   : > { %v4191_v51 = vld.sshfl [vmem:[#allocation1] sm:$0xff pattern:$0x73625140]  ;;  %v4349_v13 = vor.u32 %v4348_v43, %v4345_v8  ;;  %v4311_v21 = vrot.slane %v4310_v42, 2  ;;  %v3584_v6 = vadd.f32 %v3579_v25, %v8582_v63  ;;  %4412 = vmatpush.bf16.msra.mxu1 %v6964_v4  ;;  %4438 = vmatpush.bf16.msra.mxu2 %v6964_v4  ;;  %v8655_v42 = vpop.f32.mrf.mxu2 }
 0x47e   : > { %4216 = vst [vmem:[#allocation1] ss:$4 sm:$0xff] %v8287_v48  ;;  %6615 = vmatmul.msk.bf16.vlgmr.msrb.gmra.mxu1 %vm543_vm1, %v4191_v51  ;;  %v4319_v51 = vrot.slane %v4317_v12, 6  ;;  %v4326_v12 = vshll.u32 %v4291_v54, 16  ;;  %v4339_v44 = vshll.u32 %v4297_v3, 16  ;;  %v4354_v24 = vrot.slane %v4352_v23, 7  ;;  %v3665_v7 = vpop.f32.mrf.mxu0  ;;  %4464 = vmatpush.bf16.msra.mxu3 %v6964_v4 }
 0x47f   : > { %4218 = vst [vmem:[#allocation1 + $0x1] ss:$4 sm:$0xff] %v8298_v58  ;;  %v4350_v55 = vrot.slane %v4349_v13, 2  ;;  %v4315_v34 = vrot.slane %v4313_v36, 7  ;;  %v4337_v5 = vrot.slane %v4336_v20, 2  ;;  %v3670_v43 = vadd.f32 %v3665_v7, %v8587_v49  ;;  %4550 = vmatpush.bf16.msrb.mxu0 %v6964_v4 }
 0x480   : > { %4220 = vst [vmem:[#allocation1 + $0x2] ss:$4 sm:$0xff] %v8303_v11  ;;  %v4323_v26 = vor.u32 %v4322_v37, %v4319_v51  ;;  %v4328_v51 = vrot.slane %v4326_v12, 7  ;;  %v4341_v37 = vrot.slane %v4339_v44, 7  ;;  %v4476_v20 = vld [vmem:[#allocation2 + $0x14] sm:$0x6] }
 0x481   : > { %4222 = vst [vmem:[#allocation1 + $0x3] ss:$4 sm:$0xff] %v8308_v38  ;;  %v8631_v35 = vsel %vm7404_vm13, %v4311_v21, %v4315_v34  ;;  %v8639_v63 = vsel %vm7404_vm13, %v4350_v55, %v4354_v24  ;;  %v4475_v21 = vld [vmem:[#allocation2 + $0x10] sm:$0x6]  ;;  %v4484_v55 = vrot.slane %v4476_v20, 2 }
 0x482   : > { %v4324_v61 = vrot.slane %v4323_v26, 2  ;;  %9400 = vst [vmem:[#allocation54_spill] sm:$0xff] %v8639_v63  ;;  %v8645_v49 = vsel %vm7404_vm13, %v4337_v5, %v4341_v37  ;;  %v4483_v24 = vrot.slane %v4475_v21, 2 }
 0x483   : > { %9401 = vst [vmem:[#allocation55_spill] sm:$0xff] %v8645_v49  ;;  %v3700_v32 = vpop.f32.mrf.mxu1  ;;  %v8661_v3 = vpop.f32.mrf.mxu3  ;;  %v4510_v37 = vsel %vm973_vm6, %v4476_v20, %v4484_v55 }
 0x484   : > { %v8635_v8 = vsel %vm7404_vm13, %v4324_v61, %v4328_v51  ;;  %v3705_v62 = vadd.f32 %v3700_v32, %v8598_v56  ;;  %v4501_v4 = vsel %vm969_vm5, %v4475_v21, %v4483_v24  ;;  %v4503_v32 = vsel %vm973_vm6, %v4475_v21, %v4483_v24 }
 0x486   : > { %v8663_v23 = vpop.f32.mrf.mxu0 }
 0x488   : > { %v4223_v14 = vld.sshfl [vmem:[#allocation1] sm:$0xff pattern:$0x73625140]  ;;  %v3726_v26 = vpop.f32.mrf.mxu2 }
 0x489   : > { %4242 = vst [vmem:[#allocation1] ss:$4 sm:$0xff] %v8557_v17  ;;  %6616 = vmatmul.msk.bf16.vlgmr.msrb.gmra.mxu2 %vm543_vm1, %v4223_v14  ;;  %v3731_v13 = vadd.f32 %v3726_v26, %v3558_v2 }
 0x48a   : > { %4244 = vst [vmem:[#allocation1 + $0x1] ss:$4 sm:$0xff] %v8563_v28 }
 0x48b   : > { %4246 = vst [vmem:[#allocation1 + $0x2] ss:$4 sm:$0xff] %v8576_v52  ;;  %v8672_v36 = vpop.f32.mrf.mxu1 }
 0x48c   : > { %4248 = vst [vmem:[#allocation1 + $0x3] ss:$4 sm:$0xff] %v8567_v46 }
 0x493   : > { %v4249_v14 = vld.sshfl [vmem:[#allocation1] sm:$0xff pattern:$0x73625140] }
 0x494   : > { %4357 = vst [vmem:[#allocation1] ss:$4 sm:$0xff] %v8631_v35  ;;  %6617 = vmatmul.msk.bf16.vlgmr.msrb.gmra.mxu3 %vm543_vm1, %v4249_v14 }
 0x495   : > { %4360 = vst [vmem:[#allocation1 + $0x1] ss:$4 sm:$0xff] %v8635_v8 }
 0x496   : > { %4363 = vst [vmem:[#allocation1 + $0x2] ss:$4 sm:$0xff] %v8645_v49 }
 0x497   : > { %4366 = vst [vmem:[#allocation1 + $0x3] ss:$4 sm:$0xff] %v8639_v63 }
 0x498   : > { %v3838_v2 = vpop.f32.mrf.mxu0 }
 0x499   : > { %v3843_v12 = vadd.f32 %v3838_v2, %v3670_v43  ;;  %v4508_v43 = vsel %vm969_vm5, %v4476_v20, %v4484_v55  ;;  %v6633_v20 = vrot.slane %v4503_v32, 9 }
 0x49a   : > { %v6634_v2 = vrot.slane %v4508_v43, 9 }
 0x49e   : > { %v4367_v54 = vld.sshfl [vmem:[#allocation1] sm:$0xff pattern:$0x73625140] }
 0x49f   : > { %4389 = vst [vmem:[#allocation1] ss:$4 sm:$0xff] %v8287_v48  ;;  %6618 = vmatmul.msk.bf16.vlgmr.msra.gmra.mxu0 %vm543_vm1, %v4367_v54  ;;  %v3752_v48 = vpop.f32.mrf.mxu3 }
 0x4a0   : > { %4391 = vst [vmem:[#allocation1 + $0x1] ss:$4 sm:$0xff] %v8298_v58  ;;  %v8670_v58 = vadd.f32 %v3752_v48, %v3584_v6  ;;  %v6965_v6 = vld [vmem:[%s9297_s3 + $0x98] sm:$0xff] }
 0x4a1   : > { %4393 = vst [vmem:[#allocation1 + $0x2] ss:$4 sm:$0xff] %v8303_v11  ;;  %v4473_v11 = vld [vmem:[#allocation2 + $0x8] sm:$0x6]  ;;  %4585 = vmatpush.bf16.msrb.mxu1 %v6965_v6  ;;  %4611 = vmatpush.bf16.msrb.mxu2 %v6965_v6 }
 0x4a2   : > { %4395 = vst [vmem:[#allocation1 + $0x3] ss:$4 sm:$0xff] %v8308_v38  ;;  %v4474_v38 = vld [vmem:[#allocation2 + $0xc] sm:$0x6]  ;;  %v4481_v44 = vrot.slane %v4473_v11, 2  ;;  %4637 = vmatpush.bf16.msrb.mxu3 %v6965_v6  ;;  %4723 = vmatpush.bf16.msra.mxu0 %v6965_v6 }
 0x4a3   : > { %v4482_v25 = vrot.slane %v4474_v38, 2  ;;  %v3873_v14 = vpop.f32.mrf.mxu1 }
 0x4a4   : > { %v4487_v34 = vsel %vm969_vm5, %v4473_v11, %v4481_v44  ;;  %v4489_v5 = vsel %vm973_vm6, %v4473_v11, %v4481_v44  ;;  %v3878_v54 = vadd.f32 %v3873_v14, %v3705_v62  ;;  %v8690_v44 = vpop.f32.mrf.mxu2 }
 0x4a5   : > { %v4494_v7 = vsel %vm969_vm5, %v4474_v38, %v4482_v25  ;;  %v4496_v51 = vsel %vm973_vm6, %v4474_v38, %v4482_v25  ;;  %v6628_v26 = vrot.slane %v4487_v34, 9  ;;  %v6635_v38 = vrot.slane %v4510_v37, 9 }
 0x4a6   : > { %v6630_v48 = vrot.slane %v4494_v7, 9  ;;  %v6631_v11 = vrot.slane %v4496_v51, 9  ;;  %v6632_v25 = vrot.slane %v4501_v4, 9  ;;  %v8717_v7 = vpop.f32.mrf.mxu0 }
 0x4a7   : > { %v8702_v21 = vsel %vm7627_vm8, %v6634_v2, %v6635_v38 }
 0x4a8   : > { %v8698_v62 = vsel %vm7627_vm8, %v6630_v48, %v6631_v11  ;;  %9404 = vst [vmem:[#allocation58_spill] sm:$0xff] %v8702_v21  ;;  %v8708_v24 = vsel %vm7627_vm8, %v6632_v25, %v6633_v20 }
 0x4a9   : > { %v4396_v56 = vld.sshfl [vmem:[#allocation1] sm:$0xff pattern:$0x73625140]  ;;  %9403 = vst [vmem:[#allocation57_spill] sm:$0xff] %v8698_v62 }
 0x4aa   : > { %4421 = vst [vmem:[#allocation1] ss:$4 sm:$0xff] %v8370_v15  ;;  %6625 = vmatmul.msk.bf16.vlgmr.msra.gmra.mxu1 %vm543_vm1, %v4396_v56  ;;  %v6629_v56 = vrot.slane %v4489_v5, 9  ;;  %v8715_v5 = vpop.f32.mrf.mxu3 }
 0x4ab   : > { %4423 = vst [vmem:[#allocation1 + $0x1] ss:$4 sm:$0xff] %v8374_v19  ;;  %v8729_v4 = vpop.f32.mrf.mxu1 }
 0x4ac   : > { %4425 = vst [vmem:[#allocation1 + $0x2] ss:$4 sm:$0xff] %v8379_v9 }
 0x4ad   : > { %4427 = vst [vmem:[#allocation1 + $0x3] ss:$4 sm:$0xff] %v8384_v16 }
 0x4ae   : > { %9405 = vst [vmem:[#allocation59_spill] sm:$0xff] %v8708_v24 }
 0x4b4   : > { %v4428_v61 = vld.sshfl [vmem:[#allocation1] sm:$0xff pattern:$0x73625140]  ;;  %v3899_v6 = vpop.f32.mrf.mxu2 }
 0x4b5   : > { %4447 = vst [vmem:[#allocation1] ss:$4 sm:$0xff] %v8631_v35  ;;  %6626 = vmatmul.msk.bf16.vlgmr.msra.gmra.mxu2 %vm543_vm1, %v4428_v61  ;;  %v8694_v61 = vsel %vm7627_vm8, %v6628_v26, %v6629_v56  ;;  %v8713_v34 = vadd.f32 %v3899_v6, %v3731_v13 }
 0x4b6   : > { %4449 = vst [vmem:[#allocation1 + $0x1] ss:$4 sm:$0xff] %v8635_v8 }
 0x4b7   : > { %4451 = vst [vmem:[#allocation1 + $0x2] ss:$4 sm:$0xff] %v8645_v49 }
 0x4b8   : > { %4453 = vst [vmem:[#allocation1 + $0x3] ss:$4 sm:$0xff] %v8639_v63 }
 0x4b9   : > { %9402 = vst [vmem:[#allocation56_spill] sm:$0xff] %v8694_v61 }
 0x4bf   : > { %v4454_v55 = vld.sshfl [vmem:[#allocation1] sm:$0xff pattern:$0x73625140]  ;;  %v3934_v43 = vpop.f32.mrf.mxu3 }
 0x4c0   : > { %4530 = vst [vmem:[#allocation1] ss:$4 sm:$0xff] %v8694_v61  ;;  %6627 = vmatmul.msk.bf16.vlgmr.msra.gmra.mxu3 %vm543_vm1, %v4454_v55  ;;  %v8725_v37 = vadd.f32 %v3934_v43, %v8670_v58  ;;  %v4649_v58 = vld [vmem:[#allocation2 + $0x2c] sm:$0x6]  ;;  %v8754_v43 = vpop.f32.mrf.mxu2 }
 0x4c1   : > { %4533 = vst [vmem:[#allocation1 + $0x1] ss:$4 sm:$0xff] %v8698_v62 }
 0x4c2   : > { %4536 = vst [vmem:[#allocation1 + $0x2] ss:$4 sm:$0xff] %v8708_v24 }
 0x4c3   : > { %4539 = vst [vmem:[#allocation1 + $0x3] ss:$4 sm:$0xff] %v8702_v21 }
 0x4c4   : > { %v3969_v13 = vpop.f32.mrf.mxu0 }
 0x4c5   : > { %v8727_v14 = vadd.f32 %v3969_v13, %v3843_v12  ;;  %v4648_v12 = vld [vmem:[#allocation2 + $0x28] sm:$0x6] }
 0x4c6   : > { %v4656_v56 = vrot.slane %v4648_v12, 2 }
 0x4c8   : > { %v4674_v20 = vsel %vm969_vm5, %v4648_v12, %v4656_v56  ;;  %v4676_v55 = vsel %vm973_vm6, %v4648_v12, %v4656_v56 }
 0x4ca   : > { %v4540_v51 = vld.sshfl [vmem:[#allocation1] sm:$0xff pattern:$0x73625140] }
 0x4cb   : > { %4562 = vst [vmem:[#allocation1] ss:$4 sm:$0xff] %v8370_v15  ;;  %6636 = vmatmul.msk.bf16.vlgmr.msrb.gmra.mxu0 %vm543_vm1, %v4540_v51  ;;  %v6966_v15 = vld [vmem:[%s9297_s3 + $0xa0] sm:$0xff] }
 0x4cc   : > { %4564 = vst [vmem:[#allocation1 + $0x1] ss:$4 sm:$0xff] %v8374_v19  ;;  %4758 = vmatpush.bf16.msra.mxu1 %v6966_v15  ;;  %4784 = vmatpush.bf16.msra.mxu2 %v6966_v15 }
 0x4cd   : > { %4566 = vst [vmem:[#allocation1 + $0x2] ss:$4 sm:$0xff] %v8379_v9  ;;  %4819 = vmatpush.bf16.msra.mxu3 %v6966_v15  ;;  %4854 = vmatpush.bf16.msrb.mxu0 %v6966_v15 }
 0x4ce   : > { %4568 = vst [vmem:[#allocation1 + $0x3] ss:$4 sm:$0xff] %v8384_v16  ;;  %v4646_v16 = vld [vmem:[#allocation2 + $0x20] sm:$0x6] }
 0x4cf   : > { %v4004_v19 = vpop.f32.mrf.mxu1 }
 0x4d0   : > { %v8739_v9 = vadd.f32 %v4004_v19, %v3878_v54 }
 0x4d5   : > { %v4569_v32 = vld.sshfl [vmem:[#allocation1] sm:$0xff pattern:$0x73625140] }
 0x4d6   : > { %4594 = vst [vmem:[#allocation1] ss:$4 sm:$0xff] %v8436_v33  ;;  %6643 = vmatmul.msk.bf16.vlgmr.msrb.gmra.mxu1 %vm543_vm1, %v4569_v32  ;;  %v4647_v33 = vld [vmem:[#allocation2 + $0x24] sm:$0x6] }
 0x4d7   : > { %4596 = vst [vmem:[#allocation1 + $0x1] ss:$4 sm:$0xff] %v8440_v40  ;;  %v4654_v40 = vrot.slane %v4646_v16, 2 }
 0x4d8   : > { %4598 = vst [vmem:[#allocation1 + $0x2] ss:$4 sm:$0xff] %v8445_v22  ;;  %v4655_v22 = vrot.slane %v4647_v33, 2 }
 0x4d9   : > { %4600 = vst [vmem:[#allocation1 + $0x3] ss:$4 sm:$0xff] %v8450_v27  ;;  %v4657_v27 = vrot.slane %v4649_v58, 2  ;;  %v4660_v54 = vsel %vm969_vm5, %v4646_v16, %v4654_v40  ;;  %v4662_v48 = vsel %vm973_vm6, %v4646_v16, %v4654_v40  ;;  %v6650_v16 = vrot.slane %v4674_v20, 9  ;;  %v8789_v20 = vpop.f32.mrf.mxu1 }
 0x4da   : > { %v4667_v11 = vsel %vm969_vm5, %v4647_v33, %v4655_v22  ;;  %v4669_v2 = vsel %vm973_vm6, %v4647_v33, %v4655_v22  ;;  %v6646_v6 = vrot.slane %v4660_v54, 9  ;;  %v6647_v51 = vrot.slane %v4662_v48, 9  ;;  %v8778_v54 = vpop.f32.mrf.mxu3  ;;  %v8780_v48 = vpop.f32.mrf.mxu0 }
 0x4db   : > { %v4681_v38 = vsel %vm969_vm5, %v4649_v58, %v4657_v27  ;;  %v4683_v25 = vsel %vm973_vm6, %v4649_v58, %v4657_v27  ;;  %v6648_v13 = vrot.slane %v4667_v11, 9  ;;  %v6649_v32 = vrot.slane %v4669_v2, 9 }
 0x4dc   : > { %v6652_v15 = vrot.slane %v4681_v38, 9  ;;  %v6653_v19 = vrot.slane %v4683_v25, 9  ;;  %v6651_v40 = vrot.slane %v4676_v55, 9  ;;  %v8758_v33 = vsel %vm7627_vm8, %v6646_v6, %v6647_v51  ;;  %v4797_v6 = vld [vmem:[#allocation2 + $0x44] sm:$0x3] }
 0x4dd   : > { %9406 = vst [vmem:[#allocation60_spill] sm:$0xff] %v8758_v33  ;;  %v8762_v58 = vsel %vm7627_vm8, %v6648_v13, %v6649_v32  ;;  %v4796_v51 = vld [vmem:[#allocation2 + $0x40] sm:$0x3]  ;;  %v8805_v32 = vld [vmem:[#allocation2 + $0x50] sm:$0x3] }
 0x4de   : > { %9407 = vst [vmem:[#allocation61_spill] sm:$0xff] %v8762_v58  ;;  %v8768_v12 = vsel %vm7627_vm8, %v6652_v15, %v6653_v19  ;;  %v8772_v22 = vsel %vm7627_vm8, %v6650_v16, %v6651_v40  ;;  %v8807_v15 = vld [vmem:[#allocation2 + $0x54] sm:$0x3]  ;;  %v8811_v19 = vld [vmem:[#allocation2 + $0x5c] sm:$0x3] }
 0x4df   : > { %9408 = vst [vmem:[#allocation62_spill] sm:$0xff] %v8768_v12  ;;  %v8813_v16 = vld [vmem:[#allocation2 + $0x58] sm:$0x3]  ;;  %v9410_v40 = vld [vmem:[#allocation13_spill] sm:$0xff] }
 0x4e0   : > { %v4601_v26 = vld.sshfl [vmem:[#allocation1] sm:$0xff pattern:$0x73625140]  ;;  %9409 = vst [vmem:[#allocation63_spill] sm:$0xff] %v8772_v22  ;;  %v4030_v27 = vpop.f32.mrf.mxu2 }
 0x4e1   : > { %4620 = vst [vmem:[#allocation1] ss:$4 sm:$0xff] %v8694_v61  ;;  %6644 = vmatmul.msk.bf16.vlgmr.msrb.gmra.mxu2 %vm543_vm1, %v4601_v26  ;;  %v4035_v56 = vadd.f32 %v4030_v27, %v8713_v34  ;;  %v9424_v61 = vld [vmem:[#allocation22_spill] sm:$0xff] }
 0x4e2   : > { %4622 = vst [vmem:[#allocation1 + $0x1] ss:$4 sm:$0xff] %v8698_v62 }
 0x4e3   : > { %4624 = vst [vmem:[#allocation1 + $0x2] ss:$4 sm:$0xff] %v8708_v24 }
 0x4e4   : > { %4626 = vst [vmem:[#allocation1 + $0x3] ss:$4 sm:$0xff] %v8702_v21 }
 0x4e8   : > { %v8803_v13 = vpop.f32.mrf.mxu2 }
 0x4eb   : > { %v4627_v26 = vld.sshfl [vmem:[#allocation1] sm:$0xff pattern:$0x73625140]  ;;  %v4056_v2 = vpop.f32.mrf.mxu3 }
 0x4ec   : > { %6645 = vmatmul.msk.bf16.vlgmr.msrb.gmra.mxu3 %vm543_vm1, %v4627_v26  ;;  %4703 = vst [vmem:[#allocation1] ss:$4 sm:$0xff] %v8758_v33  ;;  %v4061_v38 = vadd.f32 %v4056_v2, %v8725_v37  ;;  %v9411_v26 = vld [vmem:[#allocation14_spill] sm:$0xff] }
 0x4ed   : > { %4706 = vst [vmem:[#allocation1 + $0x1] ss:$4 sm:$0xff] %v8762_v58  ;;  %v955_v27 = vadd.f32 %v9411_v26, %v9410_v40  ;;  %v9421_v58 = vld [vmem:[#allocation52_spill] sm:$0xff] }
 0x4ee   : > { %4709 = vst [vmem:[#allocation1 + $0x2] ss:$4 sm:$0xff] %v8772_v22 }
 0x4ef   : > { %4712 = vst [vmem:[#allocation1 + $0x3] ss:$4 sm:$0xff] %v8768_v12 }
 0x4f0   : > { %v4174_v25 = vpop.f32.mrf.mxu0 }
 0x4f1   : > { %v4179_v34 = vadd.f32 %v4174_v25, %v8727_v14  ;;  %v4795_v14 = vld [vmem:[#allocation2 + $0x3c] sm:$0x3]  ;;  %v9412_v25 = vld [vmem:[#allocation8_spill] sm:$0xff] }
 0x4f6   : > { %v4713_v11 = vld.sshfl [vmem:[#allocation1] sm:$0xff pattern:$0x73625140] }
 0x4f7   : > { %6654 = vmatmul.msk.bf16.vlgmr.msra.gmra.mxu0 %vm543_vm1, %v4713_v11  ;;  %4735 = vst [vmem:[#allocation1] ss:$4 sm:$0xff] %v8479_v41  ;;  %v6967_v41 = vld [vmem:[%s9297_s3 + $0xa8] sm:$0xff] }
 0x4f8   : > { %4737 = vst [vmem:[#allocation1 + $0x1] ss:$4 sm:$0xff] %v8481_v0  ;;  %4889 = vmatpush.bf16.msrb.mxu1 %v6967_v41  ;;  %4915 = vmatpush.bf16.msrb.mxu2 %v6967_v41 }
 0x4f9   : > { %4739 = vst [vmem:[#allocation1 + $0x2] ss:$4 sm:$0xff] %v8486_v10  ;;  %4941 = vmatpush.bf16.msrb.mxu3 %v6967_v41  ;;  %5059 = vmatpush.bf16.msra.mxu0 %v6967_v41  ;;  %v4794_v10 = vld [vmem:[#allocation2 + $0x38] sm:$0x3]  ;;  %v8823_v41 = vpop.f32.mrf.mxu3 }
 0x4fa   : > { %4741 = vst [vmem:[#allocation1 + $0x3] ss:$4 sm:$0xff] %v8483_v59 }
 0x4fb   : > { %v4209_v0 = vpop.f32.mrf.mxu1 }
 0x4fc   : > { %v8800_v59 = vadd.f32 %v4209_v0, %v8739_v9  ;;  %v8825_v0 = vpop.f32.mrf.mxu0 }
 0x501   : > { %v4742_v55 = vld.sshfl [vmem:[#allocation1] sm:$0xff pattern:$0x73625140] }
 0x502   : > { %6661 = vmatmul.msk.bf16.vlgmr.msra.gmra.mxu1 %vm543_vm1, %v4742_v55  ;;  %4767 = vst [vmem:[#allocation1] ss:$4 sm:$0xff] %v8498_v47  ;;  %v1336_v55 = vadd.f32 %v9412_v25, %v955_v27 }
 0x503   : > { %4769 = vst [vmem:[#allocation1 + $0x1] ss:$4 sm:$0xff] %v8500_v57 }
 0x504   : > { %4771 = vst [vmem:[#allocation1 + $0x2] ss:$4 sm:$0xff] %v8507_v45 }
 0x505   : > { %4773 = vst [vmem:[#allocation1 + $0x3] ss:$4 sm:$0xff] %v8502_v29 }
 0x50c   : > { %v4774_v37 = vld.sshfl [vmem:[#allocation1] sm:$0xff pattern:$0x73625140]  ;;  %v4235_v11 = vpop.f32.mrf.mxu2 }
 0x50d   : > { %6662 = vmatmul.msk.bf16.vlgmr.msra.gmra.mxu2 %vm543_vm1, %v4774_v37  ;;  %4799 = vst [vmem:[#allocation1] ss:$4 sm:$0xff] %v4794_v10  ;;  %v8820_v2 = vadd.f32 %v4235_v11, %v4035_v56  ;;  %v9413_v10 = vld [vmem:[#allocation11_spill] sm:$0xff]  ;;  %v4950_v11 = vld [vmem:[#allocation2 + $0x38] sm:$0x7] }
 0x50e   : > { %4802 = vst [vmem:[#allocation1 + $0x1] ss:$4 sm:$0xff] %v4795_v14  ;;  %v1633_v37 = vadd.f32 %v9413_v10, %v1336_v55  ;;  %v9414_v14 = vld [vmem:[#allocation25_spill] sm:$0xff]  ;;  %v9415_v10 = vld [vmem:[#allocation38_spill] sm:$0xff] }
 0x50f   : > { %4805 = vst [vmem:[#allocation1 + $0x2] ss:$4 sm:$0xff] %v4796_v51 }
 0x510   : > { %4808 = vst [vmem:[#allocation1 + $0x3] ss:$4 sm:$0xff] %v4797_v6  ;;  %v1873_v6 = vadd.f32 %v9414_v14, %v1633_v37  ;;  %v4953_v37 = vld [vmem:[#allocation2 + $0x44] sm:$0x7]  ;;  %v4952_v14 = vld [vmem:[#allocation2 + $0x40] sm:$0x7] }
 0x517   : > { %v4809_v9 = vld.sshfl [vmem:[#allocation1] sm:$0xff pattern:$0x73625140]  ;;  %v4261_v40 = vpop.f32.mrf.mxu3 }
 0x518   : > { %6663 = vmatmul.msk.bf16.vlgmr.msra.gmra.mxu3 %vm543_vm1, %v4809_v9  ;;  %4834 = vst [vmem:[#allocation1] ss:$4 sm:$0xff] %v8805_v32  ;;  %v2106_v9 = vadd.f32 %v8225_v1, %v1873_v6  ;;  %v8836_v26 = vadd.f32 %v4261_v40, %v4061_v38  ;;  %v9416_v6 = vld [vmem:[#allocation42_spill] sm:$0xff]  ;;  %v4961_v38 = vrot.slane %v4953_v37, 2  ;;  %v9417_v40 = vld [vmem:[#allocation44_spill] sm:$0xff] }
 0x519   : > { %4837 = vst [vmem:[#allocation1 + $0x1] ss:$4 sm:$0xff] %v8807_v15 }
 0x51a   : > { %4840 = vst [vmem:[#allocation1 + $0x2] ss:$4 sm:$0xff] %v8813_v16  ;;  %v2236_v56 = vadd.f32 %v8269_v53, %v2106_v9  ;;  %v4960_v9 = vrot.slane %v4952_v14, 2 }
 0x51b   : > { %4843 = vst [vmem:[#allocation1 + $0x3] ss:$4 sm:$0xff] %v8811_v19 }
 0x51c   : > { %v4379_v27 = vpop.f32.mrf.mxu0  ;;  %v2441_v25 = vadd.f32 %v8336_v39, %v2236_v56  ;;  %v4976_v22 = vsel %vm969_vm5, %v4952_v14, %v4960_v9 }
 0x51d   : > { %v8839_v55 = vadd.f32 %v4379_v27, %v4179_v34  ;;  %v9418_v27 = vld [vmem:[#allocation48_spill] sm:$0xff] }
 0x51e   : > { %v2646_v1 = vadd.f32 %v9415_v10, %v2441_v25  ;;  %v9419_v10 = vld [vmem:[#allocation15_spill] sm:$0xff] }
 0x522   : > { %v4844_v51 = vld.sshfl [vmem:[#allocation1] sm:$0xff pattern:$0x73625140] }
 0x523   : > { %6664 = vmatmul.msk.bf16.vlgmr.msrb.gmra.mxu0 %vm543_vm1, %v4844_v51  ;;  %4866 = vst [vmem:[#allocation1] ss:$4 sm:$0xff] %v8498_v47  ;;  %v4951_v47 = vld [vmem:[#allocation2 + $0x3c] sm:$0x7] }
 0x524   : > { %4868 = vst [vmem:[#allocation1 + $0x1] ss:$4 sm:$0xff] %v8500_v57  ;;  %v4958_v57 = vrot.slane %v4950_v11, 2  ;;  %v4959_v53 = vrot.slane %v4951_v47, 2 }
 0x525   : > { %4870 = vst [vmem:[#allocation1 + $0x2] ss:$4 sm:$0xff] %v8507_v45  ;;  %v8842_v45 = vpop.f32.mrf.mxu1 }
 0x526   : > { %4872 = vst [vmem:[#allocation1 + $0x3] ss:$4 sm:$0xff] %v8502_v29  ;;  %v2819_v29 = vadd.f32 %v9416_v6, %v2646_v1  ;;  %v4964_v39 = vsel %vm969_vm5, %v4950_v11, %v4958_v57  ;;  %v4965_v34 = vsel %vm973_vm6, %v4950_v11, %v4958_v57  ;;  %v4970_v56 = vsel %vm969_vm5, %v4951_v47, %v4959_v53  ;;  %v9420_v1 = vld [vmem:[#allocation16_spill] sm:$0xff]  ;;  %v6968_v11 = vld [vmem:[%s9297_s3 + $0xb0] sm:$0xff] }
 0x527   : > { %v1104_v6 = vadd.f32 %v9420_v1, %v9419_v10  ;;  %v4999_v57 = vshrl.u32 %v4970_v56, 16  ;;  %5094 = vmatpush.bf16.msra.mxu1 %v6968_v11  ;;  %5120 = vmatpush.bf16.msra.mxu2 %v6968_v11 }
 0x528   : > { %v2992_v12 = vadd.f32 %v9417_v40, %v2819_v29  ;;  %v4982_v29 = vsel %vm969_vm5, %v4953_v37, %v4961_v38  ;;  %v4989_v40 = vshll.u32 %v4964_v39, 16  ;;  %5146 = vmatpush.bf16.msra.mxu3 %v6968_v11  ;;  %5264 = vmatpush.bf16.msrb.mxu0 %v6968_v11 }
 0x529   : > { %v1454_v21 = vadd.f32 %v9422_v30, %v1104_v6  ;;  %v5025_v24 = vshrl.u32 %v4982_v29, 16  ;;  %v5028_v62 = vshll.u32 %v4982_v29, 16  ;;  %v4971_v6 = vsel %vm973_vm6, %v4951_v47, %v4959_v53  ;;  %v9427_v53 = vld [vmem:[#allocation32_spill] sm:$0xff] }
 0x52a   : > { %v3123_v25 = vadd.f32 %v9418_v27, %v2992_v12  ;;  %v4967_v12 = vrot.slane %v4965_v34, 2  ;;  %v5002_v27 = vshll.u32 %v4970_v56, 16  ;;  %v4983_v34 = vsel %vm973_vm6, %v4953_v37, %v4961_v38 }
 0x52b   : > { %v1726_v63 = vadd.f32 %v9424_v61, %v1454_v21  ;;  %v4991_v30 = vrot.slane %v4989_v40, 7  ;;  %v4985_v61 = vrot.slane %v4983_v34, 2  ;;  %v5027_v21 = vrot.slane %v5025_v24, 6 }
 0x52c   : > { %v3328_v33 = vadd.f32 %v9421_v58, %v3123_v25  ;;  %v5012_v58 = vshrl.u32 %v4976_v22, 16  ;;  %v5015_v25 = vshll.u32 %v4976_v22, 16  ;;  %v5004_v29 = vrot.slane %v5002_v27, 7  ;;  %v9428_v27 = vld [vmem:[#allocation17_spill] sm:$0xff] }
 0x52d   : > { %v4873_v51 = vld.sshfl [vmem:[#allocation1] sm:$0xff pattern:$0x73625140]  ;;  %v4414_v10 = vpop.f32.mrf.mxu1  ;;  %v5030_v37 = vrot.slane %v5028_v62, 7  ;;  %v4973_v47 = vrot.slane %v4971_v6, 2 }
 0x52e   : > { %6671 = vmatmul.msk.bf16.vlgmr.msrb.gmra.mxu1 %vm543_vm1, %v4873_v51  ;;  %4898 = vst [vmem:[#allocation1] ss:$4 sm:$0xff] %v8557_v17  ;;  %v4986_v51 = vshrl.u32 %v4964_v39, 16  ;;  %v3533_v1 = vadd.f32 %v8626_v60, %v3328_v33  ;;  %v8866_v39 = vadd.f32 %v4414_v10, %v8800_v59  ;;  %v4977_v33 = vsel %vm973_vm6, %v4952_v14, %v4960_v9  ;;  %v9425_v10 = vld [vmem:[#allocation26_spill] sm:$0xff] }
 0x52f   : > { %4900 = vst [vmem:[#allocation1 + $0x1] ss:$4 sm:$0xff] %v8563_v28  ;;  %v5001_v59 = vrot.slane %v4999_v57, 6  ;;  %v5014_v38 = vrot.slane %v5012_v58, 6  ;;  %v5017_v11 = vrot.slane %v5015_v25, 7  ;;  %v5034_v57 = vshll.u32 %v4985_v61, 16  ;;  %v4237_v61 = vpop.f32.mrf.mxu2 }
 0x530   : > { %4902 = vst [vmem:[#allocation1 + $0x2] ss:$4 sm:$0xff] %v8576_v52  ;;  %v4988_v56 = vrot.slane %v4986_v51, 6  ;;  %v3706_v60 = vadd.f32 %v8672_v36, %v3533_v1  ;;  %v9426_v51 = vld [vmem:[#allocation29_spill] sm:$0xff]  ;;  %v9429_v1 = vld [vmem:[#allocation18_spill] sm:$0xff]  ;;  %v9431_v58 = vld [vmem:[#allocation7_spill] sm:$0xff] }
 0x531   : > { %4904 = vst [vmem:[#allocation1 + $0x3] ss:$4 sm:$0xff] %v8567_v46  ;;  %v5005_v62 = vor.u32 %v5004_v29, %v5001_v59  ;;  %v9435_v59 = vld [vmem:[#allocation39_spill] sm:$0xff] }
 0x532   : > { %9423 = vst [vmem:[#allocation13_spill] sm:$0xff] %v8866_v39  ;;  %v1959_v39 = vadd.f32 %v9425_v10, %v1726_v63  ;;  %v3879_v22 = vadd.f32 %v8729_v4, %v3706_v60  ;;  %v4992_v36 = vor.u32 %v4991_v30, %v4988_v56  ;;  %v4995_v63 = vshll.u32 %v4967_v12, 16  ;;  %v9432_v12 = vld [vmem:[#allocation35_spill] sm:$0xff] }
 0x533   : > { %v4979_v4 = vrot.slane %v4977_v33, 2  ;;  %v5008_v30 = vshll.u32 %v4973_v47, 16  ;;  %v9438_v47 = vld [vmem:[#allocation43_spill] sm:$0xff] }
 0x534   : > { %v2132_v40 = vadd.f32 %v9426_v51, %v1959_v39  ;;  %v4010_v14 = vadd.f32 %v8789_v20, %v3879_v22  ;;  %v1160_v39 = vadd.f32 %v9429_v1, %v9428_v27  ;;  %v9430_v20 = vld [vmem:[#allocation19_spill] sm:$0xff]  ;;  %v4993_v56 = vrot.slane %v4992_v36, 2  ;;  %v9441_v1 = vld [vmem:[#allocation45_spill] sm:$0xff] }
 0x535   : > { %v4416_v34 = vpop.f32.mrf.mxu1  ;;  %v5021_v6 = vshll.u32 %v4979_v4, 16  ;;  %v4997_v10 = vrot.slane %v4995_v63, 7  ;;  %v5006_v22 = vrot.slane %v5005_v62, 2  ;;  %v9440_v63 = vld [vmem:[#allocation28_spill] sm:$0xff] }
 0x536   : > { %v2262_v9 = vadd.f32 %v9427_v53, %v2132_v40  ;;  %v4215_v24 = vadd.f32 %v8842_v45, %v4010_v14  ;;  %v9433_v45 = vld [vmem:[#allocation9_spill] sm:$0xff]  ;;  %v9437_v40 = vld [vmem:[#allocation24_spill] sm:$0xff]  ;;  %v5010_v53 = vrot.slane %v5008_v30, 7 }
 0x537   : > { %v1480_v60 = vadd.f32 %v9433_v45, %v1160_v39  ;;  %v8899_v4 = vsel %vm7404_vm13, %v4993_v56, %v4997_v10  ;;  %v9445_v30 = vld [vmem:[#allocation33_spill] sm:$0xff]  ;;  %v9446_v45 = vld [vmem:[#allocation34_spill] sm:$0xff] }
 0x538   : > { %v4905_v49 = vld.sshfl [vmem:[#allocation1] sm:$0xff pattern:$0x73625140]  ;;  %v2467_v25 = vadd.f32 %v9432_v12, %v2262_v9  ;;  %v5023_v9 = vrot.slane %v5021_v6, 7  ;;  %v9443_v12 = vld [vmem:[#allocation31_spill] sm:$0xff] }
 0x539   : > { %6672 = vmatmul.msk.bf16.vlgmr.msrb.gmra.mxu2 %vm543_vm1, %v4905_v49  ;;  %4924 = vst [vmem:[#allocation1] ss:$4 sm:$0xff] %v8805_v32  ;;  %v5031_v49 = vor.u32 %v5030_v37, %v5027_v21  ;;  %v5018_v32 = vor.u32 %v5017_v11, %v5014_v38  ;;  %v5036_v37 = vrot.slane %v5034_v57, 7  ;;  %v9436_v11 = vld [vmem:[#allocation23_spill] sm:$0xff] }
 0x53a   : > { %4926 = vst [vmem:[#allocation1 + $0x1] ss:$4 sm:$0xff] %v8807_v15  ;;  %v1300_v15 = vadd.f32 %v9431_v58, %v9430_v20  ;;  %v2672_v29 = vadd.f32 %v9435_v59, %v2467_v25  ;;  %v1752_v51 = vadd.f32 %v9436_v11, %v1480_v60  ;;  %v9442_v58 = vld [vmem:[#allocation30_spill] sm:$0xff]  ;;  %v4440_v59 = vpop.f32.mrf.mxu2  ;;  %v4263_v11 = vpop.f32.mrf.mxu3 }
 0x53b   : > { %4928 = vst [vmem:[#allocation1 + $0x2] ss:$4 sm:$0xff] %v8813_v16  ;;  %v8889_v16 = vadd.f32 %v4416_v34, %v4215_v24  ;;  %v5032_v21 = vrot.slane %v5031_v49, 2  ;;  %v5019_v38 = vrot.slane %v5018_v32, 2  ;;  %v9439_v24 = vld [vmem:[#allocation27_spill] sm:$0xff]  ;;  %v8906_v32 = vsel %vm7404_vm13, %v5006_v22, %v5010_v53  ;;  %v9444_v34 = vld [vmem:[#allocation49_spill] sm:$0xff]  ;;  %v4381_v53 = vpop.f32.mrf.mxu0 }
 0x53c   : > { %4930 = vst [vmem:[#allocation1 + $0x3] ss:$4 sm:$0xff] %v8811_v19  ;;  %v9434_v19 = vld [vmem:[#allocation10_spill] sm:$0xff]  ;;  %v2845_v14 = vadd.f32 %v9438_v47, %v2672_v29  ;;  %v1985_v27 = vadd.f32 %v9439_v24, %v1752_v51  ;;  %v9448_v29 = vld [vmem:[#allocation36_spill] sm:$0xff]  ;;  %v9449_v22 = vld [vmem:[#allocation37_spill] sm:$0xff] }
 0x53d   : > { %v1598_v33 = vadd.f32 %v9434_v19, %v1300_v15  ;;  %v8912_v39 = vsel %vm7404_vm13, %v5032_v21, %v5036_v37  ;;  %v8916_v20 = vsel %vm7404_vm13, %v5019_v38, %v5023_v9  ;;  %v9447_v19 = vld [vmem:[#allocation53_spill] sm:$0xff]  ;;  %v8931_v38 = vadd.f32 %v4440_v59, %v8820_v2  ;;  %v9450_v51 = vld [vmem:[#allocation40_spill] sm:$0xff] }
 0x53e   : > { %v3018_v49 = vadd.f32 %v9441_v1, %v2845_v14  ;;  %v2166_v15 = vadd.f32 %v9442_v58, %v1985_v27  ;;  %v9452_v9 = vld [vmem:[#allocation12_spill] sm:$0xff]  ;;  %v9453_v27 = vld [vmem:[#allocation21_spill] sm:$0xff] }
 0x53f   : > { %v1838_v36 = vadd.f32 %v9437_v40, %v1598_v33 }
 0x540   : > { %v3149_v56 = vadd.f32 %v9444_v34, %v3018_v49  ;;  %v2288_v6 = vadd.f32 %v9445_v30, %v2166_v15  ;;  %v9454_v49 = vld [vmem:[#allocation46_spill] sm:$0xff] }
 0x541   : > { %v2071_v62 = vadd.f32 %v9440_v63, %v1838_v36  ;;  %v9451_v36 = vld [vmem:[#allocation41_spill] sm:$0xff] }
 0x542   : > { %v3354_v33 = vadd.f32 %v9447_v19, %v3149_v56  ;;  %v2493_v10 = vadd.f32 %v9448_v29, %v2288_v6  ;;  %v5158_v19 = vld [vmem:[#allocation2 + $0x5c] sm:$0x7] }
 0x543   : > { %v4931_v57 = vld.sshfl [vmem:[#allocation1] sm:$0xff pattern:$0x73625140]  ;;  %v2201_v25 = vadd.f32 %v9443_v12, %v2071_v62  ;;  %v9457_v12 = vld [vmem:[#allocation51_spill] sm:$0xff]  ;;  %v4466_v56 = vpop.f32.mrf.mxu3 }
 0x544   : > { %6673 = vmatmul.msk.bf16.vlgmr.msrb.gmra.mxu3 %vm543_vm1, %v4931_v57  ;;  %5039 = vst [vmem:[#allocation1] ss:$4 sm:$0xff] %v8899_v4  ;;  %v3559_v37 = vadd.f32 %v8655_v42, %v3354_v33  ;;  %v2698_v40 = vadd.f32 %v9450_v51, %v2493_v10  ;;  %v9455_v57 = vld [vmem:[#allocation47_spill] sm:$0xff]  ;;  %v9459_v51 = vld [vmem:[#allocation54_spill] sm:$0xff] }
 0x545   : > { %5042 = vst [vmem:[#allocation1 + $0x1] ss:$4 sm:$0xff] %v8906_v32  ;;  %v2406_v60 = vadd.f32 %v9446_v45, %v2201_v25  ;;  %v5155_v45 = vld [vmem:[#allocation2 + $0x50] sm:$0x7] }
 0x546   : > { %5045 = vst [vmem:[#allocation1 + $0x2] ss:$4 sm:$0xff] %v8916_v20  ;;  %v3732_v14 = vadd.f32 %v8690_v44, %v3559_v37  ;;  %v2871_v24 = vadd.f32 %v9452_v9, %v2698_v40  ;;  %v9456_v44 = vld [vmem:[#allocation50_spill] sm:$0xff]  ;;  %v5163_v33 = vrot.slane %v5155_v45, 2 }
 0x547   : > { %5048 = vst [vmem:[#allocation1 + $0x3] ss:$4 sm:$0xff] %v8912_v39  ;;  %v2611_v21 = vadd.f32 %v9449_v22, %v2406_v60 }
 0x548   : > { %v3905_v62 = vadd.f32 %v8754_v43, %v3732_v14  ;;  %v3053_v42 = vadd.f32 %v9454_v49, %v2871_v24  ;;  %v4442_v43 = vpop.f32.mrf.mxu2  ;;  %v9460_v49 = vld [vmem:[#allocation13_spill] sm:$0xff] }
 0x549   : > { %v2784_v47 = vadd.f32 %v9451_v36, %v2611_v21 }
 0x54a   : > { %v4036_v58 = vadd.f32 %v8803_v13, %v3905_v62  ;;  %v3175_v15 = vadd.f32 %v9456_v44, %v3053_v42  ;;  %v5170_v44 = vsel %vm973_vm6, %v5155_v45, %v5163_v33 }
 0x54b   : > { %v2957_v63 = vadd.f32 %v9453_v27, %v2784_v47  ;;  %v4468_v9 = vpop.f32.mrf.mxu3 }
 0x54c   : > { %v4241_v34 = vadd.f32 %v4237_v61, %v4036_v58  ;;  %v3380_v30 = vadd.f32 %v8615_v18, %v3175_v15  ;;  %v5156_v61 = vld [vmem:[#allocation2 + $0x54] sm:$0x7]  ;;  %v5157_v18 = vld [vmem:[#allocation2 + $0x58] sm:$0x7] }
 0x54d   : > { %v3088_v2 = vadd.f32 %v9455_v57, %v2957_v63  ;;  %v5164_v29 = vrot.slane %v5156_v61, 2  ;;  %v5165_v21 = vrot.slane %v5157_v18, 2 }
 0x54e   : > { %v5049_v1 = vld.sshfl [vmem:[#allocation1] sm:$0xff pattern:$0x73625140]  ;;  %v8951_v6 = vadd.f32 %v4442_v43, %v4241_v34 }
 0x54f   : > { %6674 = vmatmul.msk.bf16.vlgmr.msra.gmra.mxu0 %vm543_vm1, %v5049_v1  ;;  %5071 = vst [vmem:[#allocation1] ss:$4 sm:$0xff] %v8557_v17  ;;  %v3293_v25 = vadd.f32 %v9457_v12, %v3088_v2  ;;  %v8954_v17 = vadd.f32 %v4466_v56, %v8836_v26  ;;  %v5181_v14 = vsel %vm969_vm5, %v5157_v18, %v5165_v21 }
 0x550   : > { %5073 = vst [vmem:[#allocation1 + $0x1] ss:$4 sm:$0xff] %v8563_v28  ;;  %v4552_v28 = vpop.f32.mrf.mxu0  ;;  %v5217_v57 = vshrl.u32 %v5181_v14, 16  ;;  %v5220_v2 = vshll.u32 %v5181_v14, 16  ;;  %v5182_v56 = vsel %vm973_vm6, %v5157_v18, %v5165_v21 }
 0x551   : > { %5075 = vst [vmem:[#allocation1 + $0x2] ss:$4 sm:$0xff] %v8576_v52  ;;  %v3498_v13 = vadd.f32 %v8619_v31, %v3293_v25  ;;  %v8957_v60 = vadd.f32 %v4552_v28, %v8839_v55  ;;  %v3585_v52 = vadd.f32 %v8661_v3, %v3380_v30  ;;  %v5166_v55 = vrot.slane %v5158_v19, 2 }
 0x552   : > { %5077 = vst [vmem:[#allocation1 + $0x3] ss:$4 sm:$0xff] %v8567_v46  ;;  %v5169_v3 = vsel %vm969_vm5, %v5155_v45, %v5163_v33  ;;  %v5176_v25 = vsel %vm973_vm6, %v5156_v61, %v5164_v29 }
 0x553   : > { %v3671_v46 = vadd.f32 %v8663_v23, %v3498_v13  ;;  %v3758_v31 = vadd.f32 %v8715_v5, %v3585_v52  ;;  %v5187_v40 = vsel %vm969_vm5, %v5158_v19, %v5166_v55  ;;  %v5191_v36 = vshrl.u32 %v5169_v3, 16 }
 0x554   : > { %v5194_v47 = vshll.u32 %v5169_v3, 16  ;;  %v5230_v62 = vshrl.u32 %v5187_v40, 16  ;;  %v5233_v1 = vshll.u32 %v5187_v40, 16  ;;  %v5188_v58 = vsel %vm973_vm6, %v5158_v19, %v5166_v55 }
 0x555   : > { %v3844_v59 = vadd.f32 %v8717_v7, %v3671_v46  ;;  %v3940_v26 = vadd.f32 %v8778_v54, %v3758_v31  ;;  %v5175_v7 = vsel %vm969_vm5, %v5156_v61, %v5164_v29  ;;  %v9458_v54 = vld [vmem:[#allocation55_spill] sm:$0xff]  ;;  %v5193_v15 = vrot.slane %v5191_v36, 6 }
 0x556   : > { %v5204_v24 = vshrl.u32 %v5175_v7, 16  ;;  %v5207_v27 = vshll.u32 %v5175_v7, 16  ;;  %v5196_v12 = vrot.slane %v5194_v47, 7  ;;  %v5190_v13 = vrot.slane %v5188_v58, 2  ;;  %v5361_v58 = vld [vmem:[#allocation2 + $0x3c] sm:$0x6] }
 0x557   : > { %v3975_v10 = vadd.f32 %v8780_v48, %v3844_v59  ;;  %v4062_v23 = vadd.f32 %v8823_v41, %v3940_v26  ;;  %v5232_v28 = vrot.slane %v5230_v62, 6  ;;  %v5235_v52 = vrot.slane %v5233_v1, 7 }
 0x558   : > { %v4554_v41 = vpop.f32.mrf.mxu0  ;;  %v5206_v34 = vrot.slane %v5204_v24, 6  ;;  %v5209_v43 = vrot.slane %v5207_v27, 7  ;;  %v5172_v46 = vrot.slane %v5170_v44, 2  ;;  %v5219_v31 = vrot.slane %v5217_v57, 6  ;;  %v5363_v44 = vld [vmem:[#allocation2 + $0x44] sm:$0x6] }
 0x559   : > { %v5078_v22 = vld.sshfl [vmem:[#allocation1] sm:$0xff pattern:$0x73625140]  ;;  %v4180_v5 = vadd.f32 %v8825_v0, %v3975_v10  ;;  %v4267_v48 = vadd.f32 %v4263_v11, %v4062_v23  ;;  %v6969_v0 = vld [vmem:[%s9297_s3 + $0xb8] sm:$0xff]  ;;  %v5222_v59 = vrot.slane %v5220_v2, 7  ;;  %v5178_v45 = vrot.slane %v5176_v25, 2 }
 0x55a   : > { %6681 = vmatmul.msk.bf16.vlgmr.msra.gmra.mxu1 %vm543_vm1, %v5078_v22  ;;  %5103 = vst [vmem:[#allocation1] ss:$4 sm:$0xff] %v8631_v35  ;;  %5325 = vmatpush.bf16.msrb.mxu2 %v6969_v0  ;;  %v5197_v19 = vor.u32 %v5196_v12, %v5193_v15  ;;  %v5184_v61 = vrot.slane %v5182_v56, 2  ;;  %v5210_v33 = vor.u32 %v5209_v43, %v5206_v34  ;;  %v5239_v29 = vshll.u32 %v5190_v13, 16  ;;  %v5360_v2 = vld [vmem:[#allocation2 + $0x38] sm:$0x6] }
 0x55b   : > { %5105 = vst [vmem:[#allocation1 + $0x1] ss:$4 sm:$0xff] %v8635_v8  ;;  %v4385_v37 = vadd.f32 %v4381_v53, %v4180_v5  ;;  %v8979_v63 = vadd.f32 %v4468_v9, %v4267_v48  ;;  %v4587_v53 = vpop.f32.mrf.mxu1  ;;  %5299 = vmatpush.bf16.msrb.mxu1 %v6969_v0  ;;  %5351 = vmatpush.bf16.msrb.mxu3 %v6969_v0  ;;  %v5200_v26 = vshll.u32 %v5172_v46, 16  ;;  %v5213_v55 = vshll.u32 %v5178_v45, 16  ;;  %v5362_v15 = vld [vmem:[#allocation2 + $0x40] sm:$0x6] }
 0x55c   : > { %5107 = vst [vmem:[#allocation1 + $0x2] ss:$4 sm:$0xff] %v9458_v54  ;;  %v8984_v42 = vadd.f32 %v4587_v53, %v9460_v49  ;;  %5437 = vmatpush.bf16.msra.mxu0 %v6969_v0  ;;  %v5236_v18 = vor.u32 %v5235_v52, %v5232_v28  ;;  %v5223_v10 = vor.u32 %v5222_v59, %v5219_v31  ;;  %v5226_v3 = vshll.u32 %v5184_v61, 16 }
 0x55d   : > { %5109 = vst [vmem:[#allocation1 + $0x3] ss:$4 sm:$0xff] %v9459_v51  ;;  %v8981_v11 = vadd.f32 %v4554_v41, %v4385_v37  ;;  %v5211_v23 = vrot.slane %v5210_v33, 2  ;;  %v5241_v5 = vrot.slane %v5239_v29, 7  ;;  %v5202_v7 = vrot.slane %v5200_v26, 7 }
 0x55e   : > { %v5224_v48 = vrot.slane %v5223_v10, 2  ;;  %v5228_v37 = vrot.slane %v5226_v3, 7  ;;  %v5368_v12 = vrot.slane %v5360_v2, 2  ;;  %v5369_v34 = vrot.slane %v5361_v58, 2 }
 0x55f   : > { %v5370_v43 = vrot.slane %v5362_v15, 2 }
 0x560   : > { %v5229_v47 = vsel %vm7404_vm13, %v5224_v48, %v5228_v37  ;;  %v5376_v56 = vsel %vm973_vm6, %v5360_v2, %v5368_v12  ;;  %v5383_v13 = vsel %vm973_vm6, %v5361_v58, %v5369_v34 }
 0x561   : > { %v5388_v31 = vsel %vm969_vm5, %v5362_v15, %v5370_v43  ;;  %v5390_v59 = vsel %vm973_vm6, %v5362_v15, %v5370_v43  ;;  %v6695_v61 = vrot.slane %v5376_v56, 9 }
 0x562   : > { %v6698_v10 = vrot.slane %v5388_v31, 9 }
 0x563   : > { %v4589_v22 = vpop.f32.mrf.mxu1 }
 0x564   : > { %v5110_v30 = vld.sshfl [vmem:[#allocation1] sm:$0xff pattern:$0x73625140]  ;;  %v8996_v21 = vadd.f32 %v4589_v22, %v8889_v16  ;;  %v4613_v14 = vpop.f32.mrf.mxu2  ;;  %v6699_v22 = vrot.slane %v5390_v59, 9 }
 0x565   : > { %6682 = vmatmul.msk.bf16.vlgmr.msra.gmra.mxu2 %vm543_vm1, %v5110_v30  ;;  %5129 = vst [vmem:[#allocation1] ss:$4 sm:$0xff] %v8899_v4  ;;  %v5198_v4 = vrot.slane %v5197_v19, 2  ;;  %v9008_v9 = vadd.f32 %v4613_v14, %v8931_v38  ;;  %v5381_v30 = vsel %vm969_vm5, %v5361_v58, %v5369_v34 }
 0x566   : > { %5131 = vst [vmem:[#allocation1 + $0x1] ss:$4 sm:$0xff] %v8906_v32  ;;  %v5237_v32 = vrot.slane %v5236_v18, 2  ;;  %v6696_v33 = vrot.slane %v5381_v30, 9  ;;  %v6697_v18 = vrot.slane %v5383_v13, 9 }
 0x567   : > { %5133 = vst [vmem:[#allocation1 + $0x2] ss:$4 sm:$0xff] %v8916_v20  ;;  %v5215_v20 = vrot.slane %v5213_v55, 7 }
 0x568   : > { %5135 = vst [vmem:[#allocation1 + $0x3] ss:$4 sm:$0xff] %v8912_v39  ;;  %v5203_v39 = vsel %vm7404_vm13, %v5198_v4, %v5202_v7  ;;  %v5242_v16 = vsel %vm7404_vm13, %v5237_v32, %v5241_v5  ;;  %v5411_v32 = vsel %vm7627_vm8, %v6698_v10, %v6699_v22 }
 0x569   : > { %v5216_v36 = vsel %vm7404_vm13, %v5211_v23, %v5215_v20  ;;  %v5407_v23 = vsel %vm7627_vm8, %v6696_v33, %v6697_v18 }
 0x56c   : > { %v4615_v50 = vpop.f32.mrf.mxu2 }
 0x56d   : > { %v9016_v24 = vadd.f32 %v4615_v50, %v8951_v6 }
 0x56f   : > { %v5136_v40 = vld.sshfl [vmem:[#allocation1] sm:$0xff pattern:$0x73625140]  ;;  %v4639_v0 = vpop.f32.mrf.mxu3 }
 0x570   : > { %6683 = vmatmul.msk.bf16.vlgmr.msra.gmra.mxu3 %vm543_vm1, %v5136_v40  ;;  %5244 = vst [vmem:[#allocation1] ss:$4 sm:$0xff] %v5203_v39  ;;  %v9019_v27 = vadd.f32 %v4639_v0, %v8954_v17  ;;  %v6970_v17 = vld [vmem:[%s9297_s3 + $0xc0] sm:$0xff] }
 0x571   : > { %5247 = vst [vmem:[#allocation1 + $0x1] ss:$4 sm:$0xff] %v5216_v36  ;;  %5472 = vmatpush.bf16.msra.mxu1 %v6970_v17  ;;  %5498 = vmatpush.bf16.msra.mxu2 %v6970_v17 }
 0x572   : > { %5250 = vst [vmem:[#allocation1 + $0x2] ss:$4 sm:$0xff] %v5229_v47  ;;  %5524 = vmatpush.bf16.msra.mxu3 %v6970_v17 }
 0x573   : > { %5253 = vst [vmem:[#allocation1 + $0x3] ss:$4 sm:$0xff] %v5242_v16 }
 0x574   : > { %v4725_v38 = vpop.f32.mrf.mxu0 }
 0x575   : > { %v9022_v53 = vadd.f32 %v4725_v38, %v8957_v60  ;;  %v5533_v38 = vld [vmem:[#allocation2 + $0x50] sm:$0x6] }
 0x577   : > { %v4641_v6 = vpop.f32.mrf.mxu3 }
 0x578   : > { %v9033_v60 = vadd.f32 %v4641_v6, %v8979_v63  ;;  %v5371_v63 = vrot.slane %v5363_v44, 2 }
 0x57a   : > { %v5254_v41 = vld.sshfl [vmem:[#allocation1] sm:$0xff pattern:$0x73625140]  ;;  %v5395_v28 = vsel %vm969_vm5, %v5363_v44, %v5371_v63  ;;  %v5397_v52 = vsel %vm973_vm6, %v5363_v44, %v5371_v63 }
 0x57b   : > { %6684 = vmatmul.msk.bf16.vlgmr.msrb.gmra.mxu0 %vm543_vm1, %v5254_v41  ;;  %5276 = vst [vmem:[#allocation1] ss:$4 sm:$0xff] %v8631_v35  ;;  %v9461_v35 = vld [vmem:[#allocation56_spill] sm:$0xff]  ;;  %v6700_v29 = vrot.slane %v5395_v28, 9  ;;  %v6701_v26 = vrot.slane %v5397_v52, 9  ;;  %v9468_v41 = vld [vmem:[#allocation63_spill] sm:$0xff] }
 0x57c   : > { %5278 = vst [vmem:[#allocation1 + $0x1] ss:$4 sm:$0xff] %v8635_v8  ;;  %v9462_v8 = vld [vmem:[#allocation57_spill] sm:$0xff]  ;;  %v4727_v1 = vpop.f32.mrf.mxu0  ;;  %5610 = vmatpush.bf16.msrb.mxu0 %v6970_v17 }
 0x57d   : > { %5280 = vst [vmem:[#allocation1 + $0x2] ss:$4 sm:$0xff] %v9458_v54  ;;  %v9463_v54 = vld [vmem:[#allocation59_spill] sm:$0xff]  ;;  %v9036_v49 = vadd.f32 %v4727_v1, %v8981_v11  ;;  %v5374_v11 = vsel %vm969_vm5, %v5360_v2, %v5368_v12 }
 0x57e   : > { %5282 = vst [vmem:[#allocation1 + $0x3] ss:$4 sm:$0xff] %v9459_v51  ;;  %v9464_v51 = vld [vmem:[#allocation58_spill] sm:$0xff]  ;;  %v6694_v19 = vrot.slane %v5374_v11, 9 }
 0x57f   : > { %v9038_v57 = vpop.f32.mrf.mxu1 }
 0x580   : > { %v5403_v4 = vsel %vm7627_vm8, %v6694_v19, %v6695_v61 }
 0x585   : > { %v5283_v62 = vld.sshfl [vmem:[#allocation1] sm:$0xff pattern:$0x73625140] }
 0x586   : > { %6691 = vmatmul.msk.bf16.vlgmr.msrb.gmra.mxu1 %vm543_vm1, %v5283_v62  ;;  %5308 = vst [vmem:[#allocation1] ss:$4 sm:$0xff] %v9461_v35  ;;  %v5534_v62 = vld [vmem:[#allocation2 + $0x54] sm:$0x6] }
 0x587   : > { %5310 = vst [vmem:[#allocation1 + $0x1] ss:$4 sm:$0xff] %v9462_v8  ;;  %v4762_v46 = vpop.f32.mrf.mxu1  ;;  %v5542_v6 = vrot.slane %v5534_v62, 2 }
 0x588   : > { %5312 = vst [vmem:[#allocation1 + $0x2] ss:$4 sm:$0xff] %v9463_v54  ;;  %v9050_v45 = vadd.f32 %v4762_v46, %v8996_v21  ;;  %v5415_v21 = vsel %vm7627_vm8, %v6700_v29, %v6701_v26 }
 0x589   : > { %5314 = vst [vmem:[#allocation1 + $0x3] ss:$4 sm:$0xff] %v9464_v51  ;;  %v5554_v2 = vsel %vm969_vm5, %v5534_v62, %v5542_v6  ;;  %v5556_v58 = vsel %vm973_vm6, %v5534_v62, %v5542_v6  ;;  %v4765_v62 = vadd.f32 %v9038_v57, %v8984_v42  ;;  %v6978_v42 = vld [vmem:[%s9299_s5 + $0x38] sm:$0xff] }
 0x58a   : > { %v6714_v43 = vrot.slane %v5554_v2, 9  ;;  %v6715_v11 = vrot.slane %v5556_v58, 9 }
 0x58c   : > { %v5580_v31 = vsel %vm7627_vm8, %v6714_v43, %v6715_v11 }
 0x590   : > { %v5315_v25 = vld.sshfl [vmem:[#allocation1] sm:$0xff pattern:$0x73625140]  ;;  %v9061_v5 = vpop.f32.mrf.mxu2 }
 0x591   : > { %6692 = vmatmul.msk.bf16.vlgmr.msrb.gmra.mxu2 %vm543_vm1, %v5315_v25  ;;  %5334 = vst [vmem:[#allocation1] ss:$4 sm:$0xff] %v5203_v39 }
 0x592   : > { %5336 = vst [vmem:[#allocation1 + $0x1] ss:$4 sm:$0xff] %v5216_v36  ;;  %v9466_v36 = vld [vmem:[#allocation60_spill] sm:$0xff] }
 0x593   : > { %5338 = vst [vmem:[#allocation1 + $0x2] ss:$4 sm:$0xff] %v5229_v47 }
 0x594   : > { %5340 = vst [vmem:[#allocation1 + $0x3] ss:$4 sm:$0xff] %v5242_v16  ;;  %v9467_v16 = vld [vmem:[#allocation61_spill] sm:$0xff] }
 0x598   : > { %v4788_v48 = vpop.f32.mrf.mxu2 }
 0x599   : > { %v9071_v39 = vadd.f32 %v4788_v48, %v9016_v24  ;;  %v9469_v24 = vld [vmem:[#allocation62_spill] sm:$0xff] }
 0x59b   : > { %v5341_v3 = vld.sshfl [vmem:[#allocation1] sm:$0xff pattern:$0x73625140]  ;;  %v9068_v20 = vpop.f32.mrf.mxu3 }
 0x59c   : > { %6693 = vmatmul.msk.bf16.vlgmr.msrb.gmra.mxu3 %vm543_vm1, %v5341_v3  ;;  %5417 = vst [vmem:[#allocation1] ss:$4 sm:$0xff] %v5403_v4 }
 0x59d   : > { %5420 = vst [vmem:[#allocation1 + $0x1] ss:$4 sm:$0xff] %v5407_v23 }
 0x59e   : > { %5423 = vst [vmem:[#allocation1 + $0x2] ss:$4 sm:$0xff] %v5411_v32 }
 0x59f   : > { %5426 = vst [vmem:[#allocation1 + $0x3] ss:$4 sm:$0xff] %v5415_v21 }
 0x5a0   : > { %v9073_v37 = vpop.f32.mrf.mxu0 }
 0x5a3   : > { %v4823_v47 = vpop.f32.mrf.mxu3 }
 0x5a4   : > { %v9080_v50 = vadd.f32 %v4823_v47, %v9033_v60 }
 0x5a6   : > { %v5427_v7 = vld.sshfl [vmem:[#allocation1] sm:$0xff pattern:$0x73625140] }
 0x5a7   : > { %6702 = vmatmul.msk.bf16.vlgmr.msra.gmra.mxu0 %vm543_vm1, %v5427_v7  ;;  %5449 = vst [vmem:[#allocation1] ss:$4 sm:$0xff] %v9461_v35  ;;  %v5536_v35 = vld [vmem:[#allocation2 + $0x5c] sm:$0x6] }
 0x5a8   : > { %5451 = vst [vmem:[#allocation1 + $0x1] ss:$4 sm:$0xff] %v9462_v8  ;;  %v4858_v14 = vpop.f32.mrf.mxu0  ;;  %v5535_v8 = vld [vmem:[#allocation2 + $0x58] sm:$0x6]  ;;  %v5544_v1 = vrot.slane %v5536_v35, 2  ;;  %5768 = vmatpush.bf16.msra.mxu0 %v6978_v42 }
 0x5a9   : > { %5453 = vst [vmem:[#allocation1 + $0x2] ss:$4 sm:$0xff] %v9463_v54  ;;  %v9083_v0 = vadd.f32 %v4858_v14, %v9036_v49  ;;  %v5541_v54 = vrot.slane %v5533_v38, 2  ;;  %v5543_v17 = vrot.slane %v5535_v8, 2  ;;  %v6972_v14 = vld [vmem:[%s9299_s5 + $0x8] sm:$0xff] }
 0x5aa   : > { %5455 = vst [vmem:[#allocation1 + $0x3] ss:$4 sm:$0xff] %v9464_v51  ;;  %v5568_v44 = vsel %vm969_vm5, %v5536_v35, %v5544_v1  ;;  %v5570_v15 = vsel %vm973_vm6, %v5536_v35, %v5544_v1  ;;  %5699 = vmatpush.bf16.msrb.mxu2 %v6972_v14  ;;  %v4791_v35 = vadd.f32 %v9061_v5, %v9008_v9 }
 0x5ab   : > { %v5547_v60 = vsel %vm969_vm5, %v5533_v38, %v5541_v54  ;;  %v5549_v49 = vsel %vm973_vm6, %v5533_v38, %v5541_v54  ;;  %v5561_v12 = vsel %vm969_vm5, %v5535_v8, %v5543_v17  ;;  %v5563_v25 = vsel %vm973_vm6, %v5535_v8, %v5543_v17  ;;  %v4891_v33 = vpop.f32.mrf.mxu1  ;;  %v6971_v38 = vld [vmem:[%s9299_s5] sm:$0xff]  ;;  %v6976_v54 = vld [vmem:[%s9299_s5 + $0x28] sm:$0xff] }
 0x5ac   : > { %v6712_v34 = vrot.slane %v5547_v60, 9  ;;  %v6713_v63 = vrot.slane %v5549_v49, 9  ;;  %v6718_v56 = vrot.slane %v5568_v44, 9  ;;  %v6719_v30 = vrot.slane %v5570_v15, 9  ;;  %5733 = vmatpush.bf16.msrb.mxu3 %v6976_v54  ;;  %v6975_v60 = vld [vmem:[%s9299_s5 + $0x20] sm:$0xff]  ;;  %v6973_v49 = vld [vmem:[%s9299_s5 + $0x10] sm:$0xff] }
 0x5ad   : > { %v6716_v13 = vrot.slane %v5561_v12, 9  ;;  %v6717_v28 = vrot.slane %v5563_v25, 9  ;;  %v4896_v6 = vadd.f32 %v4891_v33, %v4765_v62  ;;  %v6977_v15 = vld [vmem:[%s9299_s5 + $0x30] sm:$0xff]  ;;  %v6986_v33 = vld [vmem:[%s9299_s5 + $0x78] sm:$0xff] }
 0x5ae   : > { %v5576_v52 = vsel %vm7627_vm8, %v6712_v34, %v6713_v63  ;;  %v5588_v59 = vsel %vm7627_vm8, %v6718_v56, %v6719_v30  ;;  %5700 = vmatpush.bf16.msrb.mxu2 %v6971_v38  ;;  %5769 = vmatpush.bf16.msra.mxu0 %v6977_v15  ;;  %v6982_v56 = vld [vmem:[%s9299_s5 + $0x58] sm:$0xff] }
 0x5af   : > { %v5584_v19 = vsel %vm7627_vm8, %v6716_v13, %v6717_v28 }
 0x5b0   : > { %5734 = vmatpush.bf16.msrb.mxu3 %v6975_v60  ;;  %v6992_v60 = vld [vmem:[%s9299_s5 + $0xa8] sm:$0xff] }
 0x5b1   : > { %v5456_v40 = vld.sshfl [vmem:[#allocation1] sm:$0xff pattern:$0x73625140] }
 0x5b2   : > { %6709 = vmatmul.msk.bf16.vlgmr.msra.gmra.mxu1 %vm543_vm1, %v5456_v40  ;;  %5481 = vst [vmem:[#allocation1] ss:$4 sm:$0xff] %v9466_v36 }
 0x5b3   : > { %5483 = vst [vmem:[#allocation1 + $0x1] ss:$4 sm:$0xff] %v9467_v16  ;;  %v4893_v29 = vpop.f32.mrf.mxu1 }
 0x5b4   : > { %5485 = vst [vmem:[#allocation1 + $0x2] ss:$4 sm:$0xff] %v9468_v41  ;;  %v4897_v34 = vadd.f32 %v4893_v29, %v9050_v45  ;;  %v6980_v45 = vld [vmem:[%s9299_s5 + $0x48] sm:$0xff] }
 0x5b5   : > { %5487 = vst [vmem:[#allocation1 + $0x3] ss:$4 sm:$0xff] %v9469_v24 }
 0x5bc   : > { %v5488_v51 = vld.sshfl [vmem:[#allocation1] sm:$0xff pattern:$0x73625140]  ;;  %v4917_v18 = vpop.f32.mrf.mxu2 }
 0x5bd   : > { %6710 = vmatmul.msk.bf16.vlgmr.msra.gmra.mxu2 %vm543_vm1, %v5488_v51  ;;  %5507 = vst [vmem:[#allocation1] ss:$4 sm:$0xff] %v5403_v4  ;;  %v6974_v51 = vld [vmem:[%s9299_s5 + $0x18] sm:$0xff]  ;;  %v4922_v1 = vadd.f32 %v4917_v18, %v4791_v35  ;;  %v4861_v18 = vadd.f32 %v9073_v37, %v9022_v53 }
 0x5be   : > { %5509 = vst [vmem:[#allocation1 + $0x1] ss:$4 sm:$0xff] %v5407_v23  ;;  %5671 = vmatpush.bf16.msrb.mxu1 %v6974_v51  ;;  %5838 = vmatpush.bf16.msra.mxu2 %v6982_v56 }
 0x5bf   : > { %5511 = vst [vmem:[#allocation1 + $0x2] ss:$4 sm:$0xff] %v5411_v32 }
 0x5c0   : > { %5513 = vst [vmem:[#allocation1 + $0x3] ss:$4 sm:$0xff] %v5415_v21 }
 0x5c2   : > { %5672 = vmatpush.bf16.msrb.mxu1 %v6973_v49  ;;  %v6988_v49 = vld [vmem:[%s9299_s5 + $0x88] sm:$0xff] }
 0x5c4   : > { %v4919_v26 = vpop.f32.mrf.mxu2 }
 0x5c5   : > { %v4923_v63 = vadd.f32 %v4919_v26, %v9071_v39  ;;  %v6981_v39 = vld [vmem:[%s9299_s5 + $0x50] sm:$0xff] }
 0x5c6   : > { %5803 = vmatpush.bf16.msra.mxu1 %v6980_v45  ;;  %5839 = vmatpush.bf16.msra.mxu2 %v6981_v39  ;;  %v7002_v45 = vld [vmem:[%s9299_s5 + $0xf8] sm:$0xff] }
 0x5c7   : > { %v5514_v46 = vld.sshfl [vmem:[#allocation1] sm:$0xff pattern:$0x73625140]  ;;  %v9105_v10 = vpop.f32.mrf.mxu3 }
 0x5c8   : > { %6711 = vmatmul.msk.bf16.vlgmr.msra.gmra.mxu3 %vm543_vm1, %v5514_v46  ;;  %5590 = vst [vmem:[#allocation1] ss:$4 sm:$0xff] %v5576_v52 }
 0x5c9   : > { %5593 = vst [vmem:[#allocation1 + $0x1] ss:$4 sm:$0xff] %v5580_v31  ;;  %v6984_v31 = vld [vmem:[%s9299_s5 + $0x68] sm:$0xff] }
 0x5ca   : > { %5596 = vst [vmem:[#allocation1 + $0x2] ss:$4 sm:$0xff] %v5584_v19  ;;  %5873 = vmatpush.bf16.msra.mxu3 %v6984_v31 }
 0x5cb   : > { %5599 = vst [vmem:[#allocation1 + $0x3] ss:$4 sm:$0xff] %v5588_v59  ;;  %v4826_v59 = vadd.f32 %v9068_v20, %v9019_v27  ;;  %v6979_v27 = vld [vmem:[%s9299_s5 + $0x40] sm:$0xff] }
 0x5cc   : > { %v9107_v4 = vpop.f32.mrf.mxu0  ;;  %5804 = vmatpush.bf16.msra.mxu1 %v6979_v27 }
 0x5cd   : > { %v4948_v20 = vadd.f32 %v9105_v10, %v4826_v59 }
 0x5cf   : > { %v9109_v23 = vpop.f32.mrf.mxu3 }
 0x5d2   : > { %v5600_v61 = vld.sshfl [vmem:[#allocation1] sm:$0xff pattern:$0x73625140] }
 0x5d3   : > { %6720 = vmatmul.msk.bf16.vlgmr.msrb.gmra.mxu0 %vm543_vm1, %v5600_v61 }
 0x5d4   : > { %v9111_v21 = vpop.f32.mrf.mxu0  ;;  %5908 = vmatpush.bf16.msrb.mxu0 %v6986_v33  ;;  %v7001_v33 = vld [vmem:[%s9299_s5 + $0xf0] sm:$0xff] }
 0x5d7   : > { %v5096_v22 = vpop.f32.mrf.mxu1 }
 0x5d8   : > { %v5101_v9 = vadd.f32 %v5096_v22, %v4896_v6  ;;  %v6983_v22 = vld [vmem:[%s9299_s5 + $0x60] sm:$0xff] }
 0x5d9   : > { %5874 = vmatpush.bf16.msra.mxu3 %v6983_v22 }
 0x5df   : > { %v5098_v55 = vpop.f32.mrf.mxu1 }
 0x5e0   : > { %v5102_v30 = vadd.f32 %v5098_v55, %v4897_v34  ;;  %v6993_v34 = vld [vmem:[%s9299_s5 + $0xb0] sm:$0xff] }
 0x5e8   : > { %v5122_v3 = vpop.f32.mrf.mxu2 }
 0x5e9   : > { %v5127_v57 = vadd.f32 %v5122_v3, %v4922_v1  ;;  %v5066_v3 = vadd.f32 %v9107_v4, %v4861_v18  ;;  %v4949_v4 = vadd.f32 %v9109_v23, %v9080_v50 }
 0x5f0   : > { %v5124_v32 = vpop.f32.mrf.mxu2 }
 0x5f1   : > { %v5128_v13 = vadd.f32 %v5124_v32, %v4923_v63 }
 0x5f3   : > { %v9113_v7 = vpop.f32.mrf.mxu3 }
 0x5f4   : > { %v5153_v37 = vadd.f32 %v9113_v7, %v4948_v20  ;;  %v5067_v7 = vadd.f32 %v9111_v21, %v9083_v0  ;;  %v6990_v0 = vld [vmem:[%s9299_s5 + $0x98] sm:$0xff] }
 0x5f8   : > { %v9115_v40 = vpop.f32.mrf.mxu0 }
 0x5f9   : > { %v5271_v32 = vadd.f32 %v9115_v40, %v5066_v3  ;;  %v7044_v40 = vld [vmem:[%s9298_s4] ss:$0 sm:$0xff] }
 0x5fb   : > { %v9117_v16 = vpop.f32.mrf.mxu3 }
 0x5fc   : > { %v5154_v62 = vadd.f32 %v9117_v16, %v4949_v4  ;;  %v6989_v16 = vld [vmem:[%s9299_s5 + $0x90] sm:$0xff] }
 0x600   : > { %v9122_v41 = vpop.f32.mrf.mxu0 }
 0x601   : > { %v5272_v35 = vadd.f32 %v9122_v41, %v5067_v7 }
 0x603   : > { %v5301_v48 = vpop.f32.mrf.mxu1 }
 0x604   : > { %v5306_v2 = vadd.f32 %v5301_v48, %v5101_v9  ;;  %v6985_v48 = vld [vmem:[%s9299_s5 + $0x70] sm:$0xff] }
 0x605   : > { %5909 = vmatpush.bf16.msrb.mxu0 %v6985_v48 }
 0x60b   : > { %v5303_v47 = vpop.f32.mrf.mxu1 }
 0x60c   : > { %v5307_v52 = vadd.f32 %v5303_v47, %v5102_v30  ;;  %v6997_v30 = vld [vmem:[%s9299_s5 + $0xd0] sm:$0xff] }
 0x614   : > { %v5327_v36 = vpop.f32.mrf.mxu2 }
 0x615   : > { %v5332_v58 = vadd.f32 %v5327_v36, %v5127_v57 }
 0x61c   : > { %v5329_v24 = vpop.f32.mrf.mxu2 }
 0x61d   : > { %v5333_v46 = vadd.f32 %v5329_v24, %v5128_v13 }
 0x61f   : > { %v5353_v8 = vpop.f32.mrf.mxu3 }
 0x620   : > { %v5358_v36 = vadd.f32 %v5353_v8, %v5153_v37 }
 0x624   : > { %v5439_v5 = vpop.f32.mrf.mxu0 }
 0x625   : > { %v5444_v47 = vadd.f32 %v5439_v5, %v5271_v32 }
 0x627   : > { %v5355_v11 = vpop.f32.mrf.mxu3 }
 0x628   : > { %v5359_v51 = vadd.f32 %v5355_v11, %v5154_v62 }
 0x62c   : > { %v5441_v19 = vpop.f32.mrf.mxu0 }
 0x62d   : > { %v5445_v6 = vadd.f32 %v5441_v19, %v5272_v35  ;;  %v6999_v19 = vld [vmem:[%s9299_s5 + $0xe0] sm:$0xff] }
 0x62f   : > { %v5474_v17 = vpop.f32.mrf.mxu1 }
 0x630   : > { %v5479_v12 = vadd.f32 %v5474_v17, %v5306_v2 }
 0x637   : > { %v5476_v28 = vpop.f32.mrf.mxu1 }
 0x638   : > { %v5480_v29 = vadd.f32 %v5476_v28, %v5307_v52  ;;  %v7000_v28 = vld [vmem:[%s9299_s5 + $0xe8] sm:$0xff] }
 0x639   : > { %v6996_v52 = vld [vmem:[%s9299_s5 + $0xc8] sm:$0xff] }
 0x640   : > { %v5500_v44 = vpop.f32.mrf.mxu2 }
 0x641   : > { %v5505_v25 = vadd.f32 %v5500_v44, %v5332_v58  ;;  %v6994_v44 = vld [vmem:[%s9299_s5 + $0xb8] sm:$0xff] }
 0x643   : > { %v5619_v43 = vmax.f32 %v5479_v12, %v5505_v25  ;;  %v6991_v12 = vld [vmem:[%s9299_s5 + $0xa0] sm:$0xff] }
 0x644   : > { %v6987_v25 = vld [vmem:[%s9299_s5 + $0x80] sm:$0xff] }
 0x648   : > { %v5502_v61 = vpop.f32.mrf.mxu2 }
 0x649   : > { %v5506_v26 = vadd.f32 %v5502_v61, %v5333_v46  ;;  %v6995_v61 = vld [vmem:[%s9299_s5 + $0xc0] sm:$0xff] }
 0x64b   : > { %v5620_v55 = vmax.f32 %v5480_v29, %v5506_v26  ;;  %v5526_v53 = vpop.f32.mrf.mxu3 }
 0x64c   : > { %v5531_v24 = vadd.f32 %v5526_v53, %v5358_v36 }
 0x650   : > { %v5612_v14 = vpop.f32.mrf.mxu0 }
 0x651   : > { %v5617_v10 = vadd.f32 %v5612_v14, %v5444_v47 }
 0x653   : > { %v5621_v38 = vmax.f32 %v5531_v24, %v5617_v10  ;;  %v5528_v54 = vpop.f32.mrf.mxu3 }
 0x654   : > { %v5532_v50 = vadd.f32 %v5528_v54, %v5359_v51 }
 0x655   : > { %v5623_v8 = vmax.f32 %v5619_v43, %v5621_v38  ;;  %v6998_v43 = vld [vmem:[%s9299_s5 + $0xd8] sm:$0xff] }
 0x657   : > { %v5629_v1 = vadd.f32 %v7044_v40, %v5623_v8 }
 0x658   : > { %v5614_v17 = vpop.f32.mrf.mxu0 }
 0x659   : > { %v5631_v42 = vmax.f32 %v5629_v1, 0.0  ;;  %v5618_v23 = vadd.f32 %v5614_v17, %v5445_v6 }
 0x65b   : > { %v5633_v21 = vpack.c.bf16 %v5631_v42, %v5631_v42  ;;  %v5622_v9 = vmax.f32 %v5532_v50, %v5618_v23 }
 0x65d   : > { %v5645_v57 = vunpack.c.l.b16 %v5633_v21  ;;  %v5624_v5 = vmax.f32 %v5620_v55, %v5622_v9  ;;  %6742 = vmatmul.msk.bf16.vlgmr.msrb.gmra.mxu2 %vm405_vm0, %v5633_v21 }
 0x65e   : > { %5982 = vmatpush.bf16.msrb.mxu2 %v6990_v0 }
 0x65f   : > { %v5646_v41 = vpack.c.b16 %v5645_v57, %v5645_v57  ;;  %v5630_v63 = vadd.f32 %v7044_v40, %v5624_v5 }
 0x661   : > { %v5648_v2 = vshrl.u32 %v5646_v41, 16  ;;  %v5711_v58 = vrot.slane %v5646_v41, 1  ;;  %v5632_v11 = vmax.f32 %v5630_v63, 0.0  ;;  %v5781_v46 = vrot.slane %v5646_v41, 2 }
 0x662   : > { %5983 = vmatpush.bf16.msrb.mxu2 %v6989_v16  ;;  %v5851_v31 = vrot.slane %v5646_v41, 3 }
 0x663   : > { %6733 = vmatmul.msk.bf16.vlgmr.msrb.gmra.mxu1 %vm405_vm0, %v5648_v2  ;;  %6755 = vmatmul.msk.bf16.vlgmr.msrb.gmra.mxu3 %vm405_vm0, %v5711_v58  ;;  %v5746_v15 = vrot.slane %v5648_v2, 1  ;;  %v5816_v56 = vrot.slane %v5648_v2, 2  ;;  %v5634_v13 = vpack.c.bf16 %v5632_v11, %v5632_v11  ;;  %v5886_v59 = vrot.slane %v5648_v2, 3 }
 0x664   : > { %6017 = vmatpush.bf16.msrb.mxu3 %v6992_v60  ;;  %5942 = vmatpush.bf16.msrb.mxu1 %v6988_v49 }
 0x665   : > { %6768 = vmatmul.msk.bf16.vlgmr.msra.gmra.mxu0 %vm405_vm0, %v5746_v15  ;;  %v5956_v39 = vunpack.c.l.b16 %v5634_v13 }
 0x666   : > { %6052 = vmatpush.bf16.msra.mxu0 %v6994_v44 }
 0x667   : > { %v5957_v18 = vpack.c.b16 %v5956_v39, %v5956_v39 }
 0x668   : > { %6018 = vmatpush.bf16.msrb.mxu3 %v6991_v12  ;;  %5943 = vmatpush.bf16.msrb.mxu1 %v6987_v25 }
 0x669   : > { %v5959_v29 = vshrl.u32 %v5957_v18, 16  ;;  %v5995_v26 = vrot.slane %v5957_v18, 1  ;;  %v6065_v20 = vrot.slane %v5957_v18, 2  ;;  %v6135_v3 = vrot.slane %v5957_v18, 3 }
 0x66a   : > { %6053 = vmatpush.bf16.msra.mxu0 %v6993_v34 }
 0x66b   : > { %v6030_v22 = vrot.slane %v5959_v29, 1  ;;  %v6100_v27 = vrot.slane %v5959_v29, 2  ;;  %v6170_v55 = vrot.slane %v5959_v29, 3 }
 0x66d   : > { %6794 = vmatmul.msk.bf16.vlgmr.msra.gmra.mxu2 %vm405_vm0, %v5816_v56 }
 0x66e   : > { %6122 = vmatpush.bf16.msra.mxu2 %v6998_v43 }
 0x672   : > { %6123 = vmatpush.bf16.msra.mxu2 %v6997_v30  ;;  %v6200_v30 = vld [vmem:[%s9300_s6] sm:$0x1] }
 0x673   : > { %6781 = vmatmul.msk.bf16.vlgmr.msra.gmra.mxu1 %vm405_vm0, %v5781_v46  ;;  %6807 = vmatmul.msk.bf16.vlgmr.msra.gmra.mxu3 %vm405_vm0, %v5851_v31 }
 0x674   : > { %6157 = vmatpush.bf16.msra.mxu3 %v7000_v28  ;;  %6087 = vmatpush.bf16.msra.mxu1 %v6996_v52 }
 0x675   : > { %6820 = vmatmul.msk.bf16.vlgmr.msrb.gmra.mxu0 %vm405_vm0, %v5886_v59 }
 0x676   : > { %6192 = vmatpush.bf16.msrb.mxu0 %v7002_v45 }
 0x678   : > { %6158 = vmatpush.bf16.msra.mxu3 %v6999_v19  ;;  %6088 = vmatpush.bf16.msra.mxu1 %v6995_v61 }
 0x67a   : > { %6193 = vmatpush.bf16.msrb.mxu0 %v7001_v33 }
 0x67d   : > { %6846 = vmatmul.msk.bf16.vlgmr.msrb.gmra.mxu2 %vm405_vm0, %v5959_v29 }
 0x683   : > { %6833 = vmatmul.msk.bf16.vlgmr.msrb.gmra.mxu1 %vm405_vm0, %v5634_v13  ;;  %6859 = vmatmul.msk.bf16.vlgmr.msrb.gmra.mxu3 %vm405_vm0, %v5995_v26 }
 0x685   : > { %6872 = vmatmul.msk.bf16.vlgmr.msra.gmra.mxu0 %vm405_vm0, %v6030_v22 }
 0x68d   : > { %6898 = vmatmul.msk.bf16.vlgmr.msra.gmra.mxu2 %vm405_vm0, %v6100_v27 }
 0x693   : > { %6885 = vmatmul.msk.bf16.vlgmr.msra.gmra.mxu1 %vm405_vm0, %v6065_v20  ;;  %6911 = vmatmul.msk.bf16.vlgmr.msra.gmra.mxu3 %vm405_vm0, %v6135_v3 }
 0x695   : > { %6924 = vmatmul.msk.bf16.vlgmr.msrb.gmra.mxu0 %vm405_vm0, %v6170_v55  ;;  %vm6202_vm0 = vcmask 73728  }
 0x6e0   : > { %v5674_v53 = vpop.f32.mrf.mxu1  ;;  %v5702_v37 = vpop.f32.mrf.mxu2 }
 0x6e1   : > { %v5703_v7 = vadd.f32 %v5702_v37, %v5674_v53 }
 0x6e2   : > { %v5771_v32 = vpop.f32.mrf.mxu0 }
 0x6e6   : > { %v5736_v48 = vpop.f32.mrf.mxu3 }
 0x6e7   : > { %v5740_v40 = vadd.f32 %v5736_v48, %v5703_v7 }
 0x6e8   : > { %v5676_v36 = vpop.f32.mrf.mxu1  ;;  %v5704_v47 = vpop.f32.mrf.mxu2 }
 0x6e9   : > { %v5775_v35 = vadd.f32 %v5771_v32, %v5740_v40 }
 0x6ea   : > { %v5773_v14 = vpop.f32.mrf.mxu0 }
 0x6ee   : > { %v5738_v24 = vpop.f32.mrf.mxu3 }
 0x6f0   : > { %v5806_v10 = vpop.f32.mrf.mxu1  ;;  %v5841_v4 = vpop.f32.mrf.mxu2 }
 0x6f1   : > { %v5810_v51 = vadd.f32 %v5806_v10, %v5775_v35 }
 0x6f2   : > { %v5911_v38 = vpop.f32.mrf.mxu0 }
 0x6f3   : > { %v5845_v1 = vadd.f32 %v5841_v4, %v5810_v51 }
 0x6f6   : > { %v5876_v62 = vpop.f32.mrf.mxu3 }
 0x6f7   : > { %v5880_v42 = vadd.f32 %v5876_v62, %v5845_v1 }
 0x6f8   : > { %v5808_v8 = vpop.f32.mrf.mxu1  ;;  %v5843_v54 = vpop.f32.mrf.mxu2 }
 0x6f9   : > { %v5915_v21 = vadd.f32 %v5911_v38, %v5880_v42 }
 0x6fa   : > { %v5913_v6 = vpop.f32.mrf.mxu0 }
 0x6fe   : > { %v5878_v17 = vpop.f32.mrf.mxu3 }
 0x700   : > { %v5945_v50 = vpop.f32.mrf.mxu1  ;;  %v5985_v23 = vpop.f32.mrf.mxu2 }
 0x701   : > { %v5949_v9 = vadd.f32 %v5945_v50, %v5915_v21 }
 0x702   : > { %v6055_v0 = vpop.f32.mrf.mxu0 }
 0x703   : > { %v5989_v41 = vadd.f32 %v5985_v23, %v5949_v9 }
 0x706   : > { %v6020_v57 = vpop.f32.mrf.mxu3 }
 0x707   : > { %v6024_v49 = vadd.f32 %v6020_v57, %v5989_v41 }
 0x708   : > { %v5947_v5 = vpop.f32.mrf.mxu1  ;;  %v5987_v16 = vpop.f32.mrf.mxu2 }
 0x709   : > { %v6059_v58 = vadd.f32 %v6055_v0, %v6024_v49 }
 0x70a   : > { %v6057_v60 = vpop.f32.mrf.mxu0 }
 0x70e   : > { %v6022_v2 = vpop.f32.mrf.mxu3 }
 0x710   : > { %v6090_v44 = vpop.f32.mrf.mxu1  ;;  %v6125_v15 = vpop.f32.mrf.mxu2 }
 0x711   : > { %v6094_v12 = vadd.f32 %v6090_v44, %v6059_v58 }
 0x712   : > { %v6195_v25 = vpop.f32.mrf.mxu0 }
 0x713   : > { %v6129_v34 = vadd.f32 %v6125_v15, %v6094_v12 }
 0x716   : > { %v6160_v63 = vpop.f32.mrf.mxu3 }
 0x717   : > { %v6164_v43 = vadd.f32 %v6160_v63, %v6129_v34 }
 0x718   : > { %v6092_v11 = vpop.f32.mrf.mxu1  ;;  %v6127_v56 = vpop.f32.mrf.mxu2 }
 0x719   : > { %v6199_v13 = vadd.f32 %v6195_v25, %v6164_v43 }
 0x71a   : > { %v6197_v28 = vpop.f32.mrf.mxu0 }
 0x71b   : > { %v6201_v52 = vadd.f32 %v6200_v30, %v6199_v13 }
 0x71d   : > { %v6203_v46 = vsel %vm6202_vm0, %v6201_v52, -inf }
 0x71e   : > { %v6162_v31 = vpop.f32.mrf.mxu3  ;;  %6204 = vmax.xlane.f32.xlu0 %v6203_v46 }
 0x791   : > { %v6205_v45 = vpop.xlane.xlu0 %6204 }
 0x792   : > { %v6206_v39 = vsub.f32 %v6201_v52, %v6205_v45 }
 0x794   : > { %v6207_v59 = vmul.f32 1.442695, %v6206_v39 }
 0x796   : > { %7045 = vpow2.f32 %v6207_v59 }
 0x79c   : > { %v7046_v19 = vpop.eup %7045 }
 0x79d   : > { %v6209_v61 = vsel %vm6202_vm0, %v7046_v19, 0.0 }
 0x79e   : > { %6210 = vadd.xlane.f32.xlu0 %v6209_v61 }
 0x811   : > { %v6211_v33 = vpop.xlane.xlu0 %6210 }
 0x812   : > { %7047 = vrcp.f32 %v6211_v33 }
 0x818   : > { %v7048_v18 = vpop.eup %7047 }
 0x819   : > { %v6213_v29 = vmul.f32 %v7048_v18, %v7046_v19 }
 0x81b   : > { %6214 = vst.msk [vmem:[%s270_s20] sm:$0x1] %vm6202_vm0, %v6213_v29 }
 0x81c   : > { %7076 = shalt.err (!%p7073_p3)
}
 0x81d   : > { %7003 = dma.vmem_to_hbm [thread:$0]  (%p7192_p5), %s6227_s21, 16, %s6229_s22, %s6216_s23  }
 0x81e PF: > { %p7009_p4 = scmp.ge.s32.totalorder %s7111_s27, 2  ;;  %s6240_s16 = sand.u32 1, %s7099_s24  }
 0x81f   : > { %s6241_s17 = scalar_lea.sflag [#allocation4], %s6240_s16 }
 0x820   : > { %p7006_p7 = pnand %p7009_p4, %p7196_p6 }
 0x822   : > { %p7007_p8 = pneg %p7006_p7 }
 0x824   : > { %7094 = dma.done.wait (%p7007_p8), %s6241_s17, 16  }
 0x825   : > { %7096 = vsyncadd (%p7007_p8), %s6241_s17, 4294967280  ;;  %p17_p9 = scmp.ge.s32.totalorder %s7179_s30, 4   ;;  %s9470_s24 = smov %s7103_s25 }
 0x826   : > { %s9471_s25 = smov %s7107_s26  ;;  %s9472_s26 = smov %s7190_s10 }
 0x827   : > { %s9473_s27 = smov %s7179_s30  ;;  %19 = sbr.rel (!%p17_p9) target bundleno = 3 (0x3), region = 433 }
 0x82c   :  { %6246 = vsyncpa [#allocation4], 1 }
 0x82d   :  { %6248 = vsyncpa [#allocation4 + $0x1], 1 }

</bundles_post_ra>
